<compile_context>
chip_gen: v7x
topology: tpu7x:2x2x1
jax: 0.10.0
libtpu: 0.0.40
codegen_flags: <defaults>
</compile_context>

<pallas_src>
import jax
import jax.numpy as jnp
from jax.experimental import pallas as pl
from jax.experimental.pallas import tpu as pltpu

LANE = 128           # padded hidden width (lane dimension)
MAX_ROW_TILE = 2048  # upper bound on batch rows per grid step

IN_DIM = 2
HIDDEN = 30
OUT_DIM = 2
LAYER_DIMS = [(IN_DIM, HIDDEN), (HIDDEN, HIDDEN), (HIDDEN, HIDDEN),
              (HIDDEN, HIDDEN), (HIDDEN, HIDDEN), (HIDDEN, OUT_DIM)]
N_LAYERS = len(LAYER_DIMS)  # 6


def _mlp_kernel(x_ref, w1_ref, w_ref, b_ref, o_ref):
    """Full 6-layer MLP forward for one tile of rows, entirely in VMEM.

    x_ref : (row_tile, IN_DIM)   real 2-feature input (no lane padding in HBM)
    w1_ref: (IN_DIM, LANE)       layer-1 weights, applied via VPU broadcasts
    w_ref : (5, LANE, LANE)      layers 2..6, zero-padded to 128 lanes
    b_ref : (6, LANE)            all biases, zero-padded
    o_ref : (row_tile, OUT_DIM)  only the 2 real output columns are written
    """
    x = x_ref[...]                                  # (row_tile, 2) f32
    # Layer 1: contraction over only 2 features -> cheap broadcast mul-adds.
    h = (x[:, 0:1] * w1_ref[0:1, :]
         + x[:, 1:2] * w1_ref[1:2, :]
         + b_ref[0:1, :])
    h = jnp.tanh(h)                                 # (row_tile, LANE)

    # Hidden layers 2..5 (tanh activation), unrolled at trace time.
    for l in range(4):
        h = jnp.tanh(
            jnp.dot(h, w_ref[l], preferred_element_type=jnp.float32)
            + b_ref[l + 1:l + 2, :])

    # Output layer 6 (linear).
    h = jnp.dot(h, w_ref[4], preferred_element_type=jnp.float32) + b_ref[5:6, :]
    o_ref[...] = h[:, :OUT_DIM]


def _pack_params(params):
    """PyTorch-shaped (in,out)/(out,) params -> padded kernel operands."""
    (w1, b1) = params[0]
    w1_p = jnp.zeros((IN_DIM, LANE), jnp.float32).at[:, :HIDDEN].set(
        w1.astype(jnp.float32))
    b_stack = [jnp.zeros((LANE,), jnp.float32).at[:b1.shape[0]].set(
        b1.astype(jnp.float32))]
    w_stack = []
    for (w, b) in params[1:]:
        wp = jnp.zeros((LANE, LANE), jnp.float32).at[
            :w.shape[0], :w.shape[1]].set(w.astype(jnp.float32))
        bp = jnp.zeros((LANE,), jnp.float32).at[:b.shape[0]].set(
            b.astype(jnp.float32))
        w_stack.append(wp)
        b_stack.append(bp)
    return w1_p, jnp.stack(w_stack), jnp.stack(b_stack)


@jax.jit
def multiclass_forward(x, params):
    """x: (N, 2) float32. params: 6 (w, b) pairs stored as (in, out)/(out,).

    Returns (N, 2) float32, same semantics as Multiclass.forward.
    """
    n = x.shape[0]
    # Adaptive tiling: minimal row padding while keeping <= MAX_ROW_TILE rows
    # per step (and >1 step when N is large, for megacore sharding).
    steps = max(1, -(-n // MAX_ROW_TILE))           # cdiv(n, MAX_ROW_TILE)
    row_tile = ((-(-n // steps) + 7) // 8) * 8      # round_up(cdiv(n,steps), 8)
    n_pad = steps * row_tile

    x_p = jnp.zeros((n_pad, IN_DIM), jnp.float32).at[:n, :].set(
        x.astype(jnp.float32))
    w1_p, w_stack, b_stack = _pack_params(params)

    out = pl.pallas_call(
        _mlp_kernel,
        out_shape=jax.ShapeDtypeStruct((n_pad, OUT_DIM), jnp.float32),
        grid_spec=pltpu.PrefetchScalarGridSpec(
            num_scalar_prefetch=0,
            grid=(steps,),
            in_specs=[
                pl.BlockSpec((row_tile, IN_DIM), lambda i: (i, 0)),        # x
                pl.BlockSpec((IN_DIM, LANE), lambda i: (0, 0)),            # W1
                pl.BlockSpec((N_LAYERS - 1, LANE, LANE),
                             lambda i: (0, 0, 0)),                         # W2..W6
                pl.BlockSpec((N_LAYERS, LANE), lambda i: (0, 0)),          # b1..b6
            ],
            out_specs=pl.BlockSpec((row_tile, OUT_DIM), lambda i: (i, 0)),
        ),
        compiler_params=pltpu.CompilerParams(
            dimension_semantics=("parallel",)),
    )(x_p, w1_p, w_stack, b_stack)

    return out[:n, :]


def init_params(key):
    """Deterministic init mimicking nn.Linear default U(-1/sqrt(fan_in), +)."""
    params = []
    for (fan_in, fan_out) in LAYER_DIMS:
        key, kw, kb = jax.random.split(key, 3)
        bound = 1.0 / jnp.sqrt(float(fan_in))
        # stored as (in, out) so the kernel does x @ W  (== torch x @ W.T)
        w = jax.random.uniform(kw, (fan_in, fan_out), jnp.float32, -bound, bound)
        b = jax.random.uniform(kb, (fan_out,), jnp.float32, -bound, bound)
        params.append((w, b))
    return params


def reference_forward(x, params):
    h = x.astype(jnp.float32)
    for i, (w, b) in enumerate(params):
        h = h @ w + b
        if i < len(params) - 1:
            h = jnp.tanh(h)
    return h


if __name__ == "__main__":
    key = jax.random.PRNGKey(0)
    kp, kx = jax.random.split(key)
    params = init_params(kp)

    # Mimics the driver script (~2000 interior + boundary test points);
    # adaptive tiling gives a 2-step grid of 1032 rows each (only 12 pad rows).
    N = 2052
    x = jax.random.uniform(kx, (N, IN_DIM), jnp.float32)

    y = multiclass_forward(x, params)
    jax.block_until_ready(y)

    y_ref = reference_forward(x, params)
    assert y.shape == (N, OUT_DIM)
    assert jnp.allclose(y, y_ref, atol=1e-5, rtol=1e-5), float(
        jnp.max(jnp.abs(y - y_ref)))

    print("KERNEL_OK")
</pallas_src>

<mosaic_0001>
module attributes {stable_mosaic.version = 11 : i64} {
  func.func @_mlp_kernel(%arg0: i32, %arg1: memref<1032x2xf32, #tpu.memory_space<vmem>>, %arg2: memref<2x128xf32, #tpu.memory_space<vmem>>, %arg3: memref<5x128x128xf32, #tpu.memory_space<vmem>>, %arg4: memref<6x128xf32, #tpu.memory_space<vmem>>, %arg5: memref<1032x2xf32, #tpu.memory_space<vmem>>) attributes {dimension_semantics = [#tpu.dimension_semantics<parallel>], iteration_bounds = array<i64: 2>, scalar_prefetch = 0 : i64, scratch_operands = 0 : i64, tpu.core_type = #tpu.core_type<tc>, window_params = [{transform_indices = @transform_0, window_bounds = array<i64: 1032, 2>}, {pipeline_mode = #tpu.pipeline_mode<synchronous>, transform_indices = @transform_1, window_bounds = array<i64: 2, 128>}, {pipeline_mode = #tpu.pipeline_mode<synchronous>, transform_indices = @transform_2, window_bounds = array<i64: 5, 128, 128>}, {pipeline_mode = #tpu.pipeline_mode<synchronous>, transform_indices = @transform_3, window_bounds = array<i64: 6, 128>}, {transform_indices = @transform_4, window_bounds = array<i64: 1032, 2>}]} {
    %c0 = arith.constant 0 : index
    %c0_0 = arith.constant 0 : index
    %0 = vector.load %arg1[%c0, %c0_0] : memref<1032x2xf32, #tpu.memory_space<vmem>>, vector<1032x2xf32>
    %1 = vector.extract_strided_slice %0 {offsets = [0, 0], sizes = [1032, 1], strides = [1, 1]} : vector<1032x2xf32> to vector<1032x1xf32>
    %c0_1 = arith.constant 0 : index
    %c0_2 = arith.constant 0 : index
    %2 = vector.load %arg2[%c0_1, %c0_2] : memref<2x128xf32, #tpu.memory_space<vmem>>, vector<1x128xf32>
    %3 = vector.broadcast %1 : vector<1032x1xf32> to vector<1032x128xf32>
    %4 = vector.broadcast %2 : vector<1x128xf32> to vector<1032x128xf32>
    %5 = arith.mulf %3, %4 : vector<1032x128xf32>
    %6 = vector.extract_strided_slice %0 {offsets = [0, 1], sizes = [1032, 1], strides = [1, 1]} : vector<1032x2xf32> to vector<1032x1xf32>
    %c1 = arith.constant 1 : index
    %c0_3 = arith.constant 0 : index
    %7 = vector.load %arg2[%c1, %c0_3] : memref<2x128xf32, #tpu.memory_space<vmem>>, vector<1x128xf32>
    %8 = vector.broadcast %6 : vector<1032x1xf32> to vector<1032x128xf32>
    %9 = vector.broadcast %7 : vector<1x128xf32> to vector<1032x128xf32>
    %10 = arith.mulf %8, %9 : vector<1032x128xf32>
    %11 = arith.addf %5, %10 : vector<1032x128xf32>
    %c0_4 = arith.constant 0 : index
    %c0_5 = arith.constant 0 : index
    %12 = vector.load %arg4[%c0_4, %c0_5] : memref<6x128xf32, #tpu.memory_space<vmem>>, vector<1x128xf32>
    %13 = vector.broadcast %12 : vector<1x128xf32> to vector<1032x128xf32>
    %14 = arith.addf %11, %13 : vector<1032x128xf32>
    %15 = math.tanh %14 : vector<1032x128xf32>
    %c0_6 = arith.constant 0 : index
    %c0_7 = arith.constant 0 : index
    %c0_8 = arith.constant 0 : index
    %16 = vector.load %arg3[%c0_6, %c0_7, %c0_8] : memref<5x128x128xf32, #tpu.memory_space<vmem>>, vector<1x128x128xf32>
    %17 = vector.shape_cast %16 : vector<1x128x128xf32> to vector<128x128xf32>
    %cst = arith.constant dense<0.000000e+00> : vector<1032x128xf32>
    %18 = tpu.matmul %15, %17, %cst {dimension_numbers = #tpu.dot_dimension_numbers<[1], [0], [0], [1], [0, 0, 1, 1], [], []>} : vector<1032x128xf32>, vector<128x128xf32>, vector<1032x128xf32> -> vector<1032x128xf32>
    %c1_9 = arith.constant 1 : index
    %c0_10 = arith.constant 0 : index
    %19 = vector.load %arg4[%c1_9, %c0_10] : memref<6x128xf32, #tpu.memory_space<vmem>>, vector<1x128xf32>
    %20 = vector.broadcast %19 : vector<1x128xf32> to vector<1032x128xf32>
    %21 = arith.addf %18, %20 : vector<1032x128xf32>
    %22 = math.tanh %21 : vector<1032x128xf32>
    %c1_11 = arith.constant 1 : index
    %c0_12 = arith.constant 0 : index
    %c0_13 = arith.constant 0 : index
    %23 = vector.load %arg3[%c1_11, %c0_12, %c0_13] : memref<5x128x128xf32, #tpu.memory_space<vmem>>, vector<1x128x128xf32>
    %24 = vector.shape_cast %23 : vector<1x128x128xf32> to vector<128x128xf32>
    %cst_14 = arith.constant dense<0.000000e+00> : vector<1032x128xf32>
    %25 = tpu.matmul %22, %24, %cst_14 {dimension_numbers = #tpu.dot_dimension_numbers<[1], [0], [0], [1], [0, 0, 1, 1], [], []>} : vector<1032x128xf32>, vector<128x128xf32>, vector<1032x128xf32> -> vector<1032x128xf32>
    %c2 = arith.constant 2 : index
    %c0_15 = arith.constant 0 : index
    %26 = vector.load %arg4[%c2, %c0_15] : memref<6x128xf32, #tpu.memory_space<vmem>>, vector<1x128xf32>
    %27 = vector.broadcast %26 : vector<1x128xf32> to vector<1032x128xf32>
    %28 = arith.addf %25, %27 : vector<1032x128xf32>
    %29 = math.tanh %28 : vector<1032x128xf32>
    %c2_16 = arith.constant 2 : index
    %c0_17 = arith.constant 0 : index
    %c0_18 = arith.constant 0 : index
    %30 = vector.load %arg3[%c2_16, %c0_17, %c0_18] : memref<5x128x128xf32, #tpu.memory_space<vmem>>, vector<1x128x128xf32>
    %31 = vector.shape_cast %30 : vector<1x128x128xf32> to vector<128x128xf32>
    %cst_19 = arith.constant dense<0.000000e+00> : vector<1032x128xf32>
    %32 = tpu.matmul %29, %31, %cst_19 {dimension_numbers = #tpu.dot_dimension_numbers<[1], [0], [0], [1], [0, 0, 1, 1], [], []>} : vector<1032x128xf32>, vector<128x128xf32>, vector<1032x128xf32> -> vector<1032x128xf32>
    %c3 = arith.constant 3 : index
    %c0_20 = arith.constant 0 : index
    %33 = vector.load %arg4[%c3, %c0_20] : memref<6x128xf32, #tpu.memory_space<vmem>>, vector<1x128xf32>
    %34 = vector.broadcast %33 : vector<1x128xf32> to vector<1032x128xf32>
    %35 = arith.addf %32, %34 : vector<1032x128xf32>
    %36 = math.tanh %35 : vector<1032x128xf32>
    %c3_21 = arith.constant 3 : index
    %c0_22 = arith.constant 0 : index
    %c0_23 = arith.constant 0 : index
    %37 = vector.load %arg3[%c3_21, %c0_22, %c0_23] : memref<5x128x128xf32, #tpu.memory_space<vmem>>, vector<1x128x128xf32>
    %38 = vector.shape_cast %37 : vector<1x128x128xf32> to vector<128x128xf32>
    %cst_24 = arith.constant dense<0.000000e+00> : vector<1032x128xf32>
    %39 = tpu.matmul %36, %38, %cst_24 {dimension_numbers = #tpu.dot_dimension_numbers<[1], [0], [0], [1], [0, 0, 1, 1], [], []>} : vector<1032x128xf32>, vector<128x128xf32>, vector<1032x128xf32> -> vector<1032x128xf32>
    %c4 = arith.constant 4 : index
    %c0_25 = arith.constant 0 : index
    %40 = vector.load %arg4[%c4, %c0_25] : memref<6x128xf32, #tpu.memory_space<vmem>>, vector<1x128xf32>
    %41 = vector.broadcast %40 : vector<1x128xf32> to vector<1032x128xf32>
    %42 = arith.addf %39, %41 : vector<1032x128xf32>
    %43 = math.tanh %42 : vector<1032x128xf32>
    %c4_26 = arith.constant 4 : index
    %c0_27 = arith.constant 0 : index
    %c0_28 = arith.constant 0 : index
    %44 = vector.load %arg3[%c4_26, %c0_27, %c0_28] : memref<5x128x128xf32, #tpu.memory_space<vmem>>, vector<1x128x128xf32>
    %45 = vector.shape_cast %44 : vector<1x128x128xf32> to vector<128x128xf32>
    %cst_29 = arith.constant dense<0.000000e+00> : vector<1032x128xf32>
    %46 = tpu.matmul %43, %45, %cst_29 {dimension_numbers = #tpu.dot_dimension_numbers<[1], [0], [0], [1], [0, 0, 1, 1], [], []>} : vector<1032x128xf32>, vector<128x128xf32>, vector<1032x128xf32> -> vector<1032x128xf32>
    %c5 = arith.constant 5 : index
    %c0_30 = arith.constant 0 : index
    %47 = vector.load %arg4[%c5, %c0_30] : memref<6x128xf32, #tpu.memory_space<vmem>>, vector<1x128xf32>
    %48 = vector.broadcast %47 : vector<1x128xf32> to vector<1032x128xf32>
    %49 = arith.addf %46, %48 : vector<1032x128xf32>
    %50 = vector.extract_strided_slice %49 {offsets = [0, 0], sizes = [1032, 2], strides = [1, 1]} : vector<1032x128xf32> to vector<1032x2xf32>
    %c0_31 = arith.constant 0 : index
    %c0_32 = arith.constant 0 : index
    %51 = vector.load %arg5[%c0_31, %c0_32] : memref<1032x2xf32, #tpu.memory_space<vmem>>, vector<1032x2xf32>
    tpu.vector_store %arg5[%c0_31, %c0_32], %50 {strides = array<i32>} : memref<1032x2xf32, #tpu.memory_space<vmem>>, vector<1032x2xf32>,
    return
  }
  func.func @transform_0(%arg0: i32) -> (i32, i32) {
    %c0_i32 = arith.constant 0 : i32
    %c0_i32_0 = arith.constant 0 : i32
    return %arg0, %c0_i32 : i32, i32
  }
  func.func @transform_1(%arg0: i32) -> (i32, i32) {
    %c0_i32 = arith.constant 0 : i32
    %c0_i32_0 = arith.constant 0 : i32
    %c0_i32_1 = arith.constant 0 : i32
    return %c0_i32, %c0_i32_0 : i32, i32
  }
  func.func @transform_2(%arg0: i32) -> (i32, i32, i32) {
    %c0_i32 = arith.constant 0 : i32
    %c0_i32_0 = arith.constant 0 : i32
    %c0_i32_1 = arith.constant 0 : i32
    %c0_i32_2 = arith.constant 0 : i32
    return %c0_i32, %c0_i32_0, %c0_i32_1 : i32, i32, i32
  }
  func.func @transform_3(%arg0: i32) -> (i32, i32) {
    %c0_i32 = arith.constant 0 : i32
    %c0_i32_0 = arith.constant 0 : i32
    %c0_i32_1 = arith.constant 0 : i32
    return %c0_i32, %c0_i32_0 : i32, i32
  }
  func.func @transform_4(%arg0: i32) -> (i32, i32) {
    %c0_i32 = arith.constant 0 : i32
    %c0_i32_0 = arith.constant 0 : i32
    return %arg0, %c0_i32 : i32, i32
  }
}

</mosaic_0001>

<bundles_post_ra>
// kernel: multiclass_forward.1
= control target key start
LH: loop header
LB: loop body
LE: loop exit
PB: predicated region body
PF: predicated region fallthrough
CT: control target
= control target key end

     0   :  { %s10917_s15 = smov 0   ;;  %s14812_s0 = inlined_call_operand.vmem [shape: f32[2064,2], index: 0, kind: input, shape index: {}]   ;;  %s14813_s1 = inlined_call_operand.vmem [shape: f32[2,128], index: 1, kind: input, shape index: {}]   ;;  %s14814_s2 = inlined_call_operand.vmem [shape: f32[5,128,128], index: 2, kind: input, shape index: {}]   ;;  %s14815_s3 = inlined_call_operand.vmem [shape: f32[6,128], index: 3, kind: input, shape index: {}]   ;;  %s14816_s4 = inlined_call_operand.vmem [shape: f32[2064,2], index: 4, kind: output, shape index: {}]  }
   0x1 LB: > { %s6512_s16 = sadd.s32 4294967295, %s10885_s15   ;;  %p6516_p0 = scmp.ge.s32.totalorder %s10885_s15, 1  ;;  %s10885_s15 = sphi %s10917_s15, %s14_s15  }
   0x2   : > { %p163_p1 = scmp.lt.s32.totalorder %s10885_s15, 3 }
   0x4   : > { %p164_p2 = pnand %p6516_p0, %p163_p1 }
   0x6   : > { %167 = sbr.rel (%p164_p2) target bundleno = 2118 (0x846), region = 36 }
   0xd   : > { %s189_s17 = smul.u32 129, %s6512_s16  ;;  %v2151_v0 = vld [vmem:[%s14814_s2] sm:$0xff]  ;;  %v2152_v1 = vld [vmem:[%s14814_s2 + $0x8] sm:$0xff]  ;;  %v10887_v2 = vmov 0   ;;  %v2153_v4 = vld [vmem:[%s14814_s2 + $0x10] sm:$0xff]  ;;  %v14817_v6 = vmov 0.0|0.0  }
   0xe   : > { %9564 = vset.pattern.permute.xlu1 %v10887_v2  ;;  %9562 = vset.pattern.permute.xlu0 %v10887_v2  ;;  %v9414_v3 = vpack.c.bf16 %v2152_v1, %v2151_v0  ;;  %v2154_v5 = vld [vmem:[%s14814_s2 + $0x18] sm:$0xff]  ;;  %v2155_v8 = vld [vmem:[%s14814_s2 + $0x20] sm:$0xff]  ;;  %v2156_v9 = vld [vmem:[%s14814_s2 + $0x28] sm:$0xff]  ;;  %v10889_v13 = vmov 1   ;;  %vm10890_vm0 = vmmov 0   ;;  %v10891_v33 = vmov 0.0  }
   0xf   : > { %p190_p3 = scmp.lt.s32.totalorder %s189_s17, 257  ;;  %9533 = vmatprep.subr.bf16.mxu1 %v14817_v6  ;;  %9413 = vmatprep.subr.bf16.mxu0 %v14817_v6  ;;  %v9417_v7 = vpack.c.bf16 %v2154_v5, %v2153_v4  ;;  %v9420_v10 = vpack.c.bf16 %v2156_v9, %v2155_v8  ;;  %v2157_v16 = vld [vmem:[%s14814_s2 + $0x30] sm:$0xff]  ;;  %v2158_v17 = vld [vmem:[%s14814_s2 + $0x38] sm:$0xff]  ;;  %v2159_v19 = vld [vmem:[%s14814_s2 + $0x40] sm:$0xff]  ;;  %vm6326_vm1 = vcmask 15360  }
  0x10   : > { %9541 = vmatpush3.bf16.msra.mxu1 %v9414_v3  ;;  %9415 = vmatpush3.bf16.msra.mxu0 %v9414_v3  ;;  %v9423_v18 = vpack.c.bf16 %v2158_v17, %v2157_v16  ;;  %v2160_v20 = vld [vmem:[%s14814_s2 + $0x48] sm:$0xff]  ;;  %v2161_v23 = vld [vmem:[%s14814_s2 + $0x50] sm:$0xff]  ;;  %v2162_v24 = vld [vmem:[%s14814_s2 + $0x58] sm:$0xff] }
  0x11   : > { %s14869_s17 = smov (!%p190_p3, %s189_s17), 257  ;;  %9534 = vmatprep.subr.bf16.mxu1 %v14817_v6  ;;  %9416 = vmatprep.subr.bf16.mxu0 %v14817_v6  ;;  %v9426_v21 = vpack.c.bf16 %v2160_v20, %v2159_v19  ;;  %v9429_v25 = vpack.c.bf16 %v2162_v24, %v2161_v23  ;;  %v2163_v27 = vld [vmem:[%s14814_s2 + $0x60] sm:$0xff]  ;;  %v2164_v28 = vld [vmem:[%s14814_s2 + $0x68] sm:$0xff]  ;;  %v2165_v31 = vld [vmem:[%s14814_s2 + $0x70] sm:$0xff] }
  0x12   : > { %s6517_s30 = sshll.u32 %s14869_s17, 3  ;;  %v9432_v29 = vpack.c.bf16 %v2164_v28, %v2163_v27  ;;  %v2166_v32 = vld [vmem:[%s14814_s2 + $0x78] sm:$0xff]  ;;  %7545 = vmatprep.mubr.msk.f32.mxu1 %vm10890_vm0, %v10891_v33  ;;  %7350 = vmatprep.mubr.msk.f32.mxu0 %vm10890_vm0, %v10891_v33  ;;  %v11041_v63 = vld [vmem:[%s14813_s1] ss:$0 sm:$0xff]  ;;  %v11046_v0 = vld [vmem:[%s14813_s1 + $0x1] ss:$0 sm:$0xff] }
  0x13   : > { %s10955_s7 = scalar_lea.vmem %s14812_s0, %s6517_s30  ;;  %v9435_v34 = vpack.c.bf16 %v2166_v32, %v2165_v31  ;;  %v11056_v9 = vld [vmem:[%s14815_s3] ss:$0 sm:$0xff]  ;;  %s14108_s5 = scalar_lea.vmem %s14816_s4, %s6517_s30 }
  0x14   : > { %9542 = vmatpush3.bf16.msra.mxu1 %v9417_v7  ;;  %9418 = vmatpush3.bf16.msra.mxu0 %v9417_v7  ;;  %v267_v11 = vld [vmem:[%s10955_s7 + $0x210] sm:$0xff]  ;;  %v266_v12 = vld [vmem:[%s10955_s7 + $0x208] sm:$0xff]  ;;  %v268_v14 = vld [vmem:[%s10955_s7 + $0x218] sm:$0xff] }
  0x15   : > { %9535 = vmatprep.subr.bf16.mxu1 %v14817_v6  ;;  %9419 = vmatprep.subr.bf16.mxu0 %v14817_v6  ;;  %v269_v15 = vld [vmem:[%s10955_s7 + $0x220] sm:$0xff]  ;;  %v270_v22 = vld [vmem:[%s10955_s7 + $0x228] sm:$0xff]  ;;  %v271_v26 = vld [vmem:[%s10955_s7 + $0x230] sm:$0xff] }
  0x16   : > { %663 = vperm.xlu1 %9564, %v267_v11   ;;  %658 = vperm.xlu0 %9562, %v266_v12   ;;  %v272_v30 = vld [vmem:[%s10955_s7 + $0x238] sm:$0xff]  ;;  %v273_v35 = vld [vmem:[%s10955_s7 + $0x240] sm:$0xff]  ;;  %v274_v37 = vld [vmem:[%s10955_s7 + $0x248] sm:$0xff] }
  0x17   : > { %v201_v36 = vld [vmem:[%s10955_s7] sm:$0xff]  ;;  %v202_v38 = vld [vmem:[%s10955_s7 + $0x8] sm:$0xff]  ;;  %v275_v39 = vld [vmem:[%s10955_s7 + $0x250] sm:$0xff] }
  0x18   : > { %9543 = vmatpush3.bf16.msra.mxu1 %v9420_v10  ;;  %9421 = vmatpush3.bf16.msra.mxu0 %v9420_v10  ;;  %v203_v40 = vld [vmem:[%s10955_s7 + $0x10] sm:$0xff]  ;;  %v276_v41 = vld [vmem:[%s10955_s7 + $0x258] sm:$0xff]  ;;  %v277_v43 = vld [vmem:[%s10955_s7 + $0x260] sm:$0xff] }
  0x19   : > { %9536 = vmatprep.subr.bf16.mxu1 %v14817_v6  ;;  %9422 = vmatprep.subr.bf16.mxu0 %v14817_v6  ;;  %v204_v42 = vld [vmem:[%s10955_s7 + $0x18] sm:$0xff]  ;;  %v205_v44 = vld [vmem:[%s10955_s7 + $0x20] sm:$0xff]  ;;  %v278_v45 = vld [vmem:[%s10955_s7 + $0x268] sm:$0xff] }
  0x1a   : > { %9565 = vset.pattern.permute.xlu1 %v10889_v13  ;;  %9563 = vset.pattern.permute.xlu0 %v10889_v13  ;;  %v206_v46 = vld [vmem:[%s10955_s7 + $0x28] sm:$0xff]  ;;  %v279_v47 = vld [vmem:[%s10955_s7 + $0x270] sm:$0xff]  ;;  %v280_v49 = vld [vmem:[%s10955_s7 + $0x278] sm:$0xff] }
  0x1b   : > { %1375 = vperm.xlu1 %9565, %v267_v11   ;;  %1371 = vperm.xlu0 %9563, %v266_v12   ;;  %v207_v48 = vld [vmem:[%s10955_s7 + $0x30] sm:$0xff]  ;;  %v208_v50 = vld [vmem:[%s10955_s7 + $0x38] sm:$0xff]  ;;  %v281_v51 = vld [vmem:[%s10955_s7 + $0x280] sm:$0xff] }
  0x1c   : > { %9544 = vmatpush3.bf16.msra.mxu1 %v9423_v18  ;;  %9424 = vmatpush3.bf16.msra.mxu0 %v9423_v18  ;;  %v209_v52 = vld [vmem:[%s10955_s7 + $0x40] sm:$0xff]  ;;  %v282_v53 = vld [vmem:[%s10955_s7 + $0x288] sm:$0xff]  ;;  %v283_v55 = vld [vmem:[%s10955_s7 + $0x290] sm:$0xff] }
  0x1d   : > { %9537 = vmatprep.subr.bf16.mxu1 %v14817_v6  ;;  %9425 = vmatprep.subr.bf16.mxu0 %v14817_v6  ;;  %v210_v54 = vld [vmem:[%s10955_s7 + $0x48] sm:$0xff]  ;;  %v211_v56 = vld [vmem:[%s10955_s7 + $0x50] sm:$0xff]  ;;  %v284_v57 = vld [vmem:[%s10955_s7 + $0x298] sm:$0xff] }
  0x1e   : > { %v212_v58 = vld [vmem:[%s10955_s7 + $0x58] sm:$0xff]  ;;  %v285_v59 = vld [vmem:[%s10955_s7 + $0x2a0] sm:$0xff]  ;;  %v286_v1 = vld [vmem:[%s10955_s7 + $0x2a8] sm:$0xff] }
  0x1f   : > { %9566 = vset.pattern.permute.xlu1 %v10887_v2  ;;  %1379 = vperm.xlu0 %9563, %v268_v14   ;;  %v213_v60 = vld [vmem:[%s10955_s7 + $0x60] sm:$0xff]  ;;  %v214_v10 = vld [vmem:[%s10955_s7 + $0x68] sm:$0xff]  ;;  %v287_v18 = vld [vmem:[%s10955_s7 + $0x2b0] sm:$0xff] }
  0x20   : > { %668 = vperm.xlu1 %9566, %v268_v14   ;;  %9545 = vmatpush3.bf16.msra.mxu1 %v9426_v21  ;;  %v288_v32 = vld [vmem:[%s10955_s7 + $0x2b8] sm:$0xff] }
  0x21   : > { %9538 = vmatprep.subr.bf16.mxu1 %v14817_v6  ;;  %9427 = vmatpush3.bf16.msra.mxu0 %v9426_v21 }
  0x22   : > { %9428 = vmatprep.subr.bf16.mxu0 %v14817_v6 }
  0x23   : > { %1383 = vperm.xlu0 %9563, %v269_v15  }
  0x24   : > { %673 = vperm.xlu1 %9566, %v269_v15   ;;  %9546 = vmatpush3.bf16.msra.mxu1 %v9429_v25 }
  0x25   : > { %9539 = vmatprep.subr.bf16.mxu1 %v14817_v6  ;;  %9430 = vmatpush3.bf16.msra.mxu0 %v9429_v25  ;;  %v215_v25 = vld [vmem:[%s10955_s7 + $0x70] sm:$0xff] }
  0x26   : > { %9431 = vmatprep.subr.bf16.mxu0 %v14817_v6 }
  0x27   : > { %1387 = vperm.xlu0 %9563, %v270_v22  }
  0x28   : > { %678 = vperm.xlu1 %9566, %v270_v22   ;;  %9547 = vmatpush3.bf16.msra.mxu1 %v9432_v29 }
  0x29   : > { %9540 = vmatprep.subr.bf16.mxu1 %v14817_v6  ;;  %9433 = vmatpush3.bf16.msra.mxu0 %v9432_v29 }
  0x2a   : > { %9434 = vmatprep.subr.bf16.mxu0 %v14817_v6 }
  0x2b   : > { %1391 = vperm.xlu0 %9563, %v271_v26  }
  0x2c   : > { %683 = vperm.xlu1 %9566, %v271_v26   ;;  %9548 = vmatpush3.bf16.msra.mxu1 %v9435_v34 }
  0x2d   : > { %9437 = vmatprep.subr.bf16.mxu1 %v14817_v6  ;;  %9436 = vmatpush3.bf16.msra.mxu0 %v9435_v34 }
  0x2e   : > { %9461 = vmatprep.subr.bf16.mxu0 %v14817_v6 }
  0x2f   : > { %1395 = vperm.xlu0 %9563, %v272_v30  }
  0x30   : > { %688 = vperm.xlu1 %9566, %v272_v30  }
  0x33   : > { %1399 = vperm.xlu0 %9563, %v273_v35  }
  0x34   : > { %693 = vperm.xlu1 %9566, %v273_v35  }
  0x37   : > { %1111 = vperm.xlu0 %9563, %v201_v36  }
  0x38   : > { %333 = vperm.xlu1 %9566, %v201_v36  }
  0x3b   : > { %1403 = vperm.xlu0 %9563, %v274_v37  }
  0x3c   : > { %698 = vperm.xlu1 %9566, %v274_v37  }
  0x3f   : > { %1115 = vperm.xlu0 %9563, %v202_v38  }
  0x40   : > { %338 = vperm.xlu1 %9566, %v202_v38  }
  0x43   : > { %1407 = vperm.xlu0 %9563, %v275_v39  }
  0x44   : > { %703 = vperm.xlu1 %9566, %v275_v39  }
  0x47   : > { %1119 = vperm.xlu0 %9563, %v203_v40  }
  0x48   : > { %343 = vperm.xlu1 %9566, %v203_v40  }
  0x4b   : > { %1411 = vperm.xlu0 %9563, %v276_v41  }
  0x4c   : > { %708 = vperm.xlu1 %9566, %v276_v41   ;;  %v216_v41 = vld [vmem:[%s10955_s7 + $0x78] sm:$0xff] }
  0x4f   : > { %1123 = vperm.xlu0 %9563, %v204_v42  }
  0x50   : > { %348 = vperm.xlu1 %9566, %v204_v42  }
  0x53   : > { %1415 = vperm.xlu0 %9563, %v277_v43  }
  0x54   : > { %713 = vperm.xlu1 %9566, %v277_v43  }
  0x57   : > { %1127 = vperm.xlu0 %9563, %v205_v44  }
  0x58   : > { %353 = vperm.xlu1 %9566, %v205_v44  }
  0x5b   : > { %1419 = vperm.xlu0 %9563, %v278_v45  }
  0x5c   : > { %718 = vperm.xlu1 %9566, %v278_v45  }
  0x5f   : > { %1131 = vperm.xlu0 %9563, %v206_v46  }
  0x60   : > { %358 = vperm.xlu1 %9566, %v206_v46  }
  0x63   : > { %1423 = vperm.xlu0 %9563, %v279_v47  }
  0x64   : > { %723 = vperm.xlu1 %9566, %v279_v47  }
  0x67   : > { %1135 = vperm.xlu0 %9563, %v207_v48  }
  0x68   : > { %363 = vperm.xlu1 %9566, %v207_v48  }
  0x6b   : > { %1427 = vperm.xlu0 %9563, %v280_v49  }
  0x6c   : > { %728 = vperm.xlu1 %9566, %v280_v49   ;;  %v289_v49 = vld [vmem:[%s10955_s7 + $0x2c0] sm:$0xff] }
  0x6f   : > { %1139 = vperm.xlu0 %9563, %v208_v50  }
  0x70   : > { %368 = vperm.xlu1 %9566, %v208_v50  }
  0x73   : > { %1431 = vperm.xlu0 %9563, %v281_v51  }
  0x74   : > { %733 = vperm.xlu1 %9566, %v281_v51  }
  0x77   : > { %1143 = vperm.xlu0 %9563, %v209_v52  }
  0x78   : > { %373 = vperm.xlu1 %9566, %v209_v52  }
  0x7b   : > { %1435 = vperm.xlu0 %9563, %v282_v53  }
  0x7c   : > { %738 = vperm.xlu1 %9566, %v282_v53  }
  0x7f   : > { %1147 = vperm.xlu0 %9563, %v210_v54  }
  0x80   : > { %378 = vperm.xlu1 %9566, %v210_v54  }
  0x83   : > { %1439 = vperm.xlu0 %9563, %v283_v55  }
  0x84   : > { %743 = vperm.xlu1 %9566, %v283_v55  }
  0x87   : > { %1151 = vperm.xlu0 %9563, %v211_v56  }
  0x88   : > { %383 = vperm.xlu1 %9566, %v211_v56  }
  0x8b   : > { %1443 = vperm.xlu0 %9563, %v284_v57  }
  0x8c   : > { %748 = vperm.xlu1 %9566, %v284_v57   ;;  %v217_v57 = vld [vmem:[%s10955_s7 + $0x80] sm:$0xff] }
  0x8f   : > { %1155 = vperm.xlu0 %9563, %v212_v58  }
  0x90   : > { %388 = vperm.xlu1 %9566, %v212_v58  }
  0x93   : > { %1447 = vperm.xlu0 %9563, %v285_v59  }
  0x94   : > { %753 = vperm.xlu1 %9566, %v285_v59  }
  0x95   : > { %v664_v61 = vpop.permute.xlu1 %663  ;;  %v659_v62 = vpop.permute.xlu0 %658 }
  0x96   : > { %v1045_v4 = vmul.f32 %v11041_v63, %v659_v62  ;;  %v1046_v8 = vmul.f32 %v11041_v63, %v664_v61 }
  0x97   : > { %1159 = vperm.xlu0 %9563, %v213_v60  }
  0x98   : > { %393 = vperm.xlu1 %9566, %v213_v60  }
  0x9a   : > { %v1376_v2 = vpop.permute.xlu1 %1375  ;;  %v1372_v3 = vpop.permute.xlu0 %1371 }
  0x9b   : > { %v1696_v5 = vmul.f32 %v11046_v0, %v1376_v2  ;;  %v1695_v7 = vmul.f32 %v11046_v0, %v1372_v3  ;;  %1451 = vperm.xlu0 %9563, %v286_v1   ;;  %v290_v3 = vld [vmem:[%s10955_s7 + $0x2c8] sm:$0xff] }
  0x9c   : > { %758 = vperm.xlu1 %9566, %v286_v1  }
  0x9d   : > { %v1824_v11 = vadd.f32 %v1695_v7, %v1045_v4  ;;  %v1825_v12 = vadd.f32 %v1696_v5, %v1046_v8 }
  0x9e   : > { %v1380_v13 = vpop.permute.xlu0 %1379 }
  0x9f   : > { %v1958_v14 = vadd.f32 %v11056_v9, %v1824_v11  ;;  %v1697_v15 = vmul.f32 %v11046_v0, %v1380_v13  ;;  %v669_v16 = vpop.permute.xlu1 %668  ;;  %1163 = vperm.xlu0 %9563, %v214_v10   ;;  %v1959_v19 = vadd.f32 %v11056_v9, %v1825_v12 }
  0xa0   : > { %v1047_v17 = vmul.f32 %v11041_v63, %v669_v16  ;;  %398 = vperm.xlu1 %9566, %v214_v10  }
  0xa1   : > { %9567 = vtanh.f32 %v1958_v14  ;;  %v218_v14 = vld [vmem:[%s10955_s7 + $0x88] sm:$0xff] }
  0xa2   : > { %v1826_v20 = vadd.f32 %v1697_v15, %v1047_v17  ;;  %v1384_v21 = vpop.permute.xlu0 %1383  ;;  %9569 = vtanh.f32 %v1959_v19 }
  0xa3   : > { %v1698_v22 = vmul.f32 %v11046_v0, %v1384_v21  ;;  %v674_v23 = vpop.permute.xlu1 %673  ;;  %1455 = vperm.xlu0 %9563, %v287_v18  }
  0xa4   : > { %v1048_v24 = vmul.f32 %v11041_v63, %v674_v23  ;;  %763 = vperm.xlu1 %9566, %v287_v18   ;;  %v1960_v26 = vadd.f32 %v11056_v9, %v1826_v20 }
  0xa6   : > { %v1827_v27 = vadd.f32 %v1698_v22, %v1048_v24  ;;  %v1388_v28 = vpop.permute.xlu0 %1387  ;;  %9571 = vtanh.f32 %v1960_v26  ;;  %v291_v22 = vld [vmem:[%s10955_s7 + $0x2d0] sm:$0xff] }
  0xa7   : > { %v1699_v29 = vmul.f32 %v11046_v0, %v1388_v28  ;;  %v679_v30 = vpop.permute.xlu1 %678  ;;  %1167 = vperm.xlu0 %9563, %v215_v25  }
  0xa8   : > { %v1049_v31 = vmul.f32 %v11041_v63, %v679_v30  ;;  %403 = vperm.xlu1 %9566, %v215_v25   ;;  %v1961_v34 = vadd.f32 %v11056_v9, %v1827_v27  ;;  %v219_v30 = vld [vmem:[%s10955_s7 + $0x90] sm:$0xff] }
  0xaa   : > { %v1828_v35 = vadd.f32 %v1699_v29, %v1049_v31  ;;  %v1392_v36 = vpop.permute.xlu0 %1391  ;;  %9573 = vtanh.f32 %v1961_v34 }
  0xab   : > { %v1700_v37 = vmul.f32 %v11046_v0, %v1392_v36  ;;  %v684_v38 = vpop.permute.xlu1 %683  ;;  %1459 = vperm.xlu0 %9563, %v288_v32   ;;  %v9568_v39 = vpop.eup %9567 }
  0xac   : > { %v1050_v40 = vmul.f32 %v11041_v63, %v684_v38  ;;  %768 = vperm.xlu1 %9566, %v288_v32   ;;  %7546 = vmatmul.mubr.f32.vlgmr.msra.gmra.mrb[0].mxu1 %v9568_v39  ;;  %v1962_v42 = vadd.f32 %v11056_v9, %v1828_v35  ;;  %v9570_v47 = vpop.eup %9569 }
  0xad   : > { %7548 = vmatprep.mubr.msk.f32.mxu1 %vm10890_vm0, %v10891_v33 }
  0xae   : > { %v1829_v43 = vadd.f32 %v1700_v37, %v1050_v40  ;;  %v1396_v44 = vpop.permute.xlu0 %1395  ;;  %9575 = vtanh.f32 %v1962_v42  ;;  %v292_v40 = vld [vmem:[%s10955_s7 + $0x2d8] sm:$0xff] }
  0xaf   : > { %v1701_v45 = vmul.f32 %v11046_v0, %v1396_v44  ;;  %v689_v46 = vpop.permute.xlu1 %688  ;;  %1171 = vperm.xlu0 %9563, %v216_v41  }
  0xb0   : > { %v1051_v48 = vmul.f32 %v11041_v63, %v689_v46  ;;  %408 = vperm.xlu1 %9566, %v216_v41   ;;  %7549 = vmatmul.mubr.f32.gmra.mrb[2].mxu1 %v9570_v47  ;;  %v1963_v50 = vadd.f32 %v11056_v9, %v1829_v43  ;;  %v9572_v55 = vpop.eup %9571 }
  0xb1   : > { %7551 = vmatprep.mubr.msk.f32.mxu1 %vm10890_vm0, %v10891_v33 }
  0xb2   : > { %v1830_v51 = vadd.f32 %v1701_v45, %v1051_v48  ;;  %v1400_v52 = vpop.permute.xlu0 %1399  ;;  %9577 = vtanh.f32 %v1963_v50  ;;  %v220_v48 = vld [vmem:[%s10955_s7 + $0x98] sm:$0xff] }
  0xb3   : > { %v1702_v53 = vmul.f32 %v11046_v0, %v1400_v52  ;;  %v694_v54 = vpop.permute.xlu1 %693  ;;  %1463 = vperm.xlu0 %9563, %v289_v49  }
  0xb4   : > { %v1052_v56 = vmul.f32 %v11041_v63, %v694_v54  ;;  %773 = vperm.xlu1 %9566, %v289_v49   ;;  %7552 = vmatmul.mubr.f32.gmra.mrb[4].mxu1 %v9572_v55  ;;  %v1964_v58 = vadd.f32 %v11056_v9, %v1830_v51  ;;  %v9574_v1 = vpop.eup %9573 }
  0xb5   : > { %7554 = vmatprep.mubr.msk.f32.mxu1 %vm10890_vm0, %v10891_v33 }
  0xb6   : > { %v1831_v59 = vadd.f32 %v1702_v53, %v1052_v56  ;;  %v1112_v60 = vpop.permute.xlu0 %1111  ;;  %9579 = vtanh.f32 %v1964_v58  ;;  %v293_v56 = vld [vmem:[%s10955_s7 + $0x2e0] sm:$0xff] }
  0xb7   : > { %v1630_v61 = vmul.f32 %v11046_v0, %v1112_v60  ;;  %1175 = vperm.xlu0 %9563, %v217_v57   ;;  %v334_v62 = vpop.permute.xlu1 %333 }
  0xb8   : > { %v980_v2 = vmul.f32 %v11041_v63, %v334_v62  ;;  %413 = vperm.xlu1 %9566, %v217_v57   ;;  %v1965_v4 = vadd.f32 %v11056_v9, %v1831_v59  ;;  %7555 = vmatmul.mubr.f32.gmra.mrb[6].mxu1 %v9574_v1  ;;  %v9576_v11 = vpop.eup %9575 }
  0xb9   : > { %7557 = vmatprep.mubr.msk.f32.mxu1 %vm10890_vm0, %v10891_v33 }
  0xba   : > { %v1759_v5 = vadd.f32 %v1630_v61, %v980_v2  ;;  %v1404_v7 = vpop.permute.xlu0 %1403  ;;  %9581 = vtanh.f32 %v1965_v4  ;;  %v221_v2 = vld [vmem:[%s10955_s7 + $0xa0] sm:$0xff] }
  0xbb   : > { %v1703_v8 = vmul.f32 %v11046_v0, %v1404_v7  ;;  %1467 = vperm.xlu0 %9563, %v290_v3   ;;  %v699_v10 = vpop.permute.xlu1 %698 }
  0xbc   : > { %v1893_v12 = vadd.f32 %v11056_v9, %v1759_v5  ;;  %v1053_v13 = vmul.f32 %v11041_v63, %v699_v10  ;;  %778 = vperm.xlu1 %9566, %v290_v3   ;;  %7558 = vmatmul.mubr.f32.gmra.mrb[8].mxu1 %v9576_v11  ;;  %v9578_v19 = vpop.eup %9577 }
  0xbd   : > { %7560 = vmatprep.mubr.msk.f32.mxu1 %vm10890_vm0, %v10891_v33 }
  0xbe   : > { %9583 = vtanh.f32 %v1893_v12  ;;  %v1832_v15 = vadd.f32 %v1703_v8, %v1053_v13  ;;  %v1116_v16 = vpop.permute.xlu0 %1115  ;;  %v294_v12 = vld [vmem:[%s10955_s7 + $0x2e8] sm:$0xff] }
  0xbf   : > { %v1631_v17 = vmul.f32 %v11046_v0, %v1116_v16  ;;  %1179 = vperm.xlu0 %9563, %v218_v14   ;;  %v339_v18 = vpop.permute.xlu1 %338 }
  0xc0   : > { %v1966_v20 = vadd.f32 %v11056_v9, %v1832_v15  ;;  %v981_v21 = vmul.f32 %v11041_v63, %v339_v18  ;;  %418 = vperm.xlu1 %9566, %v218_v14   ;;  %7561 = vmatmul.mubr.f32.gmra.mrb[10].mxu1 %v9578_v19  ;;  %v9580_v27 = vpop.eup %9579 }
  0xc1   : > { %7563 = vmatprep.mubr.msk.f32.mxu1 %vm10890_vm0, %v10891_v33 }
  0xc2   : > { %9585 = vtanh.f32 %v1966_v20  ;;  %v1760_v23 = vadd.f32 %v1631_v17, %v981_v21  ;;  %v1408_v24 = vpop.permute.xlu0 %1407  ;;  %v222_v20 = vld [vmem:[%s10955_s7 + $0xa8] sm:$0xff] }
  0xc3   : > { %v1704_v25 = vmul.f32 %v11046_v0, %v1408_v24  ;;  %1471 = vperm.xlu0 %9563, %v291_v22   ;;  %v704_v26 = vpop.permute.xlu1 %703 }
  0xc4   : > { %v1894_v28 = vadd.f32 %v11056_v9, %v1760_v23  ;;  %v1054_v29 = vmul.f32 %v11041_v63, %v704_v26  ;;  %783 = vperm.xlu1 %9566, %v291_v22   ;;  %7564 = vmatmul.mubr.f32.gmra.mrb[12].mxu1 %v9580_v27  ;;  %v9582_v34 = vpop.eup %9581 }
  0xc5   : > { %7566 = vmatprep.mubr.msk.f32.mxu1 %vm10890_vm0, %v10891_v33 }
  0xc6   : > { %9587 = vtanh.f32 %v1894_v28  ;;  %v1833_v31 = vadd.f32 %v1704_v25, %v1054_v29  ;;  %v1120_v32 = vpop.permute.xlu0 %1119  ;;  %v295_v28 = vld [vmem:[%s10955_s7 + $0x2f0] sm:$0xff] }
  0xc7   : > { %v1632_v35 = vmul.f32 %v11046_v0, %v1120_v32  ;;  %1183 = vperm.xlu0 %9563, %v219_v30   ;;  %v344_v36 = vpop.permute.xlu1 %343 }
  0xc8   : > { %v9584_v37 = vpop.eup %9583  ;;  %v1967_v38 = vadd.f32 %v11056_v9, %v1833_v31  ;;  %v982_v39 = vmul.f32 %v11041_v63, %v344_v36  ;;  %423 = vperm.xlu1 %9566, %v219_v30   ;;  %7567 = vmatmul.mubr.f32.gmra.mrb[14].mxu1 %v9582_v34 }
  0xc9   : > { %7351 = vmatmul.mubr.f32.vlgmr.msra.gmra.mrb[0].mxu0 %v9584_v37  ;;  %7569 = vmatprep.mubr.msk.f32.mxu1 %vm10890_vm0, %v10891_v33  ;;  %v223_v37 = vld [vmem:[%s10955_s7 + $0xb0] sm:$0xff] }
  0xca   : > { %9589 = vtanh.f32 %v1967_v38  ;;  %v1761_v41 = vadd.f32 %v1632_v35, %v982_v39  ;;  %v1412_v42 = vpop.permute.xlu0 %1411  ;;  %7353 = vmatprep.mubr.msk.f32.mxu0 %vm10890_vm0, %v10891_v33 }
  0xcb   : > { %v1705_v43 = vmul.f32 %v11046_v0, %v1412_v42  ;;  %1475 = vperm.xlu0 %9563, %v292_v40   ;;  %v709_v44 = vpop.permute.xlu1 %708 }
  0xcc   : > { %v9586_v45 = vpop.eup %9585  ;;  %v1895_v46 = vadd.f32 %v11056_v9, %v1761_v41  ;;  %v1055_v47 = vmul.f32 %v11041_v63, %v709_v44  ;;  %788 = vperm.xlu1 %9566, %v292_v40  }
  0xcd   : > { %7570 = vmatmul.mubr.f32.gmra.mrb[16].mxu1 %v9586_v45  ;;  %v296_v45 = vld [vmem:[%s10955_s7 + $0x2f8] sm:$0xff] }
  0xce   : > { %9591 = vtanh.f32 %v1895_v46  ;;  %v1834_v49 = vadd.f32 %v1705_v43, %v1055_v47  ;;  %v1124_v50 = vpop.permute.xlu0 %1123  ;;  %7572 = vmatprep.mubr.msk.f32.mxu1 %vm10890_vm0, %v10891_v33 }
  0xcf   : > { %v1633_v51 = vmul.f32 %v11046_v0, %v1124_v50  ;;  %1187 = vperm.xlu0 %9563, %v220_v48   ;;  %v349_v52 = vpop.permute.xlu1 %348 }
  0xd0   : > { %v9588_v53 = vpop.eup %9587  ;;  %v1968_v54 = vadd.f32 %v11056_v9, %v1834_v49  ;;  %v983_v55 = vmul.f32 %v11041_v63, %v349_v52  ;;  %428 = vperm.xlu1 %9566, %v220_v48  }
  0xd1   : > { %7354 = vmatmul.mubr.f32.gmra.mrb[2].mxu0 %v9588_v53  ;;  %v224_v53 = vld [vmem:[%s10955_s7 + $0xb8] sm:$0xff] }
  0xd2   : > { %9593 = vtanh.f32 %v1968_v54  ;;  %v1762_v57 = vadd.f32 %v1633_v51, %v983_v55  ;;  %v1416_v58 = vpop.permute.xlu0 %1415  ;;  %7356 = vmatprep.mubr.msk.f32.mxu0 %vm10890_vm0, %v10891_v33 }
  0xd3   : > { %v1706_v59 = vmul.f32 %v11046_v0, %v1416_v58  ;;  %1479 = vperm.xlu0 %9563, %v293_v56   ;;  %v714_v60 = vpop.permute.xlu1 %713 }
  0xd4   : > { %v9590_v61 = vpop.eup %9589  ;;  %v1896_v62 = vadd.f32 %v11056_v9, %v1762_v57  ;;  %v1056_v1 = vmul.f32 %v11041_v63, %v714_v60  ;;  %793 = vperm.xlu1 %9566, %v293_v56  }
  0xd5   : > { %7573 = vmatmul.mubr.f32.gmra.mrb[18].mxu1 %v9590_v61  ;;  %v297_v61 = vld [vmem:[%s10955_s7 + $0x300] sm:$0xff] }
  0xd6   : > { %9595 = vtanh.f32 %v1896_v62  ;;  %v1835_v3 = vadd.f32 %v1706_v59, %v1056_v1  ;;  %v1128_v4 = vpop.permute.xlu0 %1127  ;;  %7575 = vmatprep.mubr.msk.f32.mxu1 %vm10890_vm0, %v10891_v33 }
  0xd7   : > { %v1634_v5 = vmul.f32 %v11046_v0, %v1128_v4  ;;  %1191 = vperm.xlu0 %9563, %v221_v2   ;;  %v354_v7 = vpop.permute.xlu1 %353 }
  0xd8   : > { %v9592_v8 = vpop.eup %9591  ;;  %v1969_v10 = vadd.f32 %v11056_v9, %v1835_v3  ;;  %v984_v11 = vmul.f32 %v11041_v63, %v354_v7  ;;  %433 = vperm.xlu1 %9566, %v221_v2  }
  0xd9   : > { %7357 = vmatmul.mubr.f32.gmra.mrb[4].mxu0 %v9592_v8  ;;  %v225_v8 = vld [vmem:[%s10955_s7 + $0xc0] sm:$0xff] }
  0xda   : > { %9597 = vtanh.f32 %v1969_v10  ;;  %v1763_v13 = vadd.f32 %v1634_v5, %v984_v11  ;;  %v1420_v14 = vpop.permute.xlu0 %1419  ;;  %7359 = vmatprep.mubr.msk.f32.mxu0 %vm10890_vm0, %v10891_v33 }
  0xdb   : > { %v1707_v15 = vmul.f32 %v11046_v0, %v1420_v14  ;;  %1483 = vperm.xlu0 %9563, %v294_v12   ;;  %v719_v16 = vpop.permute.xlu1 %718 }
  0xdc   : > { %v9594_v17 = vpop.eup %9593  ;;  %v1897_v18 = vadd.f32 %v11056_v9, %v1763_v13  ;;  %v1057_v19 = vmul.f32 %v11041_v63, %v719_v16  ;;  %798 = vperm.xlu1 %9566, %v294_v12  }
  0xdd   : > { %7576 = vmatmul.mubr.f32.gmra.mrb[20].mxu1 %v9594_v17  ;;  %v298_v17 = vld [vmem:[%s10955_s7 + $0x308] sm:$0xff] }
  0xde   : > { %9599 = vtanh.f32 %v1897_v18  ;;  %v1836_v21 = vadd.f32 %v1707_v15, %v1057_v19  ;;  %v1132_v22 = vpop.permute.xlu0 %1131  ;;  %7578 = vmatprep.mubr.msk.f32.mxu1 %vm10890_vm0, %v10891_v33 }
  0xdf   : > { %v1635_v23 = vmul.f32 %v11046_v0, %v1132_v22  ;;  %1195 = vperm.xlu0 %9563, %v222_v20   ;;  %v359_v24 = vpop.permute.xlu1 %358 }
  0xe0   : > { %v9596_v25 = vpop.eup %9595  ;;  %v1970_v26 = vadd.f32 %v11056_v9, %v1836_v21  ;;  %v985_v27 = vmul.f32 %v11041_v63, %v359_v24  ;;  %438 = vperm.xlu1 %9566, %v222_v20  }
  0xe1   : > { %7360 = vmatmul.mubr.f32.gmra.mrb[6].mxu0 %v9596_v25  ;;  %v226_v25 = vld [vmem:[%s10955_s7 + $0xc8] sm:$0xff] }
  0xe2   : > { %9601 = vtanh.f32 %v1970_v26  ;;  %v1764_v29 = vadd.f32 %v1635_v23, %v985_v27  ;;  %v1424_v30 = vpop.permute.xlu0 %1423  ;;  %7362 = vmatprep.mubr.msk.f32.mxu0 %vm10890_vm0, %v10891_v33 }
  0xe3   : > { %v1708_v31 = vmul.f32 %v11046_v0, %v1424_v30  ;;  %1487 = vperm.xlu0 %9563, %v295_v28   ;;  %v724_v32 = vpop.permute.xlu1 %723 }
  0xe4   : > { %v9598_v34 = vpop.eup %9597  ;;  %v1898_v35 = vadd.f32 %v11056_v9, %v1764_v29  ;;  %v1058_v36 = vmul.f32 %v11041_v63, %v724_v32  ;;  %803 = vperm.xlu1 %9566, %v295_v28  }
  0xe5   : > { %7579 = vmatmul.mubr.f32.gmra.mrb[22].mxu1 %v9598_v34  ;;  %v299_v34 = vld [vmem:[%s10955_s7 + $0x310] sm:$0xff] }
  0xe6   : > { %9603 = vtanh.f32 %v1898_v35  ;;  %v1837_v38 = vadd.f32 %v1708_v31, %v1058_v36  ;;  %v1136_v39 = vpop.permute.xlu0 %1135  ;;  %7581 = vmatprep.mubr.msk.f32.mxu1 %vm10890_vm0, %v10891_v33 }
  0xe7   : > { %v1636_v40 = vmul.f32 %v11046_v0, %v1136_v39  ;;  %1199 = vperm.xlu0 %9563, %v223_v37   ;;  %v364_v41 = vpop.permute.xlu1 %363 }
  0xe8   : > { %v9600_v42 = vpop.eup %9599  ;;  %v1971_v43 = vadd.f32 %v11056_v9, %v1837_v38  ;;  %v986_v44 = vmul.f32 %v11041_v63, %v364_v41  ;;  %443 = vperm.xlu1 %9566, %v223_v37  }
  0xe9   : > { %7363 = vmatmul.mubr.f32.gmra.mrb[8].mxu0 %v9600_v42  ;;  %v227_v42 = vld [vmem:[%s10955_s7 + $0xd0] sm:$0xff] }
  0xea   : > { %9605 = vtanh.f32 %v1971_v43  ;;  %v1765_v46 = vadd.f32 %v1636_v40, %v986_v44  ;;  %v1428_v47 = vpop.permute.xlu0 %1427  ;;  %7365 = vmatprep.mubr.msk.f32.mxu0 %vm10890_vm0, %v10891_v33 }
  0xeb   : > { %v1709_v48 = vmul.f32 %v11046_v0, %v1428_v47  ;;  %1491 = vperm.xlu0 %9563, %v296_v45   ;;  %v729_v49 = vpop.permute.xlu1 %728 }
  0xec   : > { %v9602_v50 = vpop.eup %9601  ;;  %v1899_v51 = vadd.f32 %v11056_v9, %v1765_v46  ;;  %v1059_v52 = vmul.f32 %v11041_v63, %v729_v49  ;;  %808 = vperm.xlu1 %9566, %v296_v45  }
  0xed   : > { %7582 = vmatmul.mubr.f32.gmra.mrb[24].mxu1 %v9602_v50  ;;  %v300_v50 = vld [vmem:[%s10955_s7 + $0x318] sm:$0xff] }
  0xee   : > { %9607 = vtanh.f32 %v1899_v51  ;;  %v1838_v54 = vadd.f32 %v1709_v48, %v1059_v52  ;;  %v1140_v55 = vpop.permute.xlu0 %1139  ;;  %7584 = vmatprep.mubr.msk.f32.mxu1 %vm10890_vm0, %v10891_v33 }
  0xef   : > { %v1637_v56 = vmul.f32 %v11046_v0, %v1140_v55  ;;  %1203 = vperm.xlu0 %9563, %v224_v53   ;;  %v369_v57 = vpop.permute.xlu1 %368 }
  0xf0   : > { %v9604_v58 = vpop.eup %9603  ;;  %v1972_v59 = vadd.f32 %v11056_v9, %v1838_v54  ;;  %v987_v60 = vmul.f32 %v11041_v63, %v369_v57  ;;  %448 = vperm.xlu1 %9566, %v224_v53  }
  0xf1   : > { %7366 = vmatmul.mubr.f32.gmra.mrb[10].mxu0 %v9604_v58  ;;  %v228_v58 = vld [vmem:[%s10955_s7 + $0xd8] sm:$0xff] }
  0xf2   : > { %9609 = vtanh.f32 %v1972_v59  ;;  %v1766_v62 = vadd.f32 %v1637_v56, %v987_v60  ;;  %v1432_v1 = vpop.permute.xlu0 %1431  ;;  %7368 = vmatprep.mubr.msk.f32.mxu0 %vm10890_vm0, %v10891_v33 }
  0xf3   : > { %v1710_v2 = vmul.f32 %v11046_v0, %v1432_v1  ;;  %1495 = vperm.xlu0 %9563, %v297_v61   ;;  %v734_v3 = vpop.permute.xlu1 %733 }
  0xf4   : > { %v9606_v4 = vpop.eup %9605  ;;  %v1900_v5 = vadd.f32 %v11056_v9, %v1766_v62  ;;  %v1060_v7 = vmul.f32 %v11041_v63, %v734_v3  ;;  %813 = vperm.xlu1 %9566, %v297_v61   ;;  %v6523_v61 = vld [vmem:[%s14814_s2 + $0x80] sm:$0xff]  ;;  %v6524_v62 = vld [vmem:[%s14814_s2 + $0x88] sm:$0xff] }
  0xf5   : > { %7585 = vmatmul.mubr.f32.gmra.mrb[26].mxu1 %v9606_v4  ;;  %v9438_v3 = vpack.c.bf16 %v6524_v62, %v6523_v61 }
  0xf6   : > { %9611 = vtanh.f32 %v1900_v5  ;;  %v1839_v10 = vadd.f32 %v1710_v2, %v1060_v7  ;;  %v1144_v11 = vpop.permute.xlu0 %1143  ;;  %7587 = vmatprep.mubr.msk.f32.mxu1 %vm10890_vm0, %v10891_v33 }
  0xf7   : > { %v1638_v12 = vmul.f32 %v11046_v0, %v1144_v11  ;;  %1207 = vperm.xlu0 %9563, %v225_v8   ;;  %v374_v13 = vpop.permute.xlu1 %373  ;;  %9439 = vmatpush3.bf16.msra.mxu1 %v9438_v3 }
  0xf8   : > { %v9608_v14 = vpop.eup %9607  ;;  %v1973_v15 = vadd.f32 %v11056_v9, %v1839_v10  ;;  %v988_v16 = vmul.f32 %v11041_v63, %v374_v13  ;;  %453 = vperm.xlu1 %9566, %v225_v8   ;;  %v301_v8 = vld [vmem:[%s10955_s7 + $0x320] sm:$0xff]  ;;  %9440 = vmatprep.subr.bf16.mxu1 %v14817_v6 }
  0xf9   : > { %7369 = vmatmul.mubr.f32.gmra.mrb[12].mxu0 %v9608_v14 }
  0xfa   : > { %9613 = vtanh.f32 %v1973_v15  ;;  %v1767_v18 = vadd.f32 %v1638_v12, %v988_v16  ;;  %v1436_v19 = vpop.permute.xlu0 %1435  ;;  %7371 = vmatprep.mubr.msk.f32.mxu0 %vm10890_vm0, %v10891_v33 }
  0xfb   : > { %v1711_v20 = vmul.f32 %v11046_v0, %v1436_v19  ;;  %1499 = vperm.xlu0 %9563, %v298_v17   ;;  %v739_v21 = vpop.permute.xlu1 %738 }
  0xfc   : > { %v9610_v22 = vpop.eup %9609  ;;  %v1901_v23 = vadd.f32 %v11056_v9, %v1767_v18  ;;  %v1061_v24 = vmul.f32 %v11041_v63, %v739_v21  ;;  %818 = vperm.xlu1 %9566, %v298_v17   ;;  %v229_v17 = vld [vmem:[%s10955_s7 + $0xe0] sm:$0xff] }
  0xfd   : > { %7588 = vmatmul.mubr.f32.gmra.mrb[28].mxu1 %v9610_v22 }
  0xfe   : > { %9615 = vtanh.f32 %v1901_v23  ;;  %v1840_v26 = vadd.f32 %v1711_v20, %v1061_v24  ;;  %v1148_v27 = vpop.permute.xlu0 %1147  ;;  %7590 = vmatprep.mubr.msk.f32.mxu1 %vm10890_vm0, %v10891_v33 }
  0xff   : > { %v1639_v28 = vmul.f32 %v11046_v0, %v1148_v27  ;;  %1211 = vperm.xlu0 %9563, %v226_v25   ;;  %v379_v29 = vpop.permute.xlu1 %378 }
 0x100   : > { %v9612_v30 = vpop.eup %9611  ;;  %v1974_v31 = vadd.f32 %v11056_v9, %v1840_v26  ;;  %v989_v32 = vmul.f32 %v11041_v63, %v379_v29  ;;  %458 = vperm.xlu1 %9566, %v226_v25   ;;  %v302_v25 = vld [vmem:[%s10955_s7 + $0x328] sm:$0xff] }
 0x101   : > { %7372 = vmatmul.mubr.f32.gmra.mrb[14].mxu0 %v9612_v30 }
 0x102   : > { %9617 = vtanh.f32 %v1974_v31  ;;  %v1768_v35 = vadd.f32 %v1639_v28, %v989_v32  ;;  %v1440_v36 = vpop.permute.xlu0 %1439  ;;  %7374 = vmatprep.mubr.msk.f32.mxu0 %vm10890_vm0, %v10891_v33 }
 0x103   : > { %v1712_v37 = vmul.f32 %v11046_v0, %v1440_v36  ;;  %1503 = vperm.xlu0 %9563, %v299_v34   ;;  %v744_v38 = vpop.permute.xlu1 %743 }
 0x104   : > { %v9614_v39 = vpop.eup %9613  ;;  %v1902_v40 = vadd.f32 %v11056_v9, %v1768_v35  ;;  %v1062_v41 = vmul.f32 %v11041_v63, %v744_v38  ;;  %823 = vperm.xlu1 %9566, %v299_v34   ;;  %v230_v34 = vld [vmem:[%s10955_s7 + $0xe8] sm:$0xff] }
 0x105   : > { %7591 = vmatmul.mubr.f32.gmra.mrb[30].mxu1 %v9614_v39 }
 0x106   : > { %9619 = vtanh.f32 %v1902_v40  ;;  %v1841_v43 = vadd.f32 %v1712_v37, %v1062_v41  ;;  %v1152_v44 = vpop.permute.xlu0 %1151  ;;  %7593 = vmatprep.mubr.msk.f32.mxu1 %vm10890_vm0, %v10891_v33 }
 0x107   : > { %v1640_v45 = vmul.f32 %v11046_v0, %v1152_v44  ;;  %1215 = vperm.xlu0 %9563, %v227_v42   ;;  %v384_v46 = vpop.permute.xlu1 %383 }
 0x108   : > { %v9616_v47 = vpop.eup %9615  ;;  %v1975_v48 = vadd.f32 %v11056_v9, %v1841_v43  ;;  %v990_v49 = vmul.f32 %v11041_v63, %v384_v46  ;;  %463 = vperm.xlu1 %9566, %v227_v42   ;;  %v303_v42 = vld [vmem:[%s10955_s7 + $0x330] sm:$0xff] }
 0x109   : > { %7375 = vmatmul.mubr.f32.gmra.mrb[16].mxu0 %v9616_v47 }
 0x10a   : > { %9621 = vtanh.f32 %v1975_v48  ;;  %v1769_v51 = vadd.f32 %v1640_v45, %v990_v49  ;;  %v1444_v52 = vpop.permute.xlu0 %1443  ;;  %7377 = vmatprep.mubr.msk.f32.mxu0 %vm10890_vm0, %v10891_v33 }
 0x10b   : > { %v1713_v53 = vmul.f32 %v11046_v0, %v1444_v52  ;;  %1507 = vperm.xlu0 %9563, %v300_v50   ;;  %v749_v54 = vpop.permute.xlu1 %748 }
 0x10c   : > { %v9618_v55 = vpop.eup %9617  ;;  %v1903_v56 = vadd.f32 %v11056_v9, %v1769_v51  ;;  %v1063_v57 = vmul.f32 %v11041_v63, %v749_v54  ;;  %828 = vperm.xlu1 %9566, %v300_v50   ;;  %v231_v50 = vld [vmem:[%s10955_s7 + $0xf0] sm:$0xff] }
 0x10d   : > { %7594 = vmatmul.mubr.f32.gmra.mrb[32].mxu1 %v9618_v55 }
 0x10e   : > { %9623 = vtanh.f32 %v1903_v56  ;;  %v1842_v59 = vadd.f32 %v1713_v53, %v1063_v57  ;;  %v1156_v60 = vpop.permute.xlu0 %1155  ;;  %7596 = vmatprep.mubr.msk.f32.mxu1 %vm10890_vm0, %v10891_v33 }
 0x10f   : > { %v1641_v1 = vmul.f32 %v11046_v0, %v1156_v60  ;;  %1219 = vperm.xlu0 %9563, %v228_v58   ;;  %v389_v2 = vpop.permute.xlu1 %388 }
 0x110   : > { %v9620_v4 = vpop.eup %9619  ;;  %v1976_v5 = vadd.f32 %v11056_v9, %v1842_v59  ;;  %v991_v7 = vmul.f32 %v11041_v63, %v389_v2  ;;  %468 = vperm.xlu1 %9566, %v228_v58   ;;  %v304_v58 = vld [vmem:[%s10955_s7 + $0x338] sm:$0xff] }
 0x111   : > { %7378 = vmatmul.mubr.f32.gmra.mrb[18].mxu0 %v9620_v4  ;;  %v232_v4 = vld [vmem:[%s10955_s7 + $0xf8] sm:$0xff] }
 0x112   : > { %9625 = vtanh.f32 %v1976_v5  ;;  %v1770_v10 = vadd.f32 %v1641_v1, %v991_v7  ;;  %v1448_v11 = vpop.permute.xlu0 %1447  ;;  %7380 = vmatprep.mubr.msk.f32.mxu0 %vm10890_vm0, %v10891_v33 }
 0x113   : > { %v1714_v12 = vmul.f32 %v11046_v0, %v1448_v11  ;;  %1511 = vperm.xlu0 %9563, %v301_v8   ;;  %v754_v13 = vpop.permute.xlu1 %753 }
 0x114   : > { %v9622_v14 = vpop.eup %9621  ;;  %v1904_v15 = vadd.f32 %v11056_v9, %v1770_v10  ;;  %v1064_v16 = vmul.f32 %v11041_v63, %v754_v13  ;;  %833 = vperm.xlu1 %9566, %v301_v8   ;;  %v6525_v8 = vld [vmem:[%s14814_s2 + $0x90] sm:$0xff]  ;;  %v6526_v10 = vld [vmem:[%s14814_s2 + $0x98] sm:$0xff] }
 0x115   : > { %7597 = vmatmul.mubr.f32.gmra.mrb[34].mxu1 %v9622_v14  ;;  %v9441_v13 = vpack.c.bf16 %v6526_v10, %v6525_v8 }
 0x116   : > { %9627 = vtanh.f32 %v1904_v15  ;;  %v1843_v18 = vadd.f32 %v1714_v12, %v1064_v16  ;;  %v1160_v19 = vpop.permute.xlu0 %1159  ;;  %7599 = vmatprep.mubr.msk.f32.mxu1 %vm10890_vm0, %v10891_v33 }
 0x117   : > { %v1642_v20 = vmul.f32 %v11046_v0, %v1160_v19  ;;  %1223 = vperm.xlu0 %9563, %v229_v17   ;;  %v394_v21 = vpop.permute.xlu1 %393  ;;  %9442 = vmatpush3.bf16.msra.mxu1 %v9441_v13 }
 0x118   : > { %v9624_v22 = vpop.eup %9623  ;;  %v1977_v23 = vadd.f32 %v11056_v9, %v1843_v18  ;;  %v992_v24 = vmul.f32 %v11041_v63, %v394_v21  ;;  %473 = vperm.xlu1 %9566, %v229_v17   ;;  %v305_v17 = vld [vmem:[%s10955_s7 + $0x340] sm:$0xff]  ;;  %9443 = vmatprep.subr.bf16.mxu1 %v14817_v6 }
 0x119   : > { %7381 = vmatmul.mubr.f32.gmra.mrb[20].mxu0 %v9624_v22 }
 0x11a   : > { %9629 = vtanh.f32 %v1977_v23  ;;  %v1771_v26 = vadd.f32 %v1642_v20, %v992_v24  ;;  %v1452_v27 = vpop.permute.xlu0 %1451  ;;  %7383 = vmatprep.mubr.msk.f32.mxu0 %vm10890_vm0, %v10891_v33 }
 0x11b   : > { %v1715_v28 = vmul.f32 %v11046_v0, %v1452_v27  ;;  %1515 = vperm.xlu0 %9563, %v302_v25   ;;  %v759_v29 = vpop.permute.xlu1 %758 }
 0x11c   : > { %v9626_v30 = vpop.eup %9625  ;;  %v1905_v31 = vadd.f32 %v11056_v9, %v1771_v26  ;;  %v1065_v32 = vmul.f32 %v11041_v63, %v759_v29  ;;  %838 = vperm.xlu1 %9566, %v302_v25   ;;  %v233_v25 = vld [vmem:[%s10955_s7 + $0x100] sm:$0xff] }
 0x11d   : > { %7600 = vmatmul.mubr.f32.gmra.mrb[36].mxu1 %v9626_v30 }
 0x11e   : > { %9631 = vtanh.f32 %v1905_v31  ;;  %v1844_v35 = vadd.f32 %v1715_v28, %v1065_v32  ;;  %v1164_v36 = vpop.permute.xlu0 %1163  ;;  %7602 = vmatprep.mubr.msk.f32.mxu1 %vm10890_vm0, %v10891_v33  ;;  %v11308_v31 = vld [vmem:[%s14813_s1] ss:$0 sm:$0xff] }
 0x11f   : > { %v1643_v37 = vmul.f32 %v11046_v0, %v1164_v36  ;;  %1227 = vperm.xlu0 %9563, %v230_v34   ;;  %v399_v38 = vpop.permute.xlu1 %398 }
 0x120   : > { %v9628_v39 = vpop.eup %9627  ;;  %v1978_v40 = vadd.f32 %v11056_v9, %v1844_v35  ;;  %v993_v41 = vmul.f32 %v11041_v63, %v399_v38  ;;  %478 = vperm.xlu1 %9566, %v230_v34   ;;  %v306_v34 = vld [vmem:[%s10955_s7 + $0x348] sm:$0xff] }
 0x121   : > { %7384 = vmatmul.mubr.f32.gmra.mrb[22].mxu0 %v9628_v39  ;;  %v11318_v39 = vld [vmem:[%s14815_s3] ss:$0 sm:$0xff] }
 0x122   : > { %9633 = vtanh.f32 %v1978_v40  ;;  %v1772_v43 = vadd.f32 %v1643_v37, %v993_v41  ;;  %v1456_v44 = vpop.permute.xlu0 %1455  ;;  %7386 = vmatprep.mubr.msk.f32.mxu0 %vm10890_vm0, %v10891_v33 }
 0x123   : > { %v1716_v45 = vmul.f32 %v11046_v0, %v1456_v44  ;;  %1519 = vperm.xlu0 %9563, %v303_v42   ;;  %v764_v46 = vpop.permute.xlu1 %763 }
 0x124   : > { %v9630_v47 = vpop.eup %9629  ;;  %v1906_v48 = vadd.f32 %v11056_v9, %v1772_v43  ;;  %v1066_v49 = vmul.f32 %v11041_v63, %v764_v46  ;;  %843 = vperm.xlu1 %9566, %v303_v42   ;;  %v234_v42 = vld [vmem:[%s10955_s7 + $0x108] sm:$0xff] }
 0x125   : > { %7603 = vmatmul.mubr.f32.gmra.mrb[38].mxu1 %v9630_v47 }
 0x126   : > { %9635 = vtanh.f32 %v1906_v48  ;;  %v1845_v51 = vadd.f32 %v1716_v45, %v1066_v49  ;;  %v1168_v52 = vpop.permute.xlu0 %1167  ;;  %7605 = vmatprep.mubr.msk.f32.mxu1 %vm10890_vm0, %v10891_v33 }
 0x127   : > { %v1644_v53 = vmul.f32 %v11046_v0, %v1168_v52  ;;  %1231 = vperm.xlu0 %9563, %v231_v50   ;;  %v404_v54 = vpop.permute.xlu1 %403 }
 0x128   : > { %v9632_v55 = vpop.eup %9631  ;;  %v1979_v56 = vadd.f32 %v11056_v9, %v1845_v51  ;;  %v994_v57 = vmul.f32 %v11041_v63, %v404_v54  ;;  %483 = vperm.xlu1 %9566, %v231_v50   ;;  %v307_v50 = vld [vmem:[%s10955_s7 + $0x350] sm:$0xff] }
 0x129   : > { %7387 = vmatmul.mubr.f32.gmra.mrb[24].mxu0 %v9632_v55 }
 0x12a   : > { %9637 = vtanh.f32 %v1979_v56  ;;  %v1773_v59 = vadd.f32 %v1644_v53, %v994_v57  ;;  %v1460_v60 = vpop.permute.xlu0 %1459  ;;  %7389 = vmatprep.mubr.msk.f32.mxu0 %vm10890_vm0, %v10891_v33 }
 0x12b   : > { %v1717_v61 = vmul.f32 %v11046_v0, %v1460_v60  ;;  %1523 = vperm.xlu0 %9563, %v304_v58   ;;  %v769_v62 = vpop.permute.xlu1 %768 }
 0x12c   : > { %v9634_v1 = vpop.eup %9633  ;;  %v1907_v2 = vadd.f32 %v11056_v9, %v1773_v59  ;;  %v1067_v3 = vmul.f32 %v11041_v63, %v769_v62  ;;  %848 = vperm.xlu1 %9566, %v304_v58   ;;  %v235_v58 = vld [vmem:[%s10955_s7 + $0x110] sm:$0xff] }
 0x12d   : > { %7606 = vmatmul.mubr.f32.gmra.mrb[40].mxu1 %v9634_v1 }
 0x12e   : > { %9639 = vtanh.f32 %v1907_v2  ;;  %v1846_v5 = vadd.f32 %v1717_v61, %v1067_v3  ;;  %v1172_v7 = vpop.permute.xlu0 %1171  ;;  %7608 = vmatprep.mubr.msk.f32.mxu1 %vm10890_vm0, %v10891_v33 }
 0x12f   : > { %v1645_v11 = vmul.f32 %v11046_v0, %v1172_v7  ;;  %1235 = vperm.xlu0 %9563, %v232_v4   ;;  %v409_v12 = vpop.permute.xlu1 %408 }
 0x130   : > { %v9636_v14 = vpop.eup %9635  ;;  %v1980_v15 = vadd.f32 %v11056_v9, %v1846_v5  ;;  %v995_v16 = vmul.f32 %v11041_v63, %v409_v12  ;;  %488 = vperm.xlu1 %9566, %v232_v4   ;;  %v308_v4 = vld [vmem:[%s10955_s7 + $0x358] sm:$0xff] }
 0x131   : > { %7390 = vmatmul.mubr.f32.gmra.mrb[26].mxu0 %v9636_v14  ;;  %v236_v14 = vld [vmem:[%s10955_s7 + $0x118] sm:$0xff] }
 0x132   : > { %9641 = vtanh.f32 %v1980_v15  ;;  %v1774_v18 = vadd.f32 %v1645_v11, %v995_v16  ;;  %v1464_v19 = vpop.permute.xlu0 %1463  ;;  %7392 = vmatprep.mubr.msk.f32.mxu0 %vm10890_vm0, %v10891_v33 }
 0x133   : > { %v1718_v20 = vmul.f32 %v11046_v0, %v1464_v19  ;;  %1527 = vperm.xlu0 %9563, %v305_v17   ;;  %v774_v21 = vpop.permute.xlu1 %773  ;;  %v11301_v0 = vld [vmem:[%s14813_s1 + $0x1] ss:$0 sm:$0xff] }
 0x134   : > { %v9638_v22 = vpop.eup %9637  ;;  %v1908_v23 = vadd.f32 %v11056_v9, %v1774_v18  ;;  %v1068_v24 = vmul.f32 %v11041_v63, %v774_v21  ;;  %853 = vperm.xlu1 %9566, %v305_v17   ;;  %v6527_v17 = vld [vmem:[%s14814_s2 + $0xa0] sm:$0xff]  ;;  %v6528_v18 = vld [vmem:[%s14814_s2 + $0xa8] sm:$0xff] }
 0x135   : > { %7609 = vmatmul.mubr.f32.gmra.mrb[42].mxu1 %v9638_v22  ;;  %v9444_v21 = vpack.c.bf16 %v6528_v18, %v6527_v17 }
 0x136   : > { %9643 = vtanh.f32 %v1908_v23  ;;  %v1847_v26 = vadd.f32 %v1718_v20, %v1068_v24  ;;  %v1176_v27 = vpop.permute.xlu0 %1175  ;;  %7611 = vmatprep.mubr.msk.f32.mxu1 %vm10890_vm0, %v10891_v33 }
 0x137   : > { %v1646_v28 = vmul.f32 %v11301_v0, %v1176_v27  ;;  %1239 = vperm.xlu0 %9563, %v233_v25   ;;  %v414_v29 = vpop.permute.xlu1 %413  ;;  %9445 = vmatpush3.bf16.msra.mxu1 %v9444_v21 }
 0x138   : > { %v9640_v63 = vpop.eup %9639  ;;  %v1981_v30 = vadd.f32 %v11056_v9, %v1847_v26  ;;  %v996_v32 = vmul.f32 %v11308_v31, %v414_v29  ;;  %493 = vperm.xlu1 %9566, %v233_v25   ;;  %v309_v25 = vld [vmem:[%s10955_s7 + $0x360] sm:$0xff]  ;;  %9446 = vmatprep.subr.bf16.mxu1 %v14817_v6 }
 0x139   : > { %7393 = vmatmul.mubr.f32.gmra.mrb[28].mxu0 %v9640_v63 }
 0x13a   : > { %9645 = vtanh.f32 %v1981_v30  ;;  %v1775_v35 = vadd.f32 %v1646_v28, %v996_v32  ;;  %v1468_v36 = vpop.permute.xlu0 %1467  ;;  %7395 = vmatprep.mubr.msk.f32.mxu0 %vm10890_vm0, %v10891_v33 }
 0x13b   : > { %v1719_v37 = vmul.f32 %v11301_v0, %v1468_v36  ;;  %1531 = vperm.xlu0 %9563, %v306_v34   ;;  %v779_v9 = vpop.permute.xlu1 %778 }
 0x13c   : > { %v9642_v38 = vpop.eup %9641  ;;  %v1909_v40 = vadd.f32 %v11318_v39, %v1775_v35  ;;  %v1069_v41 = vmul.f32 %v11308_v31, %v779_v9  ;;  %858 = vperm.xlu1 %9566, %v306_v34   ;;  %v237_v34 = vld [vmem:[%s10955_s7 + $0x120] sm:$0xff] }
 0x13d   : > { %7612 = vmatmul.mubr.f32.gmra.mrb[44].mxu1 %v9642_v38 }
 0x13e   : > { %9647 = vtanh.f32 %v1909_v40  ;;  %v1848_v43 = vadd.f32 %v1719_v37, %v1069_v41  ;;  %v1180_v44 = vpop.permute.xlu0 %1179  ;;  %7614 = vmatprep.mubr.msk.f32.mxu1 %vm10890_vm0, %v10891_v33 }
 0x13f   : > { %v1647_v45 = vmul.f32 %v11301_v0, %v1180_v44  ;;  %1243 = vperm.xlu0 %9563, %v234_v42   ;;  %v419_v46 = vpop.permute.xlu1 %418 }
 0x140   : > { %v9644_v47 = vpop.eup %9643  ;;  %v1982_v48 = vadd.f32 %v11318_v39, %v1848_v43  ;;  %v997_v49 = vmul.f32 %v11308_v31, %v419_v46  ;;  %498 = vperm.xlu1 %9566, %v234_v42   ;;  %v310_v42 = vld [vmem:[%s10955_s7 + $0x368] sm:$0xff] }
 0x141   : > { %7396 = vmatmul.mubr.f32.gmra.mrb[30].mxu0 %v9644_v47 }
 0x142   : > { %9649 = vtanh.f32 %v1982_v48  ;;  %v1776_v51 = vadd.f32 %v1647_v45, %v997_v49  ;;  %v1472_v52 = vpop.permute.xlu0 %1471  ;;  %7398 = vmatprep.mubr.msk.f32.mxu0 %vm10890_vm0, %v10891_v33 }
 0x143   : > { %v1720_v53 = vmul.f32 %v11301_v0, %v1472_v52  ;;  %1535 = vperm.xlu0 %9563, %v307_v50   ;;  %v784_v54 = vpop.permute.xlu1 %783 }
 0x144   : > { %v9646_v55 = vpop.eup %9645  ;;  %v1910_v56 = vadd.f32 %v11318_v39, %v1776_v51  ;;  %v1070_v57 = vmul.f32 %v11308_v31, %v784_v54  ;;  %863 = vperm.xlu1 %9566, %v307_v50   ;;  %v238_v50 = vld [vmem:[%s10955_s7 + $0x128] sm:$0xff] }
 0x145   : > { %7615 = vmatmul.mubr.f32.gmra.mrb[46].mxu1 %v9646_v55 }
 0x146   : > { %9651 = vtanh.f32 %v1910_v56  ;;  %v1849_v59 = vadd.f32 %v1720_v53, %v1070_v57  ;;  %v1184_v60 = vpop.permute.xlu0 %1183  ;;  %7617 = vmatprep.mubr.msk.f32.mxu1 %vm10890_vm0, %v10891_v33 }
 0x147   : > { %v1648_v61 = vmul.f32 %v11301_v0, %v1184_v60  ;;  %1247 = vperm.xlu0 %9563, %v235_v58   ;;  %v424_v62 = vpop.permute.xlu1 %423 }
 0x148   : > { %v9648_v1 = vpop.eup %9647  ;;  %v1983_v2 = vadd.f32 %v11318_v39, %v1849_v59  ;;  %v998_v3 = vmul.f32 %v11308_v31, %v424_v62  ;;  %503 = vperm.xlu1 %9566, %v235_v58   ;;  %v311_v58 = vld [vmem:[%s10955_s7 + $0x370] sm:$0xff] }
 0x149   : > { %7399 = vmatmul.mubr.f32.gmra.mrb[32].mxu0 %v9648_v1 }
 0x14a   : > { %9653 = vtanh.f32 %v1983_v2  ;;  %v1777_v5 = vadd.f32 %v1648_v61, %v998_v3  ;;  %v1476_v7 = vpop.permute.xlu0 %1475  ;;  %7401 = vmatprep.mubr.msk.f32.mxu0 %vm10890_vm0, %v10891_v33 }
 0x14b   : > { %v1721_v8 = vmul.f32 %v11301_v0, %v1476_v7  ;;  %1539 = vperm.xlu0 %9563, %v308_v4   ;;  %v789_v10 = vpop.permute.xlu1 %788 }
 0x14c   : > { %v9650_v11 = vpop.eup %9649  ;;  %v1911_v12 = vadd.f32 %v11318_v39, %v1777_v5  ;;  %v1071_v13 = vmul.f32 %v11308_v31, %v789_v10  ;;  %868 = vperm.xlu1 %9566, %v308_v4   ;;  %v239_v4 = vld [vmem:[%s10955_s7 + $0x130] sm:$0xff] }
 0x14d   : > { %7618 = vmatmul.mubr.f32.gmra.mrb[48].mxu1 %v9650_v11 }
 0x14e   : > { %9655 = vtanh.f32 %v1911_v12  ;;  %v1850_v15 = vadd.f32 %v1721_v8, %v1071_v13  ;;  %v1188_v16 = vpop.permute.xlu0 %1187  ;;  %7620 = vmatprep.mubr.msk.f32.mxu1 %vm10890_vm0, %v10891_v33 }
 0x14f   : > { %v1649_v19 = vmul.f32 %v11301_v0, %v1188_v16  ;;  %1251 = vperm.xlu0 %9563, %v236_v14   ;;  %v429_v20 = vpop.permute.xlu1 %428 }
 0x150   : > { %v9652_v22 = vpop.eup %9651  ;;  %v1984_v23 = vadd.f32 %v11318_v39, %v1850_v15  ;;  %v999_v24 = vmul.f32 %v11308_v31, %v429_v20  ;;  %508 = vperm.xlu1 %9566, %v236_v14   ;;  %v312_v14 = vld [vmem:[%s10955_s7 + $0x378] sm:$0xff] }
 0x151   : > { %7402 = vmatmul.mubr.f32.gmra.mrb[34].mxu0 %v9652_v22  ;;  %v240_v22 = vld [vmem:[%s10955_s7 + $0x138] sm:$0xff] }
 0x152   : > { %9657 = vtanh.f32 %v1984_v23  ;;  %v1778_v26 = vadd.f32 %v1649_v19, %v999_v24  ;;  %v1480_v27 = vpop.permute.xlu0 %1479  ;;  %7404 = vmatprep.mubr.msk.f32.mxu0 %vm10890_vm0, %v10891_v33 }
 0x153   : > { %v1722_v28 = vmul.f32 %v11301_v0, %v1480_v27  ;;  %1543 = vperm.xlu0 %9563, %v309_v25   ;;  %v794_v29 = vpop.permute.xlu1 %793 }
 0x154   : > { %v9654_v63 = vpop.eup %9653  ;;  %v1912_v30 = vadd.f32 %v11318_v39, %v1778_v26  ;;  %v1072_v32 = vmul.f32 %v11308_v31, %v794_v29  ;;  %873 = vperm.xlu1 %9566, %v309_v25   ;;  %v6529_v25 = vld [vmem:[%s14814_s2 + $0xb0] sm:$0xff]  ;;  %v6530_v26 = vld [vmem:[%s14814_s2 + $0xb8] sm:$0xff] }
 0x155   : > { %7621 = vmatmul.mubr.f32.gmra.mrb[50].mxu1 %v9654_v63  ;;  %v9447_v29 = vpack.c.bf16 %v6530_v26, %v6529_v25 }
 0x156   : > { %9659 = vtanh.f32 %v1912_v30  ;;  %v1851_v35 = vadd.f32 %v1722_v28, %v1072_v32  ;;  %v1192_v36 = vpop.permute.xlu0 %1191  ;;  %7623 = vmatprep.mubr.msk.f32.mxu1 %vm10890_vm0, %v10891_v33 }
 0x157   : > { %v1650_v37 = vmul.f32 %v11301_v0, %v1192_v36  ;;  %1255 = vperm.xlu0 %9563, %v237_v34   ;;  %v434_v9 = vpop.permute.xlu1 %433  ;;  %9448 = vmatpush3.bf16.msra.mxu1 %v9447_v29 }
 0x158   : > { %v9656_v38 = vpop.eup %9655  ;;  %v1985_v40 = vadd.f32 %v11318_v39, %v1851_v35  ;;  %v1000_v41 = vmul.f32 %v11308_v31, %v434_v9  ;;  %513 = vperm.xlu1 %9566, %v237_v34   ;;  %v313_v34 = vld [vmem:[%s10955_s7 + $0x380] sm:$0xff]  ;;  %9449 = vmatprep.subr.bf16.mxu1 %v14817_v6 }
 0x159   : > { %7405 = vmatmul.mubr.f32.gmra.mrb[36].mxu0 %v9656_v38 }
 0x15a   : > { %9661 = vtanh.f32 %v1985_v40  ;;  %v1779_v43 = vadd.f32 %v1650_v37, %v1000_v41  ;;  %v1484_v44 = vpop.permute.xlu0 %1483  ;;  %7407 = vmatprep.mubr.msk.f32.mxu0 %vm10890_vm0, %v10891_v33 }
 0x15b   : > { %v1723_v45 = vmul.f32 %v11301_v0, %v1484_v44  ;;  %1547 = vperm.xlu0 %9563, %v310_v42   ;;  %v799_v46 = vpop.permute.xlu1 %798 }
 0x15c   : > { %v9658_v47 = vpop.eup %9657  ;;  %v1913_v48 = vadd.f32 %v11318_v39, %v1779_v43  ;;  %v1073_v49 = vmul.f32 %v11308_v31, %v799_v46  ;;  %878 = vperm.xlu1 %9566, %v310_v42   ;;  %v241_v42 = vld [vmem:[%s10955_s7 + $0x140] sm:$0xff] }
 0x15d   : > { %7624 = vmatmul.mubr.f32.gmra.mrb[52].mxu1 %v9658_v47 }
 0x15e   : > { %9663 = vtanh.f32 %v1913_v48  ;;  %v1852_v51 = vadd.f32 %v1723_v45, %v1073_v49  ;;  %v1196_v52 = vpop.permute.xlu0 %1195  ;;  %7626 = vmatprep.mubr.msk.f32.mxu1 %vm10890_vm0, %v10891_v33 }
 0x15f   : > { %v1651_v53 = vmul.f32 %v11301_v0, %v1196_v52  ;;  %1259 = vperm.xlu0 %9563, %v238_v50   ;;  %v439_v54 = vpop.permute.xlu1 %438 }
 0x160   : > { %v9660_v55 = vpop.eup %9659  ;;  %v1986_v56 = vadd.f32 %v11318_v39, %v1852_v51  ;;  %v1001_v57 = vmul.f32 %v11308_v31, %v439_v54  ;;  %518 = vperm.xlu1 %9566, %v238_v50   ;;  %v314_v50 = vld [vmem:[%s10955_s7 + $0x388] sm:$0xff] }
 0x161   : > { %7408 = vmatmul.mubr.f32.gmra.mrb[38].mxu0 %v9660_v55 }
 0x162   : > { %9665 = vtanh.f32 %v1986_v56  ;;  %v1780_v59 = vadd.f32 %v1651_v53, %v1001_v57  ;;  %v1488_v60 = vpop.permute.xlu0 %1487  ;;  %7410 = vmatprep.mubr.msk.f32.mxu0 %vm10890_vm0, %v10891_v33 }
 0x163   : > { %v1724_v61 = vmul.f32 %v11301_v0, %v1488_v60  ;;  %1551 = vperm.xlu0 %9563, %v311_v58   ;;  %v804_v62 = vpop.permute.xlu1 %803 }
 0x164   : > { %v9662_v1 = vpop.eup %9661  ;;  %v1914_v2 = vadd.f32 %v11318_v39, %v1780_v59  ;;  %v1074_v3 = vmul.f32 %v11308_v31, %v804_v62  ;;  %883 = vperm.xlu1 %9566, %v311_v58   ;;  %v242_v58 = vld [vmem:[%s10955_s7 + $0x148] sm:$0xff] }
 0x165   : > { %7627 = vmatmul.mubr.f32.gmra.mrb[54].mxu1 %v9662_v1 }
 0x166   : > { %9667 = vtanh.f32 %v1914_v2  ;;  %v1853_v5 = vadd.f32 %v1724_v61, %v1074_v3  ;;  %v1200_v7 = vpop.permute.xlu0 %1199  ;;  %7629 = vmatprep.mubr.msk.f32.mxu1 %vm10890_vm0, %v10891_v33 }
 0x167   : > { %v1652_v8 = vmul.f32 %v11301_v0, %v1200_v7  ;;  %1263 = vperm.xlu0 %9563, %v239_v4   ;;  %v444_v10 = vpop.permute.xlu1 %443 }
 0x168   : > { %v9664_v11 = vpop.eup %9663  ;;  %v1987_v12 = vadd.f32 %v11318_v39, %v1853_v5  ;;  %v1002_v13 = vmul.f32 %v11308_v31, %v444_v10  ;;  %523 = vperm.xlu1 %9566, %v239_v4   ;;  %v315_v5 = vld [vmem:[%s10955_s7 + $0x390] sm:$0xff] }
 0x169   : > { %7411 = vmatmul.mubr.f32.gmra.mrb[40].mxu0 %v9664_v11 }
 0x16a   : > { %9669 = vtanh.f32 %v1987_v12  ;;  %v1781_v15 = vadd.f32 %v1652_v8, %v1002_v13  ;;  %v1492_v16 = vpop.permute.xlu0 %1491  ;;  %7413 = vmatprep.mubr.msk.f32.mxu0 %vm10890_vm0, %v10891_v33 }
 0x16b   : > { %v1725_v17 = vmul.f32 %v11301_v0, %v1492_v16  ;;  %1555 = vperm.xlu0 %9563, %v312_v14   ;;  %v809_v18 = vpop.permute.xlu1 %808 }
 0x16c   : > { %v9666_v19 = vpop.eup %9665  ;;  %v1915_v20 = vadd.f32 %v11318_v39, %v1781_v15  ;;  %v1075_v21 = vmul.f32 %v11308_v31, %v809_v18  ;;  %888 = vperm.xlu1 %9566, %v312_v14  }
 0x16d   : > { %7630 = vmatmul.mubr.f32.gmra.mrb[56].mxu1 %v9666_v19 }
 0x16e   : > { %9671 = vtanh.f32 %v1915_v20  ;;  %v1854_v23 = vadd.f32 %v1725_v17, %v1075_v21  ;;  %v1204_v24 = vpop.permute.xlu0 %1203  ;;  %7632 = vmatprep.mubr.msk.f32.mxu1 %vm10890_vm0, %v10891_v33  ;;  %v243_v17 = vld [vmem:[%s10955_s7 + $0x150] sm:$0xff] }
 0x16f   : > { %v1653_v27 = vmul.f32 %v11301_v0, %v1204_v24  ;;  %1267 = vperm.xlu0 %9563, %v240_v22   ;;  %v449_v28 = vpop.permute.xlu1 %448 }
 0x170   : > { %v9668_v63 = vpop.eup %9667  ;;  %v1988_v30 = vadd.f32 %v11318_v39, %v1854_v23  ;;  %v1003_v32 = vmul.f32 %v11308_v31, %v449_v28  ;;  %528 = vperm.xlu1 %9566, %v240_v22  }
 0x171   : > { %7414 = vmatmul.mubr.f32.gmra.mrb[42].mxu0 %v9668_v63 }
 0x172   : > { %9673 = vtanh.f32 %v1988_v30  ;;  %v1782_v35 = vadd.f32 %v1653_v27, %v1003_v32  ;;  %v1496_v36 = vpop.permute.xlu0 %1495  ;;  %7416 = vmatprep.mubr.msk.f32.mxu0 %vm10890_vm0, %v10891_v33  ;;  %v316_v27 = vld [vmem:[%s10955_s7 + $0x398] sm:$0xff] }
 0x173   : > { %v1726_v37 = vmul.f32 %v11301_v0, %v1496_v36  ;;  %1559 = vperm.xlu0 %9563, %v313_v34   ;;  %v814_v9 = vpop.permute.xlu1 %813 }
 0x174   : > { %v9670_v38 = vpop.eup %9669  ;;  %v1916_v40 = vadd.f32 %v11318_v39, %v1782_v35  ;;  %v1076_v41 = vmul.f32 %v11308_v31, %v814_v9  ;;  %893 = vperm.xlu1 %9566, %v313_v34   ;;  %v244_v9 = vld [vmem:[%s10955_s7 + $0x158] sm:$0xff] }
 0x175   : > { %7633 = vmatmul.mubr.f32.gmra.mrb[58].mxu1 %v9670_v38 }
 0x176   : > { %9675 = vtanh.f32 %v1916_v40  ;;  %v1855_v43 = vadd.f32 %v1726_v37, %v1076_v41  ;;  %v1208_v44 = vpop.permute.xlu0 %1207  ;;  %7635 = vmatprep.mubr.msk.f32.mxu1 %vm10890_vm0, %v10891_v33 }
 0x177   : > { %v1654_v45 = vmul.f32 %v11301_v0, %v1208_v44  ;;  %1271 = vperm.xlu0 %9563, %v241_v42   ;;  %v454_v46 = vpop.permute.xlu1 %453 }
 0x178   : > { %v9672_v47 = vpop.eup %9671  ;;  %v1989_v48 = vadd.f32 %v11318_v39, %v1855_v43  ;;  %v1004_v49 = vmul.f32 %v11308_v31, %v454_v46  ;;  %533 = vperm.xlu1 %9566, %v241_v42   ;;  %v6531_v42 = vld [vmem:[%s14814_s2 + $0xc0] sm:$0xff]  ;;  %v6532_v43 = vld [vmem:[%s14814_s2 + $0xc8] sm:$0xff] }
 0x179   : > { %7417 = vmatmul.mubr.f32.gmra.mrb[44].mxu0 %v9672_v47  ;;  %v9450_v46 = vpack.c.bf16 %v6532_v43, %v6531_v42 }
 0x17a   : > { %9677 = vtanh.f32 %v1989_v48  ;;  %v1783_v51 = vadd.f32 %v1654_v45, %v1004_v49  ;;  %v1500_v52 = vpop.permute.xlu0 %1499  ;;  %7419 = vmatprep.mubr.msk.f32.mxu0 %vm10890_vm0, %v10891_v33 }
 0x17b   : > { %v1727_v53 = vmul.f32 %v11301_v0, %v1500_v52  ;;  %1563 = vperm.xlu0 %9563, %v314_v50   ;;  %v819_v54 = vpop.permute.xlu1 %818  ;;  %9451 = vmatpush3.bf16.msra.mxu1 %v9450_v46 }
 0x17c   : > { %v9674_v55 = vpop.eup %9673  ;;  %v1917_v56 = vadd.f32 %v11318_v39, %v1783_v51  ;;  %v1077_v57 = vmul.f32 %v11308_v31, %v819_v54  ;;  %898 = vperm.xlu1 %9566, %v314_v50   ;;  %v317_v51 = vld [vmem:[%s10955_s7 + $0x3a0] sm:$0xff]  ;;  %9452 = vmatprep.subr.bf16.mxu1 %v14817_v6 }
 0x17d   : > { %7636 = vmatmul.mubr.f32.gmra.mrb[60].mxu1 %v9674_v55 }
 0x17e   : > { %9679 = vtanh.f32 %v1917_v56  ;;  %v1856_v59 = vadd.f32 %v1727_v53, %v1077_v57  ;;  %v1212_v60 = vpop.permute.xlu0 %1211  ;;  %7638 = vmatprep.mubr.msk.f32.mxu1 %vm10890_vm0, %v10891_v33 }
 0x17f   : > { %v1655_v61 = vmul.f32 %v11301_v0, %v1212_v60  ;;  %1275 = vperm.xlu0 %9563, %v242_v58   ;;  %v459_v62 = vpop.permute.xlu1 %458  ;;  %v11437_v3 = vpop.f32.mrb[0].mxu1 }
 0x180   : > { %v9676_v1 = vpop.eup %9675  ;;  %v1990_v2 = vadd.f32 %v11318_v39, %v1856_v59  ;;  %v1005_v4 = vmul.f32 %v11308_v31, %v459_v62  ;;  %538 = vperm.xlu1 %9566, %v242_v58   ;;  %v7547_v7 = vpop.f32.mrb[1].mxu1 }
 0x181   : > { %7420 = vmatmul.mubr.f32.gmra.mrb[46].mxu0 %v9676_v1 }
 0x182   : > { %9681 = vtanh.f32 %v1990_v2  ;;  %v1784_v8 = vadd.f32 %v1655_v61, %v1005_v4  ;;  %v1504_v10 = vpop.permute.xlu0 %1503  ;;  %7422 = vmatprep.mubr.msk.f32.mxu0 %vm10890_vm0, %v10891_v33  ;;  %v245_v61 = vld [vmem:[%s10955_s7 + $0x160] sm:$0xff] }
 0x183   : > { %v1728_v11 = vmul.f32 %v11301_v0, %v1504_v10  ;;  %1567 = vperm.xlu0 %9563, %v315_v5   ;;  %v824_v12 = vpop.permute.xlu1 %823  ;;  %v11445_v15 = vpop.f32.mrb[2].mxu1 }
 0x184   : > { %v9678_v13 = vpop.eup %9677  ;;  %v1918_v14 = vadd.f32 %v11318_v39, %v1784_v8  ;;  %v1078_v16 = vmul.f32 %v11308_v31, %v824_v12  ;;  %903 = vperm.xlu1 %9566, %v315_v5   ;;  %v7550_v18 = vpop.f32.mrb[3].mxu1  ;;  %v318_v12 = vld [vmem:[%s10955_s7 + $0x3a8] sm:$0xff] }
 0x185   : > { %7639 = vmatmul.mubr.f32.gmra.mrb[62].mxu1 %v9678_v13 }
 0x186   : > { %9683 = vtanh.f32 %v1918_v14  ;;  %v1857_v19 = vadd.f32 %v1728_v11, %v1078_v16  ;;  %v1216_v20 = vpop.permute.xlu0 %1215  ;;  %7641 = vmatprep.mubr.msk.f32.mxu1 %vm10890_vm0, %v10891_v33 }
 0x187   : > { %v1656_v21 = vmul.f32 %v11301_v0, %v1216_v20  ;;  %1279 = vperm.xlu0 %9563, %v243_v17   ;;  %v464_v22 = vpop.permute.xlu1 %463  ;;  %v11453_v25 = vpop.f32.mrb[4].mxu1 }
 0x188   : > { %v9680_v23 = vpop.eup %9679  ;;  %v1991_v24 = vadd.f32 %v11318_v39, %v1857_v19  ;;  %v1006_v26 = vmul.f32 %v11308_v31, %v464_v22  ;;  %543 = vperm.xlu1 %9566, %v243_v17   ;;  %v7553_v28 = vpop.f32.mrb[5].mxu1 }
 0x189   : > { %7423 = vmatmul.mubr.f32.gmra.mrb[48].mxu0 %v9680_v23 }
 0x18a   : > { %9685 = vtanh.f32 %v1991_v24  ;;  %v1785_v29 = vadd.f32 %v1656_v21, %v1006_v26  ;;  %v1508_v63 = vpop.permute.xlu0 %1507  ;;  %7425 = vmatprep.mubr.msk.f32.mxu0 %vm10890_vm0, %v10891_v33  ;;  %v246_v24 = vld [vmem:[%s10955_s7 + $0x168] sm:$0xff] }
 0x18b   : > { %v1729_v30 = vmul.f32 %v11301_v0, %v1508_v63  ;;  %1571 = vperm.xlu0 %9563, %v316_v27   ;;  %v829_v32 = vpop.permute.xlu1 %828  ;;  %v11461_v36 = vpop.f32.mrb[6].mxu1 }
 0x18c   : > { %v9682_v34 = vpop.eup %9681  ;;  %v1919_v35 = vadd.f32 %v11318_v39, %v1785_v29  ;;  %v1079_v37 = vmul.f32 %v11308_v31, %v829_v32  ;;  %908 = vperm.xlu1 %9566, %v316_v27   ;;  %v7556_v38 = vpop.f32.mrb[7].mxu1 }
 0x18d   : > { %7642 = vmatmul.mubr.f32.gmra.mrb[64].mxu1 %v9682_v34 }
 0x18e   : > { %9687 = vtanh.f32 %v1919_v35  ;;  %v1858_v40 = vadd.f32 %v1729_v30, %v1079_v37  ;;  %v1220_v41 = vpop.permute.xlu0 %1219  ;;  %7644 = vmatprep.mubr.msk.f32.mxu1 %vm10890_vm0, %v10891_v33 }
 0x18f   : > { %v1657_v44 = vmul.f32 %v11301_v0, %v1220_v41  ;;  %1283 = vperm.xlu0 %9563, %v244_v9   ;;  %v469_v45 = vpop.permute.xlu1 %468  ;;  %v11475_v49 = vpop.f32.mrb[8].mxu1 }
 0x190   : > { %v9684_v47 = vpop.eup %9683  ;;  %v1992_v48 = vadd.f32 %v11318_v39, %v1858_v40  ;;  %v1007_v50 = vmul.f32 %v11308_v31, %v469_v45  ;;  %548 = vperm.xlu1 %9566, %v244_v9   ;;  %v7559_v52 = vpop.f32.mrb[9].mxu1  ;;  %v319_v9 = vld [vmem:[%s10955_s7 + $0x3b0] sm:$0xff] }
 0x191   : > { %7426 = vmatmul.mubr.f32.gmra.mrb[50].mxu0 %v9684_v47 }
 0x192   : > { %9689 = vtanh.f32 %v1992_v48  ;;  %v1786_v53 = vadd.f32 %v1657_v44, %v1007_v50  ;;  %v1512_v54 = vpop.permute.xlu0 %1511  ;;  %7428 = vmatprep.mubr.msk.f32.mxu0 %vm10890_vm0, %v10891_v33  ;;  %v247_v48 = vld [vmem:[%s10955_s7 + $0x170] sm:$0xff] }
 0x193   : > { %v1730_v55 = vmul.f32 %v11301_v0, %v1512_v54  ;;  %1575 = vperm.xlu0 %9563, %v317_v51   ;;  %v834_v56 = vpop.permute.xlu1 %833  ;;  %v11484_v59 = vpop.f32.mrb[10].mxu1 }
 0x194   : > { %v9686_v57 = vpop.eup %9685  ;;  %v1920_v58 = vadd.f32 %v11318_v39, %v1786_v53  ;;  %v1080_v60 = vmul.f32 %v11308_v31, %v834_v56  ;;  %913 = vperm.xlu1 %9566, %v317_v51   ;;  %v7562_v62 = vpop.f32.mrb[11].mxu1 }
 0x195   : > { %7645 = vmatmul.mubr.f32.gmra.mrb[66].mxu1 %v9686_v57 }
 0x196   : > { %9691 = vtanh.f32 %v1920_v58  ;;  %v1859_v1 = vadd.f32 %v1730_v55, %v1080_v60  ;;  %v1224_v2 = vpop.permute.xlu0 %1223  ;;  %7647 = vmatprep.mubr.msk.f32.mxu1 %vm10890_vm0, %v10891_v33  ;;  %v320_v60 = vld [vmem:[%s10955_s7 + $0x3b8] sm:$0xff] }
 0x197   : > { %v1658_v4 = vmul.f32 %v11301_v0, %v1224_v2  ;;  %1287 = vperm.xlu0 %9563, %v245_v61   ;;  %v474_v5 = vpop.permute.xlu1 %473  ;;  %v11492_v10 = vpop.f32.mrb[12].mxu1 }
 0x198   : > { %v9688_v7 = vpop.eup %9687  ;;  %v1993_v8 = vadd.f32 %v11318_v39, %v1859_v1  ;;  %v1008_v11 = vmul.f32 %v11308_v31, %v474_v5  ;;  %553 = vperm.xlu1 %9566, %v245_v61   ;;  %v7565_v13 = vpop.f32.mrb[13].mxu1 }
 0x199   : > { %7429 = vmatmul.mubr.f32.gmra.mrb[52].mxu0 %v9688_v7 }
 0x19a   : > { %9693 = vtanh.f32 %v1993_v8  ;;  %v1787_v14 = vadd.f32 %v1658_v4, %v1008_v11  ;;  %v1516_v16 = vpop.permute.xlu0 %1515  ;;  %7431 = vmatprep.mubr.msk.f32.mxu0 %vm10890_vm0, %v10891_v33 }
 0x19b   : > { %v1731_v17 = vmul.f32 %v11301_v0, %v1516_v16  ;;  %1579 = vperm.xlu0 %9563, %v318_v12   ;;  %v839_v18 = vpop.permute.xlu1 %838  ;;  %v11500_v21 = vpop.f32.mrb[14].mxu1 }
 0x19c   : > { %v9690_v19 = vpop.eup %9689  ;;  %v1921_v20 = vadd.f32 %v11318_v39, %v1787_v14  ;;  %v1081_v22 = vmul.f32 %v11308_v31, %v839_v18  ;;  %v11503_v23 = vpop.f32.mrb[0].mxu0  ;;  %918 = vperm.xlu1 %9566, %v318_v12   ;;  %v248_v12 = vld [vmem:[%s10955_s7 + $0x178] sm:$0xff] }
 0x19d   : > { %v7568_v26 = vpop.f32.mrb[15].mxu1  ;;  %v7352_v27 = vpop.f32.mrb[1].mxu0  ;;  %7648 = vmatmul.mubr.f32.gmra.mrb[68].mxu1 %v9690_v19  ;;  %v6534_v18 = vld [vmem:[%s14814_s2 + $0xd8] sm:$0xff] }
 0x19e   : > { %9695 = vtanh.f32 %v1921_v20  ;;  %v1860_v28 = vadd.f32 %v1731_v17, %v1081_v22  ;;  %v1228_v29 = vpop.permute.xlu0 %1227  ;;  %7650 = vmatprep.mubr.msk.f32.mxu1 %vm10890_vm0, %v10891_v33  ;;  %v6533_v17 = vld [vmem:[%s14814_s2 + $0xd0] sm:$0xff] }
 0x19f   : > { %v1659_v63 = vmul.f32 %v11301_v0, %v1228_v29  ;;  %1291 = vperm.xlu0 %9563, %v246_v24   ;;  %v479_v30 = vpop.permute.xlu1 %478  ;;  %v9453_v22 = vpack.c.bf16 %v6534_v18, %v6533_v17  ;;  %v321_v29 = vld [vmem:[%s10955_s7 + $0x3c0] sm:$0xff] }
 0x1a0   : > { %v9692_v32 = vpop.eup %9691  ;;  %v1994_v34 = vadd.f32 %v11318_v39, %v1860_v28  ;;  %v1009_v35 = vmul.f32 %v11308_v31, %v479_v30  ;;  %v11511_v37 = vpop.f32.mrb[16].mxu1  ;;  %558 = vperm.xlu1 %9566, %v246_v24  }
 0x1a1   : > { %7432 = vmatmul.mubr.f32.gmra.mrb[54].mxu0 %v9692_v32  ;;  %v7571_v38 = vpop.f32.mrb[17].mxu1  ;;  %9454 = vmatpush3.bf16.msra.mxu1 %v9453_v22 }
 0x1a2   : > { %9697 = vtanh.f32 %v1994_v34  ;;  %v1788_v40 = vadd.f32 %v1659_v63, %v1009_v35  ;;  %v1520_v41 = vpop.permute.xlu0 %1519  ;;  %7434 = vmatprep.mubr.msk.f32.mxu0 %vm10890_vm0, %v10891_v33  ;;  %9455 = vmatprep.subr.bf16.mxu1 %v14817_v6 }
 0x1a3   : > { %v1732_v42 = vmul.f32 %v11301_v0, %v1520_v41  ;;  %1583 = vperm.xlu0 %9563, %v319_v9   ;;  %v844_v43 = vpop.permute.xlu1 %843 }
 0x1a4   : > { %v9694_v44 = vpop.eup %9693  ;;  %v1922_v45 = vadd.f32 %v11318_v39, %v1788_v40  ;;  %v1082_v46 = vmul.f32 %v11308_v31, %v844_v43  ;;  %v11519_v47 = vpop.f32.mrb[2].mxu0  ;;  %923 = vperm.xlu1 %9566, %v319_v9  }
 0x1a5   : > { %v7355_v50 = vpop.f32.mrb[3].mxu0  ;;  %7651 = vmatmul.mubr.f32.gmra.mrb[70].mxu1 %v9694_v44 }
 0x1a6   : > { %9699 = vtanh.f32 %v1922_v45  ;;  %v1861_v51 = vadd.f32 %v1732_v42, %v1082_v46  ;;  %v1232_v52 = vpop.permute.xlu0 %1231  ;;  %7653 = vmatprep.mubr.msk.f32.mxu1 %vm10890_vm0, %v10891_v33  ;;  %v249_v42 = vld [vmem:[%s10955_s7 + $0x180] sm:$0xff] }
 0x1a7   : > { %v1660_v53 = vmul.f32 %v11301_v0, %v1232_v52  ;;  %1295 = vperm.xlu0 %9563, %v247_v48   ;;  %v484_v54 = vpop.permute.xlu1 %483 }
 0x1a8   : > { %v9696_v55 = vpop.eup %9695  ;;  %v1995_v56 = vadd.f32 %v11318_v39, %v1861_v51  ;;  %v1010_v57 = vmul.f32 %v11308_v31, %v484_v54  ;;  %v11527_v58 = vpop.f32.mrb[18].mxu1  ;;  %563 = vperm.xlu1 %9566, %v247_v48   ;;  %v322_v54 = vld [vmem:[%s10955_s7 + $0x3c8] sm:$0xff] }
 0x1a9   : > { %7435 = vmatmul.mubr.f32.gmra.mrb[56].mxu0 %v9696_v55  ;;  %v7574_v61 = vpop.f32.mrb[19].mxu1 }
 0x1aa   : > { %9701 = vtanh.f32 %v1995_v56  ;;  %v1789_v62 = vadd.f32 %v1660_v53, %v1010_v57  ;;  %v1524_v1 = vpop.permute.xlu0 %1523  ;;  %7437 = vmatprep.mubr.msk.f32.mxu0 %vm10890_vm0, %v10891_v33 }
 0x1ab   : > { %v1733_v2 = vmul.f32 %v11301_v0, %v1524_v1  ;;  %1587 = vperm.xlu0 %9563, %v320_v60   ;;  %v849_v4 = vpop.permute.xlu1 %848 }
 0x1ac   : > { %v9698_v5 = vpop.eup %9697  ;;  %v1923_v7 = vadd.f32 %v11318_v39, %v1789_v62  ;;  %v1083_v8 = vmul.f32 %v11308_v31, %v849_v4  ;;  %v11535_v11 = vpop.f32.mrb[4].mxu0  ;;  %928 = vperm.xlu1 %9566, %v320_v60  }
 0x1ad   : > { %v7358_v13 = vpop.f32.mrb[5].mxu0  ;;  %7654 = vmatmul.mubr.f32.gmra.mrb[72].mxu1 %v9698_v5  ;;  %v250_v5 = vld [vmem:[%s10955_s7 + $0x188] sm:$0xff] }
 0x1ae   : > { %9703 = vtanh.f32 %v1923_v7  ;;  %v1862_v14 = vadd.f32 %v1733_v2, %v1083_v8  ;;  %v1236_v16 = vpop.permute.xlu0 %1235  ;;  %7656 = vmatprep.mubr.msk.f32.mxu1 %vm10890_vm0, %v10891_v33 }
 0x1af   : > { %v1661_v19 = vmul.f32 %v11301_v0, %v1236_v16  ;;  %1299 = vperm.xlu0 %9563, %v248_v12   ;;  %v489_v20 = vpop.permute.xlu1 %488 }
 0x1b0   : > { %v9700_v24 = vpop.eup %9699  ;;  %v1996_v26 = vadd.f32 %v11318_v39, %v1862_v14  ;;  %v1011_v27 = vmul.f32 %v11308_v31, %v489_v20  ;;  %v11549_v28 = vpop.f32.mrb[20].mxu1  ;;  %568 = vperm.xlu1 %9566, %v248_v12   ;;  %v323_v20 = vld [vmem:[%s10955_s7 + $0x3d0] sm:$0xff] }
 0x1b1   : > { %7438 = vmatmul.mubr.f32.gmra.mrb[58].mxu0 %v9700_v24  ;;  %v7577_v63 = vpop.f32.mrb[21].mxu1 }
 0x1b2   : > { %9705 = vtanh.f32 %v1996_v26  ;;  %v1790_v30 = vadd.f32 %v1661_v19, %v1011_v27  ;;  %v1528_v32 = vpop.permute.xlu0 %1527  ;;  %7440 = vmatprep.mubr.msk.f32.mxu0 %vm10890_vm0, %v10891_v33 }
 0x1b3   : > { %v1734_v34 = vmul.f32 %v11301_v0, %v1528_v32  ;;  %1591 = vperm.xlu0 %9563, %v321_v29   ;;  %v854_v35 = vpop.permute.xlu1 %853 }
 0x1b4   : > { %v9702_v9 = vpop.eup %9701  ;;  %v1924_v38 = vadd.f32 %v11318_v39, %v1790_v30  ;;  %v1084_v40 = vmul.f32 %v11308_v31, %v854_v35  ;;  %v11558_v41 = vpop.f32.mrb[6].mxu0  ;;  %933 = vperm.xlu1 %9566, %v321_v29   ;;  %v251_v35 = vld [vmem:[%s10955_s7 + $0x190] sm:$0xff] }
 0x1b5   : > { %v7361_v43 = vpop.f32.mrb[7].mxu0  ;;  %7657 = vmatmul.mubr.f32.gmra.mrb[74].mxu1 %v9702_v9 }
 0x1b6   : > { %9707 = vtanh.f32 %v1924_v38  ;;  %v1863_v44 = vadd.f32 %v1734_v34, %v1084_v40  ;;  %v1240_v45 = vpop.permute.xlu0 %1239  ;;  %7659 = vmatprep.mubr.msk.f32.mxu1 %vm10890_vm0, %v10891_v33  ;;  %v11604_v43 = vld [vmem:[%s14815_s3] ss:$0 sm:$0xff] }
 0x1b7   : > { %v1662_v46 = vmul.f32 %v11301_v0, %v1240_v45  ;;  %1303 = vperm.xlu0 %9563, %v249_v42   ;;  %v494_v48 = vpop.permute.xlu1 %493  ;;  %v11610_v45 = vld [vmem:[%s14813_s1] ss:$0 sm:$0xff] }
 0x1b8   : > { %v9704_v50 = vpop.eup %9703  ;;  %v1997_v51 = vadd.f32 %v11318_v39, %v1863_v44  ;;  %v1012_v52 = vmul.f32 %v11308_v31, %v494_v48  ;;  %v11566_v53 = vpop.f32.mrb[22].mxu1  ;;  %573 = vperm.xlu1 %9566, %v249_v42  }
 0x1b9   : > { %7441 = vmatmul.mubr.f32.gmra.mrb[60].mxu0 %v9704_v50  ;;  %v7580_v55 = vpop.f32.mrb[23].mxu1  ;;  %v324_v50 = vld [vmem:[%s10955_s7 + $0x3d8] sm:$0xff] }
 0x1ba   : > { %9709 = vtanh.f32 %v1997_v51  ;;  %v1791_v56 = vadd.f32 %v1662_v46, %v1012_v52  ;;  %v1532_v57 = vpop.permute.xlu0 %1531  ;;  %7443 = vmatprep.mubr.msk.f32.mxu0 %vm10890_vm0, %v10891_v33 }
 0x1bb   : > { %v1735_v60 = vmul.f32 %v11301_v0, %v1532_v57  ;;  %1595 = vperm.xlu0 %9563, %v322_v54   ;;  %v859_v61 = vpop.permute.xlu1 %858 }
 0x1bc   : > { %v9706_v62 = vpop.eup %9705  ;;  %v1925_v1 = vadd.f32 %v11318_v39, %v1791_v56  ;;  %v1085_v2 = vmul.f32 %v11308_v31, %v859_v61  ;;  %v11574_v4 = vpop.f32.mrb[8].mxu0  ;;  %938 = vperm.xlu1 %9566, %v322_v54  }
 0x1bd   : > { %v7364_v7 = vpop.f32.mrb[9].mxu0  ;;  %7660 = vmatmul.mubr.f32.gmra.mrb[76].mxu1 %v9706_v62 }
 0x1be   : > { %9711 = vtanh.f32 %v1925_v1  ;;  %v1864_v8 = vadd.f32 %v1735_v60, %v1085_v2  ;;  %v1244_v12 = vpop.permute.xlu0 %1243  ;;  %7662 = vmatprep.mubr.msk.f32.mxu1 %vm10890_vm0, %v10891_v33  ;;  %v252_v1 = vld [vmem:[%s10955_s7 + $0x198] sm:$0xff] }
 0x1bf   : > { %v1663_v13 = vmul.f32 %v11301_v0, %v1244_v12  ;;  %1307 = vperm.xlu0 %9563, %v250_v5   ;;  %v499_v14 = vpop.permute.xlu1 %498  ;;  %v6536_v12 = vld [vmem:[%s14814_s2 + $0xe8] sm:$0xff] }
 0x1c0   : > { %v9708_v16 = vpop.eup %9707  ;;  %v1998_v17 = vadd.f32 %v11318_v39, %v1864_v8  ;;  %v1013_v18 = vmul.f32 %v11308_v31, %v499_v14  ;;  %v11582_v19 = vpop.f32.mrb[24].mxu1  ;;  %578 = vperm.xlu1 %9566, %v250_v5   ;;  %v6535_v8 = vld [vmem:[%s14814_s2 + $0xe0] sm:$0xff] }
 0x1c1   : > { %7444 = vmatmul.mubr.f32.gmra.mrb[62].mxu0 %v9708_v16  ;;  %v7583_v22 = vpop.f32.mrb[25].mxu1  ;;  %v9456_v16 = vpack.c.bf16 %v6536_v12, %v6535_v8  ;;  %v254_v12 = vld [vmem:[%s10955_s7 + $0x1a8] sm:$0xff] }
 0x1c2   : > { %9713 = vtanh.f32 %v1998_v17  ;;  %v1792_v24 = vadd.f32 %v1663_v13, %v1013_v18  ;;  %v1536_v26 = vpop.permute.xlu0 %1535  ;;  %7446 = vmatprep.mubr.msk.f32.mxu0 %vm10890_vm0, %v10891_v33 }
 0x1c3   : > { %v1736_v27 = vmul.f32 %v11301_v0, %v1536_v26  ;;  %1599 = vperm.xlu0 %9563, %v323_v20   ;;  %v864_v29 = vpop.permute.xlu1 %863  ;;  %v11598_v0 = vld [vmem:[%s14813_s1 + $0x1] ss:$0 sm:$0xff]  ;;  %9457 = vmatpush3.bf16.msra.mxu1 %v9456_v16 }
 0x1c4   : > { %v9710_v63 = vpop.eup %9709  ;;  %v1926_v30 = vadd.f32 %v11318_v39, %v1792_v24  ;;  %v1086_v32 = vmul.f32 %v11308_v31, %v864_v29  ;;  %v11590_v34 = vpop.f32.mrb[10].mxu0  ;;  %943 = vperm.xlu1 %9566, %v323_v20   ;;  %v325_v24 = vld [vmem:[%s10955_s7 + $0x3e0] sm:$0xff]  ;;  %9458 = vmatprep.subr.bf16.mxu1 %v14817_v6 }
 0x1c5   : > { %v7367_v9 = vpop.f32.mrb[11].mxu0  ;;  %7663 = vmatmul.mubr.f32.gmra.mrb[78].mxu1 %v9710_v63 }
 0x1c6   : > { %9715 = vtanh.f32 %v1926_v30  ;;  %v1865_v38 = vadd.f32 %v1736_v27, %v1086_v32  ;;  %v1248_v40 = vpop.permute.xlu0 %1247  ;;  %7665 = vmatprep.mubr.msk.f32.mxu1 %vm10890_vm0, %v10891_v33 }
 0x1c7   : > { %v1664_v31 = vmul.f32 %v11598_v0, %v1248_v40  ;;  %1311 = vperm.xlu0 %9563, %v251_v35   ;;  %v504_v39 = vpop.permute.xlu1 %503  ;;  %v253_v40 = vld [vmem:[%s10955_s7 + $0x1a0] sm:$0xff] }
 0x1c8   : > { %v9712_v42 = vpop.eup %9711  ;;  %v1999_v44 = vadd.f32 %v11604_v43, %v1865_v38  ;;  %v1014_v46 = vmul.f32 %v11610_v45, %v504_v39  ;;  %v11613_v48 = vpop.f32.mrb[26].mxu1  ;;  %583 = vperm.xlu1 %9566, %v251_v35  }
 0x1c9   : > { %14819 = vst [vmem:[#allocation2_spill] sm:$0xff] %v11613_v48  ;;  %7447 = vmatmul.mubr.f32.gmra.mrb[64].mxu0 %v9712_v42  ;;  %v7586_v51 = vpop.f32.mrb[27].mxu1 }
 0x1ca   : > { %9717 = vtanh.f32 %v1999_v44  ;;  %v1793_v52 = vadd.f32 %v1664_v31, %v1014_v46  ;;  %v1540_v54 = vpop.permute.xlu0 %1539  ;;  %7449 = vmatprep.mubr.msk.f32.mxu0 %vm10890_vm0, %v10891_v33 }
 0x1cb   : > { %v1737_v55 = vmul.f32 %v11598_v0, %v1540_v54  ;;  %1603 = vperm.xlu0 %9563, %v324_v50   ;;  %v869_v56 = vpop.permute.xlu1 %868 }
 0x1cc   : > { %v9714_v57 = vpop.eup %9713  ;;  %v1927_v60 = vadd.f32 %v11604_v43, %v1793_v52  ;;  %v1087_v61 = vmul.f32 %v11610_v45, %v869_v56  ;;  %v11621_v62 = vpop.f32.mrb[12].mxu0  ;;  %948 = vperm.xlu1 %9566, %v324_v50  }
 0x1cd   : > { %v7370_v2 = vpop.f32.mrb[13].mxu0  ;;  %7666 = vmatmul.mubr.f32.gmra.mrb[80].mxu1 %v9714_v57 }
 0x1ce   : > { %9719 = vtanh.f32 %v1927_v60  ;;  %v1866_v5 = vadd.f32 %v1737_v55, %v1087_v61  ;;  %v1252_v7 = vpop.permute.xlu0 %1251  ;;  %7668 = vmatprep.mubr.msk.f32.mxu1 %vm10890_vm0, %v10891_v33  ;;  %v326_v55 = vld [vmem:[%s10955_s7 + $0x3e8] sm:$0xff] }
 0x1cf   : > { %v1665_v13 = vmul.f32 %v11598_v0, %v1252_v7  ;;  %1315 = vperm.xlu0 %9563, %v252_v1   ;;  %v509_v14 = vpop.permute.xlu1 %508 }
 0x1d0   : > { %v9716_v17 = vpop.eup %9715  ;;  %v2000_v18 = vadd.f32 %v11604_v43, %v1866_v5  ;;  %v1015_v20 = vmul.f32 %v11610_v45, %v509_v14  ;;  %v11635_v22 = vpop.f32.mrb[28].mxu1  ;;  %588 = vperm.xlu1 %9566, %v252_v1  }
 0x1d1   : > { %14820 = vst [vmem:[#allocation3_spill] sm:$0xff] %v11635_v22  ;;  %7450 = vmatmul.mubr.f32.gmra.mrb[66].mxu0 %v9716_v17  ;;  %v7589_v26 = vpop.f32.mrb[29].mxu1 }
 0x1d2   : > { %9721 = vtanh.f32 %v2000_v18  ;;  %v1794_v27 = vadd.f32 %v1665_v13, %v1015_v20  ;;  %v1544_v29 = vpop.permute.xlu0 %1543  ;;  %7452 = vmatprep.mubr.msk.f32.mxu0 %vm10890_vm0, %v10891_v33 }
 0x1d3   : > { %v1738_v63 = vmul.f32 %v11598_v0, %v1544_v29  ;;  %1607 = vperm.xlu0 %9563, %v325_v24   ;;  %v874_v30 = vpop.permute.xlu1 %873  ;;  %v327_v29 = vld [vmem:[%s10955_s7 + $0x3f0] sm:$0xff] }
 0x1d4   : > { %v9718_v32 = vpop.eup %9717  ;;  %v1928_v35 = vadd.f32 %v11604_v43, %v1794_v27  ;;  %v1088_v9 = vmul.f32 %v11610_v45, %v874_v30  ;;  %v11644_v38 = vpop.f32.mrb[14].mxu0  ;;  %953 = vperm.xlu1 %9566, %v325_v24  }
 0x1d5   : > { %v7373_v31 = vpop.f32.mrb[15].mxu0  ;;  %7669 = vmatmul.mubr.f32.gmra.mrb[82].mxu1 %v9718_v32 }
 0x1d6   : > { %9723 = vtanh.f32 %v1928_v35  ;;  %v1867_v39 = vadd.f32 %v1738_v63, %v1088_v9  ;;  %v1256_v42 = vpop.permute.xlu0 %1255  ;;  %7671 = vmatprep.mubr.msk.f32.mxu1 %vm10890_vm0, %v10891_v33 }
 0x1d7   : > { %v1666_v44 = vmul.f32 %v11598_v0, %v1256_v42  ;;  %1319 = vperm.xlu0 %9563, %v253_v40   ;;  %v514_v46 = vpop.permute.xlu1 %513 }
 0x1d8   : > { %v9720_v50 = vpop.eup %9719  ;;  %v2001_v51 = vadd.f32 %v11604_v43, %v1867_v39  ;;  %v1016_v52 = vmul.f32 %v11610_v45, %v514_v46  ;;  %v11652_v54 = vpop.f32.mrb[30].mxu1  ;;  %593 = vperm.xlu1 %9566, %v253_v40  }
 0x1d9   : > { %14821 = vst [vmem:[#allocation4_spill] sm:$0xff] %v11652_v54  ;;  %7453 = vmatmul.mubr.f32.gmra.mrb[68].mxu0 %v9720_v50  ;;  %v7592_v56 = vpop.f32.mrb[31].mxu1 }
 0x1da   : > { %9725 = vtanh.f32 %v2001_v51  ;;  %v1795_v57 = vadd.f32 %v1666_v44, %v1016_v52  ;;  %v1548_v60 = vpop.permute.xlu0 %1547  ;;  %7455 = vmatprep.mubr.msk.f32.mxu0 %vm10890_vm0, %v10891_v33  ;;  %v255_v44 = vld [vmem:[%s10955_s7 + $0x1b0] sm:$0xff] }
 0x1db   : > { %v1739_v61 = vmul.f32 %v11598_v0, %v1548_v60  ;;  %1611 = vperm.xlu0 %9563, %v326_v55   ;;  %v879_v1 = vpop.permute.xlu1 %878 }
 0x1dc   : > { %v9722_v2 = vpop.eup %9721  ;;  %v1929_v5 = vadd.f32 %v11604_v43, %v1795_v57  ;;  %v1089_v7 = vmul.f32 %v11610_v45, %v879_v1  ;;  %v11660_v8 = vpop.f32.mrb[16].mxu0  ;;  %958 = vperm.xlu1 %9566, %v326_v55   ;;  %v328_v1 = vld [vmem:[%s10955_s7 + $0x3f8] sm:$0xff] }
 0x1dd   : > { %v7376_v13 = vpop.f32.mrb[17].mxu0  ;;  %7672 = vmatmul.mubr.f32.gmra.mrb[84].mxu1 %v9722_v2 }
 0x1de   : > { %9727 = vtanh.f32 %v1929_v5  ;;  %v1868_v14 = vadd.f32 %v1739_v61, %v1089_v7  ;;  %v1260_v16 = vpop.permute.xlu0 %1259  ;;  %7674 = vmatprep.mubr.msk.f32.mxu1 %vm10890_vm0, %v10891_v33  ;;  %v6541_v13 = vld [vmem:[%s14814_s2 + $0x108] sm:$0xff] }
 0x1df   : > { %v1667_v17 = vmul.f32 %v11598_v0, %v1260_v16  ;;  %1323 = vperm.xlu0 %9563, %v254_v12   ;;  %v519_v18 = vpop.permute.xlu1 %518 }
 0x1e0   : > { %v9724_v20 = vpop.eup %9723  ;;  %v2002_v24 = vadd.f32 %v11604_v43, %v1868_v14  ;;  %v1017_v26 = vmul.f32 %v11610_v45, %v519_v18  ;;  %v11668_v27 = vpop.f32.mrb[32].mxu1  ;;  %598 = vperm.xlu1 %9566, %v254_v12   ;;  %v6540_v12 = vld [vmem:[%s14814_s2 + $0x100] sm:$0xff] }
 0x1e1   : > { %14822 = vst [vmem:[#allocation5_spill] sm:$0xff] %v11668_v27  ;;  %7456 = vmatmul.mubr.f32.gmra.mrb[70].mxu0 %v9724_v20  ;;  %v7595_v63 = vpop.f32.mrb[33].mxu1 }
 0x1e2   : > { %9729 = vtanh.f32 %v2002_v24  ;;  %v1796_v30 = vadd.f32 %v1667_v17, %v1017_v26  ;;  %v1552_v32 = vpop.permute.xlu0 %1551  ;;  %7458 = vmatprep.mubr.msk.f32.mxu0 %vm10890_vm0, %v10891_v33  ;;  %v9462_v17 = vpack.c.bf16 %v6541_v13, %v6540_v12  ;;  %v257_v13 = vld [vmem:[%s10955_s7 + $0x1c0] sm:$0xff] }
 0x1e3   : > { %v1740_v35 = vmul.f32 %v11598_v0, %v1552_v32  ;;  %1615 = vperm.xlu0 %9563, %v327_v29   ;;  %v884_v9 = vpop.permute.xlu1 %883 }
 0x1e4   : > { %v9726_v40 = vpop.eup %9725  ;;  %v1930_v31 = vadd.f32 %v11604_v43, %v1796_v30  ;;  %v1090_v39 = vmul.f32 %v11610_v45, %v884_v9  ;;  %v11676_v42 = vpop.f32.mrb[18].mxu0  ;;  %963 = vperm.xlu1 %9566, %v327_v29   ;;  %v256_v29 = vld [vmem:[%s10955_s7 + $0x1b8] sm:$0xff]  ;;  %9463 = vmatpush3.bf16.msra.mxu0 %v9462_v17 }
 0x1e5   : > { %v7379_v46 = vpop.f32.mrb[19].mxu0  ;;  %7675 = vmatmul.mubr.f32.gmra.mrb[86].mxu1 %v9726_v40  ;;  %v6538_v9 = vld [vmem:[%s14814_s2 + $0xf8] sm:$0xff]  ;;  %9464 = vmatprep.subr.bf16.mxu0 %v14817_v6 }
 0x1e6   : > { %9731 = vtanh.f32 %v1930_v31  ;;  %v1869_v50 = vadd.f32 %v1740_v35, %v1090_v39  ;;  %v1264_v51 = vpop.permute.xlu0 %1263  ;;  %7677 = vmatprep.mubr.msk.f32.mxu1 %vm10890_vm0, %v10891_v33  ;;  %v6537_v35 = vld [vmem:[%s14814_s2 + $0xf0] sm:$0xff] }
 0x1e7   : > { %v1668_v52 = vmul.f32 %v11598_v0, %v1264_v51  ;;  %1327 = vperm.xlu0 %9563, %v255_v44   ;;  %v524_v55 = vpop.permute.xlu1 %523  ;;  %v9459_v39 = vpack.c.bf16 %v6538_v9, %v6537_v35 }
 0x1e8   : > { %v9728_v56 = vpop.eup %9727  ;;  %v2003_v57 = vadd.f32 %v11604_v43, %v1869_v50  ;;  %v1018_v60 = vmul.f32 %v11610_v45, %v524_v55  ;;  %v11684_v61 = vpop.f32.mrb[34].mxu1  ;;  %603 = vperm.xlu1 %9566, %v255_v44  }
 0x1e9   : > { %14823 = vst [vmem:[#allocation6_spill] sm:$0xff] %v11684_v61  ;;  %7459 = vmatmul.mubr.f32.gmra.mrb[72].mxu0 %v9728_v56  ;;  %v7598_v2 = vpop.f32.mrb[35].mxu1  ;;  %9460 = vmatpush3.bf16.msra.mxu1 %v9459_v39 }
 0x1ea   : > { %9733 = vtanh.f32 %v2003_v57  ;;  %v1797_v5 = vadd.f32 %v1668_v52, %v1018_v60  ;;  %v1556_v7 = vpop.permute.xlu0 %1555  ;;  %7461 = vmatprep.mubr.msk.f32.mxu0 %vm10890_vm0, %v10891_v33  ;;  %v329_v52 = vld [vmem:[%s10955_s7 + $0x400] sm:$0xff]  ;;  %9485 = vmatprep.subr.bf16.mxu1 %v14817_v6 }
 0x1eb   : > { %v1741_v14 = vmul.f32 %v11598_v0, %v1556_v7  ;;  %1619 = vperm.xlu0 %9563, %v328_v1   ;;  %v889_v16 = vpop.permute.xlu1 %888 }
 0x1ec   : > { %v9730_v18 = vpop.eup %9729  ;;  %v1931_v20 = vadd.f32 %v11604_v43, %v1797_v5  ;;  %v1091_v24 = vmul.f32 %v11610_v45, %v889_v16  ;;  %v11698_v26 = vpop.f32.mrb[20].mxu0  ;;  %968 = vperm.xlu1 %9566, %v328_v1  }
 0x1ed   : > { %v7382_v63 = vpop.f32.mrb[21].mxu0  ;;  %7678 = vmatmul.mubr.f32.gmra.mrb[88].mxu1 %v9730_v18 }
 0x1ee   : > { %9735 = vtanh.f32 %v1931_v20  ;;  %v1870_v30 = vadd.f32 %v1741_v14, %v1091_v24  ;;  %v1268_v32 = vpop.permute.xlu0 %1267  ;;  %7680 = vmatprep.mubr.msk.f32.mxu1 %vm10890_vm0, %v10891_v33 }
 0x1ef   : > { %v1669_v40 = vmul.f32 %v11598_v0, %v1268_v32  ;;  %1331 = vperm.xlu0 %9563, %v256_v29   ;;  %v529_v31 = vpop.permute.xlu1 %528  ;;  %v258_v32 = vld [vmem:[%s10955_s7 + $0x1c8] sm:$0xff] }
 0x1f0   : > { %v9732_v44 = vpop.eup %9731  ;;  %v2004_v46 = vadd.f32 %v11604_v43, %v1870_v30  ;;  %v1019_v50 = vmul.f32 %v11610_v45, %v529_v31  ;;  %v11713_v51 = vpop.f32.mrb[36].mxu1  ;;  %608 = vperm.xlu1 %9566, %v256_v29  }
 0x1f1   : > { %14824 = vst [vmem:[#allocation7_spill] sm:$0xff] %v11713_v51  ;;  %7462 = vmatmul.mubr.f32.gmra.mrb[74].mxu0 %v9732_v44  ;;  %v7601_v55 = vpop.f32.mrb[37].mxu1 }
 0x1f2   : > { %9737 = vtanh.f32 %v2004_v46  ;;  %v1798_v56 = vadd.f32 %v1669_v40, %v1019_v50  ;;  %v1560_v57 = vpop.permute.xlu0 %1559  ;;  %7464 = vmatprep.mubr.msk.f32.mxu0 %vm10890_vm0, %v10891_v33  ;;  %v259_v55 = vld [vmem:[%s10955_s7 + $0x1d0] sm:$0xff] }
 0x1f3   : > { %v1742_v60 = vmul.f32 %v11598_v0, %v1560_v57  ;;  %1623 = vperm.xlu0 %9563, %v329_v52   ;;  %v894_v1 = vpop.permute.xlu1 %893 }
 0x1f4   : > { %v9734_v2 = vpop.eup %9733  ;;  %v1932_v5 = vadd.f32 %v11604_v43, %v1798_v56  ;;  %v1092_v7 = vmul.f32 %v11610_v45, %v894_v1  ;;  %v11722_v12 = vpop.f32.mrb[22].mxu0  ;;  %973 = vperm.xlu1 %9566, %v329_v52  }
 0x1f5   : > { %v7385_v14 = vpop.f32.mrb[23].mxu0  ;;  %7681 = vmatmul.mubr.f32.gmra.mrb[90].mxu1 %v9734_v2 }
 0x1f6   : > { %9739 = vtanh.f32 %v1932_v5  ;;  %v1871_v16 = vadd.f32 %v1742_v60, %v1092_v7  ;;  %v1272_v17 = vpop.permute.xlu0 %1271  ;;  %7683 = vmatprep.mubr.msk.f32.mxu1 %vm10890_vm0, %v10891_v33 }
 0x1f7   : > { %v1670_v18 = vmul.f32 %v11598_v0, %v1272_v17  ;;  %1335 = vperm.xlu0 %9563, %v257_v13   ;;  %v534_v20 = vpop.permute.xlu1 %533 }
 0x1f8   : > { %v9736_v24 = vpop.eup %9735  ;;  %v2005_v29 = vadd.f32 %v11604_v43, %v1871_v16  ;;  %v1020_v63 = vmul.f32 %v11610_v45, %v534_v20  ;;  %v11730_v30 = vpop.f32.mrb[38].mxu1  ;;  %613 = vperm.xlu1 %9566, %v257_v13   ;;  %v260_v16 = vld [vmem:[%s10955_s7 + $0x1d8] sm:$0xff] }
 0x1f9   : > { %14825 = vst [vmem:[#allocation8_spill] sm:$0xff] %v11730_v30  ;;  %7465 = vmatmul.mubr.f32.gmra.mrb[76].mxu0 %v9736_v24  ;;  %v7604_v35 = vpop.f32.mrb[39].mxu1 }
 0x1fa   : > { %9741 = vtanh.f32 %v2005_v29  ;;  %v1799_v9 = vadd.f32 %v1670_v18, %v1020_v63  ;;  %v1564_v40 = vpop.permute.xlu0 %1563  ;;  %7467 = vmatprep.mubr.msk.f32.mxu0 %vm10890_vm0, %v10891_v33 }
 0x1fb   : > { %v1743_v31 = vmul.f32 %v11598_v0, %v1564_v40  ;;  %1339 = vperm.xlu0 %9563, %v258_v32   ;;  %v899_v39 = vpop.permute.xlu1 %898  ;;  %v261_v40 = vld [vmem:[%s10955_s7 + $0x1e0] sm:$0xff] }
 0x1fc   : > { %v9738_v44 = vpop.eup %9737  ;;  %v1933_v46 = vadd.f32 %v11604_v43, %v1799_v9  ;;  %v1093_v50 = vmul.f32 %v11610_v45, %v899_v39  ;;  %v11738_v52 = vpop.f32.mrb[24].mxu0  ;;  %618 = vperm.xlu1 %9566, %v258_v32  }
 0x1fd   : > { %v7388_v56 = vpop.f32.mrb[25].mxu0  ;;  %7684 = vmatmul.mubr.f32.gmra.mrb[92].mxu1 %v9738_v44 }
 0x1fe   : > { %9743 = vtanh.f32 %v1933_v46  ;;  %v1872_v57 = vadd.f32 %v1743_v31, %v1093_v50  ;;  %v1276_v60 = vpop.permute.xlu0 %1275  ;;  %7686 = vmatprep.mubr.msk.f32.mxu1 %vm10890_vm0, %v10891_v33 }
 0x1ff   : > { %v1671_v1 = vmul.f32 %v11598_v0, %v1276_v60  ;;  %1343 = vperm.xlu0 %9563, %v259_v55   ;;  %v539_v2 = vpop.permute.xlu1 %538 }
 0x200   : > { %v9740_v5 = vpop.eup %9739  ;;  %v2006_v7 = vadd.f32 %v11604_v43, %v1872_v57  ;;  %v1021_v13 = vmul.f32 %v11610_v45, %v539_v2  ;;  %v11746_v14 = vpop.f32.mrb[40].mxu1  ;;  %623 = vperm.xlu1 %9566, %v259_v55  }
 0x201   : > { %14826 = vst [vmem:[#allocation9_spill] sm:$0xff] %v11746_v14  ;;  %7468 = vmatmul.mubr.f32.gmra.mrb[78].mxu0 %v9740_v5  ;;  %v7607_v17 = vpop.f32.mrb[41].mxu1 }
 0x202   : > { %9745 = vtanh.f32 %v2006_v7  ;;  %v1800_v18 = vadd.f32 %v1671_v1, %v1021_v13  ;;  %v1568_v20 = vpop.permute.xlu0 %1567  ;;  %7470 = vmatprep.mubr.msk.f32.mxu0 %vm10890_vm0, %v10891_v33  ;;  %v262_v1 = vld [vmem:[%s10955_s7 + $0x1e8] sm:$0xff] }
 0x203   : > { %v1744_v24 = vmul.f32 %v11598_v0, %v1568_v20  ;;  %1347 = vperm.xlu0 %9563, %v260_v16   ;;  %v904_v29 = vpop.permute.xlu1 %903 }
 0x204   : > { %v9742_v63 = vpop.eup %9741  ;;  %v1934_v32 = vadd.f32 %v11604_v43, %v1800_v18  ;;  %v1094_v35 = vmul.f32 %v11610_v45, %v904_v29  ;;  %v11754_v9 = vpop.f32.mrb[26].mxu0  ;;  %628 = vperm.xlu1 %9566, %v260_v16   ;;  %v263_v29 = vld [vmem:[%s10955_s7 + $0x1f0] sm:$0xff] }
 0x205   : > { %v7391_v31 = vpop.f32.mrb[27].mxu0  ;;  %7687 = vmatmul.mubr.f32.gmra.mrb[94].mxu1 %v9742_v63 }
 0x206   : > { %9747 = vtanh.f32 %v1934_v32  ;;  %v1873_v39 = vadd.f32 %v1744_v24, %v1094_v35  ;;  %v1280_v44 = vpop.permute.xlu0 %1279  ;;  %7689 = vmatprep.mubr.msk.f32.mxu1 %vm10890_vm0, %v10891_v33  ;;  %v6543_v31 = vld [vmem:[%s14814_s2 + $0x118] sm:$0xff] }
 0x207   : > { %v1672_v46 = vmul.f32 %v11598_v0, %v1280_v44  ;;  %1351 = vperm.xlu0 %9563, %v261_v40   ;;  %v544_v50 = vpop.permute.xlu1 %543 }
 0x208   : > { %v9744_v55 = vpop.eup %9743  ;;  %v2007_v56 = vadd.f32 %v11604_v43, %v1873_v39  ;;  %v1022_v57 = vmul.f32 %v11610_v45, %v544_v50  ;;  %v11762_v60 = vpop.f32.mrb[42].mxu1  ;;  %633 = vperm.xlu1 %9566, %v261_v40   ;;  %v6542_v40 = vld [vmem:[%s14814_s2 + $0x110] sm:$0xff] }
 0x209   : > { %14827 = vst [vmem:[#allocation10_spill] sm:$0xff] %v11762_v60  ;;  %7471 = vmatmul.mubr.f32.gmra.mrb[80].mxu0 %v9744_v55  ;;  %v7610_v2 = vpop.f32.mrb[43].mxu1 }
 0x20a   : > { %9749 = vtanh.f32 %v2007_v56  ;;  %v1801_v5 = vadd.f32 %v1672_v46, %v1022_v57  ;;  %v1572_v7 = vpop.permute.xlu0 %1571  ;;  %7473 = vmatprep.mubr.msk.f32.mxu0 %vm10890_vm0, %v10891_v33  ;;  %v9465_v46 = vpack.c.bf16 %v6543_v31, %v6542_v40 }
 0x20b   : > { %v1745_v13 = vmul.f32 %v11598_v0, %v1572_v7  ;;  %1355 = vperm.xlu0 %9563, %v262_v1   ;;  %v909_v16 = vpop.permute.xlu1 %908 }
 0x20c   : > { %v9746_v17 = vpop.eup %9745  ;;  %v1935_v18 = vadd.f32 %v11604_v43, %v1801_v5  ;;  %v1095_v20 = vmul.f32 %v11610_v45, %v909_v16  ;;  %v11770_v24 = vpop.f32.mrb[28].mxu0  ;;  %638 = vperm.xlu1 %9566, %v262_v1   ;;  %v264_v1 = vld [vmem:[%s10955_s7 + $0x1f8] sm:$0xff]  ;;  %9466 = vmatpush3.bf16.msra.mxu0 %v9465_v46 }
 0x20d   : > { %v7394_v63 = vpop.f32.mrb[29].mxu0  ;;  %7690 = vmatmul.mubr.f32.gmra.mrb[96].mxu1 %v9746_v17  ;;  %9467 = vmatprep.subr.bf16.mxu0 %v14817_v6 }
 0x20e   : > { %9751 = vtanh.f32 %v1935_v18  ;;  %v1874_v32 = vadd.f32 %v1745_v13, %v1095_v20  ;;  %v1284_v35 = vpop.permute.xlu0 %1283  ;;  %7692 = vmatprep.mubr.msk.f32.mxu1 %vm10890_vm0, %v10891_v33  ;;  %v265_v63 = vld [vmem:[%s10955_s7 + $0x200] sm:$0xff] }
 0x20f   : > { %v1673_v39 = vmul.f32 %v11598_v0, %v1284_v35  ;;  %1359 = vperm.xlu0 %9563, %v263_v29   ;;  %v549_v44 = vpop.permute.xlu1 %548 }
 0x210   : > { %v9748_v50 = vpop.eup %9747  ;;  %v2008_v55 = vadd.f32 %v11604_v43, %v1874_v32  ;;  %v1023_v56 = vmul.f32 %v11610_v45, %v549_v44  ;;  %v11784_v57 = vpop.f32.mrb[44].mxu1  ;;  %643 = vperm.xlu1 %9566, %v263_v29  }
 0x211   : > { %14828 = vst [vmem:[#allocation11_spill] sm:$0xff] %v11784_v57  ;;  %7474 = vmatmul.mubr.f32.gmra.mrb[82].mxu0 %v9748_v50  ;;  %v7613_v2 = vpop.f32.mrb[45].mxu1  ;;  %v14836_v57 = vmov 0.0|0.0  }
 0x212   : > { %9753 = vtanh.f32 %v2008_v55  ;;  %v1802_v5 = vadd.f32 %v1673_v39, %v1023_v56  ;;  %v1576_v7 = vpop.permute.xlu0 %1575  ;;  %7476 = vmatprep.mubr.msk.f32.mxu0 %vm10890_vm0, %v10891_v33 }
 0x213   : > { %v1746_v13 = vmul.f32 %v11598_v0, %v1576_v7  ;;  %1363 = vperm.xlu0 %9563, %v264_v1   ;;  %v914_v16 = vpop.permute.xlu1 %913 }
 0x214   : > { %v9750_v17 = vpop.eup %9749  ;;  %v1936_v18 = vadd.f32 %v11604_v43, %v1802_v5  ;;  %v1096_v20 = vmul.f32 %v11610_v45, %v914_v16  ;;  %v11793_v29 = vpop.f32.mrb[30].mxu0  ;;  %648 = vperm.xlu1 %9566, %v264_v1  }
 0x215   : > { %v7397_v32 = vpop.f32.mrb[31].mxu0  ;;  %7693 = vmatmul.mubr.f32.gmra.mrb[98].mxu1 %v9750_v17 }
 0x216   : > { %9755 = vtanh.f32 %v1936_v18  ;;  %v1875_v35 = vadd.f32 %v1746_v13, %v1096_v20  ;;  %v1288_v40 = vpop.permute.xlu0 %1287  ;;  %7695 = vmatprep.mubr.msk.f32.mxu1 %vm10890_vm0, %v10891_v33 }
 0x217   : > { %v1674_v31 = vmul.f32 %v11598_v0, %v1288_v40  ;;  %1367 = vperm.xlu0 %9563, %v265_v63   ;;  %v554_v39 = vpop.permute.xlu1 %553 }
 0x218   : > { %v9752_v44 = vpop.eup %9751  ;;  %v2009_v46 = vadd.f32 %v11604_v43, %v1875_v35  ;;  %v1024_v50 = vmul.f32 %v11610_v45, %v554_v39  ;;  %v11801_v55 = vpop.f32.mrb[46].mxu1  ;;  %653 = vperm.xlu1 %9566, %v265_v63  }
 0x219   : > { %14829 = vst [vmem:[#allocation12_spill] sm:$0xff] %v11801_v55  ;;  %7477 = vmatmul.mubr.f32.gmra.mrb[84].mxu0 %v9752_v44  ;;  %v7616_v56 = vpop.f32.mrb[47].mxu1 }
 0x21a   : > { %9757 = vtanh.f32 %v2009_v46  ;;  %v1803_v1 = vadd.f32 %v1674_v31, %v1024_v50  ;;  %v1580_v2 = vpop.permute.xlu0 %1579  ;;  %7479 = vmatprep.mubr.msk.f32.mxu0 %vm10890_vm0, %v10891_v33 }
 0x21b   : > { %v1747_v5 = vmul.f32 %v11598_v0, %v1580_v2  ;;  %v919_v7 = vpop.permute.xlu1 %918 }
 0x21c   : > { %v9754_v13 = vpop.eup %9753  ;;  %v1937_v16 = vadd.f32 %v11604_v43, %v1803_v1  ;;  %v1097_v17 = vmul.f32 %v11610_v45, %v919_v7  ;;  %v11808_v18 = vpop.f32.mrb[32].mxu0 }
 0x21d   : > { %v7400_v20 = vpop.f32.mrb[33].mxu0  ;;  %7696 = vmatmul.mubr.f32.gmra.mrb[100].mxu1 %v9754_v13 }
 0x21e   : > { %9759 = vtanh.f32 %v1937_v16  ;;  %v1876_v63 = vadd.f32 %v1747_v5, %v1097_v17  ;;  %v1292_v32 = vpop.permute.xlu0 %1291  ;;  %7698 = vmatprep.mubr.msk.f32.mxu1 %vm10890_vm0, %v10891_v33 }
 0x21f   : > { %v1675_v35 = vmul.f32 %v11598_v0, %v1292_v32  ;;  %v559_v40 = vpop.permute.xlu1 %558 }
 0x220   : > { %v9756_v31 = vpop.eup %9755  ;;  %v2010_v39 = vadd.f32 %v11604_v43, %v1876_v63  ;;  %v1025_v44 = vmul.f32 %v11610_v45, %v559_v40  ;;  %v11815_v46 = vpop.f32.mrb[48].mxu1 }
 0x221   : > { %14830 = vst [vmem:[#allocation13_spill] sm:$0xff] %v11815_v46  ;;  %7480 = vmatmul.mubr.f32.gmra.mrb[86].mxu0 %v9756_v31  ;;  %v7619_v50 = vpop.f32.mrb[49].mxu1 }
 0x222   : > { %9761 = vtanh.f32 %v2010_v39  ;;  %v1804_v56 = vadd.f32 %v1675_v35, %v1025_v44  ;;  %v1584_v1 = vpop.permute.xlu0 %1583  ;;  %7482 = vmatprep.mubr.msk.f32.mxu0 %vm10890_vm0, %v10891_v33 }
 0x223   : > { %v1748_v2 = vmul.f32 %v11598_v0, %v1584_v1  ;;  %v924_v5 = vpop.permute.xlu1 %923 }
 0x224   : > { %v9758_v7 = vpop.eup %9757  ;;  %v1938_v13 = vadd.f32 %v11604_v43, %v1804_v56  ;;  %v1098_v16 = vmul.f32 %v11610_v45, %v924_v5  ;;  %v11822_v17 = vpop.f32.mrb[34].mxu0 }
 0x225   : > { %v7403_v20 = vpop.f32.mrb[35].mxu0  ;;  %7699 = vmatmul.mubr.f32.gmra.mrb[102].mxu1 %v9758_v7 }
 0x226   : > { %9763 = vtanh.f32 %v1938_v13  ;;  %v1877_v63 = vadd.f32 %v1748_v2, %v1098_v16  ;;  %v1296_v32 = vpop.permute.xlu0 %1295  ;;  %7701 = vmatprep.mubr.msk.f32.mxu1 %vm10890_vm0, %v10891_v33  ;;  %v6544_v13 = vld [vmem:[%s14814_s2 + $0x120] sm:$0xff]  ;;  %v6545_v16 = vld [vmem:[%s14814_s2 + $0x128] sm:$0xff] }
 0x227   : > { %v1676_v35 = vmul.f32 %v11598_v0, %v1296_v32  ;;  %v564_v40 = vpop.permute.xlu1 %563 }
 0x228   : > { %v9760_v31 = vpop.eup %9759  ;;  %v2011_v39 = vadd.f32 %v11604_v43, %v1877_v63  ;;  %v1026_v44 = vmul.f32 %v11610_v45, %v564_v40  ;;  %v11829_v50 = vpop.f32.mrb[50].mxu1  ;;  %v9468_v40 = vpack.c.bf16 %v6545_v16, %v6544_v13 }
 0x229   : > { %14831 = vst [vmem:[#allocation14_spill] sm:$0xff] %v11829_v50  ;;  %7483 = vmatmul.mubr.f32.gmra.mrb[88].mxu0 %v9760_v31  ;;  %v7622_v56 = vpop.f32.mrb[51].mxu1 }
 0x22a   : > { %9765 = vtanh.f32 %v2011_v39  ;;  %v1805_v1 = vadd.f32 %v1676_v35, %v1026_v44  ;;  %v1588_v5 = vpop.permute.xlu0 %1587  ;;  %7485 = vmatprep.mubr.msk.f32.mxu0 %vm10890_vm0, %v10891_v33  ;;  %9469 = vmatpush3.bf16.msra.mxu0 %v9468_v40 }
 0x22b   : > { %v1749_v2 = vmul.f32 %v11598_v0, %v1588_v5  ;;  %v929_v7 = vpop.permute.xlu1 %928  ;;  %9470 = vmatprep.subr.bf16.mxu0 %v14817_v6 }
 0x22c   : > { %v9762_v20 = vpop.eup %9761  ;;  %v1939_v63 = vadd.f32 %v11604_v43, %v1805_v1  ;;  %v1099_v32 = vmul.f32 %v11610_v45, %v929_v7  ;;  %v11842_v35 = vpop.f32.mrb[36].mxu0 }
 0x22d   : > { %v7406_v31 = vpop.f32.mrb[37].mxu0  ;;  %7702 = vmatmul.mubr.f32.gmra.mrb[104].mxu1 %v9762_v20 }
 0x22e   : > { %9767 = vtanh.f32 %v1939_v63  ;;  %v1878_v39 = vadd.f32 %v1749_v2, %v1099_v32  ;;  %v1300_v44 = vpop.permute.xlu0 %1299  ;;  %7704 = vmatprep.mubr.msk.f32.mxu1 %vm10890_vm0, %v10891_v33 }
 0x22f   : > { %v1677_v56 = vmul.f32 %v11598_v0, %v1300_v44  ;;  %v569_v5 = vpop.permute.xlu1 %568 }
 0x230   : > { %v9764_v1 = vpop.eup %9763  ;;  %v2012_v7 = vadd.f32 %v11604_v43, %v1878_v39  ;;  %v1027_v50 = vmul.f32 %v11610_v45, %v569_v5  ;;  %v11850_v13 = vpop.f32.mrb[52].mxu1 }
 0x231   : > { %14832 = vst [vmem:[#allocation15_spill] sm:$0xff] %v11850_v13  ;;  %7486 = vmatmul.mubr.f32.gmra.mrb[90].mxu0 %v9764_v1  ;;  %v7625_v16 = vpop.f32.mrb[53].mxu1 }
 0x232   : > { %9769 = vtanh.f32 %v2012_v7  ;;  %v1806_v2 = vadd.f32 %v1677_v56, %v1027_v50  ;;  %v1592_v20 = vpop.permute.xlu0 %1591  ;;  %7488 = vmatprep.mubr.msk.f32.mxu0 %vm10890_vm0, %v10891_v33 }
 0x233   : > { %v1750_v63 = vmul.f32 %v11598_v0, %v1592_v20  ;;  %v934_v32 = vpop.permute.xlu1 %933 }
 0x234   : > { %v9766_v40 = vpop.eup %9765  ;;  %v1940_v31 = vadd.f32 %v11604_v43, %v1806_v2  ;;  %v1100_v39 = vmul.f32 %v11610_v45, %v934_v32  ;;  %v11857_v44 = vpop.f32.mrb[38].mxu0 }
 0x235   : > { %v7409_v5 = vpop.f32.mrb[39].mxu0  ;;  %7705 = vmatmul.mubr.f32.gmra.mrb[106].mxu1 %v9766_v40 }
 0x236   : > { %9771 = vtanh.f32 %v1940_v31  ;;  %v1879_v1 = vadd.f32 %v1750_v63, %v1100_v39  ;;  %v1304_v7 = vpop.permute.xlu0 %1303  ;;  %7707 = vmatprep.mubr.msk.f32.mxu1 %vm10890_vm0, %v10891_v33 }
 0x237   : > { %v1678_v50 = vmul.f32 %v11598_v0, %v1304_v7  ;;  %v574_v56 = vpop.permute.xlu1 %573 }
 0x238   : > { %v9768_v16 = vpop.eup %9767  ;;  %v2013_v20 = vadd.f32 %v11604_v43, %v1879_v1  ;;  %v1028_v2 = vmul.f32 %v11610_v45, %v574_v56  ;;  %v11864_v6 = vpop.f32.mrb[54].mxu1 }
 0x239   : > { %14833 = vst [vmem:[#allocation16_spill] sm:$0xff] %v11864_v6  ;;  %7489 = vmatmul.mubr.f32.gmra.mrb[92].mxu0 %v9768_v16  ;;  %v7628_v32 = vpop.f32.mrb[55].mxu1 }
 0x23a   : > { %9773 = vtanh.f32 %v2013_v20  ;;  %v1807_v40 = vadd.f32 %v1678_v50, %v1028_v2  ;;  %v1596_v31 = vpop.permute.xlu0 %1595  ;;  %7491 = vmatprep.mubr.msk.f32.mxu0 %vm10890_vm0, %v10891_v33 }
 0x23b   : > { %v1751_v63 = vmul.f32 %v11598_v0, %v1596_v31  ;;  %v939_v39 = vpop.permute.xlu1 %938 }
 0x23c   : > { %v9770_v5 = vpop.eup %9769  ;;  %v1941_v7 = vadd.f32 %v11604_v43, %v1807_v40  ;;  %v1101_v1 = vmul.f32 %v11610_v45, %v939_v39  ;;  %v11871_v13 = vpop.f32.mrb[40].mxu0 }
 0x23d   : > { %v7412_v56 = vpop.f32.mrb[41].mxu0  ;;  %7708 = vmatmul.mubr.f32.gmra.mrb[108].mxu1 %v9770_v5 }
 0x23e   : > { %9775 = vtanh.f32 %v1941_v7  ;;  %v1880_v16 = vadd.f32 %v1751_v63, %v1101_v1  ;;  %v1308_v20 = vpop.permute.xlu0 %1307  ;;  %7710 = vmatprep.mubr.msk.f32.mxu1 %vm10890_vm0, %v10891_v33 }
 0x23f   : > { %v1679_v50 = vmul.f32 %v11598_v0, %v1308_v20  ;;  %v579_v2 = vpop.permute.xlu1 %578 }
 0x240   : > { %v9772_v32 = vpop.eup %9771  ;;  %v2014_v31 = vadd.f32 %v11604_v43, %v1880_v16  ;;  %v1029_v40 = vmul.f32 %v11610_v45, %v579_v2  ;;  %v11878_v6 = vpop.f32.mrb[56].mxu1 }
 0x241   : > { %14834 = vst [vmem:[#allocation17_spill] sm:$0xff] %v11878_v6  ;;  %7492 = vmatmul.mubr.f32.gmra.mrb[94].mxu0 %v9772_v32  ;;  %v7631_v39 = vpop.f32.mrb[57].mxu1 }
 0x242   : > { %9777 = vtanh.f32 %v2014_v31  ;;  %v1808_v5 = vadd.f32 %v1679_v50, %v1029_v40  ;;  %v1600_v7 = vpop.permute.xlu0 %1599  ;;  %7494 = vmatprep.mubr.msk.f32.mxu0 %vm10890_vm0, %v10891_v33 }
 0x243   : > { %v1752_v63 = vmul.f32 %v11598_v0, %v1600_v7  ;;  %v944_v1 = vpop.permute.xlu1 %943 }
 0x244   : > { %v9774_v56 = vpop.eup %9773  ;;  %v1942_v20 = vadd.f32 %v11604_v43, %v1808_v5  ;;  %v1102_v16 = vmul.f32 %v11610_v45, %v944_v1  ;;  %v11885_v46 = vpop.f32.mrb[42].mxu0 }
 0x245   : > { %v7415_v2 = vpop.f32.mrb[43].mxu0  ;;  %7711 = vmatmul.mubr.f32.gmra.mrb[110].mxu1 %v9774_v56 }
 0x246   : > { %9779 = vtanh.f32 %v1942_v20  ;;  %v1881_v32 = vadd.f32 %v1752_v63, %v1102_v16  ;;  %v1312_v31 = vpop.permute.xlu0 %1311  ;;  %7713 = vmatprep.mubr.msk.f32.mxu1 %vm10890_vm0, %v10891_v33  ;;  %v6546_v2 = vld [vmem:[%s14814_s2 + $0x130] sm:$0xff] }
 0x247   : > { %v1680_v50 = vmul.f32 %v11598_v0, %v1312_v31  ;;  %v584_v40 = vpop.permute.xlu1 %583 }
 0x248   : > { %v9776_v39 = vpop.eup %9775  ;;  %v2015_v7 = vadd.f32 %v11604_v43, %v1881_v32  ;;  %v1030_v5 = vmul.f32 %v11610_v45, %v584_v40  ;;  %v11892_v6 = vpop.f32.mrb[58].mxu1  ;;  %v6547_v32 = vld [vmem:[%s14814_s2 + $0x138] sm:$0xff] }
 0x249   : > { %14835 = vst [vmem:[#allocation18_spill] sm:$0xff] %v11892_v6  ;;  %7495 = vmatmul.mubr.f32.gmra.mrb[96].mxu0 %v9776_v39  ;;  %v7634_v1 = vpop.f32.mrb[59].mxu1 }
 0x24a   : > { %9781 = vtanh.f32 %v2015_v7  ;;  %v1809_v56 = vadd.f32 %v1680_v50, %v1030_v5  ;;  %v1604_v20 = vpop.permute.xlu0 %1603  ;;  %7497 = vmatprep.mubr.msk.f32.mxu0 %vm10890_vm0, %v10891_v33  ;;  %v9471_v7 = vpack.c.bf16 %v6547_v32, %v6546_v2 }
 0x24b   : > { %v1753_v63 = vmul.f32 %v11598_v0, %v1604_v20  ;;  %v949_v16 = vpop.permute.xlu1 %948 }
 0x24c   : > { %v9778_v31 = vpop.eup %9777  ;;  %v1943_v40 = vadd.f32 %v11604_v43, %v1809_v56  ;;  %v1103_v50 = vmul.f32 %v11610_v45, %v949_v16  ;;  %v11905_v39 = vpop.f32.mrb[44].mxu0  ;;  %9472 = vmatpush3.bf16.msra.mxu0 %v9471_v7 }
 0x24d   : > { %v7418_v5 = vpop.f32.mrb[45].mxu0  ;;  %7714 = vmatmul.mubr.f32.gmra.mrb[112].mxu1 %v9778_v31  ;;  %9473 = vmatprep.subr.bf16.mxu0 %v14836_v57 }
 0x24e   : > { %9783 = vtanh.f32 %v1943_v40  ;;  %v1882_v1 = vadd.f32 %v1753_v63, %v1103_v50  ;;  %v1316_v20 = vpop.permute.xlu0 %1315  ;;  %7716 = vmatprep.mubr.msk.f32.mxu1 %vm10890_vm0, %v10891_v33 }
 0x24f   : > { %v1681_v6 = vmul.f32 %v11598_v0, %v1316_v20  ;;  %v589_v55 = vpop.permute.xlu1 %588  ;;  %v11920_v0 = vld [vmem:[%s14813_s1 + $0x1] ss:$0 sm:$0xff] }
 0x250   : > { %v9780_v56 = vpop.eup %9779  ;;  %v2016_v16 = vadd.f32 %v11604_v43, %v1882_v1  ;;  %v1031_v60 = vmul.f32 %v11610_v45, %v589_v55  ;;  %v11913_v2 = vpop.f32.mrb[60].mxu1 }
 0x251   : > { %14837 = vst [vmem:[#allocation19_spill] sm:$0xff] %v11913_v2  ;;  %7498 = vmatmul.mubr.f32.gmra.mrb[98].mxu0 %v9780_v56  ;;  %v7637_v32 = vpop.f32.mrb[61].mxu1 }
 0x252   : > { %9785 = vtanh.f32 %v2016_v16  ;;  %v1810_v63 = vadd.f32 %v1681_v6, %v1031_v60  ;;  %v1608_v31 = vpop.permute.xlu0 %1607  ;;  %7500 = vmatprep.mubr.msk.f32.mxu0 %vm10890_vm0, %v10891_v33 }
 0x253   : > { %v1754_v40 = vmul.f32 %v11920_v0, %v1608_v31  ;;  %v954_v50 = vpop.permute.xlu1 %953 }
 0x254   : > { %v9782_v7 = vpop.eup %9781  ;;  %v1944_v55 = vadd.f32 %v11604_v43, %v1810_v63  ;;  %v1104_v5 = vmul.f32 %v11610_v45, %v954_v50  ;;  %v11925_v1 = vpop.f32.mrb[46].mxu0  ;;  %v11933_v43 = vld [vmem:[%s14815_s3] ss:$0 sm:$0xff] }
 0x255   : > { %v7421_v6 = vpop.f32.mrb[47].mxu0  ;;  %7717 = vmatmul.mubr.f32.gmra.mrb[114].mxu1 %v9782_v7  ;;  %v11939_v63 = vld [vmem:[%s14813_s1] ss:$0 sm:$0xff] }
 0x256   : > { %9787 = vtanh.f32 %v1944_v55  ;;  %v1883_v60 = vadd.f32 %v1754_v40, %v1104_v5  ;;  %v1320_v20 = vpop.permute.xlu0 %1319  ;;  %7719 = vmatprep.mubr.msk.f32.mxu1 %vm10890_vm0, %v10891_v33 }
 0x257   : > { %v1682_v56 = vmul.f32 %v11920_v0, %v1320_v20  ;;  %v594_v16 = vpop.permute.xlu1 %593 }
 0x258   : > { %v9784_v32 = vpop.eup %9783  ;;  %v2017_v45 = vadd.f32 %v11933_v43, %v1883_v60  ;;  %v1032_v31 = vmul.f32 %v11939_v63, %v594_v16  ;;  %v11942_v40 = vpop.f32.mrb[62].mxu1 }
 0x259   : > { %14838 = vst [vmem:[#allocation20_spill] sm:$0xff] %v11942_v40  ;;  %7501 = vmatmul.mubr.f32.gmra.mrb[100].mxu0 %v9784_v32  ;;  %v7640_v50 = vpop.f32.mrb[63].mxu1 }
 0x25a   : > { %9789 = vtanh.f32 %v2017_v45  ;;  %v1811_v7 = vadd.f32 %v1682_v56, %v1032_v31  ;;  %v1612_v55 = vpop.permute.xlu0 %1611  ;;  %7503 = vmatprep.mubr.msk.f32.mxu0 %vm10890_vm0, %v10891_v33 }
 0x25b   : > { %v1755_v5 = vmul.f32 %v11920_v0, %v1612_v55  ;;  %v959_v6 = vpop.permute.xlu1 %958 }
 0x25c   : > { %v9786_v60 = vpop.eup %9785  ;;  %v1945_v20 = vadd.f32 %v11933_v43, %v1811_v7  ;;  %v1105_v2 = vmul.f32 %v11939_v63, %v959_v6  ;;  %v11949_v14 = vpop.f32.mrb[48].mxu0 }
 0x25d   : > { %v7424_v16 = vpop.f32.mrb[49].mxu0  ;;  %7720 = vmatmul.mubr.f32.gmra.mrb[116].mxu1 %v9786_v60 }
 0x25e   : > { %9791 = vtanh.f32 %v1945_v20  ;;  %v1884_v32 = vadd.f32 %v1755_v5, %v1105_v2  ;;  %v1324_v45 = vpop.permute.xlu0 %1323  ;;  %7722 = vmatprep.mubr.msk.f32.mxu1 %vm10890_vm0, %v10891_v33 }
 0x25f   : > { %v1683_v56 = vmul.f32 %v11920_v0, %v1324_v45  ;;  %v599_v31 = vpop.permute.xlu1 %598 }
 0x260   : > { %v9788_v50 = vpop.eup %9787  ;;  %v2018_v55 = vadd.f32 %v11933_v43, %v1884_v32  ;;  %v1033_v7 = vmul.f32 %v11939_v63, %v599_v31  ;;  %v11956_v40 = vpop.f32.mrb[64].mxu1 }
 0x261   : > { %14839 = vst [vmem:[#allocation21_spill] sm:$0xff] %v11956_v40  ;;  %7504 = vmatmul.mubr.f32.gmra.mrb[102].mxu0 %v9788_v50  ;;  %v7643_v6 = vpop.f32.mrb[65].mxu1 }
 0x262   : > { %9793 = vtanh.f32 %v2018_v55  ;;  %v1812_v60 = vadd.f32 %v1683_v56, %v1033_v7  ;;  %v1616_v20 = vpop.permute.xlu0 %1615  ;;  %7506 = vmatprep.mubr.msk.f32.mxu0 %vm10890_vm0, %v10891_v33 }
 0x263   : > { %v1756_v2 = vmul.f32 %v11920_v0, %v1616_v20  ;;  %v964_v5 = vpop.permute.xlu1 %963 }
 0x264   : > { %v9790_v16 = vpop.eup %9789  ;;  %v1946_v45 = vadd.f32 %v11933_v43, %v1812_v60  ;;  %v1106_v32 = vmul.f32 %v11939_v63, %v964_v5  ;;  %v11963_v30 = vpop.f32.mrb[50].mxu0 }
 0x265   : > { %v7427_v31 = vpop.f32.mrb[51].mxu0  ;;  %7723 = vmatmul.mubr.f32.gmra.mrb[118].mxu1 %v9790_v16 }
 0x266   : > { %9795 = vtanh.f32 %v1946_v45  ;;  %v1885_v50 = vadd.f32 %v1756_v2, %v1106_v32  ;;  %v1328_v55 = vpop.permute.xlu0 %1327  ;;  %7725 = vmatprep.mubr.msk.f32.mxu1 %vm10890_vm0, %v10891_v33  ;;  %v6548_v31 = vld [vmem:[%s14814_s2 + $0x140] sm:$0xff] }
 0x267   : > { %v1684_v56 = vmul.f32 %v11920_v0, %v1328_v55  ;;  %v604_v7 = vpop.permute.xlu1 %603 }
 0x268   : > { %v9792_v6 = vpop.eup %9791  ;;  %v2019_v20 = vadd.f32 %v11933_v43, %v1885_v50  ;;  %v1034_v60 = vmul.f32 %v11939_v63, %v604_v7  ;;  %v11970_v40 = vpop.f32.mrb[66].mxu1  ;;  %v6549_v50 = vld [vmem:[%s14814_s2 + $0x148] sm:$0xff] }
 0x269   : > { %14840 = vst [vmem:[#allocation22_spill] sm:$0xff] %v11970_v40  ;;  %7507 = vmatmul.mubr.f32.gmra.mrb[104].mxu0 %v9792_v6  ;;  %v7646_v5 = vpop.f32.mrb[67].mxu1 }
 0x26a   : > { %9797 = vtanh.f32 %v2019_v20  ;;  %v1813_v16 = vadd.f32 %v1684_v56, %v1034_v60  ;;  %v1620_v45 = vpop.permute.xlu0 %1619  ;;  %7509 = vmatprep.mubr.msk.f32.mxu0 %vm10890_vm0, %v10891_v33  ;;  %v9474_v20 = vpack.c.bf16 %v6549_v50, %v6548_v31 }
 0x26b   : > { %v1757_v2 = vmul.f32 %v11920_v0, %v1620_v45  ;;  %v969_v32 = vpop.permute.xlu1 %968 }
 0x26c   : > { %v9794_v55 = vpop.eup %9793  ;;  %v1947_v7 = vadd.f32 %v11933_v43, %v1813_v16  ;;  %v1107_v56 = vmul.f32 %v11939_v63, %v969_v32  ;;  %v11983_v6 = vpop.f32.mrb[52].mxu0  ;;  %9475 = vmatpush3.bf16.msra.mxu0 %v9474_v20 }
 0x26d   : > { %v7430_v60 = vpop.f32.mrb[53].mxu0  ;;  %7726 = vmatmul.mubr.f32.gmra.mrb[120].mxu1 %v9794_v55  ;;  %9476 = vmatprep.subr.bf16.mxu0 %v14836_v57 }
 0x26e   : > { %9799 = vtanh.f32 %v1947_v7  ;;  %v1886_v5 = vadd.f32 %v1757_v2, %v1107_v56  ;;  %v1332_v45 = vpop.permute.xlu0 %1331  ;;  %7728 = vmatprep.mubr.msk.f32.mxu1 %vm10890_vm0, %v10891_v33 }
 0x26f   : > { %v1685_v40 = vmul.f32 %v11920_v0, %v1332_v45  ;;  %v609_v51 = vpop.permute.xlu1 %608 }
 0x270   : > { %v9796_v16 = vpop.eup %9795  ;;  %v2020_v32 = vadd.f32 %v11933_v43, %v1886_v5  ;;  %v1035_v61 = vmul.f32 %v11939_v63, %v609_v51  ;;  %v11991_v31 = vpop.f32.mrb[68].mxu1 }
 0x271   : > { %14841 = vst [vmem:[#allocation23_spill] sm:$0xff] %v11991_v31  ;;  %7510 = vmatmul.mubr.f32.gmra.mrb[106].mxu0 %v9796_v16  ;;  %v7649_v50 = vpop.f32.mrb[69].mxu1 }
 0x272   : > { %9801 = vtanh.f32 %v2020_v32  ;;  %v1814_v2 = vadd.f32 %v1685_v40, %v1035_v61  ;;  %v1624_v55 = vpop.permute.xlu0 %1623  ;;  %7512 = vmatprep.mubr.msk.f32.mxu0 %vm10890_vm0, %v10891_v33 }
 0x273   : > { %v1758_v7 = vmul.f32 %v11920_v0, %v1624_v55  ;;  %v974_v56 = vpop.permute.xlu1 %973 }
 0x274   : > { %v9798_v20 = vpop.eup %9797  ;;  %v1948_v60 = vadd.f32 %v11933_v43, %v1814_v2  ;;  %v1108_v5 = vmul.f32 %v11939_v63, %v974_v56  ;;  %v11998_v45 = vpop.f32.mrb[54].mxu0  ;;  %v12006_v2 = vld [vmem:[%s14815_s3 + $0x1] ss:$0 sm:$0xff] }
 0x275   : > { %v7433_v51 = vpop.f32.mrb[55].mxu0  ;;  %7729 = vmatmul.mubr.f32.gmra.mrb[122].mxu1 %v9798_v20 }
 0x276   : > { %9803 = vtanh.f32 %v1948_v60  ;;  %v1887_v16 = vadd.f32 %v1758_v7, %v1108_v5  ;;  %v1336_v32 = vpop.permute.xlu0 %1335  ;;  %7731 = vmatprep.mubr.msk.f32.mxu1 %vm10890_vm0, %v10891_v33  ;;  %v2239_v7 = vadd.f32 %v12006_v2, %v11503_v23  ;;  %v2244_v23 = vadd.f32 %v12006_v2, %v11519_v47 }
 0x277   : > { %v1686_v61 = vmul.f32 %v11920_v0, %v1336_v32  ;;  %v614_v40 = vpop.permute.xlu1 %613  ;;  %v2249_v47 = vadd.f32 %v12006_v2, %v11535_v11 }
 0x278   : > { %v9800_v50 = vpop.eup %9799  ;;  %v2021_v55 = vadd.f32 %v11933_v43, %v1887_v16  ;;  %v1036_v56 = vmul.f32 %v11939_v63, %v614_v40  ;;  %v12010_v20 = vpop.f32.mrb[70].mxu1 }
 0x279   : > { %14842 = vst [vmem:[#allocation24_spill] sm:$0xff] %v12010_v20  ;;  %7513 = vmatmul.mubr.f32.gmra.mrb[108].mxu0 %v9800_v50  ;;  %v7652_v60 = vpop.f32.mrb[71].mxu1 }
 0x27a   : > { %9805 = vtanh.f32 %v2021_v55  ;;  %v1815_v5 = vadd.f32 %v1686_v61, %v1036_v56  ;;  %v1340_v51 = vpop.permute.xlu0 %1339  ;;  %7515 = vmatprep.mubr.msk.f32.mxu0 %vm10890_vm0, %v10891_v33 }
 0x27b   : > { %v1687_v32 = vmul.f32 %v11920_v0, %v1340_v51  ;;  %v619_v31 = vpop.permute.xlu1 %618  ;;  %9807 = vtanh.f32 %v2239_v7 }
 0x27c   : > { %v9802_v27 = vpop.eup %9801  ;;  %v1949_v16 = vadd.f32 %v11933_v43, %v1815_v5  ;;  %v1037_v40 = vmul.f32 %v11939_v63, %v619_v31  ;;  %v12019_v20 = vpop.f32.mrb[56].mxu0 }
 0x27d   : > { %v7436_v50 = vpop.f32.mrb[57].mxu0  ;;  %7732 = vmatmul.mubr.f32.gmra.mrb[124].mxu1 %v9802_v27 }
 0x27e   : > { %9809 = vtanh.f32 %v1949_v16  ;;  %v1816_v61 = vadd.f32 %v1687_v32, %v1037_v40  ;;  %v1344_v55 = vpop.permute.xlu0 %1343  ;;  %7734 = vmatprep.mubr.msk.f32.mxu1 %vm10890_vm0, %v10891_v33 }
 0x27f   : > { %v1688_v56 = vmul.f32 %v11920_v0, %v1344_v55  ;;  %v624_v60 = vpop.permute.xlu1 %623  ;;  %9811 = vtanh.f32 %v2244_v23  ;;  %v6558_v23 = vld [vmem:[%s14814_s2 + $0x188] sm:$0xff] }
 0x280   : > { %v9804_v5 = vpop.eup %9803  ;;  %v1950_v31 = vadd.f32 %v11933_v43, %v1816_v61  ;;  %v1038_v51 = vmul.f32 %v11939_v63, %v624_v60  ;;  %v12028_v7 = vpop.f32.mrb[72].mxu1  ;;  %v6557_v61 = vld [vmem:[%s14814_s2 + $0x180] sm:$0xff] }
 0x281   : > { %14843 = vst [vmem:[#allocation25_spill] sm:$0xff] %v12028_v7  ;;  %7516 = vmatmul.mubr.f32.gmra.mrb[110].mxu0 %v9804_v5  ;;  %v7655_v27 = vpop.f32.mrb[73].mxu1  ;;  %v2254_v5 = vadd.f32 %v12006_v2, %v11558_v41  ;;  %v6559_v41 = vld [vmem:[%s14814_s2 + $0x190] sm:$0xff] }
 0x282   : > { %9813 = vtanh.f32 %v1950_v31  ;;  %v1817_v32 = vadd.f32 %v1688_v56, %v1038_v51  ;;  %v1348_v16 = vpop.permute.xlu0 %1347  ;;  %7518 = vmatprep.mubr.msk.f32.mxu0 %vm10890_vm0, %v10891_v33 }
 0x283   : > { %v1689_v40 = vmul.f32 %v11920_v0, %v1348_v16  ;;  %v629_v50 = vpop.permute.xlu1 %628  ;;  %9815 = vtanh.f32 %v2249_v47  ;;  %v9486_v16 = vpack.c.bf16 %v6558_v23, %v6557_v61  ;;  %v2259_v61 = vadd.f32 %v12006_v2, %v11574_v4 }
 0x284   : > { %v9806_v11 = vpop.eup %9805  ;;  %v1951_v55 = vadd.f32 %v11933_v43, %v1817_v32  ;;  %v1039_v56 = vmul.f32 %v11939_v63, %v629_v50  ;;  %v12043_v60 = vpop.f32.mrb[58].mxu0 }
 0x285   : > { %v7439_v31 = vpop.f32.mrb[59].mxu0  ;;  %7735 = vmatmul.mubr.f32.gmra.mrb[126].mxu1 %v9806_v11  ;;  %v9808_v7 = vpop.eup %9807 }
 0x286   : > { %9817 = vtanh.f32 %v1951_v55  ;;  %v1818_v51 = vadd.f32 %v1689_v40, %v1039_v56  ;;  %v1352_v27 = vpop.permute.xlu0 %1351  ;;  %7769 = vmatprep.mubr.msk.f32.mxu1 %vm10890_vm0, %v10891_v33  ;;  %v6560_v40 = vld [vmem:[%s14814_s2 + $0x198] sm:$0xff] }
 0x287   : > { %v1690_v32 = vmul.f32 %v11920_v0, %v1352_v27  ;;  %v634_v54 = vpop.permute.xlu1 %633  ;;  %9819 = vtanh.f32 %v2254_v5  ;;  %v9489_v4 = vpack.c.bf16 %v6560_v40, %v6559_v41  ;;  %v2264_v41 = vadd.f32 %v12006_v2, %v11590_v34 }
 0x288   : > { %v9810_v50 = vpop.eup %9809  ;;  %v1952_v22 = vadd.f32 %v11933_v43, %v1818_v51  ;;  %v1040_v47 = vmul.f32 %v11939_v63, %v634_v54  ;;  %v12052_v48 = vpop.f32.mrb[74].mxu1 }
 0x289   : > { %7519 = vmatmul.mubr.f32.gmra.mrb[112].mxu0 %v9810_v50  ;;  %v7658_v23 = vpop.f32.mrb[75].mxu1  ;;  %7770 = vmatmul.mubr.f32.vlgmr.msra.gmra.mrb[128].mxu1 %v9808_v7  ;;  %v9812_v55 = vpop.eup %9811  ;;  %v6551_v7 = vld [vmem:[%s14814_s2 + $0x158] sm:$0xff]  ;;  %v6561_v50 = vld [vmem:[%s14814_s2 + $0x1a0] sm:$0xff] }
 0x28a   : > { %9821 = vtanh.f32 %v1952_v22  ;;  %v1819_v11 = vadd.f32 %v1690_v32, %v1040_v47  ;;  %v1356_v54 = vpop.permute.xlu0 %1355  ;;  %9487 = vmatpush3.bf16.msra.mxu1 %v9486_v16  ;;  %7521 = vmatprep.mubr.msk.f32.mxu0 %vm10890_vm0, %v10891_v33  ;;  %v6550_v22 = vld [vmem:[%s14814_s2 + $0x150] sm:$0xff]  ;;  %v6562_v47 = vld [vmem:[%s14814_s2 + $0x1a8] sm:$0xff] }
 0x28b   : > { %v1691_v56 = vmul.f32 %v11920_v0, %v1356_v54  ;;  %v639_v31 = vpop.permute.xlu1 %638  ;;  %7772 = vmatprep.mubr.msk.f32.mxu1 %vm10890_vm0, %v10891_v33  ;;  %9488 = vmatprep.subr.bf16.mxu1 %v14836_v57  ;;  %v9477_v32 = vpack.c.bf16 %v6551_v7, %v6550_v22  ;;  %9823 = vtanh.f32 %v2259_v61  ;;  %v9492_v61 = vpack.c.bf16 %v6562_v47, %v6561_v50 }
 0x28c   : > { %v9814_v5 = vpop.eup %9813  ;;  %v1953_v51 = vadd.f32 %v11933_v43, %v1819_v11  ;;  %v1041_v27 = vmul.f32 %v11939_v63, %v639_v31  ;;  %v12076_v16 = vpop.f32.mrb[60].mxu0 }
 0x28d   : > { %v7442_v40 = vpop.f32.mrb[61].mxu0  ;;  %7522 = vmatmul.mubr.f32.gmra.mrb[114].mxu0 %v9814_v5  ;;  %7773 = vmatmul.mubr.f32.gmra.mrb[130].mxu1 %v9812_v55  ;;  %v9816_v54 = vpop.eup %9815  ;;  %v2269_v5 = vadd.f32 %v12006_v2, %v11621_v62 }
 0x28e   : > { %9825 = vtanh.f32 %v1953_v51  ;;  %v1820_v23 = vadd.f32 %v1691_v56, %v1041_v27  ;;  %v1360_v11 = vpop.permute.xlu0 %1359  ;;  %7524 = vmatprep.mubr.msk.f32.mxu0 %vm10890_vm0, %v10891_v33  ;;  %7775 = vmatprep.mubr.msk.f32.mxu1 %vm10890_vm0, %v10891_v33 }
 0x28f   : > { %v1692_v31 = vmul.f32 %v11920_v0, %v1360_v11  ;;  %v644_v22 = vpop.permute.xlu1 %643  ;;  %9490 = vmatpush3.bf16.msra.mxu1 %v9489_v4  ;;  %9478 = vmatpush3.bf16.msra.mxu0 %v9477_v32  ;;  %9827 = vtanh.f32 %v2264_v41  ;;  %v2274_v11 = vadd.f32 %v12006_v2, %v11644_v38 }
 0x290   : > { %v9818_v34 = vpop.eup %9817  ;;  %v1954_v7 = vadd.f32 %v11933_v43, %v1820_v23  ;;  %v1042_v55 = vmul.f32 %v11939_v63, %v644_v22  ;;  %v12093_v56 = vpop.f32.mrb[76].mxu1  ;;  %9491 = vmatprep.subr.bf16.mxu1 %v14836_v57  ;;  %9479 = vmatprep.subr.bf16.mxu0 %v14836_v57 }
 0x291   : > { %7525 = vmatmul.mubr.f32.gmra.mrb[116].mxu0 %v9818_v34  ;;  %v7661_v51 = vpop.f32.mrb[77].mxu1  ;;  %7776 = vmatmul.mubr.f32.gmra.mrb[132].mxu1 %v9816_v54  ;;  %v9820_v32 = vpop.eup %9819 }
 0x292   : > { %9829 = vtanh.f32 %v1954_v7  ;;  %v1821_v4 = vadd.f32 %v1692_v31, %v1042_v55  ;;  %v1364_v27 = vpop.permute.xlu0 %1363  ;;  %7527 = vmatprep.mubr.msk.f32.mxu0 %vm10890_vm0, %v10891_v33  ;;  %7778 = vmatprep.mubr.msk.f32.mxu1 %vm10890_vm0, %v10891_v33 }
 0x293   : > { %v1693_v50 = vmul.f32 %v11920_v0, %v1364_v27  ;;  %v649_v47 = vpop.permute.xlu1 %648  ;;  %9493 = vmatpush3.bf16.msra.mxu1 %v9492_v61  ;;  %9831 = vtanh.f32 %v2269_v5 }
 0x294   : > { %v9822_v41 = vpop.eup %9821  ;;  %v1955_v62 = vadd.f32 %v11933_v43, %v1821_v4  ;;  %v1043_v40 = vmul.f32 %v11939_v63, %v649_v47  ;;  %v12106_v23 = vpop.f32.mrb[62].mxu0  ;;  %9494 = vmatprep.subr.bf16.mxu1 %v14836_v57  ;;  %v2279_v4 = vadd.f32 %v12006_v2, %v11660_v8  ;;  %v2284_v8 = vadd.f32 %v12006_v2, %v11676_v42 }
 0x295   : > { %v7445_v54 = vpop.f32.mrb[63].mxu0  ;;  %7528 = vmatmul.mubr.f32.gmra.mrb[118].mxu0 %v9822_v41  ;;  %7779 = vmatmul.mubr.f32.gmra.mrb[134].mxu1 %v9820_v32  ;;  %v9824_v61 = vpop.eup %9823 }
 0x296   : > { %9833 = vtanh.f32 %v1955_v62  ;;  %v1822_v31 = vadd.f32 %v1693_v50, %v1043_v40  ;;  %v1368_v22 = vpop.permute.xlu0 %1367  ;;  %7530 = vmatprep.mubr.msk.f32.mxu0 %vm10890_vm0, %v10891_v33  ;;  %7781 = vmatprep.mubr.msk.f32.mxu1 %vm10890_vm0, %v10891_v33  ;;  %v2289_v54 = vadd.f32 %v12006_v2, %v11698_v26 }
 0x297   : > { %v1694_v34 = vmul.f32 %v11920_v0, %v1368_v22  ;;  %v654_v7 = vpop.permute.xlu1 %653  ;;  %9835 = vtanh.f32 %v2274_v11 }
 0x298   : > { %v9826_v55 = vpop.eup %9825  ;;  %v1956_v5 = vadd.f32 %v11933_v43, %v1822_v31  ;;  %v1044_v38 = vmul.f32 %v11939_v63, %v654_v7  ;;  %v12118_v51 = vpop.f32.mrb[78].mxu1 }
 0x299   : > { %7531 = vmatmul.mubr.f32.gmra.mrb[120].mxu0 %v9826_v55  ;;  %v7664_v27 = vpop.f32.mrb[79].mxu1  ;;  %7782 = vmatmul.mubr.f32.gmra.mrb[136].mxu1 %v9824_v61  ;;  %v9828_v0 = vpop.eup %9827 }
 0x29a   : > { %9837 = vtanh.f32 %v1956_v5  ;;  %v1823_v32 = vadd.f32 %v1694_v34, %v1044_v38  ;;  %7533 = vmatprep.mubr.msk.f32.mxu0 %vm10890_vm0, %v10891_v33  ;;  %7784 = vmatprep.mubr.msk.f32.mxu1 %vm10890_vm0, %v10891_v33  ;;  %v2294_v34 = vadd.f32 %v12006_v2, %v11722_v12  ;;  %v2299_v38 = vadd.f32 %v12006_v2, %v11738_v52  ;;  %v6552_v12 = vld [vmem:[%s14814_s2 + $0x160] sm:$0xff] }
 0x29b   : > { %9839 = vtanh.f32 %v2279_v4  ;;  %v6553_v4 = vld [vmem:[%s14814_s2 + $0x168] sm:$0xff]  ;;  %v2304_v52 = vadd.f32 %v12006_v2, %v11754_v9 }
 0x29c   : > { %v9830_v50 = vpop.eup %9829  ;;  %v1957_v63 = vadd.f32 %v11933_v43, %v1823_v32  ;;  %v12127_v47 = vpop.f32.mrb[64].mxu0 }
 0x29d   : > { %v7448_v41 = vpop.f32.mrb[65].mxu0  ;;  %7534 = vmatmul.mubr.f32.gmra.mrb[122].mxu0 %v9830_v50  ;;  %7785 = vmatmul.mubr.f32.gmra.mrb[138].mxu1 %v9828_v0  ;;  %v9832_v62 = vpop.eup %9831  ;;  %v9480_v0 = vpack.c.bf16 %v6553_v4, %v6552_v12 }
 0x29e   : > { %9841 = vtanh.f32 %v1957_v63  ;;  %7536 = vmatprep.mubr.msk.f32.mxu0 %vm10890_vm0, %v10891_v33  ;;  %7787 = vmatprep.mubr.msk.f32.mxu1 %vm10890_vm0, %v10891_v33 }
 0x29f   : > { %9843 = vtanh.f32 %v2284_v8  ;;  %9481 = vmatpush3.bf16.msra.mxu0 %v9480_v0 }
 0x2a0   : > { %v9834_v40 = vpop.eup %9833  ;;  %v12135_v11 = vpop.f32.mrb[80].mxu1  ;;  %9845 = vtanh.f32 %v2289_v54  ;;  %9482 = vmatprep.subr.bf16.mxu0 %v14836_v57  ;;  %v2314_v54 = vadd.f32 %v12006_v2, %v11793_v29  ;;  %v2324_v29 = vadd.f32 %v12006_v2, %v11822_v17  ;;  %v2334_v17 = vadd.f32 %v12006_v2, %v11857_v44  ;;  %v6555_v44 = vld [vmem:[%s14814_s2 + $0x178] sm:$0xff] }
 0x2a1   : > { %7537 = vmatmul.mubr.f32.gmra.mrb[124].mxu0 %v9834_v40  ;;  %v7667_v43 = vpop.f32.mrb[81].mxu1  ;;  %7788 = vmatmul.mubr.f32.gmra.mrb[140].mxu1 %v9832_v62  ;;  %v9836_v42 = vpop.eup %9835  ;;  %9847 = vtanh.f32 %v2294_v34  ;;  %v2309_v62 = vadd.f32 %v12006_v2, %v11770_v24  ;;  %v2319_v24 = vadd.f32 %v12006_v2, %v11808_v18  ;;  %v2329_v18 = vadd.f32 %v12006_v2, %v11842_v35 }
 0x2a2   : > { %7539 = vmatprep.mubr.msk.f32.mxu0 %vm10890_vm0, %v10891_v33  ;;  %7790 = vmatprep.mubr.msk.f32.mxu1 %vm10890_vm0, %v10891_v33  ;;  %9849 = vtanh.f32 %v2299_v38  ;;  %v2339_v35 = vadd.f32 %v12006_v2, %v11871_v13  ;;  %v2344_v13 = vadd.f32 %v12006_v2, %v11885_v46  ;;  %v2349_v46 = vadd.f32 %v12006_v2, %v11905_v39 }
 0x2a3   : > { %9851 = vtanh.f32 %v2304_v52 }
 0x2a4   : > { %v9838_v31 = vpop.eup %9837  ;;  %v12143_v22 = vpop.f32.mrb[66].mxu0  ;;  %9853 = vtanh.f32 %v2309_v62 }
 0x2a5   : > { %v7451_v61 = vpop.f32.mrb[67].mxu0  ;;  %7540 = vmatmul.mubr.f32.gmra.mrb[126].mxu0 %v9838_v31  ;;  %7791 = vmatmul.mubr.f32.gmra.mrb[142].mxu1 %v9836_v42  ;;  %v9840_v26 = vpop.eup %9839  ;;  %9855 = vtanh.f32 %v2314_v54 }
 0x2a6   : > { %7542 = vmatprep.mubr.msk.f32.mxu0 %vm10890_vm0, %v10891_v33  ;;  %7793 = vmatprep.mubr.msk.f32.mxu1 %vm10890_vm0, %v10891_v33  ;;  %9857 = vtanh.f32 %v2319_v24 }
 0x2a7   : > { %9859 = vtanh.f32 %v2324_v29 }
 0x2a8   : > { %v9842_v7 = vpop.eup %9841  ;;  %v12151_v55 = vpop.f32.mrb[82].mxu1  ;;  %9861 = vtanh.f32 %v2329_v18 }
 0x2a9   : > { %7543 = vmatmul.mubr.f32.gmra.mrb[128].mxu0 %v9842_v7  ;;  %v7670_v5 = vpop.f32.mrb[83].mxu1  ;;  %7794 = vmatmul.mubr.f32.gmra.mrb[144].mxu1 %v9840_v26  ;;  %v9844_v27 = vpop.eup %9843  ;;  %9863 = vtanh.f32 %v2334_v17 }
 0x2aa   : > { %7796 = vmatprep.mubr.msk.f32.mxu1 %vm10890_vm0, %v10891_v33  ;;  %8188 = vmatprep.mubr.msk.f32.mxu0 %vm10890_vm0, %v10891_v33  ;;  %v9846_v63 = vpop.eup %9845  ;;  %9865 = vtanh.f32 %v2339_v35 }
 0x2ab   : > { %v9848_v40 = vpop.eup %9847  ;;  %9867 = vtanh.f32 %v2344_v13 }
 0x2ac   : > { %v12165_v32 = vpop.f32.mrb[68].mxu0  ;;  %v9850_v42 = vpop.eup %9849  ;;  %9869 = vtanh.f32 %v2349_v46 }
 0x2ad   : > { %v7454_v50 = vpop.f32.mrb[69].mxu0  ;;  %7797 = vmatmul.mubr.f32.gmra.mrb[146].mxu1 %v9844_v27  ;;  %v9852_v34 = vpop.eup %9851 }
 0x2ae   : > { %7799 = vmatprep.mubr.msk.f32.mxu1 %vm10890_vm0, %v10891_v33  ;;  %v9854_v5 = vpop.eup %9853 }
 0x2af   : > { %v9856_v4 = vpop.eup %9855 }
 0x2b0   : > { %v12172_v41 = vpop.f32.mrb[84].mxu1  ;;  %v9858_v50 = vpop.eup %9857 }
 0x2b1   : > { %v7673_v8 = vpop.f32.mrb[85].mxu1  ;;  %7800 = vmatmul.mubr.f32.gmra.mrb[148].mxu1 %v9846_v63  ;;  %v9860_v62 = vpop.eup %9859 }
 0x2b2   : > { %7802 = vmatprep.mubr.msk.f32.mxu1 %vm10890_vm0, %v10891_v33  ;;  %v6554_v8 = vld [vmem:[%s14814_s2 + $0x170] sm:$0xff]  ;;  %v9862_v24 = vpop.eup %9861 }
 0x2b4   : > { %v12178_v9 = vpop.f32.mrb[70].mxu0 }
 0x2b5   : > { %v7457_v43 = vpop.f32.mrb[71].mxu0  ;;  %7803 = vmatmul.mubr.f32.gmra.mrb[150].mxu1 %v9848_v40 }
 0x2b6   : > { %7805 = vmatprep.mubr.msk.f32.mxu1 %vm10890_vm0, %v10891_v33  ;;  %v9483_v43 = vpack.c.bf16 %v6555_v44, %v6554_v8 }
 0x2b8   : > { %v12184_v31 = vpop.f32.mrb[86].mxu1  ;;  %9484 = vmatpush3.bf16.msra.mxu0 %v9483_v43 }
 0x2b9   : > { %v7676_v61 = vpop.f32.mrb[87].mxu1  ;;  %7806 = vmatmul.mubr.f32.gmra.mrb[152].mxu1 %v9850_v42  ;;  %v6563_v42 = vld [vmem:[%s14814_s2 + $0x1b0] sm:$0xff]  ;;  %9509 = vmatprep.subr.bf16.mxu0 %v14836_v57 }
 0x2ba   : > { %7808 = vmatprep.mubr.msk.f32.mxu1 %vm10890_vm0, %v10891_v33  ;;  %v6564_v61 = vld [vmem:[%s14814_s2 + $0x1b8] sm:$0xff] }
 0x2bc   : > { %v12190_v26 = vpop.f32.mrb[72].mxu0 }
 0x2bd   : > { %v7460_v7 = vpop.f32.mrb[73].mxu0  ;;  %7809 = vmatmul.mubr.f32.gmra.mrb[154].mxu1 %v9852_v34 }
 0x2be   : > { %7811 = vmatprep.mubr.msk.f32.mxu1 %vm10890_vm0, %v10891_v33  ;;  %v9495_v7 = vpack.c.bf16 %v6564_v61, %v6563_v42 }
 0x2c0   : > { %v12196_v38 = vpop.f32.mrb[88].mxu1  ;;  %9496 = vmatpush3.bf16.msra.mxu1 %v9495_v7 }
 0x2c1   : > { %v7679_v12 = vpop.f32.mrb[89].mxu1  ;;  %7812 = vmatmul.mubr.f32.gmra.mrb[156].mxu1 %v9854_v5  ;;  %9497 = vmatprep.subr.bf16.mxu1 %v14836_v57  ;;  %v9864_v5 = vpop.eup %9863 }
 0x2c2   : > { %7814 = vmatprep.mubr.msk.f32.mxu1 %vm10890_vm0, %v10891_v33 }
 0x2c4   : > { %v12202_v27 = vpop.f32.mrb[74].mxu0 }
 0x2c5   : > { %v7463_v0 = vpop.f32.mrb[75].mxu0  ;;  %7815 = vmatmul.mubr.f32.gmra.mrb[158].mxu1 %v9856_v4  ;;  %v2354_v4 = vadd.f32 %v12006_v2, %v11925_v1  ;;  %v2364_v1 = vadd.f32 %v12006_v2, %v11963_v30  ;;  %v2374_v30 = vadd.f32 %v12006_v2, %v11998_v45  ;;  %v2384_v45 = vadd.f32 %v12006_v2, %v12043_v60 }
 0x2c6   : > { %7817 = vmatprep.mubr.msk.f32.mxu1 %vm10890_vm0, %v10891_v33  ;;  %v9866_v0 = vpop.eup %9865  ;;  %v2394_v60 = vadd.f32 %v12006_v2, %v12106_v23  ;;  %v2404_v23 = vadd.f32 %v12006_v2, %v12143_v22  ;;  %v2414_v22 = vadd.f32 %v12006_v2, %v12178_v9  ;;  %v2424_v9 = vadd.f32 %v12006_v2, %v12202_v27 }
 0x2c7   : > { %9871 = vtanh.f32 %v2354_v4 }
 0x2c8   : > { %v12208_v52 = vpop.f32.mrb[90].mxu1 }
 0x2c9   : > { %v7682_v63 = vpop.f32.mrb[91].mxu1  ;;  %7818 = vmatmul.mubr.f32.gmra.mrb[160].mxu1 %v9858_v50  ;;  %v2359_v50 = vadd.f32 %v12006_v2, %v11949_v14  ;;  %v2369_v14 = vadd.f32 %v12006_v2, %v11983_v6  ;;  %v2379_v6 = vadd.f32 %v12006_v2, %v12019_v20  ;;  %v2389_v20 = vadd.f32 %v12006_v2, %v12076_v16 }
 0x2ca   : > { %7820 = vmatprep.mubr.msk.f32.mxu1 %vm10890_vm0, %v10891_v33  ;;  %v9868_v63 = vpop.eup %9867  ;;  %v2399_v16 = vadd.f32 %v12006_v2, %v12127_v47  ;;  %v2409_v47 = vadd.f32 %v12006_v2, %v12165_v32  ;;  %v2419_v32 = vadd.f32 %v12006_v2, %v12190_v26  ;;  %v6566_v26 = vld [vmem:[%s14814_s2 + $0x1c8] sm:$0xff] }
 0x2cb   : > { %9873 = vtanh.f32 %v2359_v50  ;;  %v9870_v44 = vpop.eup %9869 }
 0x2cc   : > { %v12220_v40 = vpop.f32.mrb[76].mxu0  ;;  %9875 = vtanh.f32 %v2364_v1 }
 0x2cd   : > { %v7466_v54 = vpop.f32.mrb[77].mxu0  ;;  %7821 = vmatmul.mubr.f32.gmra.mrb[162].mxu1 %v9860_v62  ;;  %9877 = vtanh.f32 %v2369_v14  ;;  %v2429_v27 = vadd.f32 %v12006_v2, %v12220_v40 }
 0x2ce   : > { %7823 = vmatprep.mubr.msk.f32.mxu1 %vm10890_vm0, %v10891_v33  ;;  %9879 = vtanh.f32 %v2374_v30 }
 0x2cf   : > { %9881 = vtanh.f32 %v2379_v6 }
 0x2d0   : > { %v12233_v34 = vpop.f32.mrb[92].mxu1  ;;  %9883 = vtanh.f32 %v2384_v45 }
 0x2d1   : > { %v7685_v29 = vpop.f32.mrb[93].mxu1  ;;  %7824 = vmatmul.mubr.f32.gmra.mrb[164].mxu1 %v9862_v24  ;;  %v9872_v54 = vpop.eup %9871  ;;  %9885 = vtanh.f32 %v2389_v20 }
 0x2d2   : > { %7826 = vmatprep.mubr.msk.f32.mxu1 %vm10890_vm0, %v10891_v33  ;;  %9887 = vtanh.f32 %v2394_v60 }
 0x2d3   : > { %9889 = vtanh.f32 %v2399_v16 }
 0x2d4   : > { %v12240_v12 = vpop.f32.mrb[78].mxu0  ;;  %9891 = vtanh.f32 %v2404_v23 }
 0x2d5   : > { %v7469_v18 = vpop.f32.mrb[79].mxu0  ;;  %7827 = vmatmul.mubr.f32.gmra.mrb[166].mxu1 %v9864_v5  ;;  %v9874_v61 = vpop.eup %9873  ;;  %9893 = vtanh.f32 %v2409_v47 }
 0x2d6   : > { %7829 = vmatprep.mubr.msk.f32.mxu1 %vm10890_vm0, %v10891_v33  ;;  %v9876_v29 = vpop.eup %9875  ;;  %9895 = vtanh.f32 %v2414_v22 }
 0x2d7   : > { %v9878_v18 = vpop.eup %9877  ;;  %9897 = vtanh.f32 %v2419_v32 }
 0x2d8   : > { %v12246_v39 = vpop.f32.mrb[94].mxu1  ;;  %9899 = vtanh.f32 %v2424_v9 }
 0x2d9   : > { %v7688_v17 = vpop.f32.mrb[95].mxu1  ;;  %7830 = vmatmul.mubr.f32.gmra.mrb[168].mxu1 %v9866_v0  ;;  %9901 = vtanh.f32 %v2429_v27 }
 0x2da   : > { %7832 = vmatprep.mubr.msk.f32.mxu1 %vm10890_vm0, %v10891_v33  ;;  %v9880_v17 = vpop.eup %9879 }
 0x2dc   : > { %v12252_v35 = vpop.f32.mrb[80].mxu0 }
 0x2dd   : > { %v7472_v8 = vpop.f32.mrb[81].mxu0  ;;  %7833 = vmatmul.mubr.f32.gmra.mrb[170].mxu1 %v9868_v63 }
 0x2de   : > { %7835 = vmatprep.mubr.msk.f32.mxu1 %vm10890_vm0, %v10891_v33  ;;  %v9882_v8 = vpop.eup %9881 }
 0x2e0   : > { %v12258_v62 = vpop.f32.mrb[96].mxu1 }
 0x2e1   : > { %v7691_v43 = vpop.f32.mrb[97].mxu1  ;;  %7836 = vmatmul.mubr.f32.gmra.mrb[172].mxu1 %v9870_v44 }
 0x2e2   : > { %7838 = vmatprep.mubr.msk.f32.mxu1 %vm10890_vm0, %v10891_v33  ;;  %v9884_v43 = vpop.eup %9883 }
 0x2e4   : > { %v12264_v13 = vpop.f32.mrb[82].mxu0 }
 0x2e5   : > { %v7475_v42 = vpop.f32.mrb[83].mxu0  ;;  %7839 = vmatmul.mubr.f32.gmra.mrb[174].mxu1 %v9872_v54 }
 0x2e6   : > { %7841 = vmatprep.mubr.msk.f32.mxu1 %vm10890_vm0, %v10891_v33  ;;  %v9886_v42 = vpop.eup %9885 }
 0x2e8   : > { %v12270_v24 = vpop.f32.mrb[98].mxu1 }
 0x2e9   : > { %v7694_v7 = vpop.f32.mrb[99].mxu1  ;;  %7842 = vmatmul.mubr.f32.gmra.mrb[176].mxu1 %v9874_v61 }
 0x2ea   : > { %7844 = vmatprep.mubr.msk.f32.mxu1 %vm10890_vm0, %v10891_v33  ;;  %v9888_v7 = vpop.eup %9887 }
 0x2ec   : > { %v12276_v46 = vpop.f32.mrb[84].mxu0 }
 0x2ed   : > { %v7478_v5 = vpop.f32.mrb[85].mxu0  ;;  %7845 = vmatmul.mubr.f32.gmra.mrb[178].mxu1 %v9876_v29 }
 0x2ee   : > { %7847 = vmatprep.mubr.msk.f32.mxu1 %vm10890_vm0, %v10891_v33  ;;  %v9890_v5 = vpop.eup %9889 }
 0x2f0   : > { %v12282_v4 = vpop.f32.mrb[100].mxu1 }
 0x2f1   : > { %v7697_v0 = vpop.f32.mrb[101].mxu1  ;;  %7848 = vmatmul.mubr.f32.gmra.mrb[180].mxu1 %v9878_v18 }
 0x2f2   : > { %7850 = vmatprep.mubr.msk.f32.mxu1 %vm10890_vm0, %v10891_v33  ;;  %v9892_v0 = vpop.eup %9891 }
 0x2f3   : > { %v9894_v60 = vpop.eup %9893 }
 0x2f4   : > { %v12288_v50 = vpop.f32.mrb[86].mxu0 }
 0x2f5   : > { %v7481_v63 = vpop.f32.mrb[87].mxu0  ;;  %7851 = vmatmul.mubr.f32.gmra.mrb[182].mxu1 %v9880_v17 }
 0x2f6   : > { %7853 = vmatprep.mubr.msk.f32.mxu1 %vm10890_vm0, %v10891_v33  ;;  %v6565_v63 = vld [vmem:[%s14814_s2 + $0x1c0] sm:$0xff] }
 0x2f8   : > { %v12294_v1 = vpop.f32.mrb[102].mxu1 }
 0x2f9   : > { %v7700_v44 = vpop.f32.mrb[103].mxu1  ;;  %7854 = vmatmul.mubr.f32.gmra.mrb[184].mxu1 %v9882_v8 }
 0x2fa   : > { %7856 = vmatprep.mubr.msk.f32.mxu1 %vm10890_vm0, %v10891_v33  ;;  %v9498_v44 = vpack.c.bf16 %v6566_v26, %v6565_v63 }
 0x2fc   : > { %v12300_v14 = vpop.f32.mrb[88].mxu0  ;;  %9499 = vmatpush3.bf16.msra.mxu1 %v9498_v44 }
 0x2fd   : > { %v7484_v54 = vpop.f32.mrb[89].mxu0  ;;  %7857 = vmatmul.mubr.f32.gmra.mrb[186].mxu1 %v9884_v43  ;;  %9500 = vmatprep.subr.bf16.mxu1 %v14836_v57  ;;  %v9896_v43 = vpop.eup %9895 }
 0x2fe   : > { %7859 = vmatprep.mubr.msk.f32.mxu1 %vm10890_vm0, %v10891_v33 }
 0x300   : > { %v12306_v30 = vpop.f32.mrb[104].mxu1 }
 0x301   : > { %v7703_v61 = vpop.f32.mrb[105].mxu1  ;;  %7860 = vmatmul.mubr.f32.gmra.mrb[188].mxu1 %v9886_v42  ;;  %v2434_v42 = vadd.f32 %v12006_v2, %v12240_v12  ;;  %v2444_v12 = vadd.f32 %v12006_v2, %v12264_v13  ;;  %v2454_v13 = vadd.f32 %v12006_v2, %v12288_v50 }
 0x302   : > { %7862 = vmatprep.mubr.msk.f32.mxu1 %vm10890_vm0, %v10891_v33  ;;  %v9898_v61 = vpop.eup %9897 }
 0x303   : > { %9903 = vtanh.f32 %v2434_v42 }
 0x304   : > { %v12312_v6 = vpop.f32.mrb[90].mxu0 }
 0x305   : > { %v7487_v29 = vpop.f32.mrb[91].mxu0  ;;  %7863 = vmatmul.mubr.f32.gmra.mrb[190].mxu1 %v9888_v7  ;;  %v2439_v7 = vadd.f32 %v12006_v2, %v12252_v35  ;;  %v2449_v35 = vadd.f32 %v12006_v2, %v12276_v46  ;;  %v2459_v46 = vadd.f32 %v12006_v2, %v12300_v14  ;;  %v2464_v50 = vadd.f32 %v12006_v2, %v12312_v6 }
 0x306   : > { %7865 = vmatprep.mubr.msk.f32.mxu1 %vm10890_vm0, %v10891_v33  ;;  %v9900_v29 = vpop.eup %9899 }
 0x307   : > { %9905 = vtanh.f32 %v2439_v7 }
 0x308   : > { %v12318_v45 = vpop.f32.mrb[106].mxu1  ;;  %9907 = vtanh.f32 %v2444_v12 }
 0x309   : > { %v7706_v18 = vpop.f32.mrb[107].mxu1  ;;  %7866 = vmatmul.mubr.f32.gmra.mrb[192].mxu1 %v9890_v5  ;;  %9909 = vtanh.f32 %v2449_v35 }
 0x30a   : > { %7868 = vmatprep.mubr.msk.f32.mxu1 %vm10890_vm0, %v10891_v33  ;;  %v9902_v18 = vpop.eup %9901  ;;  %9911 = vtanh.f32 %v2454_v13 }
 0x30b   : > { %9913 = vtanh.f32 %v2459_v46 }
 0x30c   : > { %v12324_v20 = vpop.f32.mrb[92].mxu0  ;;  %9915 = vtanh.f32 %v2464_v50 }
 0x30d   : > { %v7490_v17 = vpop.f32.mrb[93].mxu0  ;;  %7869 = vmatmul.mubr.f32.gmra.mrb[194].mxu1 %v9892_v0  ;;  %v2469_v14 = vadd.f32 %v12006_v2, %v12324_v20 }
 0x30e   : > { %7871 = vmatprep.mubr.msk.f32.mxu1 %vm10890_vm0, %v10891_v33  ;;  %v9904_v17 = vpop.eup %9903 }
 0x30f   : > { %9917 = vtanh.f32 %v2469_v14 }
 0x310   : > { %v12336_v8 = vpop.f32.mrb[108].mxu1 }
 0x311   : > { %v7709_v16 = vpop.f32.mrb[109].mxu1  ;;  %7872 = vmatmul.mubr.f32.gmra.mrb[196].mxu1 %v9894_v60  ;;  %v9906_v26 = vpop.eup %9905 }
 0x312   : > { %7874 = vmatprep.mubr.msk.f32.mxu1 %vm10890_vm0, %v10891_v33  ;;  %v9908_v16 = vpop.eup %9907 }
 0x314   : > { %v2473_v54 = vpop.f32.mrb[94].mxu0 }
 0x315   : > { %v7493_v23 = vpop.f32.mrb[95].mxu0  ;;  %7875 = vmatmul.mubr.f32.gmra.mrb[198].mxu1 %v9896_v43  ;;  %v2474_v6 = vadd.f32 %v12006_v2, %v2473_v54 }
 0x316   : > { %7877 = vmatprep.mubr.msk.f32.mxu1 %vm10890_vm0, %v10891_v33  ;;  %v9910_v23 = vpop.eup %9909 }
 0x317   : > { %9919 = vtanh.f32 %v2474_v6  ;;  %v6568_v6 = vld [vmem:[%s14814_s2 + $0x1d8] sm:$0xff] }
 0x318   : > { %v12347_v47 = vpop.f32.mrb[110].mxu1 }
 0x319   : > { %v7712_v40 = vpop.f32.mrb[111].mxu1  ;;  %7878 = vmatmul.mubr.f32.gmra.mrb[200].mxu1 %v9898_v61 }
 0x31a   : > { %7880 = vmatprep.mubr.msk.f32.mxu1 %vm10890_vm0, %v10891_v33  ;;  %v9912_v40 = vpop.eup %9911 }
 0x31c   : > { %v2478_v22 = vpop.f32.mrb[96].mxu0 }
 0x31d   : > { %v7496_v5 = vpop.f32.mrb[97].mxu0  ;;  %7881 = vmatmul.mubr.f32.gmra.mrb[202].mxu1 %v9900_v29  ;;  %v2479_v20 = vadd.f32 %v12006_v2, %v2478_v22 }
 0x31e   : > { %7883 = vmatprep.mubr.msk.f32.mxu1 %vm10890_vm0, %v10891_v33  ;;  %v9914_v5 = vpop.eup %9913 }
 0x31f   : > { %9921 = vtanh.f32 %v2479_v20 }
 0x320   : > { %v12357_v32 = vpop.f32.mrb[112].mxu1 }
 0x321   : > { %v7715_v0 = vpop.f32.mrb[113].mxu1  ;;  %7884 = vmatmul.mubr.f32.gmra.mrb[204].mxu1 %v9902_v18 }
 0x322   : > { %7886 = vmatprep.mubr.msk.f32.mxu1 %vm10890_vm0, %v10891_v33  ;;  %v9916_v0 = vpop.eup %9915 }
 0x324   : > { %v2483_v9 = vpop.f32.mrb[98].mxu0 }
 0x325   : > { %v7499_v63 = vpop.f32.mrb[99].mxu0  ;;  %7887 = vmatmul.mubr.f32.gmra.mrb[206].mxu1 %v9904_v17  ;;  %v2484_v54 = vadd.f32 %v12006_v2, %v2483_v9 }
 0x326   : > { %7889 = vmatprep.mubr.msk.f32.mxu1 %vm10890_vm0, %v10891_v33  ;;  %v9918_v63 = vpop.eup %9917 }
 0x327   : > { %9923 = vtanh.f32 %v2484_v54 }
 0x328   : > { %v12367_v60 = vpop.f32.mrb[114].mxu1 }
 0x329   : > { %v7718_v44 = vpop.f32.mrb[115].mxu1  ;;  %7890 = vmatmul.mubr.f32.gmra.mrb[208].mxu1 %v9906_v26 }
 0x32a   : > { %7892 = vmatprep.mubr.msk.f32.mxu1 %vm10890_vm0, %v10891_v33  ;;  %v9920_v44 = vpop.eup %9919 }
 0x32c   : > { %v2488_v27 = vpop.f32.mrb[100].mxu0 }
 0x32d   : > { %v7502_v43 = vpop.f32.mrb[101].mxu0  ;;  %7893 = vmatmul.mubr.f32.gmra.mrb[210].mxu1 %v9908_v16  ;;  %v2489_v22 = vadd.f32 %v12006_v2, %v2488_v27 }
 0x32e   : > { %7895 = vmatprep.mubr.msk.f32.mxu1 %vm10890_vm0, %v10891_v33  ;;  %v9922_v43 = vpop.eup %9921 }
 0x32f   : > { %9925 = vtanh.f32 %v2489_v22 }
 0x330   : > { %v12377_v42 = vpop.f32.mrb[116].mxu1 }
 0x331   : > { %v7721_v61 = vpop.f32.mrb[117].mxu1  ;;  %7896 = vmatmul.mubr.f32.gmra.mrb[212].mxu1 %v9910_v23 }
 0x332   : > { %7898 = vmatprep.mubr.msk.f32.mxu1 %vm10890_vm0, %v10891_v33  ;;  %v9924_v61 = vpop.eup %9923 }
 0x334   : > { %v2493_v7 = vpop.f32.mrb[102].mxu0 }
 0x335   : > { %v7505_v29 = vpop.f32.mrb[103].mxu0  ;;  %7899 = vmatmul.mubr.f32.gmra.mrb[214].mxu1 %v9912_v40  ;;  %v2494_v9 = vadd.f32 %v12006_v2, %v2493_v7 }
 0x336   : > { %7901 = vmatprep.mubr.msk.f32.mxu1 %vm10890_vm0, %v10891_v33  ;;  %v6567_v29 = vld [vmem:[%s14814_s2 + $0x1d0] sm:$0xff] }
 0x337   : > { %9927 = vtanh.f32 %v2494_v9  ;;  %v9501_v20 = vpack.c.bf16 %v6568_v6, %v6567_v29 }
 0x338   : > { %v12386_v12 = vpop.f32.mrb[118].mxu1 }
 0x339   : > { %v7724_v18 = vpop.f32.mrb[119].mxu1  ;;  %7902 = vmatmul.mubr.f32.gmra.mrb[216].mxu1 %v9914_v5  ;;  %v9926_v5 = vpop.eup %9925 }
 0x33a   : > { %7904 = vmatprep.mubr.msk.f32.mxu1 %vm10890_vm0, %v10891_v33  ;;  %9502 = vmatpush3.bf16.msra.mxu1 %v9501_v20 }
 0x33b   : > { %9503 = vmatprep.subr.bf16.mxu1 %v14836_v57 }
 0x33c   : > { %v2498_v35 = vpop.f32.mrb[104].mxu0 }
 0x33d   : > { %v7508_v17 = vpop.f32.mrb[105].mxu0  ;;  %7905 = vmatmul.mubr.f32.gmra.mrb[218].mxu1 %v9916_v0  ;;  %v2499_v27 = vadd.f32 %v12006_v2, %v2498_v35 }
 0x33e   : > { %7907 = vmatprep.mubr.msk.f32.mxu1 %vm10890_vm0, %v10891_v33 }
 0x33f   : > { %9929 = vtanh.f32 %v2499_v27 }
 0x340   : > { %v12394_v13 = vpop.f32.mrb[120].mxu1 }
 0x341   : > { %v7727_v26 = vpop.f32.mrb[121].mxu1  ;;  %7908 = vmatmul.mubr.f32.gmra.mrb[220].mxu1 %v9918_v63  ;;  %v9928_v17 = vpop.eup %9927 }
 0x342   : > { %7910 = vmatprep.mubr.msk.f32.mxu1 %vm10890_vm0, %v10891_v33 }
 0x344   : > { %v2503_v46 = vpop.f32.mrb[106].mxu0 }
 0x345   : > { %v7511_v16 = vpop.f32.mrb[107].mxu0  ;;  %7911 = vmatmul.mubr.f32.gmra.mrb[222].mxu1 %v9920_v44  ;;  %v2504_v7 = vadd.f32 %v12006_v2, %v2503_v46  ;;  %v12421_v2 = vld [vmem:[%s14815_s3 + $0x1] ss:$0 sm:$0xff] }
 0x346   : > { %7913 = vmatprep.mubr.msk.f32.mxu1 %vm10890_vm0, %v10891_v33  ;;  %v12435_v16 = vld [vmem:[%s14815_s3 + $0x2] ss:$0 sm:$0xff] }
 0x347   : > { %9931 = vtanh.f32 %v2504_v7 }
 0x348   : > { %v12402_v50 = vpop.f32.mrb[122].mxu1 }
 0x349   : > { %v7730_v23 = vpop.f32.mrb[123].mxu1  ;;  %7914 = vmatmul.mubr.f32.gmra.mrb[224].mxu1 %v9922_v43  ;;  %v9930_v22 = vpop.eup %9929 }
 0x34a   : > { %7916 = vmatprep.mubr.msk.f32.mxu1 %vm10890_vm0, %v10891_v33 }
 0x34c   : > { %v2508_v14 = vpop.f32.mrb[108].mxu0 }
 0x34d   : > { %v7514_v40 = vpop.f32.mrb[109].mxu0  ;;  %7917 = vmatmul.mubr.f32.gmra.mrb[226].mxu1 %v9924_v61  ;;  %v2509_v35 = vadd.f32 %v12421_v2, %v2508_v14 }
 0x34e   : > { %7919 = vmatprep.mubr.msk.f32.mxu1 %vm10890_vm0, %v10891_v33 }
 0x34f   : > { %9933 = vtanh.f32 %v2509_v35 }
 0x350   : > { %v12416_v18 = vpop.f32.mrb[124].mxu1 }
 0x351   : > { %v7733_v0 = vpop.f32.mrb[125].mxu1  ;;  %7920 = vmatmul.mubr.f32.gmra.mrb[228].mxu1 %v9926_v5  ;;  %v9932_v9 = vpop.eup %9931 }
 0x352   : > { %7922 = vmatprep.mubr.msk.f32.mxu1 %vm10890_vm0, %v10891_v33 }
 0x354   : > { %v2513_v54 = vpop.f32.mrb[110].mxu0 }
 0x355   : > { %v7517_v63 = vpop.f32.mrb[111].mxu0  ;;  %7923 = vmatmul.mubr.f32.gmra.mrb[230].mxu1 %v9928_v17  ;;  %v2514_v26 = vadd.f32 %v12421_v2, %v2513_v54 }
 0x356   : > { %7925 = vmatprep.mubr.msk.f32.mxu1 %vm10890_vm0, %v10891_v33 }
 0x357   : > { %9935 = vtanh.f32 %v2514_v26 }
 0x358   : > { %v12430_v44 = vpop.f32.mrb[126].mxu1 }
 0x359   : > { %v7736_v46 = vpop.f32.mrb[127].mxu1  ;;  %7926 = vmatmul.mubr.f32.gmra.mrb[232].mxu1 %v9930_v22  ;;  %v9934_v7 = vpop.eup %9933 }
 0x35a   : > { %7928 = vmatprep.mubr.msk.f32.mxu1 %vm10890_vm0, %v10891_v33 }
 0x35c   : > { %v2518_v43 = vpop.f32.mrb[112].mxu0  ;;  %v3099_v23 = vpop.f32.mrb[128].mxu1 }
 0x35d   : > { %v2519_v27 = vadd.f32 %v12421_v2, %v2518_v43  ;;  %v3100_v61 = vadd.f32 %v12435_v16, %v3099_v23  ;;  %v7520_v14 = vpop.f32.mrb[113].mxu0  ;;  %v7771_v40 = vpop.f32.mrb[129].mxu1  ;;  %7929 = vmatmul.mubr.f32.gmra.mrb[234].mxu1 %v9932_v9  ;;  %v6574_v43 = vld [vmem:[%s14814_s2 + $0x200] sm:$0xff]  ;;  %v6575_v23 = vld [vmem:[%s14814_s2 + $0x208] sm:$0xff] }
 0x35e   : > { %7931 = vmatprep.mubr.msk.f32.mxu1 %vm10890_vm0, %v10891_v33  ;;  %v9510_v14 = vpack.c.bf16 %v6575_v23, %v6574_v43 }
 0x35f   : > { %9937 = vtanh.f32 %v2519_v27 }
 0x360   : > { %9939 = vtanh.f32 %v3100_v61  ;;  %v2523_v29 = vpop.f32.mrb[114].mxu0  ;;  %v3104_v6 = vpop.f32.mrb[130].mxu1 }
 0x361   : > { %v2524_v5 = vadd.f32 %v12421_v2, %v2523_v29  ;;  %v3105_v20 = vadd.f32 %v12435_v16, %v3104_v6  ;;  %v7523_v0 = vpop.f32.mrb[115].mxu0  ;;  %v7774_v35 = vpop.f32.mrb[131].mxu1  ;;  %7932 = vmatmul.mubr.f32.gmra.mrb[236].mxu1 %v9934_v7 }
 0x362   : > { %7934 = vmatprep.mubr.msk.f32.mxu1 %vm10890_vm0, %v10891_v33  ;;  %v9936_v17 = vpop.eup %9935  ;;  %v6577_v0 = vld [vmem:[%s14814_s2 + $0x218] sm:$0xff] }
 0x363   : > { %9941 = vtanh.f32 %v2524_v5 }
 0x364   : > { %9943 = vtanh.f32 %v3105_v20  ;;  %v2528_v54 = vpop.f32.mrb[116].mxu0  ;;  %v3109_v63 = vpop.f32.mrb[132].mxu1  ;;  %v6576_v20 = vld [vmem:[%s14814_s2 + $0x210] sm:$0xff] }
 0x365   : > { %v2529_v26 = vadd.f32 %v12421_v2, %v2528_v54  ;;  %v3110_v22 = vadd.f32 %v12435_v16, %v3109_v63  ;;  %v7526_v46 = vpop.f32.mrb[117].mxu0  ;;  %v7777_v9 = vpop.f32.mrb[133].mxu1  ;;  %7935 = vmatmul.mubr.f32.gmra.mrb[238].mxu1 %v9936_v17  ;;  %v9513_v63 = vpack.c.bf16 %v6577_v0, %v6576_v20 }
 0x366   : > { %7937 = vmatprep.mubr.msk.f32.mxu1 %vm10890_vm0, %v10891_v33 }
 0x367   : > { %9945 = vtanh.f32 %v2529_v26 }
 0x368   : > { %9947 = vtanh.f32 %v3110_v22  ;;  %v2533_v27 = vpop.f32.mrb[118].mxu0  ;;  %v3114_v61 = vpop.f32.mrb[134].mxu1 }
 0x369   : > { %v9938_v40 = vpop.eup %9937  ;;  %v2534_v7 = vadd.f32 %v12421_v2, %v2533_v27  ;;  %v3115_v29 = vadd.f32 %v12435_v16, %v3114_v61  ;;  %v7529_v6 = vpop.f32.mrb[119].mxu0  ;;  %v6578_v27 = vld [vmem:[%s14814_s2 + $0x220] sm:$0xff]  ;;  %v6579_v61 = vld [vmem:[%s14814_s2 + $0x228] sm:$0xff] }
 0x36a   : > { %v7780_v5 = vpop.f32.mrb[135].mxu1  ;;  %v9940_v35 = vpop.eup %9939  ;;  %7938 = vmatmul.mubr.f32.gmra.mrb[240].mxu1 %v9938_v40 }
 0x36b   : > { %9949 = vtanh.f32 %v2534_v7  ;;  %8189 = vmatmul.mubr.f32.vlgmr.msra.gmra.mrb[130].mxu0 %v9940_v35  ;;  %7940 = vmatprep.mubr.msk.f32.mxu1 %vm10890_vm0, %v10891_v33  ;;  %v9516_v7 = vpack.c.bf16 %v6579_v61, %v6578_v27 }
 0x36c   : > { %9951 = vtanh.f32 %v3115_v29  ;;  %9511 = vmatpush3.bf16.msra.mxu0 %v9510_v14  ;;  %v2538_v17 = vpop.f32.mrb[120].mxu0  ;;  %v3119_v54 = vpop.f32.mrb[136].mxu1  ;;  %8191 = vmatprep.mubr.msk.f32.mxu0 %vm10890_vm0, %v10891_v33 }
 0x36d   : > { %v9942_v26 = vpop.eup %9941  ;;  %v2539_v22 = vadd.f32 %v12421_v2, %v2538_v17  ;;  %v3120_v46 = vadd.f32 %v12435_v16, %v3119_v54  ;;  %v7532_v9 = vpop.f32.mrb[121].mxu0  ;;  %9512 = vmatprep.subr.bf16.mxu0 %v14836_v57 }
 0x36e   : > { %v7783_v43 = vpop.f32.mrb[137].mxu1  ;;  %v9944_v23 = vpop.eup %9943  ;;  %7941 = vmatmul.mubr.f32.gmra.mrb[242].mxu1 %v9942_v26 }
 0x36f   : > { %9953 = vtanh.f32 %v2539_v22  ;;  %8192 = vmatmul.mubr.f32.gmra.mrb[132].mxu0 %v9944_v23  ;;  %7943 = vmatprep.mubr.msk.f32.mxu1 %vm10890_vm0, %v10891_v33 }
 0x370   : > { %9955 = vtanh.f32 %v3120_v46  ;;  %v2543_v14 = vpop.f32.mrb[122].mxu0  ;;  %v3124_v40 = vpop.f32.mrb[138].mxu1  ;;  %8194 = vmatprep.mubr.msk.f32.mxu0 %vm10890_vm0, %v10891_v33  ;;  %9514 = vmatpush3.bf16.msra.mxu0 %v9513_v63 }
 0x371   : > { %v9946_v29 = vpop.eup %9945  ;;  %v2544_v6 = vadd.f32 %v12421_v2, %v2543_v14  ;;  %v3125_v5 = vadd.f32 %v12435_v16, %v3124_v40  ;;  %v7535_v20 = vpop.f32.mrb[123].mxu0  ;;  %9515 = vmatprep.subr.bf16.mxu0 %v14836_v57 }
 0x372   : > { %v7786_v0 = vpop.f32.mrb[139].mxu1  ;;  %v9948_v35 = vpop.eup %9947  ;;  %7944 = vmatmul.mubr.f32.gmra.mrb[244].mxu1 %v9946_v29 }
 0x373   : > { %9957 = vtanh.f32 %v2544_v6  ;;  %8195 = vmatmul.mubr.f32.gmra.mrb[134].mxu0 %v9948_v35  ;;  %7946 = vmatprep.mubr.msk.f32.mxu1 %vm10890_vm0, %v10891_v33 }
 0x374   : > { %9959 = vtanh.f32 %v3125_v5  ;;  %v2548_v17 = vpop.f32.mrb[124].mxu0  ;;  %v3129_v54 = vpop.f32.mrb[140].mxu1  ;;  %8197 = vmatprep.mubr.msk.f32.mxu0 %vm10890_vm0, %v10891_v33  ;;  %9517 = vmatpush3.bf16.msra.mxu0 %v9516_v7 }
 0x375   : > { %v9950_v63 = vpop.eup %9949  ;;  %v2549_v26 = vadd.f32 %v12421_v2, %v2548_v17  ;;  %v3130_v22 = vadd.f32 %v12435_v16, %v3129_v54  ;;  %v7538_v46 = vpop.f32.mrb[125].mxu0  ;;  %9518 = vmatprep.subr.bf16.mxu0 %v14836_v57 }
 0x376   : > { %v7789_v9 = vpop.f32.mrb[141].mxu1  ;;  %v9952_v43 = vpop.eup %9951  ;;  %7947 = vmatmul.mubr.f32.gmra.mrb[246].mxu1 %v9950_v63 }
 0x377   : > { %9961 = vtanh.f32 %v2549_v26  ;;  %8198 = vmatmul.mubr.f32.gmra.mrb[136].mxu0 %v9952_v43  ;;  %7949 = vmatprep.mubr.msk.f32.mxu1 %vm10890_vm0, %v10891_v33 }
 0x378   : > { %9963 = vtanh.f32 %v3130_v22  ;;  %v2553_v23 = vpop.f32.mrb[126].mxu0  ;;  %v3134_v27 = vpop.f32.mrb[142].mxu1  ;;  %8200 = vmatprep.mubr.msk.f32.mxu0 %vm10890_vm0, %v10891_v33  ;;  %v2564_v22 = vadd.f32 %v12421_v2, %v11437_v3  ;;  %v2569_v3 = vadd.f32 %v12421_v2, %v11445_v15 }
 0x379   : > { %v9954_v61 = vpop.eup %9953  ;;  %v2554_v14 = vadd.f32 %v12421_v2, %v2553_v23  ;;  %v3135_v40 = vadd.f32 %v12435_v16, %v3134_v27  ;;  %v7541_v7 = vpop.f32.mrb[127].mxu0 }
 0x37a   : > { %v7792_v29 = vpop.f32.mrb[143].mxu1  ;;  %v9956_v6 = vpop.eup %9955  ;;  %7950 = vmatmul.mubr.f32.gmra.mrb[248].mxu1 %v9954_v61 }
 0x37b   : > { %9965 = vtanh.f32 %v2554_v14  ;;  %8201 = vmatmul.mubr.f32.gmra.mrb[138].mxu0 %v9956_v6  ;;  %7952 = vmatprep.mubr.msk.f32.mxu1 %vm10890_vm0, %v10891_v33  ;;  %v2574_v6 = vadd.f32 %v12421_v2, %v11453_v25 }
 0x37c   : > { %9967 = vtanh.f32 %v3135_v40  ;;  %v2558_v5 = vpop.f32.mrb[128].mxu0  ;;  %v3139_v20 = vpop.f32.mrb[144].mxu1  ;;  %8203 = vmatprep.mubr.msk.f32.mxu0 %vm10890_vm0, %v10891_v33 }
 0x37d   : > { %v9958_v0 = vpop.eup %9957  ;;  %v2559_v35 = vadd.f32 %v12421_v2, %v2558_v5  ;;  %v3140_v17 = vadd.f32 %v12435_v16, %v3139_v20  ;;  %v7544_v54 = vpop.f32.mrb[129].mxu0 }
 0x37e   : > { %v7795_v63 = vpop.f32.mrb[145].mxu1  ;;  %v9960_v26 = vpop.eup %9959  ;;  %7953 = vmatmul.mubr.f32.gmra.mrb[250].mxu1 %v9958_v0 }
 0x37f   : > { %9969 = vtanh.f32 %v2559_v35  ;;  %8204 = vmatmul.mubr.f32.gmra.mrb[140].mxu0 %v9960_v26  ;;  %7955 = vmatprep.mubr.msk.f32.mxu1 %vm10890_vm0, %v10891_v33 }
 0x380   : > { %9971 = vtanh.f32 %v3140_v17  ;;  %v3144_v46 = vpop.f32.mrb[146].mxu1  ;;  %8206 = vmatprep.mubr.msk.f32.mxu0 %vm10890_vm0, %v10891_v33  ;;  %v2579_v17 = vadd.f32 %v12421_v2, %v11461_v36  ;;  %v6569_v36 = vld [vmem:[%s14814_s2 + $0x1e0] sm:$0xff] }
 0x381   : > { %v9962_v9 = vpop.eup %9961  ;;  %v3145_v43 = vadd.f32 %v12435_v16, %v3144_v46  ;;  %v7798_v23 = vpop.f32.mrb[147].mxu1  ;;  %9973 = vtanh.f32 %v2564_v22  ;;  %v2584_v46 = vadd.f32 %v12421_v2, %v11475_v49 }
 0x382   : > { %v9964_v27 = vpop.eup %9963  ;;  %7956 = vmatmul.mubr.f32.gmra.mrb[252].mxu1 %v9962_v9  ;;  %v6570_v9 = vld [vmem:[%s14814_s2 + $0x1e8] sm:$0xff] }
 0x383   : > { %9975 = vtanh.f32 %v3145_v43  ;;  %8207 = vmatmul.mubr.f32.gmra.mrb[142].mxu0 %v9964_v27  ;;  %7958 = vmatprep.mubr.msk.f32.mxu1 %vm10890_vm0, %v10891_v33  ;;  %v9504_v49 = vpack.c.bf16 %v6570_v9, %v6569_v36 }
 0x384   : > { %v3149_v61 = vpop.f32.mrb[148].mxu1  ;;  %8209 = vmatprep.mubr.msk.f32.mxu0 %vm10890_vm0, %v10891_v33  ;;  %9977 = vtanh.f32 %v2569_v3 }
 0x385   : > { %v9966_v14 = vpop.eup %9965  ;;  %v3150_v40 = vadd.f32 %v12435_v16, %v3149_v61  ;;  %v7801_v7 = vpop.f32.mrb[149].mxu1  ;;  %9505 = vmatpush3.bf16.msra.mxu1 %v9504_v49  ;;  %v2609_v49 = vadd.f32 %v12421_v2, %v11527_v58 }
 0x386   : > { %v9968_v29 = vpop.eup %9967  ;;  %7959 = vmatmul.mubr.f32.gmra.mrb[254].mxu1 %v9966_v14  ;;  %v2589_v14 = vadd.f32 %v12421_v2, %v11484_v59  ;;  %9506 = vmatprep.subr.bf16.mxu1 %v14836_v57  ;;  %v2594_v59 = vadd.f32 %v12421_v2, %v11492_v10 }
 0x387   : > { %9979 = vtanh.f32 %v3150_v40  ;;  %8210 = vmatmul.mubr.f32.gmra.mrb[144].mxu0 %v9968_v29  ;;  %7961 = vmatprep.mubr.msk.f32.mxu1 %vm10890_vm0, %v10891_v33 }
 0x388   : > { %v3154_v15 = vpop.f32.mrb[150].mxu1  ;;  %8212 = vmatprep.mubr.msk.f32.mxu0 %vm10890_vm0, %v10891_v33  ;;  %9981 = vtanh.f32 %v2574_v6 }
 0x389   : > { %v9970_v5 = vpop.eup %9969  ;;  %v3155_v20 = vadd.f32 %v12435_v16, %v3154_v15  ;;  %v7804_v0 = vpop.f32.mrb[151].mxu1 }
 0x38a   : > { %v9972_v35 = vpop.eup %9971  ;;  %7962 = vmatmul.mubr.f32.gmra.mrb[0].mxu1 %v9970_v5 }
 0x38b   : > { %9983 = vtanh.f32 %v3155_v20  ;;  %8213 = vmatmul.mubr.f32.gmra.mrb[146].mxu0 %v9972_v35  ;;  %7964 = vmatprep.mubr.msk.f32.mxu1 %vm10890_vm0, %v10891_v33  ;;  %v9974_v25 = vpop.eup %9973 }
 0x38c   : > { %v3159_v54 = vpop.f32.mrb[152].mxu1  ;;  %8215 = vmatprep.mubr.msk.f32.mxu0 %vm10890_vm0, %v10891_v33  ;;  %9985 = vtanh.f32 %v2579_v17 }
 0x38d   : > { %v9976_v63 = vpop.eup %9975  ;;  %v3160_v26 = vadd.f32 %v12435_v16, %v3159_v54  ;;  %v7807_v22 = vpop.f32.mrb[153].mxu1 }
 0x38e   : > { %7965 = vmatmul.mubr.f32.gmra.mrb[2].mxu1 %v9974_v25  ;;  %v9978_v43 = vpop.eup %9977  ;;  %v2599_v25 = vadd.f32 %v12421_v2, %v11500_v21 }
 0x38f   : > { %9987 = vtanh.f32 %v3160_v26  ;;  %8216 = vmatmul.mubr.f32.gmra.mrb[148].mxu0 %v9976_v63  ;;  %7967 = vmatprep.mubr.msk.f32.mxu1 %vm10890_vm0, %v10891_v33 }
 0x390   : > { %v3164_v23 = vpop.f32.mrb[154].mxu1  ;;  %8218 = vmatprep.mubr.msk.f32.mxu0 %vm10890_vm0, %v10891_v33  ;;  %9989 = vtanh.f32 %v2584_v46  ;;  %v2604_v46 = vadd.f32 %v12421_v2, %v11511_v37 }
 0x391   : > { %v9980_v27 = vpop.eup %9979  ;;  %v3165_v3 = vadd.f32 %v12435_v16, %v3164_v23  ;;  %v7810_v61 = vpop.f32.mrb[155].mxu1 }
 0x392   : > { %7968 = vmatmul.mubr.f32.gmra.mrb[4].mxu1 %v9978_v43  ;;  %v9982_v40 = vpop.eup %9981 }
 0x393   : > { %9991 = vtanh.f32 %v3165_v3  ;;  %8219 = vmatmul.mubr.f32.gmra.mrb[150].mxu0 %v9980_v27  ;;  %7970 = vmatprep.mubr.msk.f32.mxu1 %vm10890_vm0, %v10891_v33 }
 0x394   : > { %v3169_v7 = vpop.f32.mrb[156].mxu1  ;;  %8221 = vmatprep.mubr.msk.f32.mxu0 %vm10890_vm0, %v10891_v33  ;;  %9993 = vtanh.f32 %v2589_v14 }
 0x395   : > { %v9984_v29 = vpop.eup %9983  ;;  %v3170_v6 = vadd.f32 %v12435_v16, %v3169_v7  ;;  %v7813_v15 = vpop.f32.mrb[157].mxu1 }
 0x396   : > { %7971 = vmatmul.mubr.f32.gmra.mrb[6].mxu1 %v9982_v40  ;;  %v9986_v5 = vpop.eup %9985  ;;  %v2614_v40 = vadd.f32 %v12421_v2, %v11549_v28 }
 0x397   : > { %9995 = vtanh.f32 %v3170_v6  ;;  %8222 = vmatmul.mubr.f32.gmra.mrb[152].mxu0 %v9984_v29  ;;  %7973 = vmatprep.mubr.msk.f32.mxu1 %vm10890_vm0, %v10891_v33 }
 0x398   : > { %v3174_v20 = vpop.f32.mrb[158].mxu1  ;;  %8224 = vmatprep.mubr.msk.f32.mxu0 %vm10890_vm0, %v10891_v33  ;;  %9997 = vtanh.f32 %v2594_v59  ;;  %v2619_v59 = vadd.f32 %v12421_v2, %v11566_v53  ;;  %v6580_v53 = vld [vmem:[%s14814_s2 + $0x230] sm:$0xff] }
 0x399   : > { %v9988_v0 = vpop.eup %9987  ;;  %v3175_v35 = vadd.f32 %v12435_v16, %v3174_v20  ;;  %v7816_v17 = vpop.f32.mrb[159].mxu1 }
 0x39a   : > { %7974 = vmatmul.mubr.f32.gmra.mrb[8].mxu1 %v9986_v5  ;;  %v9990_v10 = vpop.eup %9989  ;;  %v2624_v17 = vadd.f32 %v12421_v2, %v11582_v19 }
 0x39b   : > { %9999 = vtanh.f32 %v3175_v35  ;;  %8225 = vmatmul.mubr.f32.gmra.mrb[154].mxu0 %v9988_v0  ;;  %7976 = vmatprep.mubr.msk.f32.mxu1 %vm10890_vm0, %v10891_v33 }
 0x39c   : > { %v3179_v54 = vpop.f32.mrb[160].mxu1  ;;  %8227 = vmatprep.mubr.msk.f32.mxu0 %vm10890_vm0, %v10891_v33  ;;  %10001 = vtanh.f32 %v2599_v25  ;;  %v6581_v25 = vld [vmem:[%s14814_s2 + $0x238] sm:$0xff] }
 0x39d   : > { %v9992_v63 = vpop.eup %9991  ;;  %v3180_v26 = vadd.f32 %v12435_v16, %v3179_v54  ;;  %v7819_v22 = vpop.f32.mrb[161].mxu1  ;;  %v9519_v19 = vpack.c.bf16 %v6581_v25, %v6580_v53 }
 0x39e   : > { %7977 = vmatmul.mubr.f32.gmra.mrb[10].mxu1 %v9990_v10  ;;  %v9994_v21 = vpop.eup %9993 }
 0x39f   : > { %10003 = vtanh.f32 %v3180_v26  ;;  %8228 = vmatmul.mubr.f32.gmra.mrb[156].mxu0 %v9992_v63  ;;  %7979 = vmatprep.mubr.msk.f32.mxu1 %vm10890_vm0, %v10891_v33 }
 0x3a0   : > { %v3184_v36 = vpop.f32.mrb[162].mxu1  ;;  %8230 = vmatprep.mubr.msk.f32.mxu0 %vm10890_vm0, %v10891_v33  ;;  %10005 = vtanh.f32 %v2604_v46  ;;  %v14844_v46 = vld [vmem:[#allocation2_spill] sm:$0xff]  ;;  %9520 = vmatpush3.bf16.msra.mxu0 %v9519_v19 }
 0x3a1   : > { %v9996_v9 = vpop.eup %9995  ;;  %v3185_v43 = vadd.f32 %v12435_v16, %v3184_v36  ;;  %v7822_v23 = vpop.f32.mrb[163].mxu1  ;;  %9521 = vmatprep.subr.bf16.mxu0 %v14836_v57 }
 0x3a2   : > { %7980 = vmatmul.mubr.f32.gmra.mrb[12].mxu1 %v9994_v21  ;;  %v9998_v37 = vpop.eup %9997  ;;  %v2629_v21 = vadd.f32 %v12421_v2, %v14844_v46 }
 0x3a3   : > { %10007 = vtanh.f32 %v3185_v43  ;;  %8231 = vmatmul.mubr.f32.gmra.mrb[158].mxu0 %v9996_v9  ;;  %7982 = vmatprep.mubr.msk.f32.mxu1 %vm10890_vm0, %v10891_v33 }
 0x3a4   : > { %v3189_v27 = vpop.f32.mrb[164].mxu1  ;;  %8233 = vmatprep.mubr.msk.f32.mxu0 %vm10890_vm0, %v10891_v33  ;;  %10009 = vtanh.f32 %v2609_v49 }
 0x3a5   : > { %v10000_v3 = vpop.eup %9999  ;;  %v3190_v61 = vadd.f32 %v12435_v16, %v3189_v27  ;;  %v7825_v14 = vpop.f32.mrb[165].mxu1 }
 0x3a6   : > { %7983 = vmatmul.mubr.f32.gmra.mrb[14].mxu1 %v9998_v37  ;;  %v10002_v58 = vpop.eup %10001  ;;  %v14845_v37 = vld [vmem:[#allocation3_spill] sm:$0xff] }
 0x3a7   : > { %10011 = vtanh.f32 %v3190_v61  ;;  %8234 = vmatmul.mubr.f32.gmra.mrb[160].mxu0 %v10000_v3  ;;  %7985 = vmatprep.mubr.msk.f32.mxu1 %vm10890_vm0, %v10891_v33  ;;  %v2634_v27 = vadd.f32 %v12421_v2, %v14845_v37 }
 0x3a8   : > { %v3194_v7 = vpop.f32.mrb[166].mxu1  ;;  %8236 = vmatprep.mubr.msk.f32.mxu0 %vm10890_vm0, %v10891_v33  ;;  %10013 = vtanh.f32 %v2614_v40 }
 0x3a9   : > { %v10004_v29 = vpop.eup %10003  ;;  %v3195_v6 = vadd.f32 %v12435_v16, %v3194_v7  ;;  %v7828_v15 = vpop.f32.mrb[167].mxu1  ;;  %v14846_v7 = vld [vmem:[#allocation4_spill] sm:$0xff] }
 0x3aa   : > { %7986 = vmatmul.mubr.f32.gmra.mrb[16].mxu1 %v10002_v58  ;;  %v10006_v28 = vpop.eup %10005 }
 0x3ab   : > { %10015 = vtanh.f32 %v3195_v6  ;;  %8237 = vmatmul.mubr.f32.gmra.mrb[162].mxu0 %v10004_v29  ;;  %7988 = vmatprep.mubr.msk.f32.mxu1 %vm10890_vm0, %v10891_v33  ;;  %v2639_v29 = vadd.f32 %v12421_v2, %v14846_v7 }
 0x3ac   : > { %v3199_v5 = vpop.f32.mrb[168].mxu1  ;;  %8239 = vmatprep.mubr.msk.f32.mxu0 %vm10890_vm0, %v10891_v33  ;;  %10017 = vtanh.f32 %v2619_v59 }
 0x3ad   : > { %v10008_v20 = vpop.eup %10007  ;;  %v3200_v0 = vadd.f32 %v12435_v16, %v3199_v5  ;;  %v7831_v35 = vpop.f32.mrb[169].mxu1 }
 0x3ae   : > { %7989 = vmatmul.mubr.f32.gmra.mrb[18].mxu1 %v10006_v28  ;;  %v10010_v10 = vpop.eup %10009 }
 0x3af   : > { %10019 = vtanh.f32 %v3200_v0  ;;  %8240 = vmatmul.mubr.f32.gmra.mrb[164].mxu0 %v10008_v20  ;;  %7991 = vmatprep.mubr.msk.f32.mxu1 %vm10890_vm0, %v10891_v33  ;;  %v14847_v20 = vld [vmem:[#allocation5_spill] sm:$0xff] }
 0x3b0   : > { %v3204_v54 = vpop.f32.mrb[170].mxu1  ;;  %8242 = vmatprep.mubr.msk.f32.mxu0 %vm10890_vm0, %v10891_v33  ;;  %10021 = vtanh.f32 %v2624_v17  ;;  %v2644_v0 = vadd.f32 %v12421_v2, %v14847_v20 }
 0x3b1   : > { %v10012_v63 = vpop.eup %10011  ;;  %v3205_v26 = vadd.f32 %v12435_v16, %v3204_v54  ;;  %v7834_v22 = vpop.f32.mrb[171].mxu1  ;;  %v14848_v54 = vld [vmem:[#allocation6_spill] sm:$0xff] }
 0x3b2   : > { %7992 = vmatmul.mubr.f32.gmra.mrb[20].mxu1 %v10010_v10  ;;  %v10014_v36 = vpop.eup %10013  ;;  %v2649_v19 = vadd.f32 %v12421_v2, %v14848_v54 }
 0x3b3   : > { %10023 = vtanh.f32 %v3205_v26  ;;  %8243 = vmatmul.mubr.f32.gmra.mrb[166].mxu0 %v10012_v63  ;;  %7994 = vmatprep.mubr.msk.f32.mxu1 %vm10890_vm0, %v10891_v33 }
 0x3b4   : > { %v3209_v9 = vpop.f32.mrb[172].mxu1  ;;  %8245 = vmatprep.mubr.msk.f32.mxu0 %vm10890_vm0, %v10891_v33  ;;  %10025 = vtanh.f32 %v2629_v21 }
 0x3b5   : > { %v10016_v43 = vpop.eup %10015  ;;  %v3210_v23 = vadd.f32 %v12435_v16, %v3209_v9  ;;  %v7837_v49 = vpop.f32.mrb[173].mxu1 }
 0x3b6   : > { %7995 = vmatmul.mubr.f32.gmra.mrb[22].mxu1 %v10014_v36  ;;  %v10018_v3 = vpop.eup %10017  ;;  %v14849_v36 = vld [vmem:[#allocation7_spill] sm:$0xff] }
 0x3b7   : > { %10027 = vtanh.f32 %v3210_v23  ;;  %8246 = vmatmul.mubr.f32.gmra.mrb[168].mxu0 %v10016_v43  ;;  %7997 = vmatprep.mubr.msk.f32.mxu1 %vm10890_vm0, %v10891_v33  ;;  %v2654_v9 = vadd.f32 %v12421_v2, %v14849_v36 }
 0x3b8   : > { %v3214_v61 = vpop.f32.mrb[174].mxu1  ;;  %8248 = vmatprep.mubr.msk.f32.mxu0 %vm10890_vm0, %v10891_v33  ;;  %10029 = vtanh.f32 %v2634_v27 }
 0x3b9   : > { %v10020_v14 = vpop.eup %10019  ;;  %v3215_v40 = vadd.f32 %v12435_v16, %v3214_v61  ;;  %v7840_v58 = vpop.f32.mrb[175].mxu1 }
 0x3ba   : > { %7998 = vmatmul.mubr.f32.gmra.mrb[24].mxu1 %v10018_v3  ;;  %v10022_v6 = vpop.eup %10021  ;;  %v14850_v3 = vld [vmem:[#allocation8_spill] sm:$0xff] }
 0x3bb   : > { %10031 = vtanh.f32 %v3215_v40  ;;  %8249 = vmatmul.mubr.f32.gmra.mrb[170].mxu0 %v10020_v14  ;;  %8000 = vmatprep.mubr.msk.f32.mxu1 %vm10890_vm0, %v10891_v33  ;;  %v2659_v61 = vadd.f32 %v12421_v2, %v14850_v3 }
 0x3bc   : > { %v3219_v15 = vpop.f32.mrb[176].mxu1  ;;  %8251 = vmatprep.mubr.msk.f32.mxu0 %vm10890_vm0, %v10891_v33  ;;  %10033 = vtanh.f32 %v2639_v29 }
 0x3bd   : > { %v10024_v59 = vpop.eup %10023  ;;  %v3220_v28 = vadd.f32 %v12435_v16, %v3219_v15  ;;  %v7843_v5 = vpop.f32.mrb[177].mxu1 }
 0x3be   : > { %8001 = vmatmul.mubr.f32.gmra.mrb[26].mxu1 %v10022_v6  ;;  %v10026_v35 = vpop.eup %10025  ;;  %v14851_v6 = vld [vmem:[#allocation9_spill] sm:$0xff] }
 0x3bf   : > { %10035 = vtanh.f32 %v3220_v28  ;;  %8252 = vmatmul.mubr.f32.gmra.mrb[172].mxu0 %v10024_v59  ;;  %8003 = vmatprep.mubr.msk.f32.mxu1 %vm10890_vm0, %v10891_v33  ;;  %v2664_v15 = vadd.f32 %v12421_v2, %v14851_v6 }
 0x3c0   : > { %v3224_v17 = vpop.f32.mrb[178].mxu1  ;;  %8254 = vmatprep.mubr.msk.f32.mxu0 %vm10890_vm0, %v10891_v33  ;;  %10037 = vtanh.f32 %v2644_v0 }
 0x3c1   : > { %v10028_v53 = vpop.eup %10027  ;;  %v3225_v25 = vadd.f32 %v12435_v16, %v3224_v17  ;;  %v7846_v10 = vpop.f32.mrb[179].mxu1  ;;  %v6572_v17 = vld [vmem:[%s14814_s2 + $0x1f8] sm:$0xff] }
 0x3c2   : > { %8004 = vmatmul.mubr.f32.gmra.mrb[28].mxu1 %v10026_v35  ;;  %v10030_v63 = vpop.eup %10029  ;;  %v6571_v35 = vld [vmem:[%s14814_s2 + $0x1f0] sm:$0xff] }
 0x3c3   : > { %10039 = vtanh.f32 %v3225_v25  ;;  %8255 = vmatmul.mubr.f32.gmra.mrb[174].mxu0 %v10028_v53  ;;  %8006 = vmatprep.mubr.msk.f32.mxu1 %vm10890_vm0, %v10891_v33  ;;  %v14852_v53 = vld [vmem:[#allocation10_spill] sm:$0xff]  ;;  %v9507_v10 = vpack.c.bf16 %v6572_v17, %v6571_v35 }
 0x3c4   : > { %v3229_v26 = vpop.f32.mrb[180].mxu1  ;;  %8257 = vmatprep.mubr.msk.f32.mxu0 %vm10890_vm0, %v10891_v33  ;;  %10041 = vtanh.f32 %v2649_v19  ;;  %v2669_v25 = vadd.f32 %v12421_v2, %v14852_v53 }
 0x3c5   : > { %v10032_v22 = vpop.eup %10031  ;;  %v3230_v46 = vadd.f32 %v12435_v16, %v3229_v26  ;;  %v7849_v21 = vpop.f32.mrb[181].mxu1  ;;  %9508 = vmatpush3.bf16.msra.mxu1 %v9507_v10 }
 0x3c6   : > { %8007 = vmatmul.mubr.f32.gmra.mrb[30].mxu1 %v10030_v63  ;;  %v10034_v43 = vpop.eup %10033 }
 0x3c7   : > { %10043 = vtanh.f32 %v3230_v46  ;;  %8258 = vmatmul.mubr.f32.gmra.mrb[176].mxu0 %v10032_v22  ;;  %8009 = vmatprep.mubr.msk.f32.mxu1 %vm10890_vm0, %v10891_v33  ;;  %v14853_v46 = vld [vmem:[#allocation11_spill] sm:$0xff] }
 0x3c8   : > { %v3234_v23 = vpop.f32.mrb[182].mxu1  ;;  %8260 = vmatprep.mubr.msk.f32.mxu0 %vm10890_vm0, %v10891_v33  ;;  %10045 = vtanh.f32 %v2654_v9  ;;  %v2674_v21 = vadd.f32 %v12421_v2, %v14853_v46 }
 0x3c9   : > { %v10036_v49 = vpop.eup %10035  ;;  %v3235_v37 = vadd.f32 %v12435_v16, %v3234_v23  ;;  %v7852_v27 = vpop.f32.mrb[183].mxu1 }
 0x3ca   : > { %8010 = vmatmul.mubr.f32.gmra.mrb[32].mxu1 %v10034_v43  ;;  %v10038_v14 = vpop.eup %10037 }
 0x3cb   : > { %10047 = vtanh.f32 %v3235_v37  ;;  %8261 = vmatmul.mubr.f32.gmra.mrb[178].mxu0 %v10036_v49  ;;  %8012 = vmatprep.mubr.msk.f32.mxu1 %vm10890_vm0, %v10891_v33  ;;  %v14854_v37 = vld [vmem:[#allocation12_spill] sm:$0xff] }
 0x3cc   : > { %v3239_v40 = vpop.f32.mrb[184].mxu1  ;;  %8263 = vmatprep.mubr.msk.f32.mxu0 %vm10890_vm0, %v10891_v33  ;;  %10049 = vtanh.f32 %v2659_v61  ;;  %v2679_v27 = vadd.f32 %v12421_v2, %v14854_v37 }
 0x3cd   : > { %v10040_v58 = vpop.eup %10039  ;;  %v3240_v7 = vadd.f32 %v12435_v16, %v3239_v40  ;;  %v7855_v29 = vpop.f32.mrb[185].mxu1 }
 0x3ce   : > { %8013 = vmatmul.mubr.f32.gmra.mrb[34].mxu1 %v10038_v14  ;;  %v10042_v59 = vpop.eup %10041 }
 0x3cf   : > { %10051 = vtanh.f32 %v3240_v7  ;;  %8264 = vmatmul.mubr.f32.gmra.mrb[180].mxu0 %v10040_v58  ;;  %8015 = vmatprep.mubr.msk.f32.mxu1 %vm10890_vm0, %v10891_v33  ;;  %v14855_v7 = vld [vmem:[#allocation13_spill] sm:$0xff] }
 0x3d0   : > { %v3244_v28 = vpop.f32.mrb[186].mxu1  ;;  %8266 = vmatprep.mubr.msk.f32.mxu0 %vm10890_vm0, %v10891_v33  ;;  %10053 = vtanh.f32 %v2664_v15  ;;  %v2684_v29 = vadd.f32 %v12421_v2, %v14855_v7 }
 0x3d1   : > { %v10044_v5 = vpop.eup %10043  ;;  %v3245_v20 = vadd.f32 %v12435_v16, %v3244_v28  ;;  %v7858_v0 = vpop.f32.mrb[187].mxu1 }
 0x3d2   : > { %8016 = vmatmul.mubr.f32.gmra.mrb[36].mxu1 %v10042_v59  ;;  %v10046_v54 = vpop.eup %10045 }
 0x3d3   : > { %10055 = vtanh.f32 %v3245_v20  ;;  %8267 = vmatmul.mubr.f32.gmra.mrb[182].mxu0 %v10044_v5  ;;  %8018 = vmatprep.mubr.msk.f32.mxu1 %vm10890_vm0, %v10891_v33  ;;  %v14856_v20 = vld [vmem:[#allocation14_spill] sm:$0xff] }
 0x3d4   : > { %v3249_v19 = vpop.f32.mrb[188].mxu1  ;;  %8269 = vmatprep.mubr.msk.f32.mxu0 %vm10890_vm0, %v10891_v33  ;;  %10057 = vtanh.f32 %v2669_v25  ;;  %v2689_v0 = vadd.f32 %v12421_v2, %v14856_v20 }
 0x3d5   : > { %v10048_v63 = vpop.eup %10047  ;;  %v3250_v26 = vadd.f32 %v12435_v16, %v3249_v19  ;;  %v7861_v22 = vpop.f32.mrb[189].mxu1 }
 0x3d6   : > { %8019 = vmatmul.mubr.f32.gmra.mrb[38].mxu1 %v10046_v54  ;;  %v10050_v36 = vpop.eup %10049  ;;  %v14857_v54 = vld [vmem:[#allocation15_spill] sm:$0xff] }
 0x3d7   : > { %10059 = vtanh.f32 %v3250_v26  ;;  %8270 = vmatmul.mubr.f32.gmra.mrb[184].mxu0 %v10048_v63  ;;  %8021 = vmatprep.mubr.msk.f32.mxu1 %vm10890_vm0, %v10891_v33  ;;  %v2694_v19 = vadd.f32 %v12421_v2, %v14857_v54 }
 0x3d8   : > { %v3254_v9 = vpop.f32.mrb[190].mxu1  ;;  %8272 = vmatprep.mubr.msk.f32.mxu0 %vm10890_vm0, %v10891_v33  ;;  %10061 = vtanh.f32 %v2674_v21 }
 0x3d9   : > { %v10052_v43 = vpop.eup %10051  ;;  %v3255_v23 = vadd.f32 %v12435_v16, %v3254_v9  ;;  %v7864_v49 = vpop.f32.mrb[191].mxu1 }
 0x3da   : > { %8022 = vmatmul.mubr.f32.gmra.mrb[40].mxu1 %v10050_v36  ;;  %v10054_v3 = vpop.eup %10053  ;;  %v14858_v36 = vld [vmem:[#allocation16_spill] sm:$0xff] }
 0x3db   : > { %10063 = vtanh.f32 %v3255_v23  ;;  %8273 = vmatmul.mubr.f32.gmra.mrb[186].mxu0 %v10052_v43  ;;  %8024 = vmatprep.mubr.msk.f32.mxu1 %vm10890_vm0, %v10891_v33  ;;  %v2699_v9 = vadd.f32 %v12421_v2, %v14858_v36 }
 0x3dc   : > { %v3259_v61 = vpop.f32.mrb[192].mxu1  ;;  %8275 = vmatprep.mubr.msk.f32.mxu0 %vm10890_vm0, %v10891_v33  ;;  %10065 = vtanh.f32 %v2679_v27 }
 0x3dd   : > { %v10056_v14 = vpop.eup %10055  ;;  %v3260_v40 = vadd.f32 %v12435_v16, %v3259_v61  ;;  %v7867_v58 = vpop.f32.mrb[193].mxu1 }
 0x3de   : > { %8025 = vmatmul.mubr.f32.gmra.mrb[42].mxu1 %v10054_v3  ;;  %v10058_v6 = vpop.eup %10057  ;;  %v14859_v3 = vld [vmem:[#allocation17_spill] sm:$0xff] }
 0x3df   : > { %10067 = vtanh.f32 %v3260_v40  ;;  %8276 = vmatmul.mubr.f32.gmra.mrb[188].mxu0 %v10056_v14  ;;  %8027 = vmatprep.mubr.msk.f32.mxu1 %vm10890_vm0, %v10891_v33  ;;  %v2704_v61 = vadd.f32 %v12421_v2, %v14859_v3 }
 0x3e0   : > { %v3264_v15 = vpop.f32.mrb[194].mxu1  ;;  %8278 = vmatprep.mubr.msk.f32.mxu0 %vm10890_vm0, %v10891_v33  ;;  %10069 = vtanh.f32 %v2684_v29 }
 0x3e1   : > { %v10060_v59 = vpop.eup %10059  ;;  %v3265_v28 = vadd.f32 %v12435_v16, %v3264_v15  ;;  %v7870_v5 = vpop.f32.mrb[195].mxu1  ;;  %v6583_v15 = vld [vmem:[%s14814_s2 + $0x248] sm:$0xff] }
 0x3e2   : > { %8028 = vmatmul.mubr.f32.gmra.mrb[44].mxu1 %v10058_v6  ;;  %v10062_v35 = vpop.eup %10061  ;;  %v6582_v6 = vld [vmem:[%s14814_s2 + $0x240] sm:$0xff] }
 0x3e3   : > { %10071 = vtanh.f32 %v3265_v28  ;;  %8279 = vmatmul.mubr.f32.gmra.mrb[190].mxu0 %v10060_v59  ;;  %8030 = vmatprep.mubr.msk.f32.mxu1 %vm10890_vm0, %v10891_v33  ;;  %v14860_v59 = vld [vmem:[#allocation18_spill] sm:$0xff]  ;;  %v9522_v5 = vpack.c.bf16 %v6583_v15, %v6582_v6 }
 0x3e4   : > { %v3269_v17 = vpop.f32.mrb[196].mxu1  ;;  %8281 = vmatprep.mubr.msk.f32.mxu0 %vm10890_vm0, %v10891_v33  ;;  %10073 = vtanh.f32 %v2689_v0  ;;  %v2709_v28 = vadd.f32 %v12421_v2, %v14860_v59  ;;  %v12744_v2 = vld [vmem:[%s14815_s3 + $0x1] ss:$0 sm:$0xff] }
 0x3e5   : > { %v10064_v53 = vpop.eup %10063  ;;  %v3270_v25 = vadd.f32 %v12435_v16, %v3269_v17  ;;  %v7873_v10 = vpop.f32.mrb[197].mxu1  ;;  %9523 = vmatpush3.bf16.msra.mxu0 %v9522_v5 }
 0x3e6   : > { %8031 = vmatmul.mubr.f32.gmra.mrb[46].mxu1 %v10062_v35  ;;  %v10066_v63 = vpop.eup %10065  ;;  %9524 = vmatprep.subr.bf16.mxu0 %v14836_v57 }
 0x3e7   : > { %10075 = vtanh.f32 %v3270_v25  ;;  %8282 = vmatmul.mubr.f32.gmra.mrb[192].mxu0 %v10064_v53  ;;  %8033 = vmatprep.mubr.msk.f32.mxu1 %vm10890_vm0, %v10891_v33  ;;  %v14861_v25 = vld [vmem:[#allocation19_spill] sm:$0xff] }
 0x3e8   : > { %v3274_v26 = vpop.f32.mrb[198].mxu1  ;;  %8284 = vmatprep.mubr.msk.f32.mxu0 %vm10890_vm0, %v10891_v33  ;;  %10077 = vtanh.f32 %v2694_v19  ;;  %v2714_v10 = vadd.f32 %v12744_v2, %v14861_v25 }
 0x3e9   : > { %v10068_v22 = vpop.eup %10067  ;;  %v3275_v46 = vadd.f32 %v12435_v16, %v3274_v26  ;;  %v7876_v21 = vpop.f32.mrb[199].mxu1 }
 0x3ea   : > { %8034 = vmatmul.mubr.f32.gmra.mrb[48].mxu1 %v10066_v63  ;;  %v10070_v43 = vpop.eup %10069  ;;  %v12755_v63 = vld [vmem:[%s14815_s3 + $0x2] ss:$0 sm:$0xff] }
 0x3eb   : > { %10079 = vtanh.f32 %v3275_v46  ;;  %8285 = vmatmul.mubr.f32.gmra.mrb[194].mxu0 %v10068_v22  ;;  %8036 = vmatprep.mubr.msk.f32.mxu1 %vm10890_vm0, %v10891_v33  ;;  %v14862_v46 = vld [vmem:[#allocation20_spill] sm:$0xff] }
 0x3ec   : > { %v3279_v23 = vpop.f32.mrb[200].mxu1  ;;  %8287 = vmatprep.mubr.msk.f32.mxu0 %vm10890_vm0, %v10891_v33  ;;  %10081 = vtanh.f32 %v2699_v9  ;;  %v2719_v21 = vadd.f32 %v12744_v2, %v14862_v46 }
 0x3ed   : > { %v10072_v49 = vpop.eup %10071  ;;  %v3280_v37 = vadd.f32 %v12435_v16, %v3279_v23  ;;  %v7879_v27 = vpop.f32.mrb[201].mxu1 }
 0x3ee   : > { %8037 = vmatmul.mubr.f32.gmra.mrb[50].mxu1 %v10070_v43  ;;  %v10074_v14 = vpop.eup %10073 }
 0x3ef   : > { %10083 = vtanh.f32 %v3280_v37  ;;  %8288 = vmatmul.mubr.f32.gmra.mrb[196].mxu0 %v10072_v49  ;;  %8039 = vmatprep.mubr.msk.f32.mxu1 %vm10890_vm0, %v10891_v33  ;;  %v14863_v37 = vld [vmem:[#allocation21_spill] sm:$0xff] }
 0x3f0   : > { %v3284_v40 = vpop.f32.mrb[202].mxu1  ;;  %8290 = vmatprep.mubr.msk.f32.mxu0 %vm10890_vm0, %v10891_v33  ;;  %10085 = vtanh.f32 %v2704_v61  ;;  %v2724_v27 = vadd.f32 %v12744_v2, %v14863_v37 }
 0x3f1   : > { %v10076_v58 = vpop.eup %10075  ;;  %v3285_v7 = vadd.f32 %v12435_v16, %v3284_v40  ;;  %v7882_v29 = vpop.f32.mrb[203].mxu1 }
 0x3f2   : > { %8040 = vmatmul.mubr.f32.gmra.mrb[52].mxu1 %v10074_v14  ;;  %v10078_v20 = vpop.eup %10077 }
 0x3f3   : > { %10087 = vtanh.f32 %v3285_v7  ;;  %8291 = vmatmul.mubr.f32.gmra.mrb[198].mxu0 %v10076_v58  ;;  %8042 = vmatprep.mubr.msk.f32.mxu1 %vm10890_vm0, %v10891_v33  ;;  %v14864_v7 = vld [vmem:[#allocation22_spill] sm:$0xff] }
 0x3f4   : > { %v3289_v0 = vpop.f32.mrb[204].mxu1  ;;  %8293 = vmatprep.mubr.msk.f32.mxu0 %vm10890_vm0, %v10891_v33  ;;  %10089 = vtanh.f32 %v2709_v28  ;;  %v2729_v29 = vadd.f32 %v12744_v2, %v14864_v7 }
 0x3f5   : > { %v10080_v35 = vpop.eup %10079  ;;  %v3290_v17 = vadd.f32 %v12435_v16, %v3289_v0  ;;  %v7885_v53 = vpop.f32.mrb[205].mxu1 }
 0x3f6   : > { %8043 = vmatmul.mubr.f32.gmra.mrb[54].mxu1 %v10078_v20  ;;  %v10082_v54 = vpop.eup %10081  ;;  %v14865_v20 = vld [vmem:[#allocation23_spill] sm:$0xff] }
 0x3f7   : > { %10091 = vtanh.f32 %v3290_v17  ;;  %8294 = vmatmul.mubr.f32.gmra.mrb[200].mxu0 %v10080_v35  ;;  %8045 = vmatprep.mubr.msk.f32.mxu1 %vm10890_vm0, %v10891_v33  ;;  %v2734_v0 = vadd.f32 %v12744_v2, %v14865_v20 }
 0x3f8   : > { %v3294_v16 = vpop.f32.mrb[206].mxu1  ;;  %8296 = vmatprep.mubr.msk.f32.mxu0 %vm10890_vm0, %v10891_v33  ;;  %10093 = vtanh.f32 %v2714_v10 }
 0x3f9   : > { %v10084_v19 = vpop.eup %10083  ;;  %v3295_v26 = vadd.f32 %v12755_v63, %v3294_v16  ;;  %v7888_v22 = vpop.f32.mrb[207].mxu1 }
 0x3fa   : > { %8046 = vmatmul.mubr.f32.gmra.mrb[56].mxu1 %v10082_v54  ;;  %v10086_v36 = vpop.eup %10085  ;;  %v14866_v54 = vld [vmem:[#allocation24_spill] sm:$0xff] }
 0x3fb   : > { %10095 = vtanh.f32 %v3295_v26  ;;  %8297 = vmatmul.mubr.f32.gmra.mrb[202].mxu0 %v10084_v19  ;;  %8048 = vmatprep.mubr.msk.f32.mxu1 %vm10890_vm0, %v10891_v33  ;;  %v2739_v16 = vadd.f32 %v12744_v2, %v14866_v54 }
 0x3fc   : > { %v3299_v9 = vpop.f32.mrb[208].mxu1  ;;  %8299 = vmatprep.mubr.msk.f32.mxu0 %vm10890_vm0, %v10891_v33  ;;  %10097 = vtanh.f32 %v2719_v21 }
 0x3fd   : > { %v10088_v43 = vpop.eup %10087  ;;  %v3300_v23 = vadd.f32 %v12755_v63, %v3299_v9  ;;  %v7891_v49 = vpop.f32.mrb[209].mxu1 }
 0x3fe   : > { %8049 = vmatmul.mubr.f32.gmra.mrb[58].mxu1 %v10086_v36  ;;  %v10090_v3 = vpop.eup %10089  ;;  %v14867_v36 = vld [vmem:[#allocation25_spill] sm:$0xff] }
 0x3ff   : > { %10099 = vtanh.f32 %v3300_v23  ;;  %8300 = vmatmul.mubr.f32.gmra.mrb[204].mxu0 %v10088_v43  ;;  %8051 = vmatprep.mubr.msk.f32.mxu1 %vm10890_vm0, %v10891_v33  ;;  %v2744_v9 = vadd.f32 %v12744_v2, %v14867_v36  ;;  %v2774_v36 = vadd.f32 %v12744_v2, %v12172_v41 }
 0x400   : > { %v3304_v61 = vpop.f32.mrb[210].mxu1  ;;  %8302 = vmatprep.mubr.msk.f32.mxu0 %vm10890_vm0, %v10891_v33  ;;  %10101 = vtanh.f32 %v2724_v27 }
 0x401   : > { %v10092_v14 = vpop.eup %10091  ;;  %v3305_v40 = vadd.f32 %v12755_v63, %v3304_v61  ;;  %v7894_v58 = vpop.f32.mrb[211].mxu1 }
 0x402   : > { %8052 = vmatmul.mubr.f32.gmra.mrb[60].mxu1 %v10090_v3  ;;  %v10094_v6 = vpop.eup %10093  ;;  %v2749_v3 = vadd.f32 %v12744_v2, %v12052_v48 }
 0x403   : > { %10103 = vtanh.f32 %v3305_v40  ;;  %8303 = vmatmul.mubr.f32.gmra.mrb[206].mxu0 %v10092_v14  ;;  %8054 = vmatprep.mubr.msk.f32.mxu1 %vm10890_vm0, %v10891_v33 }
 0x404   : > { %v3309_v15 = vpop.f32.mrb[212].mxu1  ;;  %8305 = vmatprep.mubr.msk.f32.mxu0 %vm10890_vm0, %v10891_v33  ;;  %10105 = vtanh.f32 %v2729_v29  ;;  %v2754_v29 = vadd.f32 %v12744_v2, %v12093_v56 }
 0x405   : > { %v10096_v59 = vpop.eup %10095  ;;  %v3310_v28 = vadd.f32 %v12755_v63, %v3309_v15  ;;  %v7897_v5 = vpop.f32.mrb[213].mxu1 }
 0x406   : > { %8055 = vmatmul.mubr.f32.gmra.mrb[62].mxu1 %v10094_v6  ;;  %v10098_v35 = vpop.eup %10097  ;;  %v2759_v5 = vadd.f32 %v12744_v2, %v12118_v51 }
 0x407   : > { %10107 = vtanh.f32 %v3310_v28  ;;  %8306 = vmatmul.mubr.f32.gmra.mrb[208].mxu0 %v10096_v59  ;;  %8057 = vmatprep.mubr.msk.f32.mxu1 %vm10890_vm0, %v10891_v33 }
 0x408   : > { %v3314_v17 = vpop.f32.mrb[214].mxu1  ;;  %8308 = vmatprep.mubr.msk.f32.mxu0 %vm10890_vm0, %v10891_v33  ;;  %10109 = vtanh.f32 %v2734_v0 }
 0x409   : > { %v10100_v53 = vpop.eup %10099  ;;  %v3315_v25 = vadd.f32 %v12755_v63, %v3314_v17  ;;  %v7900_v10 = vpop.f32.mrb[215].mxu1 }
 0x40a   : > { %8058 = vmatmul.mubr.f32.gmra.mrb[64].mxu1 %v10098_v35  ;;  %v10102_v19 = vpop.eup %10101 }
 0x40b   : > { %10111 = vtanh.f32 %v3315_v25  ;;  %8309 = vmatmul.mubr.f32.gmra.mrb[210].mxu0 %v10100_v53  ;;  %8060 = vmatprep.mubr.msk.f32.mxu1 %vm10890_vm0, %v10891_v33  ;;  %v2764_v53 = vadd.f32 %v12744_v2, %v12135_v11 }
 0x40c   : > { %v3319_v26 = vpop.f32.mrb[216].mxu1  ;;  %8311 = vmatprep.mubr.msk.f32.mxu0 %vm10890_vm0, %v10891_v33  ;;  %10113 = vtanh.f32 %v2739_v16 }
 0x40d   : > { %v10104_v22 = vpop.eup %10103  ;;  %v3320_v46 = vadd.f32 %v12755_v63, %v3319_v26  ;;  %v7903_v21 = vpop.f32.mrb[217].mxu1 }
 0x40e   : > { %8061 = vmatmul.mubr.f32.gmra.mrb[66].mxu1 %v10102_v19  ;;  %v10106_v43 = vpop.eup %10105  ;;  %v2769_v19 = vadd.f32 %v12744_v2, %v12151_v55 }
 0x40f   : > { %10115 = vtanh.f32 %v3320_v46  ;;  %8312 = vmatmul.mubr.f32.gmra.mrb[212].mxu0 %v10104_v22  ;;  %8063 = vmatprep.mubr.msk.f32.mxu1 %vm10890_vm0, %v10891_v33 }
 0x410   : > { %v3324_v23 = vpop.f32.mrb[218].mxu1  ;;  %8314 = vmatprep.mubr.msk.f32.mxu0 %vm10890_vm0, %v10891_v33  ;;  %10117 = vtanh.f32 %v2744_v9 }
 0x411   : > { %v10108_v49 = vpop.eup %10107  ;;  %v3325_v37 = vadd.f32 %v12755_v63, %v3324_v23  ;;  %v7906_v27 = vpop.f32.mrb[219].mxu1 }
 0x412   : > { %8064 = vmatmul.mubr.f32.gmra.mrb[68].mxu1 %v10106_v43  ;;  %v10110_v61 = vpop.eup %10109 }
 0x413   : > { %10119 = vtanh.f32 %v3325_v37  ;;  %8315 = vmatmul.mubr.f32.gmra.mrb[214].mxu0 %v10108_v49  ;;  %8066 = vmatprep.mubr.msk.f32.mxu1 %vm10890_vm0, %v10891_v33  ;;  %v2779_v37 = vadd.f32 %v12744_v2, %v12184_v31 }
 0x414   : > { %v3329_v14 = vpop.f32.mrb[220].mxu1  ;;  %8317 = vmatprep.mubr.msk.f32.mxu0 %vm10890_vm0, %v10891_v33  ;;  %10121 = vtanh.f32 %v2749_v3 }
 0x415   : > { %v10112_v40 = vpop.eup %10111  ;;  %v3330_v58 = vadd.f32 %v12755_v63, %v3329_v14  ;;  %v7909_v7 = vpop.f32.mrb[221].mxu1 }
 0x416   : > { %8067 = vmatmul.mubr.f32.gmra.mrb[70].mxu1 %v10110_v61  ;;  %v10114_v48 = vpop.eup %10113 }
 0x417   : > { %10123 = vtanh.f32 %v3330_v58  ;;  %8318 = vmatmul.mubr.f32.gmra.mrb[216].mxu0 %v10112_v40  ;;  %8069 = vmatprep.mubr.msk.f32.mxu1 %vm10890_vm0, %v10891_v33  ;;  %v2784_v40 = vadd.f32 %v12744_v2, %v12196_v38  ;;  %v6585_v38 = vld [vmem:[%s14814_s2 + $0x258] sm:$0xff] }
 0x418   : > { %v3334_v6 = vpop.f32.mrb[222].mxu1  ;;  %8320 = vmatprep.mubr.msk.f32.mxu0 %vm10890_vm0, %v10891_v33  ;;  %10125 = vtanh.f32 %v2754_v29 }
 0x419   : > { %v10116_v15 = vpop.eup %10115  ;;  %v3335_v59 = vadd.f32 %v12755_v63, %v3334_v6  ;;  %v7912_v28 = vpop.f32.mrb[223].mxu1  ;;  %v6584_v6 = vld [vmem:[%s14814_s2 + $0x250] sm:$0xff] }
 0x41a   : > { %8070 = vmatmul.mubr.f32.gmra.mrb[72].mxu1 %v10114_v48  ;;  %v10118_v56 = vpop.eup %10117 }
 0x41b   : > { %10127 = vtanh.f32 %v3335_v59  ;;  %8321 = vmatmul.mubr.f32.gmra.mrb[218].mxu0 %v10116_v15  ;;  %8072 = vmatprep.mubr.msk.f32.mxu1 %vm10890_vm0, %v10891_v33  ;;  %v2789_v15 = vadd.f32 %v12744_v2, %v12208_v52  ;;  %v9525_v59 = vpack.c.bf16 %v6585_v38, %v6584_v6  ;;  %v2794_v52 = vadd.f32 %v12744_v2, %v12233_v34 }
 0x41c   : > { %v3339_v20 = vpop.f32.mrb[224].mxu1  ;;  %8323 = vmatprep.mubr.msk.f32.mxu0 %vm10890_vm0, %v10891_v33  ;;  %10129 = vtanh.f32 %v2759_v5  ;;  %v2799_v34 = vadd.f32 %v12744_v2, %v12246_v39  ;;  %v2804_v39 = vadd.f32 %v12744_v2, %v12258_v62  ;;  %v2809_v62 = vadd.f32 %v12744_v2, %v12270_v24 }
 0x41d   : > { %v10120_v0 = vpop.eup %10119  ;;  %v3340_v35 = vadd.f32 %v12755_v63, %v3339_v20  ;;  %v7915_v17 = vpop.f32.mrb[225].mxu1  ;;  %9526 = vmatpush3.bf16.msra.mxu0 %v9525_v59  ;;  %v2814_v24 = vadd.f32 %v12744_v2, %v12282_v4  ;;  %v2819_v4 = vadd.f32 %v12744_v2, %v12294_v1  ;;  %v2824_v1 = vadd.f32 %v12744_v2, %v12306_v30 }
 0x41e   : > { %8073 = vmatmul.mubr.f32.gmra.mrb[74].mxu1 %v10118_v56  ;;  %v10122_v51 = vpop.eup %10121  ;;  %9527 = vmatprep.subr.bf16.mxu0 %v14836_v57  ;;  %v2829_v30 = vadd.f32 %v12744_v2, %v12318_v45  ;;  %v2834_v45 = vadd.f32 %v12744_v2, %v12336_v8  ;;  %v2839_v8 = vadd.f32 %v12744_v2, %v12347_v47 }
 0x41f   : > { %10131 = vtanh.f32 %v3340_v35  ;;  %8324 = vmatmul.mubr.f32.gmra.mrb[220].mxu0 %v10120_v0  ;;  %8075 = vmatprep.mubr.msk.f32.mxu1 %vm10890_vm0, %v10891_v33  ;;  %v2844_v47 = vadd.f32 %v12744_v2, %v12357_v32  ;;  %v2849_v32 = vadd.f32 %v12744_v2, %v12367_v60  ;;  %v2854_v60 = vadd.f32 %v12744_v2, %v12377_v42 }
 0x420   : > { %v3344_v25 = vpop.f32.mrb[226].mxu1  ;;  %8326 = vmatprep.mubr.msk.f32.mxu0 %vm10890_vm0, %v10891_v33  ;;  %10133 = vtanh.f32 %v2764_v53  ;;  %v2859_v42 = vadd.f32 %v12744_v2, %v12386_v12  ;;  %v2864_v12 = vadd.f32 %v12744_v2, %v12394_v13 }
 0x421   : > { %v10124_v10 = vpop.eup %10123  ;;  %v3345_v54 = vadd.f32 %v12755_v63, %v3344_v25  ;;  %v7918_v16 = vpop.f32.mrb[227].mxu1 }
 0x422   : > { %8076 = vmatmul.mubr.f32.gmra.mrb[76].mxu1 %v10122_v51  ;;  %v10126_v11 = vpop.eup %10125 }
 0x423   : > { %10135 = vtanh.f32 %v3345_v54  ;;  %8327 = vmatmul.mubr.f32.gmra.mrb[222].mxu0 %v10124_v10  ;;  %8078 = vmatprep.mubr.msk.f32.mxu1 %vm10890_vm0, %v10891_v33 }
 0x424   : > { %v3349_v26 = vpop.f32.mrb[228].mxu1  ;;  %8329 = vmatprep.mubr.msk.f32.mxu0 %vm10890_vm0, %v10891_v33  ;;  %10137 = vtanh.f32 %v2769_v19 }
 0x425   : > { %v10128_v22 = vpop.eup %10127  ;;  %v3350_v46 = vadd.f32 %v12755_v63, %v3349_v26  ;;  %v7921_v21 = vpop.f32.mrb[229].mxu1 }
 0x426   : > { %8079 = vmatmul.mubr.f32.gmra.mrb[78].mxu1 %v10126_v11  ;;  %v10130_v55 = vpop.eup %10129 }
 0x427   : > { %10139 = vtanh.f32 %v3350_v46  ;;  %8330 = vmatmul.mubr.f32.gmra.mrb[224].mxu0 %v10128_v22  ;;  %8081 = vmatprep.mubr.msk.f32.mxu1 %vm10890_vm0, %v10891_v33 }
 0x428   : > { %v3354_v9 = vpop.f32.mrb[230].mxu1  ;;  %8332 = vmatprep.mubr.msk.f32.mxu0 %vm10890_vm0, %v10891_v33  ;;  %10141 = vtanh.f32 %v2774_v36 }
 0x429   : > { %v10132_v43 = vpop.eup %10131  ;;  %v3355_v23 = vadd.f32 %v12755_v63, %v3354_v9  ;;  %v7924_v49 = vpop.f32.mrb[231].mxu1 }
 0x42a   : > { %8082 = vmatmul.mubr.f32.gmra.mrb[80].mxu1 %v10130_v55  ;;  %v10134_v41 = vpop.eup %10133 }
 0x42b   : > { %10143 = vtanh.f32 %v3355_v23  ;;  %8333 = vmatmul.mubr.f32.gmra.mrb[226].mxu0 %v10132_v43  ;;  %8084 = vmatprep.mubr.msk.f32.mxu1 %vm10890_vm0, %v10891_v33 }
 0x42c   : > { %v3359_v27 = vpop.f32.mrb[232].mxu1  ;;  %8335 = vmatprep.mubr.msk.f32.mxu0 %vm10890_vm0, %v10891_v33  ;;  %10145 = vtanh.f32 %v2779_v37 }
 0x42d   : > { %v10136_v3 = vpop.eup %10135  ;;  %v3360_v61 = vadd.f32 %v12755_v63, %v3359_v27  ;;  %v7927_v14 = vpop.f32.mrb[233].mxu1 }
 0x42e   : > { %8085 = vmatmul.mubr.f32.gmra.mrb[82].mxu1 %v10134_v41  ;;  %v10138_v31 = vpop.eup %10137 }
 0x42f   : > { %10147 = vtanh.f32 %v3360_v61  ;;  %8336 = vmatmul.mubr.f32.gmra.mrb[228].mxu0 %v10136_v3  ;;  %8087 = vmatprep.mubr.msk.f32.mxu1 %vm10890_vm0, %v10891_v33 }
 0x430   : > { %v3364_v58 = vpop.f32.mrb[234].mxu1  ;;  %8338 = vmatprep.mubr.msk.f32.mxu0 %vm10890_vm0, %v10891_v33  ;;  %10149 = vtanh.f32 %v2784_v40 }
 0x431   : > { %v10140_v7 = vpop.eup %10139  ;;  %v3365_v29 = vadd.f32 %v12755_v63, %v3364_v58  ;;  %v7930_v48 = vpop.f32.mrb[235].mxu1 }
 0x432   : > { %8088 = vmatmul.mubr.f32.gmra.mrb[84].mxu1 %v10138_v31  ;;  %v10142_v28 = vpop.eup %10141 }
 0x433   : > { %10151 = vtanh.f32 %v3365_v29  ;;  %8339 = vmatmul.mubr.f32.gmra.mrb[230].mxu0 %v10140_v7  ;;  %8090 = vmatprep.mubr.msk.f32.mxu1 %vm10890_vm0, %v10891_v33 }
 0x434   : > { %v3369_v5 = vpop.f32.mrb[236].mxu1  ;;  %8341 = vmatprep.mubr.msk.f32.mxu0 %vm10890_vm0, %v10891_v33  ;;  %10153 = vtanh.f32 %v2789_v15 }
 0x435   : > { %v10144_v56 = vpop.eup %10143  ;;  %v3370_v20 = vadd.f32 %v12755_v63, %v3369_v5  ;;  %v7933_v0 = vpop.f32.mrb[237].mxu1 }
 0x436   : > { %8091 = vmatmul.mubr.f32.gmra.mrb[86].mxu1 %v10142_v28  ;;  %v10146_v35 = vpop.eup %10145 }
 0x437   : > { %10155 = vtanh.f32 %v3370_v20  ;;  %8342 = vmatmul.mubr.f32.gmra.mrb[232].mxu0 %v10144_v56  ;;  %8093 = vmatprep.mubr.msk.f32.mxu1 %vm10890_vm0, %v10891_v33 }
 0x438   : > { %v3374_v17 = vpop.f32.mrb[238].mxu1  ;;  %8344 = vmatprep.mubr.msk.f32.mxu0 %vm10890_vm0, %v10891_v33  ;;  %10157 = vtanh.f32 %v2794_v52 }
 0x439   : > { %v10148_v53 = vpop.eup %10147  ;;  %v3375_v51 = vadd.f32 %v12755_v63, %v3374_v17  ;;  %v7936_v25 = vpop.f32.mrb[239].mxu1 }
 0x43a   : > { %8094 = vmatmul.mubr.f32.gmra.mrb[88].mxu1 %v10146_v35  ;;  %v10150_v10 = vpop.eup %10149 }
 0x43b   : > { %10159 = vtanh.f32 %v3375_v51  ;;  %8345 = vmatmul.mubr.f32.gmra.mrb[234].mxu0 %v10148_v53  ;;  %8096 = vmatprep.mubr.msk.f32.mxu1 %vm10890_vm0, %v10891_v33 }
 0x43c   : > { %8347 = vmatprep.mubr.msk.f32.mxu0 %vm10890_vm0, %v10891_v33  ;;  %10161 = vtanh.f32 %v2799_v34 }
 0x43d   : > { %v10152_v54 = vpop.eup %10151  ;;  %v3379_v16 = vpop.f32.mrb[240].mxu1 }
 0x43e   : > { %v3380_v19 = vadd.f32 %v12755_v63, %v3379_v16  ;;  %v12884_v11 = vpop.f32.mrb[130].mxu0  ;;  %v7939_v26 = vpop.f32.mrb[241].mxu1  ;;  %8097 = vmatmul.mubr.f32.gmra.mrb[90].mxu1 %v10150_v10 }
 0x43f   : > { %v8190_v22 = vpop.f32.mrb[131].mxu0  ;;  %8348 = vmatmul.mubr.f32.gmra.mrb[236].mxu0 %v10152_v54  ;;  %8099 = vmatprep.mubr.msk.f32.mxu1 %vm10890_vm0, %v10891_v33  ;;  %v10154_v46 = vpop.eup %10153 }
 0x440   : > { %10163 = vtanh.f32 %v3380_v19  ;;  %8350 = vmatprep.mubr.msk.f32.mxu0 %vm10890_vm0, %v10891_v33 }
 0x441   : > { %v10156_v21 = vpop.eup %10155  ;;  %v3384_v36 = vpop.f32.mrb[242].mxu1  ;;  %10165 = vtanh.f32 %v2804_v39 }
 0x442   : > { %v3385_v55 = vadd.f32 %v12755_v63, %v3384_v36  ;;  %v12893_v9 = vpop.f32.mrb[132].mxu0  ;;  %v7942_v43 = vpop.f32.mrb[243].mxu1  ;;  %8100 = vmatmul.mubr.f32.gmra.mrb[92].mxu1 %v10154_v46 }
 0x443   : > { %v8193_v23 = vpop.f32.mrb[133].mxu0  ;;  %8351 = vmatmul.mubr.f32.gmra.mrb[238].mxu0 %v10156_v21  ;;  %8102 = vmatprep.mubr.msk.f32.mxu1 %vm10890_vm0, %v10891_v33  ;;  %v10158_v49 = vpop.eup %10157 }
 0x444   : > { %10167 = vtanh.f32 %v3385_v55  ;;  %8353 = vmatprep.mubr.msk.f32.mxu0 %vm10890_vm0, %v10891_v33 }
 0x445   : > { %v10160_v37 = vpop.eup %10159  ;;  %v3389_v41 = vpop.f32.mrb[244].mxu1  ;;  %10169 = vtanh.f32 %v2809_v62 }
 0x446   : > { %v3390_v27 = vadd.f32 %v12755_v63, %v3389_v41  ;;  %v12902_v3 = vpop.f32.mrb[134].mxu0  ;;  %v7945_v61 = vpop.f32.mrb[245].mxu1  ;;  %8103 = vmatmul.mubr.f32.gmra.mrb[94].mxu1 %v10158_v49 }
 0x447   : > { %v8196_v14 = vpop.f32.mrb[135].mxu0  ;;  %8354 = vmatmul.mubr.f32.gmra.mrb[240].mxu0 %v10160_v37  ;;  %8105 = vmatprep.mubr.msk.f32.mxu1 %vm10890_vm0, %v10891_v33  ;;  %v10162_v40 = vpop.eup %10161 }
 0x448   : > { %10171 = vtanh.f32 %v3390_v27  ;;  %8356 = vmatprep.mubr.msk.f32.mxu0 %vm10890_vm0, %v10891_v33 }
 0x449   : > { %v3394_v31 = vpop.f32.mrb[246].mxu1  ;;  %10173 = vtanh.f32 %v2814_v24 }
 0x44a   : > { %v10164_v58 = vpop.eup %10163  ;;  %v3395_v7 = vadd.f32 %v12755_v63, %v3394_v31  ;;  %v12911_v29 = vpop.f32.mrb[136].mxu0  ;;  %8106 = vmatmul.mubr.f32.gmra.mrb[96].mxu1 %v10162_v40 }
 0x44b   : > { %v7948_v48 = vpop.f32.mrb[247].mxu1  ;;  %v8199_v6 = vpop.f32.mrb[137].mxu0  ;;  %8357 = vmatmul.mubr.f32.gmra.mrb[242].mxu0 %v10164_v58  ;;  %8108 = vmatprep.mubr.msk.f32.mxu1 %vm10890_vm0, %v10891_v33 }
 0x44c   : > { %10175 = vtanh.f32 %v3395_v7  ;;  %8359 = vmatprep.mubr.msk.f32.mxu0 %vm10890_vm0, %v10891_v33  ;;  %v10166_v38 = vpop.eup %10165 }
 0x44d   : > { %v3399_v15 = vpop.f32.mrb[248].mxu1  ;;  %10177 = vtanh.f32 %v2819_v4 }
 0x44e   : > { %v10168_v59 = vpop.eup %10167  ;;  %v3400_v28 = vadd.f32 %v12755_v63, %v3399_v15  ;;  %v12920_v5 = vpop.f32.mrb[138].mxu0  ;;  %8109 = vmatmul.mubr.f32.gmra.mrb[98].mxu1 %v10166_v38 }
 0x44f   : > { %v7951_v56 = vpop.f32.mrb[249].mxu1  ;;  %v8202_v20 = vpop.f32.mrb[139].mxu0  ;;  %8360 = vmatmul.mubr.f32.gmra.mrb[244].mxu0 %v10168_v59  ;;  %8111 = vmatprep.mubr.msk.f32.mxu1 %vm10890_vm0, %v10891_v33 }
 0x450   : > { %10179 = vtanh.f32 %v3400_v28  ;;  %8362 = vmatprep.mubr.msk.f32.mxu0 %vm10890_vm0, %v10891_v33  ;;  %v10170_v0 = vpop.eup %10169 }
 0x451   : > { %v3404_v52 = vpop.f32.mrb[250].mxu1  ;;  %10181 = vtanh.f32 %v2824_v1 }
 0x452   : > { %v10172_v35 = vpop.eup %10171  ;;  %v3405_v17 = vadd.f32 %v12755_v63, %v3404_v52  ;;  %v12929_v53 = vpop.f32.mrb[140].mxu0  ;;  %8112 = vmatmul.mubr.f32.gmra.mrb[100].mxu1 %v10170_v0 }
 0x453   : > { %v7954_v51 = vpop.f32.mrb[251].mxu1  ;;  %v8205_v25 = vpop.f32.mrb[141].mxu0  ;;  %8363 = vmatmul.mubr.f32.gmra.mrb[246].mxu0 %v10172_v35  ;;  %8114 = vmatprep.mubr.msk.f32.mxu1 %vm10890_vm0, %v10891_v33 }
 0x454   : > { %10183 = vtanh.f32 %v3405_v17  ;;  %8365 = vmatprep.mubr.msk.f32.mxu0 %vm10890_vm0, %v10891_v33  ;;  %v10174_v34 = vpop.eup %10173 }
 0x455   : > { %v3409_v10 = vpop.f32.mrb[252].mxu1  ;;  %10185 = vtanh.f32 %v2829_v30 }
 0x456   : > { %v10176_v54 = vpop.eup %10175  ;;  %v3410_v16 = vadd.f32 %v12755_v63, %v3409_v10  ;;  %v12938_v19 = vpop.f32.mrb[142].mxu0  ;;  %8115 = vmatmul.mubr.f32.gmra.mrb[102].mxu1 %v10174_v34 }
 0x457   : > { %v7957_v26 = vpop.f32.mrb[253].mxu1  ;;  %v8208_v39 = vpop.f32.mrb[143].mxu0  ;;  %8366 = vmatmul.mubr.f32.gmra.mrb[248].mxu0 %v10176_v54  ;;  %8117 = vmatprep.mubr.msk.f32.mxu1 %vm10890_vm0, %v10891_v33 }
 0x458   : > { %10187 = vtanh.f32 %v3410_v16  ;;  %8368 = vmatprep.mubr.msk.f32.mxu0 %vm10890_vm0, %v10891_v33  ;;  %v10178_v22 = vpop.eup %10177 }
 0x459   : > { %v3414_v46 = vpop.f32.mrb[254].mxu1  ;;  %10189 = vtanh.f32 %v2834_v45 }
 0x45a   : > { %v10180_v21 = vpop.eup %10179  ;;  %v3415_v36 = vadd.f32 %v12755_v63, %v3414_v46  ;;  %v12947_v55 = vpop.f32.mrb[144].mxu0  ;;  %8118 = vmatmul.mubr.f32.gmra.mrb[104].mxu1 %v10178_v22  ;;  %v6586_v46 = vld [vmem:[%s14814_s2 + $0x260] sm:$0xff] }
 0x45b   : > { %v7960_v43 = vpop.f32.mrb[255].mxu1  ;;  %v8211_v62 = vpop.f32.mrb[145].mxu0  ;;  %8369 = vmatmul.mubr.f32.gmra.mrb[250].mxu0 %v10180_v21  ;;  %8120 = vmatprep.mubr.msk.f32.mxu1 %vm10890_vm0, %v10891_v33  ;;  %v6587_v21 = vld [vmem:[%s14814_s2 + $0x268] sm:$0xff] }
 0x45c   : > { %10191 = vtanh.f32 %v3415_v36  ;;  %8371 = vmatprep.mubr.msk.f32.mxu0 %vm10890_vm0, %v10891_v33  ;;  %v10182_v23 = vpop.eup %10181  ;;  %v9528_v62 = vpack.c.bf16 %v6587_v21, %v6586_v46 }
 0x45d   : > { %v3419_v49 = vpop.f32.mrb[0].mxu1  ;;  %10193 = vtanh.f32 %v2839_v8 }
 0x45e   : > { %v10184_v37 = vpop.eup %10183  ;;  %v3420_v41 = vadd.f32 %v12755_v63, %v3419_v49  ;;  %v12956_v27 = vpop.f32.mrb[146].mxu0  ;;  %8121 = vmatmul.mubr.f32.gmra.mrb[106].mxu1 %v10182_v23  ;;  %v2869_v23 = vadd.f32 %v12744_v2, %v12402_v50  ;;  %9529 = vmatpush3.bf16.msra.mxu0 %v9528_v62 }
 0x45f   : > { %v7963_v61 = vpop.f32.mrb[1].mxu1  ;;  %v8214_v24 = vpop.f32.mrb[147].mxu0  ;;  %8372 = vmatmul.mubr.f32.gmra.mrb[252].mxu0 %v10184_v37  ;;  %8123 = vmatprep.mubr.msk.f32.mxu1 %vm10890_vm0, %v10891_v33 }
 0x460   : > { %10195 = vtanh.f32 %v3420_v41  ;;  %8374 = vmatprep.mubr.msk.f32.mxu0 %vm10890_vm0, %v10891_v33  ;;  %v10186_v14 = vpop.eup %10185  ;;  %9530 = vmatprep.subr.bf16.mxu0 %v14836_v57 }
 0x461   : > { %v3424_v40 = vpop.f32.mrb[2].mxu1  ;;  %10197 = vtanh.f32 %v2844_v47 }
 0x462   : > { %v10188_v31 = vpop.eup %10187  ;;  %v3425_v58 = vadd.f32 %v12755_v63, %v3424_v40  ;;  %v12965_v7 = vpop.f32.mrb[148].mxu0  ;;  %8124 = vmatmul.mubr.f32.gmra.mrb[108].mxu1 %v10186_v14  ;;  %v2874_v14 = vadd.f32 %v12744_v2, %v12416_v18  ;;  %v2879_v18 = vadd.f32 %v12744_v2, %v12430_v44 }
 0x463   : > { %v7966_v48 = vpop.f32.mrb[3].mxu1  ;;  %v8217_v4 = vpop.f32.mrb[149].mxu0  ;;  %8375 = vmatmul.mubr.f32.gmra.mrb[254].mxu0 %v10188_v31  ;;  %8126 = vmatprep.mubr.msk.f32.mxu1 %vm10890_vm0, %v10891_v33 }
 0x464   : > { %10199 = vtanh.f32 %v3425_v58  ;;  %8377 = vmatprep.mubr.msk.f32.mxu0 %vm10890_vm0, %v10891_v33  ;;  %v10190_v6 = vpop.eup %10189 }
 0x465   : > { %v3429_v38 = vpop.f32.mrb[4].mxu1  ;;  %10201 = vtanh.f32 %v2849_v32 }
 0x466   : > { %v10192_v15 = vpop.eup %10191  ;;  %v3430_v59 = vadd.f32 %v12755_v63, %v3429_v38  ;;  %v12974_v28 = vpop.f32.mrb[150].mxu0  ;;  %8127 = vmatmul.mubr.f32.gmra.mrb[110].mxu1 %v10190_v6  ;;  %v13035_v38 = vld [vmem:[%s14815_s3 + $0x3] ss:$0 sm:$0xff] }
 0x467   : > { %v7969_v56 = vpop.f32.mrb[5].mxu1  ;;  %v8220_v1 = vpop.f32.mrb[151].mxu0  ;;  %8378 = vmatmul.mubr.f32.gmra.mrb[0].mxu0 %v10192_v15  ;;  %8129 = vmatprep.mubr.msk.f32.mxu1 %vm10890_vm0, %v10891_v33 }
 0x468   : > { %10203 = vtanh.f32 %v3430_v59  ;;  %8380 = vmatprep.mubr.msk.f32.mxu0 %vm10890_vm0, %v10891_v33  ;;  %v10194_v20 = vpop.eup %10193  ;;  %v3961_v1 = vadd.f32 %v13035_v38, %v12884_v11  ;;  %v3966_v11 = vadd.f32 %v13035_v38, %v12893_v9  ;;  %v3971_v9 = vadd.f32 %v13035_v38, %v12902_v3 }
 0x469   : > { %v3434_v0 = vpop.f32.mrb[6].mxu1  ;;  %10205 = vtanh.f32 %v2854_v60  ;;  %v3976_v3 = vadd.f32 %v13035_v38, %v12911_v29  ;;  %v3981_v29 = vadd.f32 %v13035_v38, %v12920_v5  ;;  %v3986_v5 = vadd.f32 %v13035_v38, %v12929_v53 }
 0x46a   : > { %v10196_v52 = vpop.eup %10195  ;;  %v3435_v35 = vadd.f32 %v12755_v63, %v3434_v0  ;;  %v12983_v17 = vpop.f32.mrb[152].mxu0  ;;  %8130 = vmatmul.mubr.f32.gmra.mrb[112].mxu1 %v10194_v20 }
 0x46b   : > { %v7972_v51 = vpop.f32.mrb[7].mxu1  ;;  %v8223_v30 = vpop.f32.mrb[153].mxu0  ;;  %8381 = vmatmul.mubr.f32.gmra.mrb[2].mxu0 %v10196_v52  ;;  %8132 = vmatprep.mubr.msk.f32.mxu1 %vm10890_vm0, %v10891_v33 }
 0x46c   : > { %10207 = vtanh.f32 %v3435_v35  ;;  %8383 = vmatprep.mubr.msk.f32.mxu0 %vm10890_vm0, %v10891_v33  ;;  %v10198_v25 = vpop.eup %10197 }
 0x46d   : > { %v3439_v34 = vpop.f32.mrb[8].mxu1  ;;  %10209 = vtanh.f32 %v2859_v42 }
 0x46e   : > { %v10200_v10 = vpop.eup %10199  ;;  %v3440_v54 = vadd.f32 %v12755_v63, %v3439_v34  ;;  %v12992_v16 = vpop.f32.mrb[154].mxu0  ;;  %8133 = vmatmul.mubr.f32.gmra.mrb[114].mxu1 %v10198_v25 }
 0x46f   : > { %v7975_v26 = vpop.f32.mrb[9].mxu1  ;;  %v8226_v45 = vpop.f32.mrb[155].mxu0  ;;  %8384 = vmatmul.mubr.f32.gmra.mrb[4].mxu0 %v10200_v10  ;;  %8135 = vmatprep.mubr.msk.f32.mxu1 %vm10890_vm0, %v10891_v33 }
 0x470   : > { %10211 = vtanh.f32 %v3440_v54  ;;  %8386 = vmatprep.mubr.msk.f32.mxu0 %vm10890_vm0, %v10891_v33  ;;  %v10202_v39 = vpop.eup %10201 }
 0x471   : > { %v3444_v22 = vpop.f32.mrb[10].mxu1  ;;  %10213 = vtanh.f32 %v2864_v12 }
 0x472   : > { %v10204_v13 = vpop.eup %10203  ;;  %v3445_v36 = vadd.f32 %v12755_v63, %v3444_v22  ;;  %v13007_v43 = vpop.f32.mrb[156].mxu0  ;;  %8136 = vmatmul.mubr.f32.gmra.mrb[116].mxu1 %v10202_v39 }
 0x473   : > { %v7978_v8 = vpop.f32.mrb[11].mxu1  ;;  %v8229_v49 = vpop.f32.mrb[157].mxu0  ;;  %8387 = vmatmul.mubr.f32.gmra.mrb[6].mxu0 %v10204_v13  ;;  %8138 = vmatprep.mubr.msk.f32.mxu1 %vm10890_vm0, %v10891_v33 }
 0x474   : > { %10215 = vtanh.f32 %v3445_v36  ;;  %8389 = vmatprep.mubr.msk.f32.mxu0 %vm10890_vm0, %v10891_v33  ;;  %v10206_v37 = vpop.eup %10205 }
 0x475   : > { %v3449_v41 = vpop.f32.mrb[12].mxu1  ;;  %10217 = vtanh.f32 %v2869_v23 }
 0x476   : > { %v10208_v61 = vpop.eup %10207  ;;  %v3450_v47 = vadd.f32 %v12755_v63, %v3449_v41  ;;  %v13017_v24 = vpop.f32.mrb[158].mxu0  ;;  %8139 = vmatmul.mubr.f32.gmra.mrb[118].mxu1 %v10206_v37 }
 0x477   : > { %v7981_v50 = vpop.f32.mrb[13].mxu1  ;;  %v8232_v40 = vpop.f32.mrb[159].mxu0  ;;  %8390 = vmatmul.mubr.f32.gmra.mrb[8].mxu0 %v10208_v61  ;;  %8141 = vmatprep.mubr.msk.f32.mxu1 %vm10890_vm0, %v10891_v33 }
 0x478   : > { %10219 = vtanh.f32 %v3450_v47  ;;  %8392 = vmatprep.mubr.msk.f32.mxu0 %vm10890_vm0, %v10891_v33  ;;  %v10210_v57 = vpop.eup %10209 }
 0x479   : > { %v3454_v31 = vpop.f32.mrb[14].mxu1  ;;  %10221 = vtanh.f32 %v2874_v14 }
 0x47a   : > { %v10212_v58 = vpop.eup %10211  ;;  %v3455_v48 = vadd.f32 %v12755_v63, %v3454_v31  ;;  %v13026_v32 = vpop.f32.mrb[160].mxu0  ;;  %8142 = vmatmul.mubr.f32.gmra.mrb[120].mxu1 %v10210_v57 }
 0x47b   : > { %v7984_v4 = vpop.f32.mrb[15].mxu1  ;;  %v8235_v6 = vpop.f32.mrb[161].mxu0  ;;  %8393 = vmatmul.mubr.f32.gmra.mrb[10].mxu0 %v10212_v58  ;;  %8144 = vmatprep.mubr.msk.f32.mxu1 %vm10890_vm0, %v10891_v33 }
 0x47c   : > { %10223 = vtanh.f32 %v3455_v48  ;;  %8395 = vmatprep.mubr.msk.f32.mxu0 %vm10890_vm0, %v10891_v33  ;;  %v10214_v15 = vpop.eup %10213 }
 0x47d   : > { %v3459_v59 = vpop.f32.mrb[16].mxu1  ;;  %10225 = vtanh.f32 %v2879_v18 }
 0x47e   : > { %v10216_v56 = vpop.eup %10215  ;;  %v3460_v60 = vadd.f32 %v12755_v63, %v3459_v59  ;;  %v13040_v44 = vpop.f32.mrb[162].mxu0  ;;  %8145 = vmatmul.mubr.f32.gmra.mrb[122].mxu1 %v10214_v15  ;;  %v13096_v15 = vld [vmem:[%s14815_s3 + $0x2] ss:$0 sm:$0xff] }
 0x47f   : > { %v7987_v2 = vpop.f32.mrb[17].mxu1  ;;  %v8238_v20 = vpop.f32.mrb[163].mxu0  ;;  %8396 = vmatmul.mubr.f32.gmra.mrb[12].mxu0 %v10216_v56  ;;  %8147 = vmatprep.mubr.msk.f32.mxu1 %vm10890_vm0, %v10891_v33 }
 0x480   : > { %10227 = vtanh.f32 %v3460_v60  ;;  %8398 = vmatprep.mubr.msk.f32.mxu0 %vm10890_vm0, %v10891_v33  ;;  %v10218_v0 = vpop.eup %10217  ;;  %v3991_v60 = vadd.f32 %v13035_v38, %v12938_v19  ;;  %v3996_v19 = vadd.f32 %v13035_v38, %v12947_v55  ;;  %v4001_v55 = vadd.f32 %v13035_v38, %v12956_v27 }
 0x481   : > { %v3464_v52 = vpop.f32.mrb[18].mxu1  ;;  %10229 = vtanh.f32 %v3961_v1  ;;  %v4006_v27 = vadd.f32 %v13035_v38, %v12965_v7  ;;  %v4011_v7 = vadd.f32 %v13035_v38, %v12974_v28  ;;  %v4016_v28 = vadd.f32 %v13035_v38, %v12983_v17 }
 0x482   : > { %v10220_v35 = vpop.eup %10219  ;;  %v3465_v51 = vadd.f32 %v12755_v63, %v3464_v52  ;;  %v13049_v42 = vpop.f32.mrb[164].mxu0  ;;  %8148 = vmatmul.mubr.f32.gmra.mrb[124].mxu1 %v10218_v0  ;;  %v4021_v17 = vadd.f32 %v13035_v38, %v12992_v16 }
 0x483   : > { %v7990_v30 = vpop.f32.mrb[19].mxu1  ;;  %v8241_v25 = vpop.f32.mrb[165].mxu0  ;;  %8399 = vmatmul.mubr.f32.gmra.mrb[14].mxu0 %v10220_v35  ;;  %8150 = vmatprep.mubr.msk.f32.mxu1 %vm10890_vm0, %v10891_v33 }
 0x484   : > { %10231 = vtanh.f32 %v3465_v51  ;;  %8401 = vmatprep.mubr.msk.f32.mxu0 %vm10890_vm0, %v10891_v33  ;;  %v10222_v34 = vpop.eup %10221 }
 0x485   : > { %v3469_v10 = vpop.f32.mrb[20].mxu1  ;;  %10233 = vtanh.f32 %v3966_v11 }
 0x486   : > { %v10224_v54 = vpop.eup %10223  ;;  %v3470_v26 = vadd.f32 %v12755_v63, %v3469_v10  ;;  %v13058_v12 = vpop.f32.mrb[166].mxu0  ;;  %8151 = vmatmul.mubr.f32.gmra.mrb[126].mxu1 %v10222_v34 }
 0x487   : > { %v7993_v45 = vpop.f32.mrb[21].mxu1  ;;  %v8244_v39 = vpop.f32.mrb[167].mxu0  ;;  %8402 = vmatmul.mubr.f32.gmra.mrb[16].mxu0 %v10224_v54  ;;  %8153 = vmatprep.mubr.msk.f32.mxu1 %vm10890_vm0, %v10891_v33 }
 0x488   : > { %10235 = vtanh.f32 %v3470_v26  ;;  %8404 = vmatprep.mubr.msk.f32.mxu0 %vm10890_vm0, %v10891_v33  ;;  %v10226_v22 = vpop.eup %10225 }
 0x489   : > { %v3474_v46 = vpop.f32.mrb[22].mxu1  ;;  %10237 = vtanh.f32 %v3971_v9 }
 0x48a   : > { %v10228_v21 = vpop.eup %10227  ;;  %v3475_v13 = vadd.f32 %v12755_v63, %v3474_v46  ;;  %v13067_v36 = vpop.f32.mrb[168].mxu0  ;;  %8154 = vmatmul.mubr.f32.gmra.mrb[128].mxu1 %v10226_v22 }
 0x48b   : > { %v7996_v8 = vpop.f32.mrb[23].mxu1  ;;  %v8247_v62 = vpop.f32.mrb[169].mxu0  ;;  %8405 = vmatmul.mubr.f32.gmra.mrb[18].mxu0 %v10228_v21  ;;  %8607 = vmatprep.mubr.msk.f32.mxu1 %vm10890_vm0, %v10891_v33 }
 0x48c   : > { %10239 = vtanh.f32 %v3475_v13  ;;  %8407 = vmatprep.mubr.msk.f32.mxu0 %vm10890_vm0, %v10891_v33  ;;  %v10230_v23 = vpop.eup %10229 }
 0x48d   : > { %v3479_v49 = vpop.f32.mrb[24].mxu1  ;;  %10241 = vtanh.f32 %v3976_v3 }
 0x48e   : > { %v10232_v37 = vpop.eup %10231  ;;  %v3480_v41 = vadd.f32 %v12755_v63, %v3479_v49  ;;  %v13076_v61 = vpop.f32.mrb[170].mxu0  ;;  %8608 = vmatmul.mubr.f32.vlgmr.msra.gmra.mrb[130].mxu1 %v10230_v23 }
 0x48f   : > { %v7999_v47 = vpop.f32.mrb[25].mxu1  ;;  %v8250_v50 = vpop.f32.mrb[171].mxu0  ;;  %8408 = vmatmul.mubr.f32.gmra.mrb[20].mxu0 %v10232_v37  ;;  %8610 = vmatprep.mubr.msk.f32.mxu1 %vm10890_vm0, %v10891_v33 }
 0x490   : > { %10243 = vtanh.f32 %v3480_v41  ;;  %8410 = vmatprep.mubr.msk.f32.mxu0 %vm10890_vm0, %v10891_v33  ;;  %v10234_v14 = vpop.eup %10233 }
 0x491   : > { %v3484_v40 = vpop.f32.mrb[26].mxu1  ;;  %10245 = vtanh.f32 %v3981_v29 }
 0x492   : > { %v10236_v57 = vpop.eup %10235  ;;  %v3485_v31 = vadd.f32 %v12755_v63, %v3484_v40  ;;  %v13085_v58 = vpop.f32.mrb[172].mxu0  ;;  %8611 = vmatmul.mubr.f32.gmra.mrb[132].mxu1 %v10234_v14 }
 0x493   : > { %v8002_v48 = vpop.f32.mrb[27].mxu1  ;;  %v8253_v4 = vpop.f32.mrb[173].mxu0  ;;  %8411 = vmatmul.mubr.f32.gmra.mrb[22].mxu0 %v10236_v57  ;;  %8613 = vmatprep.mubr.msk.f32.mxu1 %vm10890_vm0, %v10891_v33 }
 0x494   : > { %10247 = vtanh.f32 %v3485_v31  ;;  %8413 = vmatprep.mubr.msk.f32.mxu0 %vm10890_vm0, %v10891_v33  ;;  %v10238_v18 = vpop.eup %10237 }
 0x495   : > { %v3489_v6 = vpop.f32.mrb[28].mxu1  ;;  %10249 = vtanh.f32 %v3986_v5 }
 0x496   : > { %v10240_v63 = vpop.eup %10239  ;;  %v3490_v59 = vadd.f32 %v13096_v15, %v3489_v6  ;;  %v13099_v53 = vpop.f32.mrb[174].mxu0  ;;  %8614 = vmatmul.mubr.f32.gmra.mrb[134].mxu1 %v10238_v18 }
 0x497   : > { %v8005_v56 = vpop.f32.mrb[29].mxu1  ;;  %v8256_v2 = vpop.f32.mrb[175].mxu0  ;;  %8414 = vmatmul.mubr.f32.gmra.mrb[24].mxu0 %v10240_v63  ;;  %8616 = vmatprep.mubr.msk.f32.mxu1 %vm10890_vm0, %v10891_v33 }
 0x498   : > { %10251 = vtanh.f32 %v3490_v59  ;;  %8416 = vmatprep.mubr.msk.f32.mxu0 %vm10890_vm0, %v10891_v33  ;;  %v10242_v1 = vpop.eup %10241 }
 0x499   : > { %v3494_v20 = vpop.f32.mrb[30].mxu1  ;;  %10253 = vtanh.f32 %v3991_v60 }
 0x49a   : > { %v10244_v0 = vpop.eup %10243  ;;  %v3495_v52 = vadd.f32 %v13096_v15, %v3494_v20  ;;  %v13108_v35 = vpop.f32.mrb[176].mxu0  ;;  %8617 = vmatmul.mubr.f32.gmra.mrb[136].mxu1 %v10242_v1  ;;  %v6588_v1 = vld [vmem:[%s14814_s2 + $0x270] sm:$0xff]  ;;  %v6589_v20 = vld [vmem:[%s14814_s2 + $0x278] sm:$0xff] }
 0x49b   : > { %v8008_v51 = vpop.f32.mrb[31].mxu1  ;;  %v8259_v30 = vpop.f32.mrb[177].mxu0  ;;  %8417 = vmatmul.mubr.f32.gmra.mrb[26].mxu0 %v10244_v0  ;;  %8619 = vmatprep.mubr.msk.f32.mxu1 %vm10890_vm0, %v10891_v33 }
 0x49c   : > { %10255 = vtanh.f32 %v3495_v52  ;;  %8419 = vmatprep.mubr.msk.f32.mxu0 %vm10890_vm0, %v10891_v33  ;;  %v10246_v11 = vpop.eup %10245  ;;  %v4026_v30 = vadd.f32 %v13035_v38, %v13007_v43  ;;  %v4031_v43 = vadd.f32 %v13035_v38, %v13017_v24  ;;  %v4036_v24 = vadd.f32 %v13035_v38, %v13026_v32 }
 0x49d   : > { %v3499_v25 = vpop.f32.mrb[32].mxu1  ;;  %10257 = vtanh.f32 %v3996_v19  ;;  %v9531_v19 = vpack.c.bf16 %v6589_v20, %v6588_v1  ;;  %v4041_v32 = vadd.f32 %v13035_v38, %v13040_v44  ;;  %v4046_v44 = vadd.f32 %v13035_v38, %v13049_v42 }
 0x49e   : > { %v10248_v34 = vpop.eup %10247  ;;  %v3500_v10 = vadd.f32 %v13096_v15, %v3499_v25  ;;  %v13117_v54 = vpop.f32.mrb[178].mxu0  ;;  %8620 = vmatmul.mubr.f32.gmra.mrb[138].mxu1 %v10246_v11  ;;  %v4051_v42 = vadd.f32 %v13035_v38, %v13058_v12  ;;  %v4056_v12 = vadd.f32 %v13035_v38, %v13067_v36  ;;  %v4061_v36 = vadd.f32 %v13035_v38, %v13076_v61 }
 0x49f   : > { %v8011_v26 = vpop.f32.mrb[33].mxu1  ;;  %v8262_v45 = vpop.f32.mrb[179].mxu0  ;;  %8420 = vmatmul.mubr.f32.gmra.mrb[28].mxu0 %v10248_v34  ;;  %8622 = vmatprep.mubr.msk.f32.mxu1 %vm10890_vm0, %v10891_v33  ;;  %v4066_v61 = vadd.f32 %v13035_v38, %v13085_v58  ;;  %v4071_v58 = vadd.f32 %v13035_v38, %v13099_v53  ;;  %v4076_v53 = vadd.f32 %v13035_v38, %v13108_v35 }
 0x4a0   : > { %10259 = vtanh.f32 %v3500_v10  ;;  %8422 = vmatprep.mubr.msk.f32.mxu0 %vm10890_vm0, %v10891_v33  ;;  %v10250_v9 = vpop.eup %10249  ;;  %9532 = vmatpush3.bf16.msra.mxu0 %v9531_v19  ;;  %v4081_v35 = vadd.f32 %v13035_v38, %v13117_v54 }
 0x4a1   : > { %v3504_v39 = vpop.f32.mrb[34].mxu1  ;;  %10261 = vtanh.f32 %v4001_v55 }
 0x4a2   : > { %v10252_v22 = vpop.eup %10251  ;;  %v3505_v46 = vadd.f32 %v13096_v15, %v3504_v39  ;;  %v13126_v21 = vpop.f32.mrb[180].mxu0  ;;  %8623 = vmatmul.mubr.f32.gmra.mrb[140].mxu1 %v10250_v9 }
 0x4a3   : > { %v8014_v13 = vpop.f32.mrb[35].mxu1  ;;  %v8265_v8 = vpop.f32.mrb[181].mxu0  ;;  %8423 = vmatmul.mubr.f32.gmra.mrb[30].mxu0 %v10252_v22  ;;  %8625 = vmatprep.mubr.msk.f32.mxu1 %vm10890_vm0, %v10891_v33  ;;  %v4086_v54 = vadd.f32 %v13035_v38, %v13126_v21 }
 0x4a4   : > { %10263 = vtanh.f32 %v3505_v46  ;;  %8425 = vmatprep.mubr.msk.f32.mxu0 %vm10890_vm0, %v10891_v33  ;;  %v10254_v3 = vpop.eup %10253 }
 0x4a5   : > { %v3509_v62 = vpop.f32.mrb[36].mxu1  ;;  %10265 = vtanh.f32 %v4006_v27 }
 0x4a6   : > { %v10256_v23 = vpop.eup %10255  ;;  %v3510_v49 = vadd.f32 %v13096_v15, %v3509_v62  ;;  %v13135_v37 = vpop.f32.mrb[182].mxu0  ;;  %8626 = vmatmul.mubr.f32.gmra.mrb[142].mxu1 %v10254_v3 }
 0x4a7   : > { %v8017_v41 = vpop.f32.mrb[37].mxu1  ;;  %v8268_v47 = vpop.f32.mrb[183].mxu0  ;;  %8426 = vmatmul.mubr.f32.gmra.mrb[32].mxu0 %v10256_v23  ;;  %8628 = vmatprep.mubr.msk.f32.mxu1 %vm10890_vm0, %v10891_v33  ;;  %v4091_v21 = vadd.f32 %v13035_v38, %v13135_v37 }
 0x4a8   : > { %10267 = vtanh.f32 %v3510_v49  ;;  %8428 = vmatprep.mubr.msk.f32.mxu0 %vm10890_vm0, %v10891_v33  ;;  %v10258_v29 = vpop.eup %10257 }
 0x4a9   : > { %v3514_v50 = vpop.f32.mrb[38].mxu1  ;;  %10269 = vtanh.f32 %v4011_v7 }
 0x4aa   : > { %v10260_v14 = vpop.eup %10259  ;;  %v3515_v40 = vadd.f32 %v13096_v15, %v3514_v50  ;;  %v13144_v57 = vpop.f32.mrb[184].mxu0  ;;  %8629 = vmatmul.mubr.f32.gmra.mrb[144].mxu1 %v10258_v29 }
 0x4ab   : > { %v8020_v31 = vpop.f32.mrb[39].mxu1  ;;  %v8271_v48 = vpop.f32.mrb[185].mxu0  ;;  %8429 = vmatmul.mubr.f32.gmra.mrb[34].mxu0 %v10260_v14  ;;  %8631 = vmatprep.mubr.msk.f32.mxu1 %vm10890_vm0, %v10891_v33  ;;  %v4096_v37 = vadd.f32 %v13035_v38, %v13144_v57 }
 0x4ac   : > { %10271 = vtanh.f32 %v3515_v40  ;;  %8431 = vmatprep.mubr.msk.f32.mxu0 %vm10890_vm0, %v10891_v33  ;;  %v10262_v5 = vpop.eup %10261 }
 0x4ad   : > { %v3519_v4 = vpop.f32.mrb[40].mxu1  ;;  %10273 = vtanh.f32 %v4016_v28 }
 0x4ae   : > { %v10264_v18 = vpop.eup %10263  ;;  %v3520_v6 = vadd.f32 %v13096_v15, %v3519_v4  ;;  %v13153_v63 = vpop.f32.mrb[186].mxu0  ;;  %8632 = vmatmul.mubr.f32.gmra.mrb[146].mxu1 %v10262_v5 }
 0x4af   : > { %v8023_v59 = vpop.f32.mrb[41].mxu1  ;;  %v8274_v56 = vpop.f32.mrb[187].mxu0  ;;  %8432 = vmatmul.mubr.f32.gmra.mrb[36].mxu0 %v10264_v18  ;;  %8634 = vmatprep.mubr.msk.f32.mxu1 %vm10890_vm0, %v10891_v33  ;;  %v4101_v57 = vadd.f32 %v13035_v38, %v13153_v63 }
 0x4b0   : > { %10275 = vtanh.f32 %v3520_v6  ;;  %8434 = vmatprep.mubr.msk.f32.mxu0 %vm10890_vm0, %v10891_v33  ;;  %v10266_v60 = vpop.eup %10265 }
 0x4b1   : > { %v3524_v2 = vpop.f32.mrb[42].mxu1  ;;  %10277 = vtanh.f32 %v4021_v17 }
 0x4b2   : > { %v10268_v16 = vpop.eup %10267  ;;  %v3525_v0 = vadd.f32 %v13096_v15, %v3524_v2  ;;  %v13168_v52 = vpop.f32.mrb[188].mxu0  ;;  %8635 = vmatmul.mubr.f32.gmra.mrb[148].mxu1 %v10266_v60 }
 0x4b3   : > { %v8026_v51 = vpop.f32.mrb[43].mxu1  ;;  %v8277_v11 = vpop.f32.mrb[189].mxu0  ;;  %8435 = vmatmul.mubr.f32.gmra.mrb[38].mxu0 %v10268_v16  ;;  %8637 = vmatprep.mubr.msk.f32.mxu1 %vm10890_vm0, %v10891_v33  ;;  %v4106_v63 = vadd.f32 %v13035_v38, %v13168_v52 }
 0x4b4   : > { %10279 = vtanh.f32 %v3525_v0  ;;  %8437 = vmatprep.mubr.msk.f32.mxu0 %vm10890_vm0, %v10891_v33  ;;  %v10270_v25 = vpop.eup %10269 }
 0x4b5   : > { %v3529_v34 = vpop.f32.mrb[44].mxu1  ;;  %10281 = vtanh.f32 %v4026_v30 }
 0x4b6   : > { %v10272_v10 = vpop.eup %10271  ;;  %v3530_v26 = vadd.f32 %v13096_v15, %v3529_v34  ;;  %v13177_v55 = vpop.f32.mrb[190].mxu0  ;;  %8638 = vmatmul.mubr.f32.gmra.mrb[150].mxu1 %v10270_v25 }
 0x4b7   : > { %v8029_v45 = vpop.f32.mrb[45].mxu1  ;;  %v8280_v9 = vpop.f32.mrb[191].mxu0  ;;  %8438 = vmatmul.mubr.f32.gmra.mrb[40].mxu0 %v10272_v10  ;;  %8640 = vmatprep.mubr.msk.f32.mxu1 %vm10890_vm0, %v10891_v33  ;;  %v4111_v52 = vadd.f32 %v13035_v38, %v13177_v55 }
 0x4b8   : > { %10283 = vtanh.f32 %v3530_v26  ;;  %8440 = vmatprep.mubr.msk.f32.mxu0 %vm10890_vm0, %v10891_v33  ;;  %v10274_v39 = vpop.eup %10273 }
 0x4b9   : > { %v3534_v22 = vpop.f32.mrb[46].mxu1  ;;  %10285 = vtanh.f32 %v4031_v43 }
 0x4ba   : > { %v10276_v46 = vpop.eup %10275  ;;  %v3535_v13 = vadd.f32 %v13096_v15, %v3534_v22  ;;  %v13186_v27 = vpop.f32.mrb[192].mxu0  ;;  %8641 = vmatmul.mubr.f32.gmra.mrb[152].mxu1 %v10274_v39 }
 0x4bb   : > { %v8032_v8 = vpop.f32.mrb[47].mxu1  ;;  %v8283_v3 = vpop.f32.mrb[193].mxu0  ;;  %8441 = vmatmul.mubr.f32.gmra.mrb[42].mxu0 %v10276_v46  ;;  %8643 = vmatprep.mubr.msk.f32.mxu1 %vm10890_vm0, %v10891_v33  ;;  %v4116_v55 = vadd.f32 %v13035_v38, %v13186_v27 }
 0x4bc   : > { %10287 = vtanh.f32 %v3535_v13  ;;  %8443 = vmatprep.mubr.msk.f32.mxu0 %vm10890_vm0, %v10891_v33  ;;  %v10278_v62 = vpop.eup %10277 }
 0x4bd   : > { %v3539_v23 = vpop.f32.mrb[48].mxu1  ;;  %10289 = vtanh.f32 %v4036_v24 }
 0x4be   : > { %v10280_v49 = vpop.eup %10279  ;;  %v3540_v41 = vadd.f32 %v13096_v15, %v3539_v23  ;;  %v13195_v7 = vpop.f32.mrb[194].mxu0  ;;  %8644 = vmatmul.mubr.f32.gmra.mrb[154].mxu1 %v10278_v62 }
 0x4bf   : > { %v8035_v47 = vpop.f32.mrb[49].mxu1  ;;  %v8286_v29 = vpop.f32.mrb[195].mxu0  ;;  %8444 = vmatmul.mubr.f32.gmra.mrb[44].mxu0 %v10280_v49  ;;  %8646 = vmatprep.mubr.msk.f32.mxu1 %vm10890_vm0, %v10891_v33  ;;  %v4121_v27 = vadd.f32 %v13035_v38, %v13195_v7 }
 0x4c0   : > { %10291 = vtanh.f32 %v3540_v41  ;;  %8446 = vmatprep.mubr.msk.f32.mxu0 %vm10890_vm0, %v10891_v33  ;;  %v10282_v50 = vpop.eup %10281 }
 0x4c1   : > { %v3544_v14 = vpop.f32.mrb[50].mxu1  ;;  %10293 = vtanh.f32 %v4041_v32 }
 0x4c2   : > { %v10284_v40 = vpop.eup %10283  ;;  %v3545_v31 = vadd.f32 %v13096_v15, %v3544_v14  ;;  %v13204_v28 = vpop.f32.mrb[196].mxu0  ;;  %8647 = vmatmul.mubr.f32.gmra.mrb[156].mxu1 %v10282_v50 }
 0x4c3   : > { %v8038_v48 = vpop.f32.mrb[51].mxu1  ;;  %v8289_v5 = vpop.f32.mrb[197].mxu0  ;;  %8447 = vmatmul.mubr.f32.gmra.mrb[46].mxu0 %v10284_v40  ;;  %8649 = vmatprep.mubr.msk.f32.mxu1 %vm10890_vm0, %v10891_v33  ;;  %v4126_v7 = vadd.f32 %v13035_v38, %v13204_v28 }
 0x4c4   : > { %10295 = vtanh.f32 %v3545_v31  ;;  %8449 = vmatprep.mubr.msk.f32.mxu0 %vm10890_vm0, %v10891_v33  ;;  %v10286_v4 = vpop.eup %10285 }
 0x4c5   : > { %v3549_v18 = vpop.f32.mrb[52].mxu1  ;;  %10297 = vtanh.f32 %v4046_v44 }
 0x4c6   : > { %v10288_v6 = vpop.eup %10287  ;;  %v3550_v59 = vadd.f32 %v13096_v15, %v3549_v18  ;;  %v13213_v17 = vpop.f32.mrb[198].mxu0  ;;  %8650 = vmatmul.mubr.f32.gmra.mrb[158].mxu1 %v10286_v4 }
 0x4c7   : > { %v8041_v56 = vpop.f32.mrb[53].mxu1  ;;  %v8292_v60 = vpop.f32.mrb[199].mxu0  ;;  %8450 = vmatmul.mubr.f32.gmra.mrb[48].mxu0 %v10288_v6  ;;  %8652 = vmatprep.mubr.msk.f32.mxu1 %vm10890_vm0, %v10891_v33  ;;  %v4131_v28 = vadd.f32 %v13035_v38, %v13213_v17 }
 0x4c8   : > { %10299 = vtanh.f32 %v3550_v59  ;;  %8452 = vmatprep.mubr.msk.f32.mxu0 %vm10890_vm0, %v10891_v33  ;;  %v10290_v2 = vpop.eup %10289 }
 0x4c9   : > { %v3554_v1 = vpop.f32.mrb[54].mxu1  ;;  %10301 = vtanh.f32 %v4051_v42 }
 0x4ca   : > { %v10292_v20 = vpop.eup %10291  ;;  %v3555_v16 = vadd.f32 %v13096_v15, %v3554_v1  ;;  %v13222_v0 = vpop.f32.mrb[200].mxu0  ;;  %8653 = vmatmul.mubr.f32.gmra.mrb[160].mxu1 %v10290_v2 }
 0x4cb   : > { %v8044_v51 = vpop.f32.mrb[55].mxu1  ;;  %v8295_v19 = vpop.f32.mrb[201].mxu0  ;;  %8453 = vmatmul.mubr.f32.gmra.mrb[50].mxu0 %v10292_v20  ;;  %8655 = vmatprep.mubr.msk.f32.mxu1 %vm10890_vm0, %v10891_v33  ;;  %v4136_v17 = vadd.f32 %v13035_v38, %v13222_v0  ;;  %v13380_v38 = vld [vmem:[%s14815_s3 + $0x3] ss:$0 sm:$0xff] }
 0x4cc   : > { %10303 = vtanh.f32 %v3555_v16  ;;  %8455 = vmatprep.mubr.msk.f32.mxu0 %vm10890_vm0, %v10891_v33  ;;  %v10294_v30 = vpop.eup %10293 }
 0x4cd   : > { %v3559_v11 = vpop.f32.mrb[56].mxu1  ;;  %10305 = vtanh.f32 %v4056_v12 }
 0x4ce   : > { %v10296_v25 = vpop.eup %10295  ;;  %v3560_v34 = vadd.f32 %v13096_v15, %v3559_v11  ;;  %v13231_v10 = vpop.f32.mrb[202].mxu0  ;;  %8656 = vmatmul.mubr.f32.gmra.mrb[162].mxu1 %v10294_v30 }
 0x4cf   : > { %v8047_v26 = vpop.f32.mrb[57].mxu1  ;;  %v8298_v45 = vpop.f32.mrb[203].mxu0  ;;  %8456 = vmatmul.mubr.f32.gmra.mrb[52].mxu0 %v10296_v25  ;;  %8658 = vmatprep.mubr.msk.f32.mxu1 %vm10890_vm0, %v10891_v33  ;;  %v4141_v0 = vadd.f32 %v13380_v38, %v13231_v10 }
 0x4d0   : > { %10307 = vtanh.f32 %v3560_v34  ;;  %8458 = vmatprep.mubr.msk.f32.mxu0 %vm10890_vm0, %v10891_v33  ;;  %v10298_v43 = vpop.eup %10297 }
 0x4d1   : > { %v3564_v9 = vpop.f32.mrb[58].mxu1  ;;  %10309 = vtanh.f32 %v4061_v36 }
 0x4d2   : > { %v10300_v39 = vpop.eup %10299  ;;  %v3565_v22 = vadd.f32 %v13096_v15, %v3564_v9  ;;  %v13240_v46 = vpop.f32.mrb[204].mxu0  ;;  %8659 = vmatmul.mubr.f32.gmra.mrb[164].mxu1 %v10298_v43 }
 0x4d3   : > { %v8050_v13 = vpop.f32.mrb[59].mxu1  ;;  %v8301_v8 = vpop.f32.mrb[205].mxu0  ;;  %8459 = vmatmul.mubr.f32.gmra.mrb[54].mxu0 %v10300_v39  ;;  %8661 = vmatprep.mubr.msk.f32.mxu1 %vm10890_vm0, %v10891_v33  ;;  %v4146_v10 = vadd.f32 %v13380_v38, %v13240_v46 }
 0x4d4   : > { %10311 = vtanh.f32 %v3565_v22  ;;  %8461 = vmatprep.mubr.msk.f32.mxu0 %vm10890_vm0, %v10891_v33  ;;  %v10302_v24 = vpop.eup %10301 }
 0x4d5   : > { %v3569_v3 = vpop.f32.mrb[60].mxu1  ;;  %10313 = vtanh.f32 %v4066_v61 }
 0x4d6   : > { %v10304_v62 = vpop.eup %10303  ;;  %v3570_v23 = vadd.f32 %v13096_v15, %v3569_v3  ;;  %v13249_v49 = vpop.f32.mrb[206].mxu0  ;;  %8662 = vmatmul.mubr.f32.gmra.mrb[166].mxu1 %v10302_v24 }
 0x4d7   : > { %v8053_v41 = vpop.f32.mrb[61].mxu1  ;;  %v8304_v47 = vpop.f32.mrb[207].mxu0  ;;  %8462 = vmatmul.mubr.f32.gmra.mrb[56].mxu0 %v10304_v62  ;;  %8664 = vmatprep.mubr.msk.f32.mxu1 %vm10890_vm0, %v10891_v33  ;;  %v4151_v46 = vadd.f32 %v13380_v38, %v13249_v49 }
 0x4d8   : > { %10315 = vtanh.f32 %v3570_v23  ;;  %8464 = vmatprep.mubr.msk.f32.mxu0 %vm10890_vm0, %v10891_v33  ;;  %v10306_v32 = vpop.eup %10305 }
 0x4d9   : > { %v3574_v29 = vpop.f32.mrb[62].mxu1  ;;  %10317 = vtanh.f32 %v4071_v58 }
 0x4da   : > { %v10308_v50 = vpop.eup %10307  ;;  %v3575_v14 = vadd.f32 %v13096_v15, %v3574_v29  ;;  %v13258_v40 = vpop.f32.mrb[208].mxu0  ;;  %8665 = vmatmul.mubr.f32.gmra.mrb[168].mxu1 %v10306_v32 }
 0x4db   : > { %v8056_v31 = vpop.f32.mrb[63].mxu1  ;;  %v8307_v48 = vpop.f32.mrb[209].mxu0  ;;  %8465 = vmatmul.mubr.f32.gmra.mrb[58].mxu0 %v10308_v50  ;;  %8667 = vmatprep.mubr.msk.f32.mxu1 %vm10890_vm0, %v10891_v33  ;;  %v4156_v49 = vadd.f32 %v13380_v38, %v13258_v40 }
 0x4dc   : > { %10319 = vtanh.f32 %v3575_v14  ;;  %8467 = vmatprep.mubr.msk.f32.mxu0 %vm10890_vm0, %v10891_v33  ;;  %v10310_v44 = vpop.eup %10309 }
 0x4dd   : > { %v3579_v5 = vpop.f32.mrb[64].mxu1  ;;  %10321 = vtanh.f32 %v4076_v53 }
 0x4de   : > { %v10312_v4 = vpop.eup %10311  ;;  %v3580_v18 = vadd.f32 %v13096_v15, %v3579_v5  ;;  %v13267_v6 = vpop.f32.mrb[210].mxu0  ;;  %8668 = vmatmul.mubr.f32.gmra.mrb[170].mxu1 %v10310_v44 }
 0x4df   : > { %v8059_v59 = vpop.f32.mrb[65].mxu1  ;;  %v8310_v56 = vpop.f32.mrb[211].mxu0  ;;  %8468 = vmatmul.mubr.f32.gmra.mrb[60].mxu0 %v10312_v4  ;;  %8670 = vmatprep.mubr.msk.f32.mxu1 %vm10890_vm0, %v10891_v33  ;;  %v4161_v40 = vadd.f32 %v13380_v38, %v13267_v6 }
 0x4e0   : > { %10323 = vtanh.f32 %v3580_v18  ;;  %8470 = vmatprep.mubr.msk.f32.mxu0 %vm10890_vm0, %v10891_v33  ;;  %v10314_v42 = vpop.eup %10313 }
 0x4e1   : > { %v3584_v60 = vpop.f32.mrb[66].mxu1  ;;  %10325 = vtanh.f32 %v4081_v35 }
 0x4e2   : > { %v10316_v2 = vpop.eup %10315  ;;  %v3585_v1 = vadd.f32 %v13096_v15, %v3584_v60  ;;  %v13276_v20 = vpop.f32.mrb[212].mxu0  ;;  %8671 = vmatmul.mubr.f32.gmra.mrb[172].mxu1 %v10314_v42 }
 0x4e3   : > { %v8062_v16 = vpop.f32.mrb[67].mxu1  ;;  %v8313_v51 = vpop.f32.mrb[213].mxu0  ;;  %8471 = vmatmul.mubr.f32.gmra.mrb[62].mxu0 %v10316_v2  ;;  %8673 = vmatprep.mubr.msk.f32.mxu1 %vm10890_vm0, %v10891_v33  ;;  %v4166_v6 = vadd.f32 %v13380_v38, %v13276_v20 }
 0x4e4   : > { %10327 = vtanh.f32 %v3585_v1  ;;  %8473 = vmatprep.mubr.msk.f32.mxu0 %vm10890_vm0, %v10891_v33  ;;  %v10318_v12 = vpop.eup %10317 }
 0x4e5   : > { %v3589_v19 = vpop.f32.mrb[68].mxu1  ;;  %10329 = vtanh.f32 %v4086_v54 }
 0x4e6   : > { %v10320_v30 = vpop.eup %10319  ;;  %v3590_v11 = vadd.f32 %v13096_v15, %v3589_v19  ;;  %v13285_v25 = vpop.f32.mrb[214].mxu0  ;;  %8674 = vmatmul.mubr.f32.gmra.mrb[174].mxu1 %v10318_v12 }
 0x4e7   : > { %v8065_v34 = vpop.f32.mrb[69].mxu1  ;;  %v8316_v26 = vpop.f32.mrb[215].mxu0  ;;  %8474 = vmatmul.mubr.f32.gmra.mrb[64].mxu0 %v10320_v30  ;;  %8676 = vmatprep.mubr.msk.f32.mxu1 %vm10890_vm0, %v10891_v33  ;;  %v4171_v20 = vadd.f32 %v13380_v38, %v13285_v25 }
 0x4e8   : > { %10331 = vtanh.f32 %v3590_v11  ;;  %8476 = vmatprep.mubr.msk.f32.mxu0 %vm10890_vm0, %v10891_v33  ;;  %v10322_v36 = vpop.eup %10321 }
 0x4e9   : > { %v3594_v45 = vpop.f32.mrb[70].mxu1  ;;  %10333 = vtanh.f32 %v4091_v21 }
 0x4ea   : > { %v10324_v43 = vpop.eup %10323  ;;  %v3595_v9 = vadd.f32 %v13096_v15, %v3594_v45  ;;  %v13294_v39 = vpop.f32.mrb[216].mxu0  ;;  %8677 = vmatmul.mubr.f32.gmra.mrb[176].mxu1 %v10322_v36 }
 0x4eb   : > { %v8068_v22 = vpop.f32.mrb[71].mxu1  ;;  %v8319_v13 = vpop.f32.mrb[217].mxu0  ;;  %8477 = vmatmul.mubr.f32.gmra.mrb[66].mxu0 %v10324_v43  ;;  %8679 = vmatprep.mubr.msk.f32.mxu1 %vm10890_vm0, %v10891_v33 }
 0x4ec   : > { %10335 = vtanh.f32 %v3595_v9  ;;  %8479 = vmatprep.mubr.msk.f32.mxu0 %vm10890_vm0, %v10891_v33  ;;  %v10326_v61 = vpop.eup %10325 }
 0x4ed   : > { %v3599_v8 = vpop.f32.mrb[72].mxu1  ;;  %10337 = vtanh.f32 %v4096_v37 }
 0x4ee   : > { %v10328_v24 = vpop.eup %10327  ;;  %v3600_v3 = vadd.f32 %v13096_v15, %v3599_v8  ;;  %v13303_v62 = vpop.f32.mrb[218].mxu0  ;;  %8680 = vmatmul.mubr.f32.gmra.mrb[178].mxu1 %v10326_v61 }
 0x4ef   : > { %v8071_v23 = vpop.f32.mrb[73].mxu1  ;;  %v8322_v41 = vpop.f32.mrb[219].mxu0  ;;  %8480 = vmatmul.mubr.f32.gmra.mrb[68].mxu0 %v10328_v24  ;;  %8682 = vmatprep.mubr.msk.f32.mxu1 %vm10890_vm0, %v10891_v33 }
 0x4f0   : > { %10339 = vtanh.f32 %v3600_v3  ;;  %8482 = vmatprep.mubr.msk.f32.mxu0 %vm10890_vm0, %v10891_v33  ;;  %v10330_v58 = vpop.eup %10329 }
 0x4f1   : > { %v3604_v47 = vpop.f32.mrb[74].mxu1  ;;  %10341 = vtanh.f32 %v4101_v57 }
 0x4f2   : > { %v10332_v32 = vpop.eup %10331  ;;  %v3605_v29 = vadd.f32 %v13096_v15, %v3604_v47  ;;  %v13312_v50 = vpop.f32.mrb[220].mxu0  ;;  %8683 = vmatmul.mubr.f32.gmra.mrb[180].mxu1 %v10330_v58 }
 0x4f3   : > { %v8074_v14 = vpop.f32.mrb[75].mxu1  ;;  %v8325_v31 = vpop.f32.mrb[221].mxu0  ;;  %8483 = vmatmul.mubr.f32.gmra.mrb[70].mxu0 %v10332_v32  ;;  %8685 = vmatprep.mubr.msk.f32.mxu1 %vm10890_vm0, %v10891_v33 }
 0x4f4   : > { %10343 = vtanh.f32 %v3605_v29  ;;  %8485 = vmatprep.mubr.msk.f32.mxu0 %vm10890_vm0, %v10891_v33  ;;  %v10334_v53 = vpop.eup %10333 }
 0x4f5   : > { %v3609_v48 = vpop.f32.mrb[76].mxu1  ;;  %10345 = vtanh.f32 %v4106_v63 }
 0x4f6   : > { %v10336_v44 = vpop.eup %10335  ;;  %v3610_v5 = vadd.f32 %v13096_v15, %v3609_v48  ;;  %v13321_v4 = vpop.f32.mrb[222].mxu0  ;;  %8686 = vmatmul.mubr.f32.gmra.mrb[182].mxu1 %v10334_v53 }
 0x4f7   : > { %v8077_v18 = vpop.f32.mrb[77].mxu1  ;;  %v8328_v59 = vpop.f32.mrb[223].mxu0  ;;  %8486 = vmatmul.mubr.f32.gmra.mrb[72].mxu0 %v10336_v44  ;;  %8688 = vmatprep.mubr.msk.f32.mxu1 %vm10890_vm0, %v10891_v33 }
 0x4f8   : > { %10347 = vtanh.f32 %v3610_v5  ;;  %8488 = vmatprep.mubr.msk.f32.mxu0 %vm10890_vm0, %v10891_v33  ;;  %v10338_v35 = vpop.eup %10337 }
 0x4f9   : > { %v3614_v56 = vpop.f32.mrb[78].mxu1  ;;  %10349 = vtanh.f32 %v4111_v52 }
 0x4fa   : > { %v10340_v42 = vpop.eup %10339  ;;  %v3615_v60 = vadd.f32 %v13096_v15, %v3614_v56  ;;  %v13330_v2 = vpop.f32.mrb[224].mxu0  ;;  %8689 = vmatmul.mubr.f32.gmra.mrb[184].mxu1 %v10338_v35 }
 0x4fb   : > { %v8080_v1 = vpop.f32.mrb[79].mxu1  ;;  %v8331_v16 = vpop.f32.mrb[225].mxu0  ;;  %8489 = vmatmul.mubr.f32.gmra.mrb[74].mxu0 %v10340_v42  ;;  %8691 = vmatprep.mubr.msk.f32.mxu1 %vm10890_vm0, %v10891_v33 }
 0x4fc   : > { %10351 = vtanh.f32 %v3615_v60  ;;  %8491 = vmatprep.mubr.msk.f32.mxu0 %vm10890_vm0, %v10891_v33  ;;  %v10342_v54 = vpop.eup %10341 }
 0x4fd   : > { %v3619_v51 = vpop.f32.mrb[80].mxu1  ;;  %10353 = vtanh.f32 %v4116_v55 }
 0x4fe   : > { %v10344_v12 = vpop.eup %10343  ;;  %v3620_v19 = vadd.f32 %v13096_v15, %v3619_v51  ;;  %v13339_v30 = vpop.f32.mrb[226].mxu0  ;;  %8692 = vmatmul.mubr.f32.gmra.mrb[186].mxu1 %v10342_v54 }
 0x4ff   : > { %v8083_v11 = vpop.f32.mrb[81].mxu1  ;;  %v8334_v34 = vpop.f32.mrb[227].mxu0  ;;  %8492 = vmatmul.mubr.f32.gmra.mrb[76].mxu0 %v10344_v12  ;;  %8694 = vmatprep.mubr.msk.f32.mxu1 %vm10890_vm0, %v10891_v33 }
 0x500   : > { %10355 = vtanh.f32 %v3620_v19  ;;  %8494 = vmatprep.mubr.msk.f32.mxu0 %vm10890_vm0, %v10891_v33  ;;  %v10346_v21 = vpop.eup %10345 }
 0x501   : > { %v3624_v26 = vpop.f32.mrb[82].mxu1  ;;  %10357 = vtanh.f32 %v4121_v27 }
 0x502   : > { %v10348_v36 = vpop.eup %10347  ;;  %v3625_v45 = vadd.f32 %v13096_v15, %v3624_v26  ;;  %v13348_v43 = vpop.f32.mrb[228].mxu0  ;;  %8695 = vmatmul.mubr.f32.gmra.mrb[188].mxu1 %v10346_v21 }
 0x503   : > { %v8086_v9 = vpop.f32.mrb[83].mxu1  ;;  %v8337_v22 = vpop.f32.mrb[229].mxu0  ;;  %8495 = vmatmul.mubr.f32.gmra.mrb[78].mxu0 %v10348_v36  ;;  %8697 = vmatprep.mubr.msk.f32.mxu1 %vm10890_vm0, %v10891_v33 }
 0x504   : > { %10359 = vtanh.f32 %v3625_v45  ;;  %8497 = vmatprep.mubr.msk.f32.mxu0 %vm10890_vm0, %v10891_v33  ;;  %v10350_v37 = vpop.eup %10349 }
 0x505   : > { %v3629_v13 = vpop.f32.mrb[84].mxu1  ;;  %10361 = vtanh.f32 %v4126_v7 }
 0x506   : > { %v10352_v61 = vpop.eup %10351  ;;  %v3630_v8 = vadd.f32 %v13096_v15, %v3629_v13  ;;  %v13357_v24 = vpop.f32.mrb[230].mxu0  ;;  %8698 = vmatmul.mubr.f32.gmra.mrb[190].mxu1 %v10350_v37 }
 0x507   : > { %v8089_v3 = vpop.f32.mrb[85].mxu1  ;;  %v8340_v23 = vpop.f32.mrb[231].mxu0  ;;  %8498 = vmatmul.mubr.f32.gmra.mrb[80].mxu0 %v10352_v61  ;;  %8700 = vmatprep.mubr.msk.f32.mxu1 %vm10890_vm0, %v10891_v33 }
 0x508   : > { %10363 = vtanh.f32 %v3630_v8  ;;  %8500 = vmatprep.mubr.msk.f32.mxu0 %vm10890_vm0, %v10891_v33  ;;  %v10354_v57 = vpop.eup %10353 }
 0x509   : > { %v3634_v41 = vpop.f32.mrb[86].mxu1  ;;  %10365 = vtanh.f32 %v4131_v28 }
 0x50a   : > { %v10356_v58 = vpop.eup %10355  ;;  %v3635_v47 = vadd.f32 %v13096_v15, %v3634_v41  ;;  %v13366_v32 = vpop.f32.mrb[232].mxu0  ;;  %8701 = vmatmul.mubr.f32.gmra.mrb[192].mxu1 %v10354_v57 }
 0x50b   : > { %v8092_v29 = vpop.f32.mrb[87].mxu1  ;;  %v8343_v14 = vpop.f32.mrb[233].mxu0  ;;  %8501 = vmatmul.mubr.f32.gmra.mrb[82].mxu0 %v10356_v58  ;;  %8703 = vmatprep.mubr.msk.f32.mxu1 %vm10890_vm0, %v10891_v33 }
 0x50c   : > { %10367 = vtanh.f32 %v3635_v47  ;;  %8503 = vmatprep.mubr.msk.f32.mxu0 %vm10890_vm0, %v10891_v33  ;;  %v10358_v63 = vpop.eup %10357 }
 0x50d   : > { %v3639_v31 = vpop.f32.mrb[88].mxu1  ;;  %10369 = vtanh.f32 %v4136_v17 }
 0x50e   : > { %v10360_v53 = vpop.eup %10359  ;;  %v3640_v48 = vadd.f32 %v13096_v15, %v3639_v31  ;;  %v13375_v44 = vpop.f32.mrb[234].mxu0  ;;  %8704 = vmatmul.mubr.f32.gmra.mrb[194].mxu1 %v10358_v63 }
 0x50f   : > { %v8095_v5 = vpop.f32.mrb[89].mxu1  ;;  %v8346_v18 = vpop.f32.mrb[235].mxu0  ;;  %8504 = vmatmul.mubr.f32.gmra.mrb[84].mxu0 %v10360_v53  ;;  %8706 = vmatprep.mubr.msk.f32.mxu1 %vm10890_vm0, %v10891_v33 }
 0x510   : > { %10371 = vtanh.f32 %v3640_v48  ;;  %8506 = vmatprep.mubr.msk.f32.mxu0 %vm10890_vm0, %v10891_v33  ;;  %v10362_v52 = vpop.eup %10361 }
 0x511   : > { %v3644_v59 = vpop.f32.mrb[90].mxu1  ;;  %10373 = vtanh.f32 %v4141_v0 }
 0x512   : > { %v10364_v35 = vpop.eup %10363  ;;  %v3645_v56 = vadd.f32 %v13096_v15, %v3644_v59  ;;  %v13389_v42 = vpop.f32.mrb[236].mxu0  ;;  %8707 = vmatmul.mubr.f32.gmra.mrb[196].mxu1 %v10362_v52  ;;  %v13445_v52 = vld [vmem:[%s14815_s3 + $0x2] ss:$0 sm:$0xff] }
 0x513   : > { %v8098_v60 = vpop.f32.mrb[91].mxu1  ;;  %v8349_v1 = vpop.f32.mrb[237].mxu0  ;;  %8507 = vmatmul.mubr.f32.gmra.mrb[86].mxu0 %v10364_v35  ;;  %8709 = vmatprep.mubr.msk.f32.mxu1 %vm10890_vm0, %v10891_v33 }
 0x514   : > { %10375 = vtanh.f32 %v3645_v56  ;;  %8509 = vmatprep.mubr.msk.f32.mxu0 %vm10890_vm0, %v10891_v33  ;;  %v10366_v55 = vpop.eup %10365  ;;  %v4176_v56 = vadd.f32 %v13380_v38, %v13294_v39  ;;  %v4181_v39 = vadd.f32 %v13380_v38, %v13303_v62  ;;  %v4186_v62 = vadd.f32 %v13380_v38, %v13312_v50 }
 0x515   : > { %v3649_v16 = vpop.f32.mrb[92].mxu1  ;;  %10377 = vtanh.f32 %v4146_v10  ;;  %v4191_v50 = vadd.f32 %v13380_v38, %v13321_v4  ;;  %v4196_v4 = vadd.f32 %v13380_v38, %v13330_v2  ;;  %v4201_v2 = vadd.f32 %v13380_v38, %v13339_v30 }
 0x516   : > { %v10368_v54 = vpop.eup %10367  ;;  %v3650_v51 = vadd.f32 %v13096_v15, %v3649_v16  ;;  %v13398_v12 = vpop.f32.mrb[238].mxu0  ;;  %8710 = vmatmul.mubr.f32.gmra.mrb[198].mxu1 %v10366_v55  ;;  %v4206_v30 = vadd.f32 %v13380_v38, %v13348_v43  ;;  %v4211_v43 = vadd.f32 %v13380_v38, %v13357_v24  ;;  %v4216_v24 = vadd.f32 %v13380_v38, %v13366_v32 }
 0x517   : > { %v8101_v19 = vpop.f32.mrb[93].mxu1  ;;  %v8352_v11 = vpop.f32.mrb[239].mxu0  ;;  %8510 = vmatmul.mubr.f32.gmra.mrb[88].mxu0 %v10368_v54  ;;  %8712 = vmatprep.mubr.msk.f32.mxu1 %vm10890_vm0, %v10891_v33  ;;  %v4221_v32 = vadd.f32 %v13380_v38, %v13375_v44  ;;  %v4226_v44 = vadd.f32 %v13380_v38, %v13389_v42  ;;  %v4231_v42 = vadd.f32 %v13380_v38, %v13398_v12 }
 0x518   : > { %10379 = vtanh.f32 %v3650_v51  ;;  %8512 = vmatprep.mubr.msk.f32.mxu0 %vm10890_vm0, %v10891_v33  ;;  %v10370_v27 = vpop.eup %10369 }
 0x519   : > { %v3654_v34 = vpop.f32.mrb[94].mxu1  ;;  %10381 = vtanh.f32 %v4151_v46 }
 0x51a   : > { %v10372_v21 = vpop.eup %10371  ;;  %v3655_v26 = vadd.f32 %v13096_v15, %v3654_v34  ;;  %v13407_v36 = vpop.f32.mrb[240].mxu0  ;;  %8713 = vmatmul.mubr.f32.gmra.mrb[200].mxu1 %v10370_v27 }
 0x51b   : > { %v8104_v45 = vpop.f32.mrb[95].mxu1  ;;  %v8355_v9 = vpop.f32.mrb[241].mxu0  ;;  %8513 = vmatmul.mubr.f32.gmra.mrb[90].mxu0 %v10372_v21  ;;  %8715 = vmatprep.mubr.msk.f32.mxu1 %vm10890_vm0, %v10891_v33  ;;  %v4236_v12 = vadd.f32 %v13380_v38, %v13407_v36 }
 0x51c   : > { %10383 = vtanh.f32 %v3655_v26  ;;  %8515 = vmatprep.mubr.msk.f32.mxu0 %vm10890_vm0, %v10891_v33  ;;  %v10374_v7 = vpop.eup %10373 }
 0x51d   : > { %v3659_v22 = vpop.f32.mrb[96].mxu1  ;;  %10385 = vtanh.f32 %v4156_v49 }
 0x51e   : > { %v10376_v37 = vpop.eup %10375  ;;  %v3660_v13 = vadd.f32 %v13096_v15, %v3659_v22  ;;  %v8107_v61 = vpop.f32.mrb[97].mxu1  ;;  %8716 = vmatmul.mubr.f32.gmra.mrb[202].mxu1 %v10374_v7 }
 0x51f   : > { %v13416_v8 = vpop.f32.mrb[242].mxu0  ;;  %8516 = vmatmul.mubr.f32.gmra.mrb[92].mxu0 %v10376_v37  ;;  %8718 = vmatprep.mubr.msk.f32.mxu1 %vm10890_vm0, %v10891_v33  ;;  %v10378_v28 = vpop.eup %10377 }
 0x520   : > { %v8358_v3 = vpop.f32.mrb[243].mxu0  ;;  %10387 = vtanh.f32 %v3660_v13  ;;  %8518 = vmatprep.mubr.msk.f32.mxu0 %vm10890_vm0, %v10891_v33  ;;  %v4241_v36 = vadd.f32 %v13380_v38, %v13416_v8 }
 0x521   : > { %v3664_v23 = vpop.f32.mrb[98].mxu1  ;;  %10389 = vtanh.f32 %v4161_v40 }
 0x522   : > { %v10380_v57 = vpop.eup %10379  ;;  %v3665_v41 = vadd.f32 %v13096_v15, %v3664_v23  ;;  %v8110_v58 = vpop.f32.mrb[99].mxu1  ;;  %8719 = vmatmul.mubr.f32.gmra.mrb[204].mxu1 %v10378_v28 }
 0x523   : > { %v13425_v47 = vpop.f32.mrb[244].mxu0  ;;  %8519 = vmatmul.mubr.f32.gmra.mrb[94].mxu0 %v10380_v57  ;;  %8721 = vmatprep.mubr.msk.f32.mxu1 %vm10890_vm0, %v10891_v33  ;;  %v10382_v17 = vpop.eup %10381 }
 0x524   : > { %v8361_v29 = vpop.f32.mrb[245].mxu0  ;;  %10391 = vtanh.f32 %v3665_v41  ;;  %8521 = vmatprep.mubr.msk.f32.mxu0 %vm10890_vm0, %v10891_v33 }
 0x525   : > { %v3669_v14 = vpop.f32.mrb[100].mxu1  ;;  %10393 = vtanh.f32 %v4166_v6 }
 0x526   : > { %v10384_v63 = vpop.eup %10383  ;;  %v3670_v31 = vadd.f32 %v13096_v15, %v3669_v14  ;;  %v8113_v53 = vpop.f32.mrb[101].mxu1  ;;  %8722 = vmatmul.mubr.f32.gmra.mrb[206].mxu1 %v10382_v17 }
 0x527   : > { %v13434_v48 = vpop.f32.mrb[246].mxu0  ;;  %8522 = vmatmul.mubr.f32.gmra.mrb[96].mxu0 %v10384_v63  ;;  %8724 = vmatprep.mubr.msk.f32.mxu1 %vm10890_vm0, %v10891_v33  ;;  %v10386_v0 = vpop.eup %10385 }
 0x528   : > { %v8364_v5 = vpop.f32.mrb[247].mxu0  ;;  %10395 = vtanh.f32 %v3670_v31  ;;  %8524 = vmatprep.mubr.msk.f32.mxu0 %vm10890_vm0, %v10891_v33 }
 0x529   : > { %v3674_v18 = vpop.f32.mrb[102].mxu1  ;;  %10397 = vtanh.f32 %v4171_v20 }
 0x52a   : > { %v10388_v15 = vpop.eup %10387  ;;  %v3675_v59 = vadd.f32 %v13445_v52, %v3674_v18  ;;  %v8116_v25 = vpop.f32.mrb[103].mxu1  ;;  %8725 = vmatmul.mubr.f32.gmra.mrb[208].mxu1 %v10386_v0 }
 0x52b   : > { %v13448_v35 = vpop.f32.mrb[248].mxu0  ;;  %8525 = vmatmul.mubr.f32.gmra.mrb[98].mxu0 %v10388_v15  ;;  %8727 = vmatprep.mubr.msk.f32.mxu1 %vm10890_vm0, %v10891_v33  ;;  %v10390_v10 = vpop.eup %10389 }
 0x52c   : > { %v8367_v60 = vpop.f32.mrb[249].mxu0  ;;  %10399 = vtanh.f32 %v3675_v59  ;;  %8527 = vmatprep.mubr.msk.f32.mxu0 %vm10890_vm0, %v10891_v33 }
 0x52d   : > { %v3679_v1 = vpop.f32.mrb[104].mxu1  ;;  %10401 = vtanh.f32 %v4176_v56 }
 0x52e   : > { %v10392_v55 = vpop.eup %10391  ;;  %v3680_v16 = vadd.f32 %v13445_v52, %v3679_v1  ;;  %v8119_v54 = vpop.f32.mrb[105].mxu1  ;;  %8728 = vmatmul.mubr.f32.gmra.mrb[210].mxu1 %v10390_v10 }
 0x52f   : > { %v13457_v51 = vpop.f32.mrb[250].mxu0  ;;  %8528 = vmatmul.mubr.f32.gmra.mrb[100].mxu0 %v10392_v55  ;;  %8730 = vmatprep.mubr.msk.f32.mxu1 %vm10890_vm0, %v10891_v33  ;;  %v10394_v46 = vpop.eup %10393 }
 0x530   : > { %v8370_v19 = vpop.f32.mrb[251].mxu0  ;;  %10403 = vtanh.f32 %v3680_v16  ;;  %8530 = vmatprep.mubr.msk.f32.mxu0 %vm10890_vm0, %v10891_v33 }
 0x531   : > { %v3684_v11 = vpop.f32.mrb[106].mxu1  ;;  %10405 = vtanh.f32 %v4181_v39 }
 0x532   : > { %v10396_v27 = vpop.eup %10395  ;;  %v3685_v34 = vadd.f32 %v13445_v52, %v3684_v11  ;;  %v8122_v21 = vpop.f32.mrb[107].mxu1  ;;  %8731 = vmatmul.mubr.f32.gmra.mrb[212].mxu1 %v10394_v46 }
 0x533   : > { %v13466_v26 = vpop.f32.mrb[252].mxu0  ;;  %8531 = vmatmul.mubr.f32.gmra.mrb[102].mxu0 %v10396_v27  ;;  %8733 = vmatprep.mubr.msk.f32.mxu1 %vm10890_vm0, %v10891_v33  ;;  %v10398_v49 = vpop.eup %10397 }
 0x534   : > { %v8373_v45 = vpop.f32.mrb[253].mxu0  ;;  %10407 = vtanh.f32 %v3685_v34  ;;  %8533 = vmatprep.mubr.msk.f32.mxu0 %vm10890_vm0, %v10891_v33 }
 0x535   : > { %v3689_v9 = vpop.f32.mrb[108].mxu1  ;;  %10409 = vtanh.f32 %v4186_v62 }
 0x536   : > { %v10400_v7 = vpop.eup %10399  ;;  %v3690_v22 = vadd.f32 %v13445_v52, %v3689_v9  ;;  %v8125_v37 = vpop.f32.mrb[109].mxu1  ;;  %8734 = vmatmul.mubr.f32.gmra.mrb[214].mxu1 %v10398_v49 }
 0x537   : > { %v13475_v13 = vpop.f32.mrb[254].mxu0  ;;  %8534 = vmatmul.mubr.f32.gmra.mrb[104].mxu0 %v10400_v7  ;;  %8736 = vmatprep.mubr.msk.f32.mxu1 %vm10890_vm0, %v10891_v33  ;;  %v10402_v40 = vpop.eup %10401 }
 0x538   : > { %v8376_v61 = vpop.f32.mrb[255].mxu0  ;;  %10411 = vtanh.f32 %v3690_v22  ;;  %8536 = vmatprep.mubr.msk.f32.mxu0 %vm10890_vm0, %v10891_v33 }
 0x539   : > { %v3694_v3 = vpop.f32.mrb[110].mxu1  ;;  %10413 = vtanh.f32 %v4191_v50 }
 0x53a   : > { %v10404_v28 = vpop.eup %10403  ;;  %v3695_v23 = vadd.f32 %v13445_v52, %v3694_v3  ;;  %v8128_v57 = vpop.f32.mrb[111].mxu1  ;;  %8737 = vmatmul.mubr.f32.gmra.mrb[216].mxu1 %v10402_v40 }
 0x53b   : > { %v13484_v41 = vpop.f32.mrb[0].mxu0  ;;  %8537 = vmatmul.mubr.f32.gmra.mrb[106].mxu0 %v10404_v28  ;;  %8739 = vmatprep.mubr.msk.f32.mxu1 %vm10890_vm0, %v10891_v33  ;;  %v10406_v6 = vpop.eup %10405 }
 0x53c   : > { %v8379_v58 = vpop.f32.mrb[1].mxu0  ;;  %10415 = vtanh.f32 %v3695_v23  ;;  %8539 = vmatprep.mubr.msk.f32.mxu0 %vm10890_vm0, %v10891_v33 }
 0x53d   : > { %v3699_v29 = vpop.f32.mrb[112].mxu1  ;;  %10417 = vtanh.f32 %v4196_v4 }
 0x53e   : > { %v10408_v17 = vpop.eup %10407  ;;  %v3700_v14 = vadd.f32 %v13445_v52, %v3699_v29  ;;  %v8131_v63 = vpop.f32.mrb[113].mxu1  ;;  %8740 = vmatmul.mubr.f32.gmra.mrb[218].mxu1 %v10406_v6 }
 0x53f   : > { %v13493_v31 = vpop.f32.mrb[2].mxu0  ;;  %8540 = vmatmul.mubr.f32.gmra.mrb[108].mxu0 %v10408_v17  ;;  %8742 = vmatprep.mubr.msk.f32.mxu1 %vm10890_vm0, %v10891_v33  ;;  %v10410_v20 = vpop.eup %10409 }
 0x540   : > { %v8382_v53 = vpop.f32.mrb[3].mxu0  ;;  %10419 = vtanh.f32 %v3700_v14  ;;  %8542 = vmatprep.mubr.msk.f32.mxu0 %vm10890_vm0, %v10891_v33 }
 0x541   : > { %v3704_v5 = vpop.f32.mrb[114].mxu1  ;;  %10421 = vtanh.f32 %v4201_v2 }
 0x542   : > { %v10412_v0 = vpop.eup %10411  ;;  %v3705_v18 = vadd.f32 %v13445_v52, %v3704_v5  ;;  %v8134_v15 = vpop.f32.mrb[115].mxu1  ;;  %8743 = vmatmul.mubr.f32.gmra.mrb[220].mxu1 %v10410_v20 }
 0x543   : > { %v13502_v59 = vpop.f32.mrb[4].mxu0  ;;  %8543 = vmatmul.mubr.f32.gmra.mrb[110].mxu0 %v10412_v0  ;;  %8745 = vmatprep.mubr.msk.f32.mxu1 %vm10890_vm0, %v10891_v33  ;;  %v10414_v56 = vpop.eup %10413 }
 0x544   : > { %v8385_v25 = vpop.f32.mrb[5].mxu0  ;;  %10423 = vtanh.f32 %v3705_v18  ;;  %8545 = vmatprep.mubr.msk.f32.mxu0 %vm10890_vm0, %v10891_v33 }
 0x545   : > { %v3709_v60 = vpop.f32.mrb[116].mxu1  ;;  %10425 = vtanh.f32 %v4206_v30 }
 0x546   : > { %v10416_v10 = vpop.eup %10415  ;;  %v3710_v1 = vadd.f32 %v13445_v52, %v3709_v60  ;;  %v8137_v55 = vpop.f32.mrb[117].mxu1  ;;  %8746 = vmatmul.mubr.f32.gmra.mrb[222].mxu1 %v10414_v56 }
 0x547   : > { %v13511_v16 = vpop.f32.mrb[6].mxu0  ;;  %8546 = vmatmul.mubr.f32.gmra.mrb[112].mxu0 %v10416_v10  ;;  %8748 = vmatprep.mubr.msk.f32.mxu1 %vm10890_vm0, %v10891_v33  ;;  %v10418_v39 = vpop.eup %10417 }
 0x548   : > { %v8388_v54 = vpop.f32.mrb[7].mxu0  ;;  %10427 = vtanh.f32 %v3710_v1  ;;  %8548 = vmatprep.mubr.msk.f32.mxu0 %vm10890_vm0, %v10891_v33 }
 0x549   : > { %v3714_v19 = vpop.f32.mrb[118].mxu1  ;;  %10429 = vtanh.f32 %v4211_v43  ;;  %v13572_v43 = vld [vmem:[%s14815_s3 + $0x4] ss:$0 sm:$0xff] }
 0x54a   : > { %v10420_v46 = vpop.eup %10419  ;;  %v3715_v11 = vadd.f32 %v13445_v52, %v3714_v19  ;;  %v8140_v27 = vpop.f32.mrb[119].mxu1  ;;  %8749 = vmatmul.mubr.f32.gmra.mrb[224].mxu1 %v10418_v39 }
 0x54b   : > { %v13520_v34 = vpop.f32.mrb[8].mxu0  ;;  %8549 = vmatmul.mubr.f32.gmra.mrb[114].mxu0 %v10420_v46  ;;  %8751 = vmatprep.mubr.msk.f32.mxu1 %vm10890_vm0, %v10891_v33  ;;  %v10422_v62 = vpop.eup %10421 }
 0x54c   : > { %v8391_v21 = vpop.f32.mrb[9].mxu0  ;;  %10431 = vtanh.f32 %v3715_v11  ;;  %8551 = vmatprep.mubr.msk.f32.mxu0 %vm10890_vm0, %v10891_v33  ;;  %v4246_v11 = vadd.f32 %v13380_v38, %v13425_v47  ;;  %v4251_v47 = vadd.f32 %v13380_v38, %v13434_v48  ;;  %v4256_v48 = vadd.f32 %v13380_v38, %v13448_v35 }
 0x54d   : > { %v3719_v45 = vpop.f32.mrb[120].mxu1  ;;  %10433 = vtanh.f32 %v4216_v24  ;;  %v4261_v35 = vadd.f32 %v13380_v38, %v13457_v51  ;;  %v4266_v51 = vadd.f32 %v13380_v38, %v13466_v26  ;;  %v4271_v26 = vadd.f32 %v13380_v38, %v13475_v13 }
 0x54e   : > { %v10424_v49 = vpop.eup %10423  ;;  %v3720_v9 = vadd.f32 %v13445_v52, %v3719_v45  ;;  %v8143_v7 = vpop.f32.mrb[121].mxu1  ;;  %8752 = vmatmul.mubr.f32.gmra.mrb[226].mxu1 %v10422_v62  ;;  %v4276_v13 = vadd.f32 %v13380_v38, %v13484_v41  ;;  %v4281_v41 = vadd.f32 %v13380_v38, %v13493_v31  ;;  %v4286_v31 = vadd.f32 %v13380_v38, %v13502_v59 }
 0x54f   : > { %v13529_v22 = vpop.f32.mrb[10].mxu0  ;;  %8552 = vmatmul.mubr.f32.gmra.mrb[116].mxu0 %v10424_v49  ;;  %8754 = vmatprep.mubr.msk.f32.mxu1 %vm10890_vm0, %v10891_v33  ;;  %v10426_v50 = vpop.eup %10425  ;;  %v4291_v59 = vadd.f32 %v13380_v38, %v13511_v16  ;;  %v4296_v16 = vadd.f32 %v13380_v38, %v13520_v34 }
 0x550   : > { %v8394_v37 = vpop.f32.mrb[11].mxu0  ;;  %10435 = vtanh.f32 %v3720_v9  ;;  %8554 = vmatprep.mubr.msk.f32.mxu0 %vm10890_vm0, %v10891_v33  ;;  %v4301_v34 = vadd.f32 %v13380_v38, %v13529_v22 }
 0x551   : > { %v3724_v61 = vpop.f32.mrb[122].mxu1  ;;  %10437 = vtanh.f32 %v4221_v32 }
 0x552   : > { %v10428_v40 = vpop.eup %10427  ;;  %v3725_v3 = vadd.f32 %v13445_v52, %v3724_v61  ;;  %v8146_v28 = vpop.f32.mrb[123].mxu1  ;;  %8755 = vmatmul.mubr.f32.gmra.mrb[228].mxu1 %v10426_v50 }
 0x553   : > { %v13538_v23 = vpop.f32.mrb[12].mxu0  ;;  %8555 = vmatmul.mubr.f32.gmra.mrb[118].mxu0 %v10428_v40  ;;  %8757 = vmatprep.mubr.msk.f32.mxu1 %vm10890_vm0, %v10891_v33  ;;  %v10430_v4 = vpop.eup %10429 }
 0x554   : > { %v8397_v57 = vpop.f32.mrb[13].mxu0  ;;  %10439 = vtanh.f32 %v3725_v3  ;;  %8557 = vmatprep.mubr.msk.f32.mxu0 %vm10890_vm0, %v10891_v33  ;;  %v4306_v22 = vadd.f32 %v13380_v38, %v13538_v23 }
 0x555   : > { %v3729_v58 = vpop.f32.mrb[124].mxu1  ;;  %10441 = vtanh.f32 %v4226_v44 }
 0x556   : > { %v10432_v6 = vpop.eup %10431  ;;  %v3730_v29 = vadd.f32 %v13445_v52, %v3729_v58  ;;  %v8149_v17 = vpop.f32.mrb[125].mxu1  ;;  %8758 = vmatmul.mubr.f32.gmra.mrb[230].mxu1 %v10430_v4 }
 0x557   : > { %v13547_v14 = vpop.f32.mrb[14].mxu0  ;;  %8558 = vmatmul.mubr.f32.gmra.mrb[120].mxu0 %v10432_v6  ;;  %8760 = vmatprep.mubr.msk.f32.mxu1 %vm10890_vm0, %v10891_v33  ;;  %v10434_v2 = vpop.eup %10433 }
 0x558   : > { %v8400_v63 = vpop.f32.mrb[15].mxu0  ;;  %10443 = vtanh.f32 %v3730_v29  ;;  %8560 = vmatprep.mubr.msk.f32.mxu0 %vm10890_vm0, %v10891_v33  ;;  %v4311_v23 = vadd.f32 %v13380_v38, %v13547_v14 }
 0x559   : > { %v3734_v53 = vpop.f32.mrb[126].mxu1  ;;  %10445 = vtanh.f32 %v4231_v42 }
 0x55a   : > { %v10436_v20 = vpop.eup %10435  ;;  %v3735_v5 = vadd.f32 %v13445_v52, %v3734_v53  ;;  %v8152_v0 = vpop.f32.mrb[127].mxu1  ;;  %8761 = vmatmul.mubr.f32.gmra.mrb[232].mxu1 %v10434_v2 }
 0x55b   : > { %v13556_v18 = vpop.f32.mrb[16].mxu0  ;;  %8561 = vmatmul.mubr.f32.gmra.mrb[122].mxu0 %v10436_v20  ;;  %8763 = vmatprep.mubr.msk.f32.mxu1 %vm10890_vm0, %v10891_v33  ;;  %v10438_v30 = vpop.eup %10437 }
 0x55c   : > { %v8403_v15 = vpop.f32.mrb[17].mxu0  ;;  %10447 = vtanh.f32 %v3735_v5  ;;  %8563 = vmatprep.mubr.msk.f32.mxu0 %vm10890_vm0, %v10891_v33  ;;  %v4316_v14 = vadd.f32 %v13380_v38, %v13556_v18 }
 0x55d   : > { %v3739_v25 = vpop.f32.mrb[128].mxu1  ;;  %10449 = vtanh.f32 %v4236_v12 }
 0x55e   : > { %v10440_v56 = vpop.eup %10439  ;;  %v3740_v60 = vadd.f32 %v13445_v52, %v3739_v25  ;;  %v8155_v10 = vpop.f32.mrb[129].mxu1  ;;  %8764 = vmatmul.mubr.f32.gmra.mrb[234].mxu1 %v10438_v30 }
 0x55f   : > { %v13565_v1 = vpop.f32.mrb[18].mxu0  ;;  %8564 = vmatmul.mubr.f32.gmra.mrb[124].mxu0 %v10440_v56  ;;  %8766 = vmatprep.mubr.msk.f32.mxu1 %vm10890_vm0, %v10891_v33  ;;  %v10442_v52 = vpop.eup %10441 }
 0x560   : > { %v8406_v55 = vpop.f32.mrb[19].mxu0  ;;  %10451 = vtanh.f32 %v3740_v60  ;;  %8566 = vmatprep.mubr.msk.f32.mxu0 %vm10890_vm0, %v10891_v33  ;;  %v4321_v18 = vadd.f32 %v13380_v38, %v13565_v1  ;;  %v13728_v38 = vld [vmem:[%s14815_s3 + $0x3] ss:$0 sm:$0xff] }
 0x561   : > { %v4821_v54 = vpop.f32.mrb[130].mxu1  ;;  %10453 = vtanh.f32 %v4241_v36 }
 0x562   : > { %v10444_v39 = vpop.eup %10443  ;;  %v4822_v19 = vadd.f32 %v13572_v43, %v4821_v54  ;;  %v13579_v8 = vpop.f32.mrb[20].mxu0  ;;  %8767 = vmatmul.mubr.f32.gmra.mrb[236].mxu1 %v10442_v52 }
 0x563   : > { %v8609_v46 = vpop.f32.mrb[131].mxu1  ;;  %v8409_v27 = vpop.f32.mrb[21].mxu0  ;;  %8567 = vmatmul.mubr.f32.gmra.mrb[126].mxu0 %v10444_v39  ;;  %8769 = vmatprep.mubr.msk.f32.mxu1 %vm10890_vm0, %v10891_v33  ;;  %v4326_v1 = vadd.f32 %v13728_v38, %v13579_v8 }
 0x564   : > { %10455 = vtanh.f32 %v4822_v19  ;;  %8569 = vmatprep.mubr.msk.f32.mxu0 %vm10890_vm0, %v10891_v33  ;;  %v10446_v24 = vpop.eup %10445 }
 0x565   : > { %v4826_v21 = vpop.f32.mrb[132].mxu1  ;;  %10457 = vtanh.f32 %v4246_v11 }
 0x566   : > { %v10448_v62 = vpop.eup %10447  ;;  %v4827_v45 = vadd.f32 %v13572_v43, %v4826_v21  ;;  %v13588_v49 = vpop.f32.mrb[22].mxu0  ;;  %8770 = vmatmul.mubr.f32.gmra.mrb[238].mxu1 %v10446_v24 }
 0x567   : > { %v8612_v9 = vpop.f32.mrb[133].mxu1  ;;  %v8412_v7 = vpop.f32.mrb[23].mxu0  ;;  %8570 = vmatmul.mubr.f32.gmra.mrb[128].mxu0 %v10448_v62  ;;  %8772 = vmatprep.mubr.msk.f32.mxu1 %vm10890_vm0, %v10891_v33  ;;  %v4331_v8 = vadd.f32 %v13728_v38, %v13588_v49 }
 0x568   : > { %10459 = vtanh.f32 %v4827_v45  ;;  %8572 = vmatprep.mubr.msk.f32.mxu0 %vm10890_vm0, %v10891_v33  ;;  %v10450_v32 = vpop.eup %10449 }
 0x569   : > { %v4831_v37 = vpop.f32.mrb[134].mxu1  ;;  %10461 = vtanh.f32 %v4251_v47 }
 0x56a   : > { %v10452_v50 = vpop.eup %10451  ;;  %v4832_v61 = vadd.f32 %v13572_v43, %v4831_v37  ;;  %v13597_v40 = vpop.f32.mrb[24].mxu0  ;;  %8773 = vmatmul.mubr.f32.gmra.mrb[240].mxu1 %v10450_v32 }
 0x56b   : > { %v8615_v3 = vpop.f32.mrb[135].mxu1  ;;  %v8415_v28 = vpop.f32.mrb[25].mxu0  ;;  %8573 = vmatmul.mubr.f32.gmra.mrb[130].mxu0 %v10452_v50  ;;  %8775 = vmatprep.mubr.msk.f32.mxu1 %vm10890_vm0, %v10891_v33  ;;  %v4336_v49 = vadd.f32 %v13728_v38, %v13597_v40 }
 0x56c   : > { %10463 = vtanh.f32 %v4832_v61  ;;  %9026 = vmatprep.mubr.msk.f32.mxu0 %vm10890_vm0, %v10891_v33  ;;  %v10454_v44 = vpop.eup %10453 }
 0x56d   : > { %v4836_v57 = vpop.f32.mrb[136].mxu1  ;;  %10465 = vtanh.f32 %v4256_v48 }
 0x56e   : > { %v10456_v4 = vpop.eup %10455  ;;  %v4837_v58 = vadd.f32 %v13572_v43, %v4836_v57  ;;  %v13606_v6 = vpop.f32.mrb[26].mxu0  ;;  %8776 = vmatmul.mubr.f32.gmra.mrb[242].mxu1 %v10454_v44 }
 0x56f   : > { %v8618_v29 = vpop.f32.mrb[137].mxu1  ;;  %v8418_v17 = vpop.f32.mrb[27].mxu0  ;;  %9027 = vmatmul.mubr.f32.vlgmr.msra.gmra.mrb[132].mxu0 %v10456_v4  ;;  %8778 = vmatprep.mubr.msk.f32.mxu1 %vm10890_vm0, %v10891_v33  ;;  %v4341_v40 = vadd.f32 %v13728_v38, %v13606_v6 }
 0x570   : > { %10467 = vtanh.f32 %v4837_v58  ;;  %9029 = vmatprep.mubr.msk.f32.mxu0 %vm10890_vm0, %v10891_v33  ;;  %v10458_v42 = vpop.eup %10457 }
 0x571   : > { %v4841_v63 = vpop.f32.mrb[138].mxu1  ;;  %10469 = vtanh.f32 %v4261_v35 }
 0x572   : > { %v10460_v2 = vpop.eup %10459  ;;  %v4842_v53 = vadd.f32 %v13572_v43, %v4841_v63  ;;  %v13615_v20 = vpop.f32.mrb[28].mxu0  ;;  %8779 = vmatmul.mubr.f32.gmra.mrb[244].mxu1 %v10458_v42 }
 0x573   : > { %v8621_v5 = vpop.f32.mrb[139].mxu1  ;;  %v8421_v0 = vpop.f32.mrb[29].mxu0  ;;  %9030 = vmatmul.mubr.f32.gmra.mrb[134].mxu0 %v10460_v2  ;;  %8781 = vmatprep.mubr.msk.f32.mxu1 %vm10890_vm0, %v10891_v33  ;;  %v4346_v6 = vadd.f32 %v13728_v38, %v13615_v20 }
 0x574   : > { %10471 = vtanh.f32 %v4842_v53  ;;  %9032 = vmatprep.mubr.msk.f32.mxu0 %vm10890_vm0, %v10891_v33  ;;  %v10462_v12 = vpop.eup %10461 }
 0x575   : > { %v4846_v15 = vpop.f32.mrb[140].mxu1  ;;  %10473 = vtanh.f32 %v4266_v51 }
 0x576   : > { %v10464_v30 = vpop.eup %10463  ;;  %v4847_v25 = vadd.f32 %v13572_v43, %v4846_v15  ;;  %v13624_v56 = vpop.f32.mrb[30].mxu0  ;;  %8782 = vmatmul.mubr.f32.gmra.mrb[246].mxu1 %v10462_v12 }
 0x577   : > { %v8624_v60 = vpop.f32.mrb[141].mxu1  ;;  %v8424_v10 = vpop.f32.mrb[31].mxu0  ;;  %9033 = vmatmul.mubr.f32.gmra.mrb[136].mxu0 %v10464_v30  ;;  %8784 = vmatprep.mubr.msk.f32.mxu1 %vm10890_vm0, %v10891_v33  ;;  %v4351_v20 = vadd.f32 %v13728_v38, %v13624_v56 }
 0x578   : > { %10475 = vtanh.f32 %v4847_v25  ;;  %9035 = vmatprep.mubr.msk.f32.mxu0 %vm10890_vm0, %v10891_v33  ;;  %v10466_v36 = vpop.eup %10465 }
 0x579   : > { %v4851_v55 = vpop.f32.mrb[142].mxu1  ;;  %10477 = vtanh.f32 %v4271_v26 }
 0x57a   : > { %v10468_v52 = vpop.eup %10467  ;;  %v4852_v54 = vadd.f32 %v13572_v43, %v4851_v55  ;;  %v13633_v39 = vpop.f32.mrb[32].mxu0  ;;  %8785 = vmatmul.mubr.f32.gmra.mrb[248].mxu1 %v10466_v36 }
 0x57b   : > { %v8627_v19 = vpop.f32.mrb[143].mxu1  ;;  %v8427_v46 = vpop.f32.mrb[33].mxu0  ;;  %9036 = vmatmul.mubr.f32.gmra.mrb[138].mxu0 %v10468_v52  ;;  %8787 = vmatprep.mubr.msk.f32.mxu1 %vm10890_vm0, %v10891_v33  ;;  %v4356_v56 = vadd.f32 %v13728_v38, %v13633_v39 }
 0x57c   : > { %10479 = vtanh.f32 %v4852_v54  ;;  %9038 = vmatprep.mubr.msk.f32.mxu0 %vm10890_vm0, %v10891_v33  ;;  %v10470_v11 = vpop.eup %10469 }
 0x57d   : > { %v4856_v27 = vpop.f32.mrb[144].mxu1  ;;  %10481 = vtanh.f32 %v4276_v13 }
 0x57e   : > { %v10472_v24 = vpop.eup %10471  ;;  %v4857_v21 = vadd.f32 %v13572_v43, %v4856_v27  ;;  %v13642_v62 = vpop.f32.mrb[34].mxu0  ;;  %8788 = vmatmul.mubr.f32.gmra.mrb[250].mxu1 %v10470_v11 }
 0x57f   : > { %v8630_v45 = vpop.f32.mrb[145].mxu1  ;;  %v8430_v9 = vpop.f32.mrb[35].mxu0  ;;  %9039 = vmatmul.mubr.f32.gmra.mrb[140].mxu0 %v10472_v24  ;;  %8790 = vmatprep.mubr.msk.f32.mxu1 %vm10890_vm0, %v10891_v33  ;;  %v4361_v39 = vadd.f32 %v13728_v38, %v13642_v62 }
 0x580   : > { %10483 = vtanh.f32 %v4857_v21  ;;  %9041 = vmatprep.mubr.msk.f32.mxu0 %vm10890_vm0, %v10891_v33  ;;  %v10474_v47 = vpop.eup %10473 }
 0x581   : > { %v4861_v7 = vpop.f32.mrb[146].mxu1  ;;  %10485 = vtanh.f32 %v4281_v41 }
 0x582   : > { %v10476_v32 = vpop.eup %10475  ;;  %v4862_v37 = vadd.f32 %v13572_v43, %v4861_v7  ;;  %v13651_v50 = vpop.f32.mrb[36].mxu0  ;;  %8791 = vmatmul.mubr.f32.gmra.mrb[252].mxu1 %v10474_v47 }
 0x583   : > { %v8633_v61 = vpop.f32.mrb[147].mxu1  ;;  %v8433_v3 = vpop.f32.mrb[37].mxu0  ;;  %9042 = vmatmul.mubr.f32.gmra.mrb[142].mxu0 %v10476_v32  ;;  %8793 = vmatprep.mubr.msk.f32.mxu1 %vm10890_vm0, %v10891_v33  ;;  %v4366_v62 = vadd.f32 %v13728_v38, %v13651_v50 }
 0x584   : > { %10487 = vtanh.f32 %v4862_v37  ;;  %9044 = vmatprep.mubr.msk.f32.mxu0 %vm10890_vm0, %v10891_v33  ;;  %v10478_v48 = vpop.eup %10477 }
 0x585   : > { %v4866_v28 = vpop.f32.mrb[148].mxu1  ;;  %10489 = vtanh.f32 %v4286_v31 }
 0x586   : > { %v10480_v44 = vpop.eup %10479  ;;  %v4867_v57 = vadd.f32 %v13572_v43, %v4866_v28  ;;  %v13660_v4 = vpop.f32.mrb[38].mxu0  ;;  %8794 = vmatmul.mubr.f32.gmra.mrb[254].mxu1 %v10478_v48 }
 0x587   : > { %v8636_v58 = vpop.f32.mrb[149].mxu1  ;;  %v8436_v29 = vpop.f32.mrb[39].mxu0  ;;  %9045 = vmatmul.mubr.f32.gmra.mrb[144].mxu0 %v10480_v44  ;;  %8796 = vmatprep.mubr.msk.f32.mxu1 %vm10890_vm0, %v10891_v33  ;;  %v4371_v50 = vadd.f32 %v13728_v38, %v13660_v4 }
 0x588   : > { %10491 = vtanh.f32 %v4867_v57  ;;  %9047 = vmatprep.mubr.msk.f32.mxu0 %vm10890_vm0, %v10891_v33  ;;  %v10482_v35 = vpop.eup %10481 }
 0x589   : > { %v4871_v17 = vpop.f32.mrb[150].mxu1  ;;  %10493 = vtanh.f32 %v4291_v59 }
 0x58a   : > { %v10484_v42 = vpop.eup %10483  ;;  %v4872_v63 = vadd.f32 %v13572_v43, %v4871_v17  ;;  %v13669_v2 = vpop.f32.mrb[40].mxu0  ;;  %8797 = vmatmul.mubr.f32.gmra.mrb[0].mxu1 %v10482_v35 }
 0x58b   : > { %v8639_v53 = vpop.f32.mrb[151].mxu1  ;;  %v8439_v5 = vpop.f32.mrb[41].mxu0  ;;  %9048 = vmatmul.mubr.f32.gmra.mrb[146].mxu0 %v10484_v42  ;;  %8799 = vmatprep.mubr.msk.f32.mxu1 %vm10890_vm0, %v10891_v33  ;;  %v4376_v4 = vadd.f32 %v13728_v38, %v13669_v2 }
 0x58c   : > { %10495 = vtanh.f32 %v4872_v63  ;;  %9050 = vmatprep.mubr.msk.f32.mxu0 %vm10890_vm0, %v10891_v33  ;;  %v10486_v51 = vpop.eup %10485 }
 0x58d   : > { %v4876_v0 = vpop.f32.mrb[152].mxu1  ;;  %10497 = vtanh.f32 %v4296_v16 }
 0x58e   : > { %v10488_v12 = vpop.eup %10487  ;;  %v4877_v15 = vadd.f32 %v13572_v43, %v4876_v0  ;;  %v13678_v30 = vpop.f32.mrb[42].mxu0  ;;  %8800 = vmatmul.mubr.f32.gmra.mrb[2].mxu1 %v10486_v51 }
 0x58f   : > { %v8642_v25 = vpop.f32.mrb[153].mxu1  ;;  %v8442_v60 = vpop.f32.mrb[43].mxu0  ;;  %9051 = vmatmul.mubr.f32.gmra.mrb[148].mxu0 %v10488_v12  ;;  %8802 = vmatprep.mubr.msk.f32.mxu1 %vm10890_vm0, %v10891_v33  ;;  %v4381_v2 = vadd.f32 %v13728_v38, %v13678_v30 }
 0x590   : > { %10499 = vtanh.f32 %v4877_v15  ;;  %9053 = vmatprep.mubr.msk.f32.mxu0 %vm10890_vm0, %v10891_v33  ;;  %v10490_v26 = vpop.eup %10489 }
 0x591   : > { %v4881_v10 = vpop.f32.mrb[154].mxu1  ;;  %10501 = vtanh.f32 %v4301_v34 }
 0x592   : > { %v10492_v36 = vpop.eup %10491  ;;  %v4882_v55 = vadd.f32 %v13572_v43, %v4881_v10  ;;  %v13687_v52 = vpop.f32.mrb[44].mxu0  ;;  %8803 = vmatmul.mubr.f32.gmra.mrb[4].mxu1 %v10490_v26 }
 0x593   : > { %v8645_v54 = vpop.f32.mrb[155].mxu1  ;;  %v8445_v19 = vpop.f32.mrb[45].mxu0  ;;  %9054 = vmatmul.mubr.f32.gmra.mrb[150].mxu0 %v10492_v36  ;;  %8805 = vmatprep.mubr.msk.f32.mxu1 %vm10890_vm0, %v10891_v33  ;;  %v4386_v30 = vadd.f32 %v13728_v38, %v13687_v52 }
 0x594   : > { %10503 = vtanh.f32 %v4882_v55  ;;  %9056 = vmatprep.mubr.msk.f32.mxu0 %vm10890_vm0, %v10891_v33  ;;  %v10494_v13 = vpop.eup %10493 }
 0x595   : > { %v4886_v46 = vpop.f32.mrb[156].mxu1  ;;  %10505 = vtanh.f32 %v4306_v22 }
 0x596   : > { %v10496_v11 = vpop.eup %10495  ;;  %v4887_v27 = vadd.f32 %v13572_v43, %v4886_v46  ;;  %v13696_v24 = vpop.f32.mrb[46].mxu0  ;;  %8806 = vmatmul.mubr.f32.gmra.mrb[6].mxu1 %v10494_v13 }
 0x597   : > { %v8648_v21 = vpop.f32.mrb[157].mxu1  ;;  %v8448_v45 = vpop.f32.mrb[47].mxu0  ;;  %9057 = vmatmul.mubr.f32.gmra.mrb[152].mxu0 %v10496_v11  ;;  %8808 = vmatprep.mubr.msk.f32.mxu1 %vm10890_vm0, %v10891_v33  ;;  %v4391_v52 = vadd.f32 %v13728_v38, %v13696_v24 }
 0x598   : > { %10507 = vtanh.f32 %v4887_v27  ;;  %9059 = vmatprep.mubr.msk.f32.mxu0 %vm10890_vm0, %v10891_v33  ;;  %v10498_v41 = vpop.eup %10497 }
 0x599   : > { %v4891_v9 = vpop.f32.mrb[158].mxu1  ;;  %10509 = vtanh.f32 %v4311_v23 }
 0x59a   : > { %v10500_v47 = vpop.eup %10499  ;;  %v4892_v7 = vadd.f32 %v13572_v43, %v4891_v9  ;;  %v13705_v32 = vpop.f32.mrb[48].mxu0  ;;  %8809 = vmatmul.mubr.f32.gmra.mrb[8].mxu1 %v10498_v41 }
 0x59b   : > { %v8651_v37 = vpop.f32.mrb[159].mxu1  ;;  %v8451_v61 = vpop.f32.mrb[49].mxu0  ;;  %9060 = vmatmul.mubr.f32.gmra.mrb[154].mxu0 %v10500_v47  ;;  %8811 = vmatprep.mubr.msk.f32.mxu1 %vm10890_vm0, %v10891_v33  ;;  %v4396_v24 = vadd.f32 %v13728_v38, %v13705_v32 }
 0x59c   : > { %10511 = vtanh.f32 %v4892_v7  ;;  %9062 = vmatprep.mubr.msk.f32.mxu0 %vm10890_vm0, %v10891_v33  ;;  %v10502_v31 = vpop.eup %10501 }
 0x59d   : > { %v4896_v3 = vpop.f32.mrb[160].mxu1  ;;  %10513 = vtanh.f32 %v4316_v14 }
 0x59e   : > { %v10504_v48 = vpop.eup %10503  ;;  %v4897_v28 = vadd.f32 %v13572_v43, %v4896_v3  ;;  %v13714_v44 = vpop.f32.mrb[50].mxu0  ;;  %8812 = vmatmul.mubr.f32.gmra.mrb[10].mxu1 %v10502_v31 }
 0x59f   : > { %v8654_v57 = vpop.f32.mrb[161].mxu1  ;;  %v8454_v58 = vpop.f32.mrb[51].mxu0  ;;  %9063 = vmatmul.mubr.f32.gmra.mrb[156].mxu0 %v10504_v48  ;;  %8814 = vmatprep.mubr.msk.f32.mxu1 %vm10890_vm0, %v10891_v33  ;;  %v4401_v32 = vadd.f32 %v13728_v38, %v13714_v44 }
 0x5a0   : > { %10515 = vtanh.f32 %v4897_v28  ;;  %9065 = vmatprep.mubr.msk.f32.mxu0 %vm10890_vm0, %v10891_v33  ;;  %v10506_v59 = vpop.eup %10505 }
 0x5a1   : > { %v4901_v29 = vpop.f32.mrb[162].mxu1  ;;  %10517 = vtanh.f32 %v4321_v18 }
 0x5a2   : > { %v10508_v35 = vpop.eup %10507  ;;  %v4902_v17 = vadd.f32 %v13572_v43, %v4901_v29  ;;  %v13723_v42 = vpop.f32.mrb[52].mxu0  ;;  %8815 = vmatmul.mubr.f32.gmra.mrb[12].mxu1 %v10506_v59 }
 0x5a3   : > { %v8657_v63 = vpop.f32.mrb[163].mxu1  ;;  %v8457_v53 = vpop.f32.mrb[53].mxu0  ;;  %9066 = vmatmul.mubr.f32.gmra.mrb[158].mxu0 %v10508_v35  ;;  %8817 = vmatprep.mubr.msk.f32.mxu1 %vm10890_vm0, %v10891_v33  ;;  %v4406_v44 = vadd.f32 %v13728_v38, %v13723_v42 }
 0x5a4   : > { %10519 = vtanh.f32 %v4902_v17  ;;  %9068 = vmatprep.mubr.msk.f32.mxu0 %vm10890_vm0, %v10891_v33  ;;  %v10510_v16 = vpop.eup %10509 }
 0x5a5   : > { %v4906_v5 = vpop.f32.mrb[164].mxu1  ;;  %10521 = vtanh.f32 %v4326_v1 }
 0x5a6   : > { %v10512_v51 = vpop.eup %10511  ;;  %v4907_v0 = vadd.f32 %v13572_v43, %v4906_v5  ;;  %v13737_v12 = vpop.f32.mrb[54].mxu0  ;;  %8818 = vmatmul.mubr.f32.gmra.mrb[14].mxu1 %v10510_v16 }
 0x5a7   : > { %v8660_v15 = vpop.f32.mrb[165].mxu1  ;;  %v8460_v25 = vpop.f32.mrb[55].mxu0  ;;  %9069 = vmatmul.mubr.f32.gmra.mrb[160].mxu0 %v10512_v51  ;;  %8820 = vmatprep.mubr.msk.f32.mxu1 %vm10890_vm0, %v10891_v33  ;;  %v4411_v42 = vadd.f32 %v13728_v38, %v13737_v12 }
 0x5a8   : > { %10523 = vtanh.f32 %v4907_v0  ;;  %9071 = vmatprep.mubr.msk.f32.mxu0 %vm10890_vm0, %v10891_v33  ;;  %v10514_v34 = vpop.eup %10513 }
 0x5a9   : > { %v4911_v60 = vpop.f32.mrb[166].mxu1  ;;  %10525 = vtanh.f32 %v4331_v8 }
 0x5aa   : > { %v10516_v26 = vpop.eup %10515  ;;  %v4912_v10 = vadd.f32 %v13572_v43, %v4911_v60  ;;  %v13746_v36 = vpop.f32.mrb[56].mxu0  ;;  %8821 = vmatmul.mubr.f32.gmra.mrb[16].mxu1 %v10514_v34 }
 0x5ab   : > { %v8663_v55 = vpop.f32.mrb[167].mxu1  ;;  %v8463_v54 = vpop.f32.mrb[57].mxu0  ;;  %9072 = vmatmul.mubr.f32.gmra.mrb[162].mxu0 %v10516_v26  ;;  %8823 = vmatprep.mubr.msk.f32.mxu1 %vm10890_vm0, %v10891_v33  ;;  %v4416_v12 = vadd.f32 %v13728_v38, %v13746_v36 }
 0x5ac   : > { %10527 = vtanh.f32 %v4912_v10  ;;  %9074 = vmatprep.mubr.msk.f32.mxu0 %vm10890_vm0, %v10891_v33  ;;  %v10518_v22 = vpop.eup %10517 }
 0x5ad   : > { %v4916_v19 = vpop.f32.mrb[168].mxu1  ;;  %10529 = vtanh.f32 %v4336_v49 }
 0x5ae   : > { %v10520_v13 = vpop.eup %10519  ;;  %v4917_v46 = vadd.f32 %v13572_v43, %v4916_v19  ;;  %v13755_v11 = vpop.f32.mrb[58].mxu0  ;;  %8824 = vmatmul.mubr.f32.gmra.mrb[18].mxu1 %v10518_v22 }
 0x5af   : > { %v8666_v27 = vpop.f32.mrb[169].mxu1  ;;  %v8466_v21 = vpop.f32.mrb[59].mxu0  ;;  %9075 = vmatmul.mubr.f32.gmra.mrb[164].mxu0 %v10520_v13  ;;  %8826 = vmatprep.mubr.msk.f32.mxu1 %vm10890_vm0, %v10891_v33  ;;  %v4421_v36 = vadd.f32 %v13728_v38, %v13755_v11 }
 0x5b0   : > { %10531 = vtanh.f32 %v4917_v46  ;;  %9077 = vmatprep.mubr.msk.f32.mxu0 %vm10890_vm0, %v10891_v33  ;;  %v10522_v23 = vpop.eup %10521 }
 0x5b1   : > { %v4921_v45 = vpop.f32.mrb[170].mxu1  ;;  %10533 = vtanh.f32 %v4341_v40 }
 0x5b2   : > { %v10524_v41 = vpop.eup %10523  ;;  %v4922_v9 = vadd.f32 %v13572_v43, %v4921_v45  ;;  %v13764_v47 = vpop.f32.mrb[60].mxu0  ;;  %8827 = vmatmul.mubr.f32.gmra.mrb[20].mxu1 %v10522_v23 }
 0x5b3   : > { %v8669_v7 = vpop.f32.mrb[171].mxu1  ;;  %v8469_v37 = vpop.f32.mrb[61].mxu0  ;;  %9078 = vmatmul.mubr.f32.gmra.mrb[166].mxu0 %v10524_v41  ;;  %8829 = vmatprep.mubr.msk.f32.mxu1 %vm10890_vm0, %v10891_v33  ;;  %v4426_v11 = vadd.f32 %v13728_v38, %v13764_v47 }
 0x5b4   : > { %10535 = vtanh.f32 %v4922_v9  ;;  %9080 = vmatprep.mubr.msk.f32.mxu0 %vm10890_vm0, %v10891_v33  ;;  %v10526_v14 = vpop.eup %10525 }
 0x5b5   : > { %v4926_v61 = vpop.f32.mrb[172].mxu1  ;;  %10537 = vtanh.f32 %v4346_v6 }
 0x5b6   : > { %v10528_v31 = vpop.eup %10527  ;;  %v4927_v3 = vadd.f32 %v13572_v43, %v4926_v61  ;;  %v13773_v48 = vpop.f32.mrb[62].mxu0  ;;  %8830 = vmatmul.mubr.f32.gmra.mrb[22].mxu1 %v10526_v14 }
 0x5b7   : > { %v8672_v28 = vpop.f32.mrb[173].mxu1  ;;  %v8472_v57 = vpop.f32.mrb[63].mxu0  ;;  %9081 = vmatmul.mubr.f32.gmra.mrb[168].mxu0 %v10528_v31  ;;  %8832 = vmatprep.mubr.msk.f32.mxu1 %vm10890_vm0, %v10891_v33 }
 0x5b8   : > { %10539 = vtanh.f32 %v4927_v3  ;;  %9083 = vmatprep.mubr.msk.f32.mxu0 %vm10890_vm0, %v10891_v33  ;;  %v10530_v18 = vpop.eup %10529 }
 0x5b9   : > { %v4931_v58 = vpop.f32.mrb[174].mxu1  ;;  %10541 = vtanh.f32 %v4351_v20 }
 0x5ba   : > { %v10532_v59 = vpop.eup %10531  ;;  %v4932_v29 = vadd.f32 %v13572_v43, %v4931_v58  ;;  %v13782_v35 = vpop.f32.mrb[64].mxu0  ;;  %8833 = vmatmul.mubr.f32.gmra.mrb[24].mxu1 %v10530_v18 }
 0x5bb   : > { %v8675_v17 = vpop.f32.mrb[175].mxu1  ;;  %v8475_v63 = vpop.f32.mrb[65].mxu0  ;;  %9084 = vmatmul.mubr.f32.gmra.mrb[170].mxu0 %v10532_v59  ;;  %8835 = vmatprep.mubr.msk.f32.mxu1 %vm10890_vm0, %v10891_v33 }
 0x5bc   : > { %10543 = vtanh.f32 %v4932_v29  ;;  %9086 = vmatprep.mubr.msk.f32.mxu0 %vm10890_vm0, %v10891_v33  ;;  %v10534_v1 = vpop.eup %10533 }
 0x5bd   : > { %v4936_v53 = vpop.f32.mrb[176].mxu1  ;;  %10545 = vtanh.f32 %v4356_v56 }
 0x5be   : > { %v10536_v16 = vpop.eup %10535  ;;  %v4937_v5 = vadd.f32 %v13572_v43, %v4936_v53  ;;  %v13791_v51 = vpop.f32.mrb[66].mxu0  ;;  %8836 = vmatmul.mubr.f32.gmra.mrb[26].mxu1 %v10534_v1 }
 0x5bf   : > { %v8678_v0 = vpop.f32.mrb[177].mxu1  ;;  %v8478_v15 = vpop.f32.mrb[67].mxu0  ;;  %9087 = vmatmul.mubr.f32.gmra.mrb[172].mxu0 %v10536_v16  ;;  %8838 = vmatprep.mubr.msk.f32.mxu1 %vm10890_vm0, %v10891_v33 }
 0x5c0   : > { %10547 = vtanh.f32 %v4937_v5  ;;  %9089 = vmatprep.mubr.msk.f32.mxu0 %vm10890_vm0, %v10891_v33  ;;  %v10538_v8 = vpop.eup %10537 }
 0x5c1   : > { %v4941_v25 = vpop.f32.mrb[178].mxu1  ;;  %10549 = vtanh.f32 %v4361_v39 }
 0x5c2   : > { %v10540_v34 = vpop.eup %10539  ;;  %v4942_v60 = vadd.f32 %v13572_v43, %v4941_v25  ;;  %v13800_v26 = vpop.f32.mrb[68].mxu0  ;;  %8839 = vmatmul.mubr.f32.gmra.mrb[28].mxu1 %v10538_v8 }
 0x5c3   : > { %v8681_v10 = vpop.f32.mrb[179].mxu1  ;;  %v8481_v55 = vpop.f32.mrb[69].mxu0  ;;  %9090 = vmatmul.mubr.f32.gmra.mrb[174].mxu0 %v10540_v34  ;;  %8841 = vmatprep.mubr.msk.f32.mxu1 %vm10890_vm0, %v10891_v33 }
 0x5c4   : > { %10551 = vtanh.f32 %v4942_v60  ;;  %9092 = vmatprep.mubr.msk.f32.mxu0 %vm10890_vm0, %v10891_v33  ;;  %v10542_v49 = vpop.eup %10541 }
 0x5c5   : > { %v4946_v54 = vpop.f32.mrb[180].mxu1  ;;  %10553 = vtanh.f32 %v4366_v62 }
 0x5c6   : > { %v10544_v22 = vpop.eup %10543  ;;  %v4947_v19 = vadd.f32 %v13572_v43, %v4946_v54  ;;  %v13809_v13 = vpop.f32.mrb[70].mxu0  ;;  %8842 = vmatmul.mubr.f32.gmra.mrb[30].mxu1 %v10542_v49 }
 0x5c7   : > { %v8684_v46 = vpop.f32.mrb[181].mxu1  ;;  %v8484_v27 = vpop.f32.mrb[71].mxu0  ;;  %9093 = vmatmul.mubr.f32.gmra.mrb[176].mxu0 %v10544_v22  ;;  %8844 = vmatprep.mubr.msk.f32.mxu1 %vm10890_vm0, %v10891_v33 }
 0x5c8   : > { %10555 = vtanh.f32 %v4947_v19  ;;  %9095 = vmatprep.mubr.msk.f32.mxu0 %vm10890_vm0, %v10891_v33  ;;  %v10546_v40 = vpop.eup %10545 }
 0x5c9   : > { %v4951_v21 = vpop.f32.mrb[182].mxu1  ;;  %10557 = vtanh.f32 %v4371_v50 }
 0x5ca   : > { %v10548_v23 = vpop.eup %10547  ;;  %v4952_v45 = vadd.f32 %v13572_v43, %v4951_v21  ;;  %v13818_v41 = vpop.f32.mrb[72].mxu0  ;;  %8845 = vmatmul.mubr.f32.gmra.mrb[32].mxu1 %v10546_v40 }
 0x5cb   : > { %v8687_v9 = vpop.f32.mrb[183].mxu1  ;;  %v8487_v7 = vpop.f32.mrb[73].mxu0  ;;  %9096 = vmatmul.mubr.f32.gmra.mrb[178].mxu0 %v10548_v23  ;;  %8847 = vmatprep.mubr.msk.f32.mxu1 %vm10890_vm0, %v10891_v33 }
 0x5cc   : > { %10559 = vtanh.f32 %v4952_v45  ;;  %9098 = vmatprep.mubr.msk.f32.mxu0 %vm10890_vm0, %v10891_v33  ;;  %v10550_v6 = vpop.eup %10549 }
 0x5cd   : > { %v4956_v37 = vpop.f32.mrb[184].mxu1  ;;  %10561 = vtanh.f32 %v4376_v4 }
 0x5ce   : > { %v10552_v14 = vpop.eup %10551  ;;  %v4957_v61 = vadd.f32 %v13572_v43, %v4956_v37  ;;  %v13827_v31 = vpop.f32.mrb[74].mxu0  ;;  %8848 = vmatmul.mubr.f32.gmra.mrb[34].mxu1 %v10550_v6 }
 0x5cf   : > { %v8690_v3 = vpop.f32.mrb[185].mxu1  ;;  %v8490_v28 = vpop.f32.mrb[75].mxu0  ;;  %9099 = vmatmul.mubr.f32.gmra.mrb[180].mxu0 %v10552_v14  ;;  %8850 = vmatprep.mubr.msk.f32.mxu1 %vm10890_vm0, %v10891_v33 }
 0x5d0   : > { %10563 = vtanh.f32 %v4957_v61  ;;  %9101 = vmatprep.mubr.msk.f32.mxu0 %vm10890_vm0, %v10891_v33  ;;  %v10554_v20 = vpop.eup %10553 }
 0x5d1   : > { %v4961_v57 = vpop.f32.mrb[186].mxu1  ;;  %10565 = vtanh.f32 %v4381_v2 }
 0x5d2   : > { %v10556_v18 = vpop.eup %10555  ;;  %v4962_v58 = vadd.f32 %v13572_v43, %v4961_v57  ;;  %v13836_v59 = vpop.f32.mrb[76].mxu0  ;;  %8851 = vmatmul.mubr.f32.gmra.mrb[36].mxu1 %v10554_v20 }
 0x5d3   : > { %v8693_v29 = vpop.f32.mrb[187].mxu1  ;;  %v8493_v17 = vpop.f32.mrb[77].mxu0  ;;  %9102 = vmatmul.mubr.f32.gmra.mrb[182].mxu0 %v10556_v18  ;;  %8853 = vmatprep.mubr.msk.f32.mxu1 %vm10890_vm0, %v10891_v33 }
 0x5d4   : > { %10567 = vtanh.f32 %v4962_v58  ;;  %9104 = vmatprep.mubr.msk.f32.mxu0 %vm10890_vm0, %v10891_v33  ;;  %v10558_v56 = vpop.eup %10557 }
 0x5d5   : > { %v4966_v63 = vpop.f32.mrb[188].mxu1  ;;  %10569 = vtanh.f32 %v4386_v30 }
 0x5d6   : > { %v10560_v1 = vpop.eup %10559  ;;  %v4967_v53 = vadd.f32 %v13572_v43, %v4966_v63  ;;  %v13845_v16 = vpop.f32.mrb[78].mxu0  ;;  %8854 = vmatmul.mubr.f32.gmra.mrb[38].mxu1 %v10558_v56 }
 0x5d7   : > { %v8696_v5 = vpop.f32.mrb[189].mxu1  ;;  %v8496_v0 = vpop.f32.mrb[79].mxu0  ;;  %9105 = vmatmul.mubr.f32.gmra.mrb[184].mxu0 %v10560_v1  ;;  %8856 = vmatprep.mubr.msk.f32.mxu1 %vm10890_vm0, %v10891_v33 }
 0x5d8   : > { %10571 = vtanh.f32 %v4967_v53  ;;  %9107 = vmatprep.mubr.msk.f32.mxu0 %vm10890_vm0, %v10891_v33  ;;  %v10562_v39 = vpop.eup %10561 }
 0x5d9   : > { %v4971_v15 = vpop.f32.mrb[190].mxu1  ;;  %10573 = vtanh.f32 %v4391_v52 }
 0x5da   : > { %v10564_v8 = vpop.eup %10563  ;;  %v4972_v25 = vadd.f32 %v13572_v43, %v4971_v15  ;;  %v13854_v34 = vpop.f32.mrb[80].mxu0  ;;  %8857 = vmatmul.mubr.f32.gmra.mrb[40].mxu1 %v10562_v39 }
 0x5db   : > { %v8699_v60 = vpop.f32.mrb[191].mxu1  ;;  %v8499_v10 = vpop.f32.mrb[81].mxu0  ;;  %9108 = vmatmul.mubr.f32.gmra.mrb[186].mxu0 %v10564_v8  ;;  %8859 = vmatprep.mubr.msk.f32.mxu1 %vm10890_vm0, %v10891_v33 }
 0x5dc   : > { %10575 = vtanh.f32 %v4972_v25  ;;  %9110 = vmatprep.mubr.msk.f32.mxu0 %vm10890_vm0, %v10891_v33  ;;  %v10566_v62 = vpop.eup %10565 }
 0x5dd   : > { %v4976_v55 = vpop.f32.mrb[192].mxu1  ;;  %10577 = vtanh.f32 %v4396_v24 }
 0x5de   : > { %v10568_v49 = vpop.eup %10567  ;;  %v4977_v54 = vadd.f32 %v13572_v43, %v4976_v55  ;;  %v13863_v22 = vpop.f32.mrb[82].mxu0  ;;  %8860 = vmatmul.mubr.f32.gmra.mrb[42].mxu1 %v10566_v62  ;;  %v13919_v62 = vld [vmem:[%s14815_s3 + $0x4] ss:$0 sm:$0xff] }
 0x5df   : > { %v8702_v19 = vpop.f32.mrb[193].mxu1  ;;  %v8502_v46 = vpop.f32.mrb[83].mxu0  ;;  %9111 = vmatmul.mubr.f32.gmra.mrb[188].mxu0 %v10568_v49  ;;  %8862 = vmatprep.mubr.msk.f32.mxu1 %vm10890_vm0, %v10891_v33 }
 0x5e0   : > { %10579 = vtanh.f32 %v4977_v54  ;;  %9113 = vmatprep.mubr.msk.f32.mxu0 %vm10890_vm0, %v10891_v33  ;;  %v10570_v50 = vpop.eup %10569  ;;  %v4431_v54 = vadd.f32 %v13728_v38, %v13773_v48  ;;  %v4436_v48 = vadd.f32 %v13728_v38, %v13782_v35  ;;  %v4441_v35 = vadd.f32 %v13728_v38, %v13791_v51 }
 0x5e1   : > { %v4981_v27 = vpop.f32.mrb[194].mxu1  ;;  %10581 = vtanh.f32 %v4401_v32  ;;  %v4446_v51 = vadd.f32 %v13728_v38, %v13800_v26  ;;  %v4451_v26 = vadd.f32 %v13728_v38, %v13809_v13  ;;  %v4456_v13 = vadd.f32 %v13728_v38, %v13818_v41 }
 0x5e2   : > { %v10572_v40 = vpop.eup %10571  ;;  %v4982_v21 = vadd.f32 %v13572_v43, %v4981_v27  ;;  %v13872_v23 = vpop.f32.mrb[84].mxu0  ;;  %8863 = vmatmul.mubr.f32.gmra.mrb[44].mxu1 %v10570_v50  ;;  %v4461_v41 = vadd.f32 %v13728_v38, %v13827_v31  ;;  %v4466_v31 = vadd.f32 %v13728_v38, %v13836_v59  ;;  %v4471_v59 = vadd.f32 %v13728_v38, %v13845_v16 }
 0x5e3   : > { %v8705_v45 = vpop.f32.mrb[195].mxu1  ;;  %v8505_v9 = vpop.f32.mrb[85].mxu0  ;;  %9114 = vmatmul.mubr.f32.gmra.mrb[190].mxu0 %v10572_v40  ;;  %8865 = vmatprep.mubr.msk.f32.mxu1 %vm10890_vm0, %v10891_v33  ;;  %v4476_v16 = vadd.f32 %v13728_v38, %v13854_v34  ;;  %v4481_v34 = vadd.f32 %v13728_v38, %v13863_v22  ;;  %v4486_v22 = vadd.f32 %v13728_v38, %v13872_v23 }
 0x5e4   : > { %10583 = vtanh.f32 %v4982_v21  ;;  %9116 = vmatprep.mubr.msk.f32.mxu0 %vm10890_vm0, %v10891_v33  ;;  %v10574_v4 = vpop.eup %10573 }
 0x5e5   : > { %v4986_v7 = vpop.f32.mrb[196].mxu1  ;;  %10585 = vtanh.f32 %v4406_v44 }
 0x5e6   : > { %v10576_v6 = vpop.eup %10575  ;;  %v4987_v37 = vadd.f32 %v13572_v43, %v4986_v7  ;;  %v13881_v14 = vpop.f32.mrb[86].mxu0  ;;  %8866 = vmatmul.mubr.f32.gmra.mrb[46].mxu1 %v10574_v4 }
 0x5e7   : > { %v8708_v61 = vpop.f32.mrb[197].mxu1  ;;  %v8508_v3 = vpop.f32.mrb[87].mxu0  ;;  %9117 = vmatmul.mubr.f32.gmra.mrb[192].mxu0 %v10576_v6  ;;  %8868 = vmatprep.mubr.msk.f32.mxu1 %vm10890_vm0, %v10891_v33  ;;  %v4491_v23 = vadd.f32 %v13728_v38, %v13881_v14 }
 0x5e8   : > { %10587 = vtanh.f32 %v4987_v37  ;;  %9119 = vmatprep.mubr.msk.f32.mxu0 %vm10890_vm0, %v10891_v33  ;;  %v10578_v2 = vpop.eup %10577 }
 0x5e9   : > { %v4991_v28 = vpop.f32.mrb[198].mxu1  ;;  %10589 = vtanh.f32 %v4411_v42 }
 0x5ea   : > { %v10580_v20 = vpop.eup %10579  ;;  %v4992_v57 = vadd.f32 %v13572_v43, %v4991_v28  ;;  %v13890_v18 = vpop.f32.mrb[88].mxu0  ;;  %8869 = vmatmul.mubr.f32.gmra.mrb[48].mxu1 %v10578_v2 }
 0x5eb   : > { %v8711_v58 = vpop.f32.mrb[199].mxu1  ;;  %v8511_v29 = vpop.f32.mrb[89].mxu0  ;;  %9120 = vmatmul.mubr.f32.gmra.mrb[194].mxu0 %v10580_v20  ;;  %8871 = vmatprep.mubr.msk.f32.mxu1 %vm10890_vm0, %v10891_v33  ;;  %v4496_v14 = vadd.f32 %v13728_v38, %v13890_v18 }
 0x5ec   : > { %10591 = vtanh.f32 %v4992_v57  ;;  %9122 = vmatprep.mubr.msk.f32.mxu0 %vm10890_vm0, %v10891_v33  ;;  %v10582_v30 = vpop.eup %10581 }
 0x5ed   : > { %v4996_v17 = vpop.f32.mrb[200].mxu1  ;;  %10593 = vtanh.f32 %v4416_v12 }
 0x5ee   : > { %v10584_v56 = vpop.eup %10583  ;;  %v4997_v63 = vadd.f32 %v13572_v43, %v4996_v17  ;;  %v13899_v1 = vpop.f32.mrb[90].mxu0  ;;  %8872 = vmatmul.mubr.f32.gmra.mrb[50].mxu1 %v10582_v30 }
 0x5ef   : > { %v8714_v53 = vpop.f32.mrb[201].mxu1  ;;  %v8514_v5 = vpop.f32.mrb[91].mxu0  ;;  %9123 = vmatmul.mubr.f32.gmra.mrb[196].mxu0 %v10584_v56  ;;  %8874 = vmatprep.mubr.msk.f32.mxu1 %vm10890_vm0, %v10891_v33  ;;  %v4501_v18 = vadd.f32 %v13728_v38, %v13899_v1 }
 0x5f0   : > { %10595 = vtanh.f32 %v4997_v63  ;;  %9125 = vmatprep.mubr.msk.f32.mxu0 %vm10890_vm0, %v10891_v33  ;;  %v10586_v52 = vpop.eup %10585 }
 0x5f1   : > { %v5001_v0 = vpop.f32.mrb[202].mxu1  ;;  %10597 = vtanh.f32 %v4421_v36 }
 0x5f2   : > { %v10588_v39 = vpop.eup %10587  ;;  %v5002_v15 = vadd.f32 %v13572_v43, %v5001_v0  ;;  %v13908_v8 = vpop.f32.mrb[92].mxu0  ;;  %8875 = vmatmul.mubr.f32.gmra.mrb[52].mxu1 %v10586_v52 }
 0x5f3   : > { %v8717_v25 = vpop.f32.mrb[203].mxu1  ;;  %v8517_v60 = vpop.f32.mrb[93].mxu0  ;;  %9126 = vmatmul.mubr.f32.gmra.mrb[198].mxu0 %v10588_v39  ;;  %8877 = vmatprep.mubr.msk.f32.mxu1 %vm10890_vm0, %v10891_v33  ;;  %v4506_v1 = vadd.f32 %v13728_v38, %v13908_v8  ;;  %v14071_v38 = vld [vmem:[%s14815_s3 + $0x3] ss:$0 sm:$0xff] }
 0x5f4   : > { %10599 = vtanh.f32 %v5002_v15  ;;  %9128 = vmatprep.mubr.msk.f32.mxu0 %vm10890_vm0, %v10891_v33  ;;  %v10590_v24 = vpop.eup %10589 }
 0x5f5   : > { %v5006_v10 = vpop.f32.mrb[204].mxu1  ;;  %10601 = vtanh.f32 %v4426_v11 }
 0x5f6   : > { %v10592_v43 = vpop.eup %10591  ;;  %v5007_v55 = vadd.f32 %v13919_v62, %v5006_v10  ;;  %v13922_v47 = vpop.f32.mrb[94].mxu0  ;;  %8878 = vmatmul.mubr.f32.gmra.mrb[54].mxu1 %v10590_v24 }
 0x5f7   : > { %v8720_v49 = vpop.f32.mrb[205].mxu1  ;;  %v8520_v19 = vpop.f32.mrb[95].mxu0  ;;  %9129 = vmatmul.mubr.f32.gmra.mrb[200].mxu0 %v10592_v43  ;;  %8880 = vmatprep.mubr.msk.f32.mxu1 %vm10890_vm0, %v10891_v33  ;;  %v4511_v8 = vadd.f32 %v14071_v38, %v13922_v47 }
 0x5f8   : > { %10603 = vtanh.f32 %v5007_v55  ;;  %9131 = vmatprep.mubr.msk.f32.mxu0 %vm10890_vm0, %v10891_v33  ;;  %v10594_v32 = vpop.eup %10593 }
 0x5f9   : > { %v5011_v46 = vpop.f32.mrb[206].mxu1  ;;  %10605 = vtanh.f32 %v4431_v54 }
 0x5fa   : > { %v10596_v50 = vpop.eup %10595  ;;  %v5012_v27 = vadd.f32 %v13919_v62, %v5011_v46  ;;  %v13931_v40 = vpop.f32.mrb[96].mxu0  ;;  %8881 = vmatmul.mubr.f32.gmra.mrb[56].mxu1 %v10594_v32 }
 0x5fb   : > { %v8723_v21 = vpop.f32.mrb[207].mxu1  ;;  %v8523_v45 = vpop.f32.mrb[97].mxu0  ;;  %9132 = vmatmul.mubr.f32.gmra.mrb[202].mxu0 %v10596_v50  ;;  %8883 = vmatprep.mubr.msk.f32.mxu1 %vm10890_vm0, %v10891_v33  ;;  %v4516_v47 = vadd.f32 %v14071_v38, %v13931_v40 }
 0x5fc   : > { %10607 = vtanh.f32 %v5012_v27  ;;  %9134 = vmatprep.mubr.msk.f32.mxu0 %vm10890_vm0, %v10891_v33  ;;  %v10598_v44 = vpop.eup %10597 }
 0x5fd   : > { %v5016_v9 = vpop.f32.mrb[208].mxu1  ;;  %10609 = vtanh.f32 %v4436_v48 }
 0x5fe   : > { %v10600_v4 = vpop.eup %10599  ;;  %v5017_v7 = vadd.f32 %v13919_v62, %v5016_v9  ;;  %v13940_v6 = vpop.f32.mrb[98].mxu0  ;;  %8884 = vmatmul.mubr.f32.gmra.mrb[58].mxu1 %v10598_v44 }
 0x5ff   : > { %v8726_v37 = vpop.f32.mrb[209].mxu1  ;;  %v8526_v61 = vpop.f32.mrb[99].mxu0  ;;  %9135 = vmatmul.mubr.f32.gmra.mrb[204].mxu0 %v10600_v4  ;;  %8886 = vmatprep.mubr.msk.f32.mxu1 %vm10890_vm0, %v10891_v33  ;;  %v4521_v40 = vadd.f32 %v14071_v38, %v13940_v6 }
 0x600   : > { %10611 = vtanh.f32 %v5017_v7  ;;  %9137 = vmatprep.mubr.msk.f32.mxu0 %vm10890_vm0, %v10891_v33  ;;  %v10602_v42 = vpop.eup %10601 }
 0x601   : > { %v5021_v3 = vpop.f32.mrb[210].mxu1  ;;  %10613 = vtanh.f32 %v4441_v35 }
 0x602   : > { %v10604_v2 = vpop.eup %10603  ;;  %v5022_v28 = vadd.f32 %v13919_v62, %v5021_v3  ;;  %v13949_v20 = vpop.f32.mrb[100].mxu0  ;;  %8887 = vmatmul.mubr.f32.gmra.mrb[60].mxu1 %v10602_v42 }
 0x603   : > { %v8729_v57 = vpop.f32.mrb[211].mxu1  ;;  %v8529_v58 = vpop.f32.mrb[101].mxu0  ;;  %9138 = vmatmul.mubr.f32.gmra.mrb[206].mxu0 %v10604_v2  ;;  %8889 = vmatprep.mubr.msk.f32.mxu1 %vm10890_vm0, %v10891_v33 }
 0x604   : > { %10615 = vtanh.f32 %v5022_v28  ;;  %9140 = vmatprep.mubr.msk.f32.mxu0 %vm10890_vm0, %v10891_v33  ;;  %v10606_v12 = vpop.eup %10605 }
 0x605   : > { %v5026_v29 = vpop.f32.mrb[212].mxu1  ;;  %10617 = vtanh.f32 %v4446_v51 }
 0x606   : > { %v10608_v30 = vpop.eup %10607  ;;  %v5027_v17 = vadd.f32 %v13919_v62, %v5026_v29  ;;  %v13958_v56 = vpop.f32.mrb[102].mxu0  ;;  %8890 = vmatmul.mubr.f32.gmra.mrb[62].mxu1 %v10606_v12 }
 0x607   : > { %v8732_v63 = vpop.f32.mrb[213].mxu1  ;;  %v8532_v53 = vpop.f32.mrb[103].mxu0  ;;  %9141 = vmatmul.mubr.f32.gmra.mrb[208].mxu0 %v10608_v30  ;;  %8892 = vmatprep.mubr.msk.f32.mxu1 %vm10890_vm0, %v10891_v33 }
 0x608   : > { %10619 = vtanh.f32 %v5027_v17  ;;  %9143 = vmatprep.mubr.msk.f32.mxu0 %vm10890_vm0, %v10891_v33  ;;  %v10610_v36 = vpop.eup %10609 }
 0x609   : > { %v5031_v5 = vpop.f32.mrb[214].mxu1  ;;  %10621 = vtanh.f32 %v4451_v26 }
 0x60a   : > { %v10612_v52 = vpop.eup %10611  ;;  %v5032_v0 = vadd.f32 %v13919_v62, %v5031_v5  ;;  %v13967_v39 = vpop.f32.mrb[104].mxu0  ;;  %8893 = vmatmul.mubr.f32.gmra.mrb[64].mxu1 %v10610_v36 }
 0x60b   : > { %v8735_v15 = vpop.f32.mrb[215].mxu1  ;;  %v8535_v25 = vpop.f32.mrb[105].mxu0  ;;  %9144 = vmatmul.mubr.f32.gmra.mrb[210].mxu0 %v10612_v52  ;;  %8895 = vmatprep.mubr.msk.f32.mxu1 %vm10890_vm0, %v10891_v33 }
 0x60c   : > { %10623 = vtanh.f32 %v5032_v0  ;;  %9146 = vmatprep.mubr.msk.f32.mxu0 %vm10890_vm0, %v10891_v33  ;;  %v10614_v11 = vpop.eup %10613 }
 0x60d   : > { %v5036_v60 = vpop.f32.mrb[216].mxu1  ;;  %10625 = vtanh.f32 %v4456_v13 }
 0x60e   : > { %v10616_v24 = vpop.eup %10615  ;;  %v5037_v10 = vadd.f32 %v13919_v62, %v5036_v60  ;;  %v13976_v43 = vpop.f32.mrb[106].mxu0  ;;  %8896 = vmatmul.mubr.f32.gmra.mrb[66].mxu1 %v10614_v11 }
 0x60f   : > { %v8738_v55 = vpop.f32.mrb[217].mxu1  ;;  %v8538_v49 = vpop.f32.mrb[107].mxu0  ;;  %9147 = vmatmul.mubr.f32.gmra.mrb[212].mxu0 %v10616_v24  ;;  %8898 = vmatprep.mubr.msk.f32.mxu1 %vm10890_vm0, %v10891_v33 }
 0x610   : > { %10627 = vtanh.f32 %v5037_v10  ;;  %9149 = vmatprep.mubr.msk.f32.mxu0 %vm10890_vm0, %v10891_v33  ;;  %v10618_v54 = vpop.eup %10617 }
 0x611   : > { %v5041_v19 = vpop.f32.mrb[218].mxu1  ;;  %10629 = vtanh.f32 %v4461_v41 }
 0x612   : > { %v10620_v32 = vpop.eup %10619  ;;  %v5042_v46 = vadd.f32 %v13919_v62, %v5041_v19  ;;  %v13985_v50 = vpop.f32.mrb[108].mxu0  ;;  %8899 = vmatmul.mubr.f32.gmra.mrb[68].mxu1 %v10618_v54 }
 0x613   : > { %v8741_v27 = vpop.f32.mrb[219].mxu1  ;;  %v8541_v21 = vpop.f32.mrb[109].mxu0  ;;  %9150 = vmatmul.mubr.f32.gmra.mrb[214].mxu0 %v10620_v32  ;;  %8901 = vmatprep.mubr.msk.f32.mxu1 %vm10890_vm0, %v10891_v33 }
 0x614   : > { %10631 = vtanh.f32 %v5042_v46  ;;  %9152 = vmatprep.mubr.msk.f32.mxu0 %vm10890_vm0, %v10891_v33  ;;  %v10622_v48 = vpop.eup %10621 }
 0x615   : > { %v5046_v45 = vpop.f32.mrb[220].mxu1  ;;  %10633 = vtanh.f32 %v4466_v31 }
 0x616   : > { %v10624_v44 = vpop.eup %10623  ;;  %v5047_v9 = vadd.f32 %v13919_v62, %v5046_v45  ;;  %v13994_v4 = vpop.f32.mrb[110].mxu0  ;;  %8902 = vmatmul.mubr.f32.gmra.mrb[70].mxu1 %v10622_v48 }
 0x617   : > { %v8744_v7 = vpop.f32.mrb[221].mxu1  ;;  %v8544_v37 = vpop.f32.mrb[111].mxu0  ;;  %9153 = vmatmul.mubr.f32.gmra.mrb[216].mxu0 %v10624_v44  ;;  %8904 = vmatprep.mubr.msk.f32.mxu1 %vm10890_vm0, %v10891_v33 }
 0x618   : > { %10635 = vtanh.f32 %v5047_v9  ;;  %9155 = vmatprep.mubr.msk.f32.mxu0 %vm10890_vm0, %v10891_v33  ;;  %v10626_v35 = vpop.eup %10625 }
 0x619   : > { %v5051_v61 = vpop.f32.mrb[222].mxu1  ;;  %10637 = vtanh.f32 %v4471_v59 }
 0x61a   : > { %v10628_v42 = vpop.eup %10627  ;;  %v5052_v3 = vadd.f32 %v13919_v62, %v5051_v61  ;;  %v14003_v2 = vpop.f32.mrb[112].mxu0  ;;  %8905 = vmatmul.mubr.f32.gmra.mrb[72].mxu1 %v10626_v35 }
 0x61b   : > { %v8747_v28 = vpop.f32.mrb[223].mxu1  ;;  %v8547_v57 = vpop.f32.mrb[113].mxu0  ;;  %9156 = vmatmul.mubr.f32.gmra.mrb[218].mxu0 %v10628_v42  ;;  %8907 = vmatprep.mubr.msk.f32.mxu1 %vm10890_vm0, %v10891_v33 }
 0x61c   : > { %10639 = vtanh.f32 %v5052_v3  ;;  %9158 = vmatprep.mubr.msk.f32.mxu0 %vm10890_vm0, %v10891_v33  ;;  %v10630_v51 = vpop.eup %10629 }
 0x61d   : > { %v5056_v58 = vpop.f32.mrb[224].mxu1  ;;  %10641 = vtanh.f32 %v4476_v16 }
 0x61e   : > { %v10632_v12 = vpop.eup %10631  ;;  %v5057_v29 = vadd.f32 %v13919_v62, %v5056_v58  ;;  %v14012_v30 = vpop.f32.mrb[114].mxu0  ;;  %8908 = vmatmul.mubr.f32.gmra.mrb[74].mxu1 %v10630_v51 }
 0x61f   : > { %v8750_v17 = vpop.f32.mrb[225].mxu1  ;;  %v8550_v63 = vpop.f32.mrb[115].mxu0  ;;  %9159 = vmatmul.mubr.f32.gmra.mrb[220].mxu0 %v10632_v12  ;;  %8910 = vmatprep.mubr.msk.f32.mxu1 %vm10890_vm0, %v10891_v33 }
 0x620   : > { %10643 = vtanh.f32 %v5057_v29  ;;  %9161 = vmatprep.mubr.msk.f32.mxu0 %vm10890_vm0, %v10891_v33  ;;  %v10634_v26 = vpop.eup %10633 }
 0x621   : > { %v5061_v53 = vpop.f32.mrb[226].mxu1  ;;  %10645 = vtanh.f32 %v4481_v34 }
 0x622   : > { %v10636_v36 = vpop.eup %10635  ;;  %v5062_v5 = vadd.f32 %v13919_v62, %v5061_v53  ;;  %v14021_v52 = vpop.f32.mrb[116].mxu0  ;;  %8911 = vmatmul.mubr.f32.gmra.mrb[76].mxu1 %v10634_v26 }
 0x623   : > { %v8753_v0 = vpop.f32.mrb[227].mxu1  ;;  %v8553_v15 = vpop.f32.mrb[117].mxu0  ;;  %9162 = vmatmul.mubr.f32.gmra.mrb[222].mxu0 %v10636_v36  ;;  %8913 = vmatprep.mubr.msk.f32.mxu1 %vm10890_vm0, %v10891_v33 }
 0x624   : > { %10647 = vtanh.f32 %v5062_v5  ;;  %9164 = vmatprep.mubr.msk.f32.mxu0 %vm10890_vm0, %v10891_v33  ;;  %v10638_v13 = vpop.eup %10637 }
 0x625   : > { %v5066_v25 = vpop.f32.mrb[228].mxu1  ;;  %10649 = vtanh.f32 %v4486_v22 }
 0x626   : > { %v10640_v11 = vpop.eup %10639  ;;  %v5067_v60 = vadd.f32 %v13919_v62, %v5066_v25  ;;  %v14030_v24 = vpop.f32.mrb[118].mxu0  ;;  %8914 = vmatmul.mubr.f32.gmra.mrb[78].mxu1 %v10638_v13 }
 0x627   : > { %v8756_v10 = vpop.f32.mrb[229].mxu1  ;;  %v8556_v55 = vpop.f32.mrb[119].mxu0  ;;  %9165 = vmatmul.mubr.f32.gmra.mrb[224].mxu0 %v10640_v11  ;;  %8916 = vmatprep.mubr.msk.f32.mxu1 %vm10890_vm0, %v10891_v33 }
 0x628   : > { %10651 = vtanh.f32 %v5067_v60  ;;  %9167 = vmatprep.mubr.msk.f32.mxu0 %vm10890_vm0, %v10891_v33  ;;  %v10642_v41 = vpop.eup %10641 }
 0x629   : > { %v5071_v49 = vpop.f32.mrb[230].mxu1  ;;  %10653 = vtanh.f32 %v4491_v23  ;;  %v14098_v23 = vld [vmem:[%s14815_s3 + $0x5] ss:$0 sm:$0xff] }
 0x62a   : > { %v10644_v54 = vpop.eup %10643  ;;  %v5072_v19 = vadd.f32 %v13919_v62, %v5071_v49  ;;  %v14039_v32 = vpop.f32.mrb[120].mxu0  ;;  %8917 = vmatmul.mubr.f32.gmra.mrb[80].mxu1 %v10642_v41 }
 0x62b   : > { %v8759_v46 = vpop.f32.mrb[231].mxu1  ;;  %v8559_v27 = vpop.f32.mrb[121].mxu0  ;;  %9168 = vmatmul.mubr.f32.gmra.mrb[226].mxu0 %v10644_v54  ;;  %8919 = vmatprep.mubr.msk.f32.mxu1 %vm10890_vm0, %v10891_v33 }
 0x62c   : > { %10655 = vtanh.f32 %v5072_v19  ;;  %9170 = vmatprep.mubr.msk.f32.mxu0 %vm10890_vm0, %v10891_v33  ;;  %v10646_v31 = vpop.eup %10645  ;;  %v4526_v46 = vadd.f32 %v14071_v38, %v13949_v20 }
 0x62d   : > { %v5076_v21 = vpop.f32.mrb[232].mxu1  ;;  %10657 = vtanh.f32 %v4496_v14 }
 0x62e   : > { %v10648_v48 = vpop.eup %10647  ;;  %v5077_v45 = vadd.f32 %v13919_v62, %v5076_v21  ;;  %v14048_v44 = vpop.f32.mrb[122].mxu0  ;;  %8920 = vmatmul.mubr.f32.gmra.mrb[82].mxu1 %v10646_v31 }
 0x62f   : > { %v8762_v9 = vpop.f32.mrb[233].mxu1  ;;  %v8562_v7 = vpop.f32.mrb[123].mxu0  ;;  %9171 = vmatmul.mubr.f32.gmra.mrb[228].mxu0 %v10648_v48  ;;  %8922 = vmatprep.mubr.msk.f32.mxu1 %vm10890_vm0, %v10891_v33 }
 0x630   : > { %10659 = vtanh.f32 %v5077_v45  ;;  %9173 = vmatprep.mubr.msk.f32.mxu0 %vm10890_vm0, %v10891_v33  ;;  %v10650_v59 = vpop.eup %10649 }
 0x631   : > { %v5081_v37 = vpop.f32.mrb[234].mxu1  ;;  %10661 = vtanh.f32 %v4501_v18  ;;  %v4531_v18 = vadd.f32 %v14071_v38, %v13958_v56 }
 0x632   : > { %v10652_v35 = vpop.eup %10651  ;;  %v5082_v61 = vadd.f32 %v13919_v62, %v5081_v37  ;;  %v14057_v42 = vpop.f32.mrb[124].mxu0  ;;  %8923 = vmatmul.mubr.f32.gmra.mrb[84].mxu1 %v10650_v59 }
 0x633   : > { %v8765_v3 = vpop.f32.mrb[235].mxu1  ;;  %v8565_v28 = vpop.f32.mrb[125].mxu0  ;;  %9174 = vmatmul.mubr.f32.gmra.mrb[230].mxu0 %v10652_v35  ;;  %8925 = vmatprep.mubr.msk.f32.mxu1 %vm10890_vm0, %v10891_v33 }
 0x634   : > { %10663 = vtanh.f32 %v5082_v61  ;;  %9176 = vmatprep.mubr.msk.f32.mxu0 %vm10890_vm0, %v10891_v33  ;;  %v10654_v16 = vpop.eup %10653  ;;  %v4536_v28 = vadd.f32 %v14071_v38, %v13967_v39 }
 0x635   : > { %v5086_v57 = vpop.f32.mrb[236].mxu1  ;;  %10665 = vtanh.f32 %v4506_v1 }
 0x636   : > { %v10656_v51 = vpop.eup %10655  ;;  %v5087_v58 = vadd.f32 %v13919_v62, %v5086_v57  ;;  %v14066_v12 = vpop.f32.mrb[126].mxu0  ;;  %8926 = vmatmul.mubr.f32.gmra.mrb[86].mxu1 %v10654_v16 }
 0x637   : > { %v8768_v29 = vpop.f32.mrb[237].mxu1  ;;  %v8568_v17 = vpop.f32.mrb[127].mxu0  ;;  %9177 = vmatmul.mubr.f32.gmra.mrb[232].mxu0 %v10656_v51  ;;  %8928 = vmatprep.mubr.msk.f32.mxu1 %vm10890_vm0, %v10891_v33 }
 0x638   : > { %10667 = vtanh.f32 %v5087_v58  ;;  %9179 = vmatprep.mubr.msk.f32.mxu0 %vm10890_vm0, %v10891_v33  ;;  %v10658_v34 = vpop.eup %10657 }
 0x639   : > { %v5091_v63 = vpop.f32.mrb[238].mxu1  ;;  %10669 = vtanh.f32 %v4511_v8 }
 0x63a   : > { %v10660_v26 = vpop.eup %10659  ;;  %v5092_v53 = vadd.f32 %v13919_v62, %v5091_v63  ;;  %v14080_v36 = vpop.f32.mrb[128].mxu0  ;;  %8929 = vmatmul.mubr.f32.gmra.mrb[88].mxu1 %v10658_v34  ;;  %v4541_v34 = vadd.f32 %v14071_v38, %v13976_v43 }
 0x63b   : > { %v8771_v5 = vpop.f32.mrb[239].mxu1  ;;  %v8571_v0 = vpop.f32.mrb[129].mxu0  ;;  %9180 = vmatmul.mubr.f32.gmra.mrb[234].mxu0 %v10660_v26  ;;  %8931 = vmatprep.mubr.msk.f32.mxu1 %vm10890_vm0, %v10891_v33 }
 0x63c   : > { %10671 = vtanh.f32 %v5092_v53  ;;  %9182 = vmatprep.mubr.msk.f32.mxu0 %vm10890_vm0, %v10891_v33  ;;  %v10662_v22 = vpop.eup %10661 }
 0x63d   : > { %v5096_v15 = vpop.f32.mrb[240].mxu1  ;;  %10673 = vtanh.f32 %v4516_v47 }
 0x63e   : > { %v10664_v13 = vpop.eup %10663  ;;  %v5097_v25 = vadd.f32 %v13919_v62, %v5096_v15  ;;  %v14089_v11 = vpop.f32.mrb[130].mxu0  ;;  %8932 = vmatmul.mubr.f32.gmra.mrb[90].mxu1 %v10662_v22  ;;  %v4546_v15 = vadd.f32 %v14071_v38, %v13985_v50 }
 0x63f   : > { %v8774_v60 = vpop.f32.mrb[241].mxu1  ;;  %v8574_v10 = vpop.f32.mrb[131].mxu0  ;;  %9183 = vmatmul.mubr.f32.gmra.mrb[236].mxu0 %v10664_v13  ;;  %8934 = vmatprep.mubr.msk.f32.mxu1 %vm10890_vm0, %v10891_v33 }
 0x640   : > { %10675 = vtanh.f32 %v5097_v25  ;;  %9185 = vmatprep.mubr.msk.f32.mxu0 %vm10890_vm0, %v10891_v33  ;;  %v10666_v55 = vpop.eup %10665 }
 0x641   : > { %v5101_v41 = vpop.f32.mrb[242].mxu1  ;;  %10677 = vtanh.f32 %v4521_v40 }
 0x642   : > { %v10668_v49 = vpop.eup %10667  ;;  %v5102_v54 = vadd.f32 %v13919_v62, %v5101_v41  ;;  %v8777_v6 = vpop.f32.mrb[243].mxu1  ;;  %8935 = vmatmul.mubr.f32.gmra.mrb[92].mxu1 %v10666_v55 }
 0x643   : > { %v5682_v19 = vpop.f32.mrb[132].mxu0  ;;  %9186 = vmatmul.mubr.f32.gmra.mrb[238].mxu0 %v10668_v49  ;;  %8937 = vmatprep.mubr.msk.f32.mxu1 %vm10890_vm0, %v10891_v33  ;;  %v10670_v31 = vpop.eup %10669  ;;  %v4551_v49 = vadd.f32 %v14071_v38, %v13994_v4 }
 0x644   : > { %v5683_v14 = vadd.f32 %v14098_v23, %v5682_v19  ;;  %v9028_v27 = vpop.f32.mrb[133].mxu0  ;;  %10679 = vtanh.f32 %v5102_v54  ;;  %9188 = vmatprep.mubr.msk.f32.mxu0 %vm10890_vm0, %v10891_v33 }
 0x645   : > { %v5106_v21 = vpop.f32.mrb[244].mxu1  ;;  %10681 = vtanh.f32 %v4526_v46 }
 0x646   : > { %6327 = vst.msk [vmem:[%s14108_s5] sm:$0xff] %vm6326_vm1, %v5683_v14  ;;  %v10672_v48 = vpop.eup %10671  ;;  %v5107_v45 = vadd.f32 %v13919_v62, %v5106_v21  ;;  %v8780_v20 = vpop.f32.mrb[245].mxu1  ;;  %8938 = vmatmul.mubr.f32.gmra.mrb[94].mxu1 %v10670_v31  ;;  %v4556_v21 = vadd.f32 %v14071_v38, %v14003_v2 }
 0x647   : > { %v5687_v9 = vpop.f32.mrb[134].mxu0  ;;  %9189 = vmatmul.mubr.f32.gmra.mrb[240].mxu0 %v10672_v48  ;;  %8940 = vmatprep.mubr.msk.f32.mxu1 %vm10890_vm0, %v10891_v33  ;;  %v10674_v37 = vpop.eup %10673 }
 0x648   : > { %v5688_v7 = vadd.f32 %v14098_v23, %v5687_v9  ;;  %v9031_v59 = vpop.f32.mrb[135].mxu0  ;;  %10683 = vtanh.f32 %v5107_v45  ;;  %9191 = vmatprep.mubr.msk.f32.mxu0 %vm10890_vm0, %v10891_v33 }
 0x649   : > { %v5111_v35 = vpop.f32.mrb[246].mxu1  ;;  %10685 = vtanh.f32 %v4531_v18 }
 0x64a   : > { %6328 = vst.msk [vmem:[%s14108_s5 + $0x8] sm:$0xff] %vm6326_vm1, %v5688_v7  ;;  %v10676_v61 = vpop.eup %10675  ;;  %v5112_v3 = vadd.f32 %v13919_v62, %v5111_v35  ;;  %v8783_v56 = vpop.f32.mrb[247].mxu1  ;;  %8941 = vmatmul.mubr.f32.gmra.mrb[96].mxu1 %v10674_v37  ;;  %v4561_v37 = vadd.f32 %v14071_v38, %v14012_v30 }
 0x64b   : > { %v5692_v1 = vpop.f32.mrb[136].mxu0  ;;  %9192 = vmatmul.mubr.f32.gmra.mrb[242].mxu0 %v10676_v61  ;;  %8943 = vmatprep.mubr.msk.f32.mxu1 %vm10890_vm0, %v10891_v33  ;;  %v10678_v51 = vpop.eup %10677 }
 0x64c   : > { %v5693_v16 = vadd.f32 %v14098_v23, %v5692_v1  ;;  %v9034_v57 = vpop.f32.mrb[137].mxu0  ;;  %10687 = vtanh.f32 %v5112_v3  ;;  %9194 = vmatprep.mubr.msk.f32.mxu0 %vm10890_vm0, %v10891_v33 }
 0x64d   : > { %v5116_v58 = vpop.f32.mrb[248].mxu1  ;;  %10689 = vtanh.f32 %v4536_v28  ;;  %v4566_v57 = vadd.f32 %v14071_v38, %v14021_v52 }
 0x64e   : > { %6329 = vst.msk [vmem:[%s14108_s5 + $0x10] sm:$0xff] %vm6326_vm1, %v5693_v16  ;;  %v10680_v29 = vpop.eup %10679  ;;  %v5117_v8 = vadd.f32 %v13919_v62, %v5116_v58  ;;  %v8786_v39 = vpop.f32.mrb[249].mxu1  ;;  %8944 = vmatmul.mubr.f32.gmra.mrb[98].mxu1 %v10678_v51 }
 0x64f   : > { %v5697_v17 = vpop.f32.mrb[138].mxu0  ;;  %9195 = vmatmul.mubr.f32.gmra.mrb[244].mxu0 %v10680_v29  ;;  %8946 = vmatprep.mubr.msk.f32.mxu1 %vm10890_vm0, %v10891_v33  ;;  %v10682_v53 = vpop.eup %10681 }
 0x650   : > { %v5698_v63 = vadd.f32 %v14098_v23, %v5697_v17  ;;  %v9037_v26 = vpop.f32.mrb[139].mxu0  ;;  %10691 = vtanh.f32 %v5117_v8  ;;  %9197 = vmatprep.mubr.msk.f32.mxu0 %vm10890_vm0, %v10891_v33 }
 0x651   : > { %v5121_v5 = vpop.f32.mrb[250].mxu1  ;;  %10693 = vtanh.f32 %v4541_v34 }
 0x652   : > { %6330 = vst.msk [vmem:[%s14108_s5 + $0x18] sm:$0xff] %vm6326_vm1, %v5698_v63  ;;  %v10684_v47 = vpop.eup %10683  ;;  %v5122_v0 = vadd.f32 %v13919_v62, %v5121_v5  ;;  %v8789_v43 = vpop.f32.mrb[251].mxu1  ;;  %8947 = vmatmul.mubr.f32.gmra.mrb[100].mxu1 %v10682_v53  ;;  %v4571_v63 = vadd.f32 %v14071_v38, %v14030_v24 }
 0x653   : > { %v5702_v22 = vpop.f32.mrb[140].mxu0  ;;  %9198 = vmatmul.mubr.f32.gmra.mrb[246].mxu0 %v10684_v47  ;;  %8949 = vmatprep.mubr.msk.f32.mxu1 %vm10890_vm0, %v10891_v33  ;;  %v10686_v60 = vpop.eup %10685 }
 0x654   : > { %v5703_v13 = vadd.f32 %v14098_v23, %v5702_v22  ;;  %v9040_v25 = vpop.f32.mrb[141].mxu0  ;;  %10695 = vtanh.f32 %v5122_v0  ;;  %9200 = vmatprep.mubr.msk.f32.mxu0 %vm10890_vm0, %v10891_v33 }
 0x655   : > { %v5126_v40 = vpop.f32.mrb[252].mxu1  ;;  %10697 = vtanh.f32 %v4546_v15  ;;  %v4576_v15 = vadd.f32 %v14071_v38, %v14039_v32 }
 0x656   : > { %6331 = vst.msk [vmem:[%s14108_s5 + $0x20] sm:$0xff] %vm6326_vm1, %v5703_v13  ;;  %v10688_v10 = vpop.eup %10687  ;;  %v5127_v55 = vadd.f32 %v13919_v62, %v5126_v40  ;;  %v8792_v50 = vpop.f32.mrb[253].mxu1  ;;  %8950 = vmatmul.mubr.f32.gmra.mrb[102].mxu1 %v10686_v60 }
 0x657   : > { %v5707_v41 = vpop.f32.mrb[142].mxu0  ;;  %9201 = vmatmul.mubr.f32.gmra.mrb[248].mxu0 %v10688_v10  ;;  %8952 = vmatprep.mubr.msk.f32.mxu1 %vm10890_vm0, %v10891_v33  ;;  %v10690_v19 = vpop.eup %10689 }
 0x658   : > { %v5708_v54 = vadd.f32 %v14098_v23, %v5707_v41  ;;  %v9043_v6 = vpop.f32.mrb[143].mxu0  ;;  %10699 = vtanh.f32 %v5127_v55  ;;  %9203 = vmatprep.mubr.msk.f32.mxu0 %vm10890_vm0, %v10891_v33  ;;  %v4581_v41 = vadd.f32 %v14071_v38, %v14048_v44 }
 0x659   : > { %v5131_v46 = vpop.f32.mrb[254].mxu1  ;;  %10701 = vtanh.f32 %v4551_v49 }
 0x65a   : > { %6332 = vst.msk [vmem:[%s14108_s5 + $0x28] sm:$0xff] %vm6326_vm1, %v5708_v54  ;;  %v10692_v14 = vpop.eup %10691  ;;  %v5132_v27 = vadd.f32 %v13919_v62, %v5131_v46  ;;  %v8795_v4 = vpop.f32.mrb[255].mxu1  ;;  %8953 = vmatmul.mubr.f32.gmra.mrb[104].mxu1 %v10690_v19 }
 0x65b   : > { %v5712_v31 = vpop.f32.mrb[144].mxu0  ;;  %9204 = vmatmul.mubr.f32.gmra.mrb[250].mxu0 %v10692_v14  ;;  %8955 = vmatprep.mubr.msk.f32.mxu1 %vm10890_vm0, %v10891_v33  ;;  %v10694_v20 = vpop.eup %10693  ;;  %v4586_v4 = vadd.f32 %v14071_v38, %v14057_v42 }
 0x65c   : > { %v5713_v48 = vadd.f32 %v14098_v23, %v5712_v31  ;;  %v9046_v45 = vpop.f32.mrb[145].mxu0  ;;  %10703 = vtanh.f32 %v5132_v27  ;;  %9206 = vmatprep.mubr.msk.f32.mxu0 %vm10890_vm0, %v10891_v33 }
 0x65d   : > { %v5136_v9 = vpop.f32.mrb[0].mxu1  ;;  %10705 = vtanh.f32 %v4556_v21 }
 0x65e   : > { %6333 = vst.msk [vmem:[%s14108_s5 + $0x30] sm:$0xff] %vm6326_vm1, %v5713_v48  ;;  %v10696_v18 = vpop.eup %10695  ;;  %v5137_v7 = vadd.f32 %v13919_v62, %v5136_v9  ;;  %v8798_v2 = vpop.f32.mrb[1].mxu1  ;;  %8956 = vmatmul.mubr.f32.gmra.mrb[106].mxu1 %v10694_v20 }
 0x65f   : > { %v5717_v59 = vpop.f32.mrb[146].mxu0  ;;  %9207 = vmatmul.mubr.f32.gmra.mrb[252].mxu0 %v10696_v18  ;;  %8958 = vmatprep.mubr.msk.f32.mxu1 %vm10890_vm0, %v10891_v33  ;;  %v10698_v3 = vpop.eup %10697 }
 0x660   : > { %v5718_v35 = vadd.f32 %v14098_v23, %v5717_v59  ;;  %v9049_v61 = vpop.f32.mrb[147].mxu0  ;;  %10707 = vtanh.f32 %v5137_v7  ;;  %9209 = vmatprep.mubr.msk.f32.mxu0 %vm10890_vm0, %v10891_v33  ;;  %v4591_v7 = vadd.f32 %v14071_v38, %v14066_v12 }
 0x661   : > { %v5141_v56 = vpop.f32.mrb[2].mxu1  ;;  %10709 = vtanh.f32 %v4561_v37 }
 0x662   : > { %6334 = vst.msk [vmem:[%s14108_s5 + $0x38] sm:$0xff] %vm6326_vm1, %v5718_v35  ;;  %v10700_v1 = vpop.eup %10699  ;;  %v5142_v28 = vadd.f32 %v13919_v62, %v5141_v56  ;;  %v8801_v30 = vpop.f32.mrb[3].mxu1  ;;  %8959 = vmatmul.mubr.f32.gmra.mrb[108].mxu1 %v10698_v3 }
 0x663   : > { %v5722_v16 = vpop.f32.mrb[148].mxu0  ;;  %9210 = vmatmul.mubr.f32.gmra.mrb[254].mxu0 %v10700_v1  ;;  %8961 = vmatprep.mubr.msk.f32.mxu1 %vm10890_vm0, %v10891_v33  ;;  %v10702_v29 = vpop.eup %10701  ;;  %v4596_v1 = vadd.f32 %v14071_v38, %v14080_v36 }
 0x664   : > { %v5723_v51 = vadd.f32 %v14098_v23, %v5722_v16  ;;  %v9052_v58 = vpop.f32.mrb[149].mxu0  ;;  %10711 = vtanh.f32 %v5142_v28  ;;  %9212 = vmatprep.mubr.msk.f32.mxu0 %vm10890_vm0, %v10891_v33 }
 0x665   : > { %v5146_v8 = vpop.f32.mrb[4].mxu1  ;;  %10713 = vtanh.f32 %v4566_v57 }
 0x666   : > { %6335 = vst.msk [vmem:[%s14108_s5 + $0x40] sm:$0xff] %vm6326_vm1, %v5723_v51  ;;  %v10704_v39 = vpop.eup %10703  ;;  %v5147_v17 = vadd.f32 %v13919_v62, %v5146_v8  ;;  %v8804_v52 = vpop.f32.mrb[5].mxu1  ;;  %8962 = vmatmul.mubr.f32.gmra.mrb[110].mxu1 %v10702_v29  ;;  %v4601_v8 = vadd.f32 %v14071_v38, %v14089_v11  ;;  %v14272_v38 = vld [vmem:[%s14815_s3 + $0x4] ss:$0 sm:$0xff] }
 0x667   : > { %v5727_v34 = vpop.f32.mrb[150].mxu0  ;;  %9213 = vmatmul.mubr.f32.gmra.mrb[0].mxu0 %v10704_v39  ;;  %8964 = vmatprep.mubr.msk.f32.mxu1 %vm10890_vm0, %v10891_v33  ;;  %v10706_v5 = vpop.eup %10705 }
 0x668   : > { %v5728_v26 = vadd.f32 %v14098_v23, %v5727_v34  ;;  %v9055_v53 = vpop.f32.mrb[151].mxu0  ;;  %10715 = vtanh.f32 %v5147_v17  ;;  %9215 = vmatprep.mubr.msk.f32.mxu0 %vm10890_vm0, %v10891_v33 }
 0x669   : > { %v5151_v47 = vpop.f32.mrb[6].mxu1  ;;  %10717 = vtanh.f32 %v4571_v63 }
 0x66a   : > { %6336 = vst.msk [vmem:[%s14108_s5 + $0x48] sm:$0xff] %vm6326_vm1, %v5728_v26  ;;  %v10708_v0 = vpop.eup %10707  ;;  %v5152_v43 = vadd.f32 %v13919_v62, %v5151_v47  ;;  %v8807_v24 = vpop.f32.mrb[7].mxu1  ;;  %8965 = vmatmul.mubr.f32.gmra.mrb[112].mxu1 %v10706_v5 }
 0x66b   : > { %v5732_v22 = vpop.f32.mrb[152].mxu0  ;;  %9216 = vmatmul.mubr.f32.gmra.mrb[2].mxu0 %v10708_v0  ;;  %8967 = vmatprep.mubr.msk.f32.mxu1 %vm10890_vm0, %v10891_v33  ;;  %v10710_v60 = vpop.eup %10709 }
 0x66c   : > { %v5733_v13 = vadd.f32 %v14098_v23, %v5732_v22  ;;  %v9058_v25 = vpop.f32.mrb[153].mxu0  ;;  %10719 = vtanh.f32 %v5152_v43  ;;  %9218 = vmatprep.mubr.msk.f32.mxu0 %vm10890_vm0, %v10891_v33 }
 0x66d   : > { %v5156_v40 = vpop.f32.mrb[8].mxu1  ;;  %10721 = vtanh.f32 %v4576_v15 }
 0x66e   : > { %6337 = vst.msk [vmem:[%s14108_s5 + $0x50] sm:$0xff] %vm6326_vm1, %v5733_v13  ;;  %v10712_v10 = vpop.eup %10711  ;;  %v5157_v55 = vadd.f32 %v13919_v62, %v5156_v40  ;;  %v8810_v32 = vpop.f32.mrb[9].mxu1  ;;  %8968 = vmatmul.mubr.f32.gmra.mrb[114].mxu1 %v10710_v60 }
 0x66f   : > { %v5737_v50 = vpop.f32.mrb[154].mxu0  ;;  %9219 = vmatmul.mubr.f32.gmra.mrb[4].mxu0 %v10712_v10  ;;  %8970 = vmatprep.mubr.msk.f32.mxu1 %vm10890_vm0, %v10891_v33  ;;  %v10714_v6 = vpop.eup %10713 }
 0x670   : > { %v5738_v49 = vadd.f32 %v14098_v23, %v5737_v50  ;;  %v9061_v54 = vpop.f32.mrb[155].mxu0  ;;  %10723 = vtanh.f32 %v5157_v55  ;;  %9221 = vmatprep.mubr.msk.f32.mxu0 %vm10890_vm0, %v10891_v33 }
 0x671   : > { %v5161_v19 = vpop.f32.mrb[10].mxu1  ;;  %10725 = vtanh.f32 %v4581_v41 }
 0x672   : > { %6338 = vst.msk [vmem:[%s14108_s5 + $0x58] sm:$0xff] %vm6326_vm1, %v5738_v49  ;;  %v10716_v46 = vpop.eup %10715  ;;  %v5162_v14 = vadd.f32 %v13919_v62, %v5161_v19  ;;  %v8813_v44 = vpop.f32.mrb[11].mxu1  ;;  %8971 = vmatmul.mubr.f32.gmra.mrb[116].mxu1 %v10714_v6 }
 0x673   : > { %v5742_v27 = vpop.f32.mrb[156].mxu0  ;;  %9222 = vmatmul.mubr.f32.gmra.mrb[6].mxu0 %v10716_v46  ;;  %8973 = vmatprep.mubr.msk.f32.mxu1 %vm10890_vm0, %v10891_v33  ;;  %v10718_v48 = vpop.eup %10717 }
 0x674   : > { %v5743_v31 = vadd.f32 %v14098_v23, %v5742_v27  ;;  %v9064_v21 = vpop.f32.mrb[157].mxu0  ;;  %10727 = vtanh.f32 %v5162_v14  ;;  %9224 = vmatprep.mubr.msk.f32.mxu0 %vm10890_vm0, %v10891_v33 }
 0x675   : > { %v5166_v45 = vpop.f32.mrb[12].mxu1  ;;  %10729 = vtanh.f32 %v4586_v4 }
 0x676   : > { %6339 = vst.msk [vmem:[%s14108_s5 + $0x60] sm:$0xff] %vm6326_vm1, %v5743_v31  ;;  %v10720_v20 = vpop.eup %10719  ;;  %v5167_v9 = vadd.f32 %v13919_v62, %v5166_v45  ;;  %v8816_v42 = vpop.f32.mrb[13].mxu1  ;;  %8974 = vmatmul.mubr.f32.gmra.mrb[118].mxu1 %v10718_v48 }
 0x677   : > { %v5747_v18 = vpop.f32.mrb[158].mxu0  ;;  %9225 = vmatmul.mubr.f32.gmra.mrb[8].mxu0 %v10720_v20  ;;  %8976 = vmatprep.mubr.msk.f32.mxu1 %vm10890_vm0, %v10891_v33  ;;  %v10722_v37 = vpop.eup %10721 }
 0x678   : > { %v5748_v2 = vadd.f32 %v14098_v23, %v5747_v18  ;;  %v9067_v59 = vpop.f32.mrb[159].mxu0  ;;  %10731 = vtanh.f32 %v5167_v9  ;;  %9227 = vmatprep.mubr.msk.f32.mxu0 %vm10890_vm0, %v10891_v33 }
 0x679   : > { %v5171_v35 = vpop.f32.mrb[14].mxu1  ;;  %10733 = vtanh.f32 %v4591_v7 }
 0x67a   : > { %6340 = vst.msk [vmem:[%s14108_s5 + $0x68] sm:$0xff] %vm6326_vm1, %v5748_v2  ;;  %v10724_v61 = vpop.eup %10723  ;;  %v5172_v3 = vadd.f32 %v13919_v62, %v5171_v35  ;;  %v8819_v12 = vpop.f32.mrb[15].mxu1  ;;  %8977 = vmatmul.mubr.f32.gmra.mrb[120].mxu1 %v10722_v37 }
 0x67b   : > { %v5752_v56 = vpop.f32.mrb[160].mxu0  ;;  %9228 = vmatmul.mubr.f32.gmra.mrb[10].mxu0 %v10724_v61  ;;  %8979 = vmatprep.mubr.msk.f32.mxu1 %vm10890_vm0, %v10891_v33  ;;  %v10726_v16 = vpop.eup %10725 }
 0x67c   : > { %v5753_v28 = vadd.f32 %v14098_v23, %v5752_v56  ;;  %v9070_v30 = vpop.f32.mrb[161].mxu0  ;;  %10735 = vtanh.f32 %v5172_v3  ;;  %9230 = vmatprep.mubr.msk.f32.mxu0 %vm10890_vm0, %v10891_v33 }
 0x67d   : > { %v5176_v57 = vpop.f32.mrb[16].mxu1  ;;  %10737 = vtanh.f32 %v4596_v1 }
 0x67e   : > { %6341 = vst.msk [vmem:[%s14108_s5 + $0x70] sm:$0xff] %vm6326_vm1, %v5753_v28  ;;  %v10728_v51 = vpop.eup %10727  ;;  %v5177_v58 = vadd.f32 %v13919_v62, %v5176_v57  ;;  %v8822_v36 = vpop.f32.mrb[17].mxu1  ;;  %8980 = vmatmul.mubr.f32.gmra.mrb[122].mxu1 %v10726_v16 }
 0x67f   : > { %v5757_v29 = vpop.f32.mrb[162].mxu0  ;;  %9231 = vmatmul.mubr.f32.gmra.mrb[12].mxu0 %v10728_v51  ;;  %8982 = vmatprep.mubr.msk.f32.mxu1 %vm10890_vm0, %v10891_v33  ;;  %v10730_v52 = vpop.eup %10729 }
 0x680   : > { %v5758_v39 = vadd.f32 %v14098_v23, %v5757_v29  ;;  %v9073_v17 = vpop.f32.mrb[163].mxu0  ;;  %10739 = vtanh.f32 %v5177_v58  ;;  %9233 = vmatprep.mubr.msk.f32.mxu0 %vm10890_vm0, %v10891_v33 }
 0x681   : > { %v5181_v62 = vpop.f32.mrb[18].mxu1  ;;  %10741 = vtanh.f32 %v4601_v8 }
 0x682   : > { %6342 = vst.msk [vmem:[%s14108_s5 + $0x78] sm:$0xff] %vm6326_vm1, %v5758_v39  ;;  %v10732_v34 = vpop.eup %10731  ;;  %v5182_v11 = vadd.f32 %v14272_v38, %v5181_v62  ;;  %v8825_v63 = vpop.f32.mrb[19].mxu1  ;;  %8983 = vmatmul.mubr.f32.gmra.mrb[124].mxu1 %v10730_v52 }
 0x683   : > { %v5762_v26 = vpop.f32.mrb[164].mxu0  ;;  %9234 = vmatmul.mubr.f32.gmra.mrb[14].mxu0 %v10732_v34  ;;  %8985 = vmatprep.mubr.msk.f32.mxu1 %vm10890_vm0, %v10891_v33  ;;  %v10734_v47 = vpop.eup %10733 }
 0x684   : > { %v5763_v53 = vadd.f32 %v14098_v23, %v5762_v26  ;;  %v9076_v5 = vpop.f32.mrb[165].mxu0  ;;  %10743 = vtanh.f32 %v5182_v11  ;;  %9236 = vmatprep.mubr.msk.f32.mxu0 %vm10890_vm0, %v10891_v33 }
 0x685   : > { %v5186_v0 = vpop.f32.mrb[20].mxu1 }
 0x686   : > { %6343 = vst.msk [vmem:[%s14108_s5 + $0x80] sm:$0xff] %vm6326_vm1, %v5763_v53  ;;  %v10736_v43 = vpop.eup %10735  ;;  %v5187_v24 = vadd.f32 %v14272_v38, %v5186_v0  ;;  %v8828_v22 = vpop.f32.mrb[21].mxu1  ;;  %8986 = vmatmul.mubr.f32.gmra.mrb[126].mxu1 %v10734_v47 }
 0x687   : > { %v5767_v15 = vpop.f32.mrb[166].mxu0  ;;  %9237 = vmatmul.mubr.f32.gmra.mrb[16].mxu0 %v10736_v43  ;;  %8988 = vmatprep.mubr.msk.f32.mxu1 %vm10890_vm0, %v10891_v33  ;;  %v10738_v60 = vpop.eup %10737 }
 0x688   : > { %v5768_v13 = vadd.f32 %v14098_v23, %v5767_v15  ;;  %v9079_v25 = vpop.f32.mrb[167].mxu0  ;;  %10745 = vtanh.f32 %v5187_v24  ;;  %9239 = vmatprep.mubr.msk.f32.mxu0 %vm10890_vm0, %v10891_v33 }
 0x689   : > { %v5191_v40 = vpop.f32.mrb[22].mxu1 }
 0x68a   : > { %6344 = vst.msk [vmem:[%s14108_s5 + $0x88] sm:$0xff] %vm6326_vm1, %v5768_v13  ;;  %v10740_v10 = vpop.eup %10739  ;;  %v5192_v55 = vadd.f32 %v14272_v38, %v5191_v40  ;;  %v8831_v32 = vpop.f32.mrb[23].mxu1  ;;  %8989 = vmatmul.mubr.f32.gmra.mrb[128].mxu1 %v10738_v60 }
 0x68b   : > { %v5772_v50 = vpop.f32.mrb[168].mxu0  ;;  %9240 = vmatmul.mubr.f32.gmra.mrb[18].mxu0 %v10740_v10  ;;  %8991 = vmatprep.mubr.msk.f32.mxu1 %vm10890_vm0, %v10891_v33  ;;  %v10742_v54 = vpop.eup %10741 }
 0x68c   : > { %v5773_v41 = vadd.f32 %v14098_v23, %v5772_v50  ;;  %v9082_v49 = vpop.f32.mrb[169].mxu0  ;;  %10747 = vtanh.f32 %v5192_v55  ;;  %9242 = vmatprep.mubr.msk.f32.mxu0 %vm10890_vm0, %v10891_v33 }
 0x68d   : > { %v5196_v6 = vpop.f32.mrb[24].mxu1 }
 0x68e   : > { %6345 = vst.msk [vmem:[%s14108_s5 + $0x90] sm:$0xff] %vm6326_vm1, %v5773_v41  ;;  %v10744_v19 = vpop.eup %10743  ;;  %v5197_v46 = vadd.f32 %v14272_v38, %v5196_v6  ;;  %v8834_v14 = vpop.f32.mrb[25].mxu1  ;;  %8992 = vmatmul.mubr.f32.gmra.mrb[130].mxu1 %v10742_v54 }
 0x68f   : > { %v5777_v44 = vpop.f32.mrb[170].mxu0  ;;  %9243 = vmatmul.mubr.f32.gmra.mrb[20].mxu0 %v10744_v19 }
 0x690   : > { %v5778_v27 = vadd.f32 %v14098_v23, %v5777_v44  ;;  %v9085_v4 = vpop.f32.mrb[171].mxu0  ;;  %10749 = vtanh.f32 %v5197_v46  ;;  %9245 = vmatprep.mubr.msk.f32.mxu0 %vm10890_vm0, %v10891_v33 }
 0x691   : > { %v5201_v31 = vpop.f32.mrb[26].mxu1 }
 0x692   : > { %6346 = vst.msk [vmem:[%s14108_s5 + $0x98] sm:$0xff] %vm6326_vm1, %v5778_v27  ;;  %v10746_v21 = vpop.eup %10745  ;;  %v5202_v48 = vadd.f32 %v14272_v38, %v5201_v31  ;;  %v8837_v45 = vpop.f32.mrb[27].mxu1 }
 0x693   : > { %v5782_v20 = vpop.f32.mrb[172].mxu0  ;;  %9246 = vmatmul.mubr.f32.gmra.mrb[22].mxu0 %v10746_v21 }
 0x694   : > { %v5783_v9 = vadd.f32 %v14098_v23, %v5782_v20  ;;  %v9088_v42 = vpop.f32.mrb[173].mxu0  ;;  %10751 = vtanh.f32 %v5202_v48  ;;  %9248 = vmatprep.mubr.msk.f32.mxu0 %vm10890_vm0, %v10891_v33 }
 0x695   : > { %v5206_v18 = vpop.f32.mrb[28].mxu1 }
 0x696   : > { %6347 = vst.msk [vmem:[%s14108_s5 + $0xa0] sm:$0xff] %vm6326_vm1, %v5783_v9  ;;  %v10748_v7 = vpop.eup %10747  ;;  %v5207_v2 = vadd.f32 %v14272_v38, %v5206_v18  ;;  %v8840_v59 = vpop.f32.mrb[29].mxu1 }
 0x697   : > { %v5787_v37 = vpop.f32.mrb[174].mxu0  ;;  %9249 = vmatmul.mubr.f32.gmra.mrb[24].mxu0 %v10748_v7 }
 0x698   : > { %v5788_v35 = vadd.f32 %v14098_v23, %v5787_v37  ;;  %v9091_v61 = vpop.f32.mrb[175].mxu0  ;;  %10753 = vtanh.f32 %v5207_v2  ;;  %9251 = vmatprep.mubr.msk.f32.mxu0 %vm10890_vm0, %v10891_v33 }
 0x699   : > { %v5211_v3 = vpop.f32.mrb[30].mxu1 }
 0x69a   : > { %6348 = vst.msk [vmem:[%s14108_s5 + $0xa8] sm:$0xff] %vm6326_vm1, %v5788_v35  ;;  %v10750_v12 = vpop.eup %10749  ;;  %v5212_v56 = vadd.f32 %v14272_v38, %v5211_v3  ;;  %v8843_v1 = vpop.f32.mrb[31].mxu1 }
 0x69b   : > { %v5792_v28 = vpop.f32.mrb[176].mxu0  ;;  %9252 = vmatmul.mubr.f32.gmra.mrb[26].mxu0 %v10750_v12 }
 0x69c   : > { %v5793_v30 = vadd.f32 %v14098_v23, %v5792_v28  ;;  %v9094_v16 = vpop.f32.mrb[177].mxu0  ;;  %10755 = vtanh.f32 %v5212_v56  ;;  %9254 = vmatprep.mubr.msk.f32.mxu0 %vm10890_vm0, %v10891_v33 }
 0x69d   : > { %v5216_v57 = vpop.f32.mrb[32].mxu1 }
 0x69e   : > { %6349 = vst.msk [vmem:[%s14108_s5 + $0xb0] sm:$0xff] %vm6326_vm1, %v5793_v30  ;;  %v10752_v51 = vpop.eup %10751  ;;  %v5217_v58 = vadd.f32 %v14272_v38, %v5216_v57  ;;  %v8846_v36 = vpop.f32.mrb[33].mxu1 }
 0x69f   : > { %v5797_v29 = vpop.f32.mrb[178].mxu0  ;;  %9255 = vmatmul.mubr.f32.gmra.mrb[28].mxu0 %v10752_v51 }
 0x6a0   : > { %v5798_v8 = vadd.f32 %v14098_v23, %v5797_v29  ;;  %v9097_v39 = vpop.f32.mrb[179].mxu0  ;;  %10757 = vtanh.f32 %v5217_v58  ;;  %9257 = vmatprep.mubr.msk.f32.mxu0 %vm10890_vm0, %v10891_v33 }
 0x6a1   : > { %v5221_v17 = vpop.f32.mrb[34].mxu1 }
 0x6a2   : > { %6350 = vst.msk [vmem:[%s14108_s5 + $0xb8] sm:$0xff] %vm6326_vm1, %v5798_v8  ;;  %v10754_v52 = vpop.eup %10753  ;;  %v5222_v62 = vadd.f32 %v14272_v38, %v5221_v17  ;;  %v8849_v34 = vpop.f32.mrb[35].mxu1 }
 0x6a3   : > { %v5802_v11 = vpop.f32.mrb[180].mxu0  ;;  %9258 = vmatmul.mubr.f32.gmra.mrb[30].mxu0 %v10754_v52 }
 0x6a4   : > { %v5803_v63 = vadd.f32 %v14098_v23, %v5802_v11  ;;  %v9100_v26 = vpop.f32.mrb[181].mxu0  ;;  %10759 = vtanh.f32 %v5222_v62  ;;  %9260 = vmatprep.mubr.msk.f32.mxu0 %vm10890_vm0, %v10891_v33 }
 0x6a5   : > { %v5226_v53 = vpop.f32.mrb[36].mxu1 }
 0x6a6   : > { %6351 = vst.msk [vmem:[%s14108_s5 + $0xc0] sm:$0xff] %vm6326_vm1, %v5803_v63  ;;  %v10756_v5 = vpop.eup %10755  ;;  %v5227_v47 = vadd.f32 %v14272_v38, %v5226_v53  ;;  %v8852_v0 = vpop.f32.mrb[37].mxu1 }
 0x6a7   : > { %v5807_v43 = vpop.f32.mrb[182].mxu0  ;;  %9261 = vmatmul.mubr.f32.gmra.mrb[32].mxu0 %v10756_v5 }
 0x6a8   : > { %v5808_v24 = vadd.f32 %v14098_v23, %v5807_v43  ;;  %v9103_v22 = vpop.f32.mrb[183].mxu0  ;;  %10761 = vtanh.f32 %v5227_v47  ;;  %9263 = vmatprep.mubr.msk.f32.mxu0 %vm10890_vm0, %v10891_v33 }
 0x6a9   : > { %v5231_v15 = vpop.f32.mrb[38].mxu1 }
 0x6aa   : > { %6352 = vst.msk [vmem:[%s14108_s5 + $0xc8] sm:$0xff] %vm6326_vm1, %v5808_v24  ;;  %v10758_v13 = vpop.eup %10757  ;;  %v5232_v25 = vadd.f32 %v14272_v38, %v5231_v15  ;;  %v8855_v60 = vpop.f32.mrb[39].mxu1 }
 0x6ab   : > { %v5812_v40 = vpop.f32.mrb[184].mxu0  ;;  %9264 = vmatmul.mubr.f32.gmra.mrb[34].mxu0 %v10758_v13 }
 0x6ac   : > { %v5813_v10 = vadd.f32 %v14098_v23, %v5812_v40  ;;  %v9106_v55 = vpop.f32.mrb[185].mxu0  ;;  %10763 = vtanh.f32 %v5232_v25  ;;  %9266 = vmatprep.mubr.msk.f32.mxu0 %vm10890_vm0, %v10891_v33 }
 0x6ad   : > { %v5236_v32 = vpop.f32.mrb[40].mxu1 }
 0x6ae   : > { %6353 = vst.msk [vmem:[%s14108_s5 + $0xd0] sm:$0xff] %vm6326_vm1, %v5813_v10  ;;  %v10760_v50 = vpop.eup %10759  ;;  %v5237_v41 = vadd.f32 %v14272_v38, %v5236_v32  ;;  %v8858_v49 = vpop.f32.mrb[41].mxu1 }
 0x6af   : > { %v5817_v54 = vpop.f32.mrb[186].mxu0  ;;  %9267 = vmatmul.mubr.f32.gmra.mrb[36].mxu0 %v10760_v50 }
 0x6b0   : > { %v5818_v6 = vadd.f32 %v14098_v23, %v5817_v54  ;;  %v9109_v19 = vpop.f32.mrb[187].mxu0  ;;  %10765 = vtanh.f32 %v5237_v41  ;;  %9269 = vmatprep.mubr.msk.f32.mxu0 %vm10890_vm0, %v10891_v33 }
 0x6b1   : > { %v5241_v46 = vpop.f32.mrb[42].mxu1 }
 0x6b2   : > { %6354 = vst.msk [vmem:[%s14108_s5 + $0xd8] sm:$0xff] %vm6326_vm1, %v5818_v6  ;;  %v10762_v14 = vpop.eup %10761  ;;  %v5242_v44 = vadd.f32 %v14272_v38, %v5241_v46  ;;  %v8861_v27 = vpop.f32.mrb[43].mxu1 }
 0x6b3   : > { %v5822_v4 = vpop.f32.mrb[188].mxu0  ;;  %9270 = vmatmul.mubr.f32.gmra.mrb[38].mxu0 %v10762_v14 }
 0x6b4   : > { %v5823_v31 = vadd.f32 %v14098_v23, %v5822_v4  ;;  %v9112_v21 = vpop.f32.mrb[189].mxu0  ;;  %10767 = vtanh.f32 %v5242_v44  ;;  %9272 = vmatprep.mubr.msk.f32.mxu0 %vm10890_vm0, %v10891_v33 }
 0x6b5   : > { %v5246_v48 = vpop.f32.mrb[44].mxu1 }
 0x6b6   : > { %6355 = vst.msk [vmem:[%s14108_s5 + $0xe0] sm:$0xff] %vm6326_vm1, %v5823_v31  ;;  %v10764_v45 = vpop.eup %10763  ;;  %v5247_v20 = vadd.f32 %v14272_v38, %v5246_v48  ;;  %v8864_v9 = vpop.f32.mrb[45].mxu1 }
 0x6b7   : > { %v5827_v42 = vpop.f32.mrb[190].mxu0  ;;  %9273 = vmatmul.mubr.f32.gmra.mrb[40].mxu0 %v10764_v45 }
 0x6b8   : > { %v5828_v18 = vadd.f32 %v14098_v23, %v5827_v42  ;;  %v9115_v7 = vpop.f32.mrb[191].mxu0  ;;  %10769 = vtanh.f32 %v5247_v20  ;;  %9275 = vmatprep.mubr.msk.f32.mxu0 %vm10890_vm0, %v10891_v33 }
 0x6b9   : > { %v5251_v2 = vpop.f32.mrb[46].mxu1 }
 0x6ba   : > { %6356 = vst.msk [vmem:[%s14108_s5 + $0xe8] sm:$0xff] %vm6326_vm1, %v5828_v18  ;;  %v10766_v59 = vpop.eup %10765  ;;  %v5252_v37 = vadd.f32 %v14272_v38, %v5251_v2  ;;  %v8867_v35 = vpop.f32.mrb[47].mxu1  ;;  %v14416_v2 = vld [vmem:[%s14815_s3 + $0x5] ss:$0 sm:$0xff] }
 0x6bb   : > { %v5832_v61 = vpop.f32.mrb[192].mxu0  ;;  %9276 = vmatmul.mubr.f32.gmra.mrb[42].mxu0 %v10766_v59 }
 0x6bc   : > { %v5833_v3 = vadd.f32 %v14098_v23, %v5832_v61  ;;  %v9118_v12 = vpop.f32.mrb[193].mxu0  ;;  %10771 = vtanh.f32 %v5252_v37  ;;  %9278 = vmatprep.mubr.msk.f32.mxu0 %vm10890_vm0, %v10891_v33 }
 0x6bd   : > { %v5256_v56 = vpop.f32.mrb[48].mxu1 }
 0x6be   : > { %6357 = vst.msk [vmem:[%s14108_s5 + $0xf0] sm:$0xff] %vm6326_vm1, %v5833_v3  ;;  %v10768_v1 = vpop.eup %10767  ;;  %v5257_v28 = vadd.f32 %v14272_v38, %v5256_v56  ;;  %v8870_v30 = vpop.f32.mrb[49].mxu1 }
 0x6bf   : > { %v5837_v16 = vpop.f32.mrb[194].mxu0  ;;  %9279 = vmatmul.mubr.f32.gmra.mrb[44].mxu0 %v10768_v1 }
 0x6c0   : > { %v5838_v57 = vadd.f32 %v14098_v23, %v5837_v16  ;;  %v9121_v51 = vpop.f32.mrb[195].mxu0  ;;  %10773 = vtanh.f32 %v5257_v28  ;;  %9281 = vmatprep.mubr.msk.f32.mxu0 %vm10890_vm0, %v10891_v33 }
 0x6c1   : > { %v5261_v58 = vpop.f32.mrb[50].mxu1 }
 0x6c2   : > { %6358 = vst.msk [vmem:[%s14108_s5 + $0xf8] sm:$0xff] %vm6326_vm1, %v5838_v57  ;;  %v10770_v36 = vpop.eup %10769  ;;  %v5262_v29 = vadd.f32 %v14272_v38, %v5261_v58  ;;  %v8873_v8 = vpop.f32.mrb[51].mxu1 }
 0x6c3   : > { %v5842_v39 = vpop.f32.mrb[196].mxu0  ;;  %9282 = vmatmul.mubr.f32.gmra.mrb[46].mxu0 %v10770_v36 }
 0x6c4   : > { %v5843_v17 = vadd.f32 %v14098_v23, %v5842_v39  ;;  %v9124_v52 = vpop.f32.mrb[197].mxu0  ;;  %10775 = vtanh.f32 %v5262_v29  ;;  %9284 = vmatprep.mubr.msk.f32.mxu0 %vm10890_vm0, %v10891_v33 }
 0x6c5   : > { %v5266_v62 = vpop.f32.mrb[52].mxu1 }
 0x6c6   : > { %6359 = vst.msk [vmem:[%s14108_s5 + $0x100] sm:$0xff] %vm6326_vm1, %v5843_v17  ;;  %v10772_v34 = vpop.eup %10771  ;;  %v5267_v11 = vadd.f32 %v14272_v38, %v5266_v62  ;;  %v8876_v63 = vpop.f32.mrb[53].mxu1 }
 0x6c7   : > { %v5847_v26 = vpop.f32.mrb[198].mxu0  ;;  %9285 = vmatmul.mubr.f32.gmra.mrb[48].mxu0 %v10772_v34 }
 0x6c8   : > { %v5848_v53 = vadd.f32 %v14098_v23, %v5847_v26  ;;  %v9127_v5 = vpop.f32.mrb[199].mxu0  ;;  %10777 = vtanh.f32 %v5267_v11  ;;  %9287 = vmatprep.mubr.msk.f32.mxu0 %vm10890_vm0, %v10891_v33 }
 0x6c9   : > { %v5271_v47 = vpop.f32.mrb[54].mxu1 }
 0x6ca   : > { %6360 = vst.msk [vmem:[%s14108_s5 + $0x108] sm:$0xff] %vm6326_vm1, %v5848_v53  ;;  %v10774_v0 = vpop.eup %10773  ;;  %v5272_v43 = vadd.f32 %v14272_v38, %v5271_v47  ;;  %v8879_v24 = vpop.f32.mrb[55].mxu1 }
 0x6cb   : > { %v5852_v22 = vpop.f32.mrb[200].mxu0  ;;  %9288 = vmatmul.mubr.f32.gmra.mrb[50].mxu0 %v10774_v0 }
 0x6cc   : > { %v5853_v15 = vadd.f32 %v14098_v23, %v5852_v22  ;;  %v9130_v13 = vpop.f32.mrb[201].mxu0  ;;  %10779 = vtanh.f32 %v5272_v43  ;;  %9290 = vmatprep.mubr.msk.f32.mxu0 %vm10890_vm0, %v10891_v33 }
 0x6cd   : > { %v5276_v25 = vpop.f32.mrb[56].mxu1 }
 0x6ce   : > { %6361 = vst.msk [vmem:[%s14108_s5 + $0x110] sm:$0xff] %vm6326_vm1, %v5853_v15  ;;  %v10776_v60 = vpop.eup %10775  ;;  %v5277_v40 = vadd.f32 %v14272_v38, %v5276_v25  ;;  %v8882_v10 = vpop.f32.mrb[57].mxu1 }
 0x6cf   : > { %v5857_v55 = vpop.f32.mrb[202].mxu0  ;;  %9291 = vmatmul.mubr.f32.gmra.mrb[52].mxu0 %v10776_v60 }
 0x6d0   : > { %v5858_v32 = vadd.f32 %v14098_v23, %v5857_v55  ;;  %v9133_v50 = vpop.f32.mrb[203].mxu0  ;;  %10781 = vtanh.f32 %v5277_v40  ;;  %9293 = vmatprep.mubr.msk.f32.mxu0 %vm10890_vm0, %v10891_v33 }
 0x6d1   : > { %v5281_v41 = vpop.f32.mrb[58].mxu1 }
 0x6d2   : > { %6362 = vst.msk [vmem:[%s14108_s5 + $0x118] sm:$0xff] %vm6326_vm1, %v5858_v32  ;;  %v10778_v49 = vpop.eup %10777  ;;  %v5282_v54 = vadd.f32 %v14272_v38, %v5281_v41  ;;  %v8885_v6 = vpop.f32.mrb[59].mxu1 }
 0x6d3   : > { %v5862_v19 = vpop.f32.mrb[204].mxu0  ;;  %9294 = vmatmul.mubr.f32.gmra.mrb[54].mxu0 %v10778_v49 }
 0x6d4   : > { %v5863_v46 = vadd.f32 %v14098_v23, %v5862_v19  ;;  %v9136_v14 = vpop.f32.mrb[205].mxu0  ;;  %10783 = vtanh.f32 %v5282_v54  ;;  %9296 = vmatprep.mubr.msk.f32.mxu0 %vm10890_vm0, %v10891_v33 }
 0x6d5   : > { %v5286_v44 = vpop.f32.mrb[60].mxu1 }
 0x6d6   : > { %6363 = vst.msk [vmem:[%s14108_s5 + $0x120] sm:$0xff] %vm6326_vm1, %v5863_v46  ;;  %v10780_v27 = vpop.eup %10779  ;;  %v5287_v4 = vadd.f32 %v14272_v38, %v5286_v44  ;;  %v8888_v31 = vpop.f32.mrb[61].mxu1 }
 0x6d7   : > { %v5867_v21 = vpop.f32.mrb[206].mxu0  ;;  %9297 = vmatmul.mubr.f32.gmra.mrb[56].mxu0 %v10780_v27 }
 0x6d8   : > { %v5868_v48 = vadd.f32 %v14098_v23, %v5867_v21  ;;  %v9139_v45 = vpop.f32.mrb[207].mxu0  ;;  %10785 = vtanh.f32 %v5287_v4  ;;  %9299 = vmatprep.mubr.msk.f32.mxu0 %vm10890_vm0, %v10891_v33 }
 0x6d9   : > { %v5291_v20 = vpop.f32.mrb[62].mxu1 }
 0x6da   : > { %6364 = vst.msk [vmem:[%s14108_s5 + $0x128] sm:$0xff] %vm6326_vm1, %v5868_v48  ;;  %v10782_v9 = vpop.eup %10781  ;;  %v5292_v42 = vadd.f32 %v14272_v38, %v5291_v20  ;;  %v8891_v18 = vpop.f32.mrb[63].mxu1 }
 0x6db   : > { %v5872_v7 = vpop.f32.mrb[208].mxu0  ;;  %9300 = vmatmul.mubr.f32.gmra.mrb[58].mxu0 %v10782_v9 }
 0x6dc   : > { %v5873_v23 = vadd.f32 %v14416_v2, %v5872_v7  ;;  %v9142_v59 = vpop.f32.mrb[209].mxu0  ;;  %10787 = vtanh.f32 %v5292_v42  ;;  %9302 = vmatprep.mubr.msk.f32.mxu0 %vm10890_vm0, %v10891_v33 }
 0x6dd   : > { %v5296_v37 = vpop.f32.mrb[64].mxu1 }
 0x6de   : > { %6365 = vst.msk [vmem:[%s14108_s5 + $0x130] sm:$0xff] %vm6326_vm1, %v5873_v23  ;;  %v10784_v35 = vpop.eup %10783  ;;  %v5297_v61 = vadd.f32 %v14272_v38, %v5296_v37  ;;  %v8894_v3 = vpop.f32.mrb[65].mxu1 }
 0x6df   : > { %v5877_v12 = vpop.f32.mrb[210].mxu0  ;;  %9303 = vmatmul.mubr.f32.gmra.mrb[60].mxu0 %v10784_v35 }
 0x6e0   : > { %v5878_v56 = vadd.f32 %v14416_v2, %v5877_v12  ;;  %v9145_v1 = vpop.f32.mrb[211].mxu0  ;;  %10789 = vtanh.f32 %v5297_v61  ;;  %9305 = vmatprep.mubr.msk.f32.mxu0 %vm10890_vm0, %v10891_v33 }
 0x6e1   : > { %v5301_v28 = vpop.f32.mrb[66].mxu1 }
 0x6e2   : > { %6366 = vst.msk [vmem:[%s14108_s5 + $0x138] sm:$0xff] %vm6326_vm1, %v5878_v56  ;;  %v10786_v30 = vpop.eup %10785  ;;  %v5302_v16 = vadd.f32 %v14272_v38, %v5301_v28  ;;  %v8897_v57 = vpop.f32.mrb[67].mxu1 }
 0x6e3   : > { %v5882_v51 = vpop.f32.mrb[212].mxu0  ;;  %9306 = vmatmul.mubr.f32.gmra.mrb[62].mxu0 %v10786_v30 }
 0x6e4   : > { %v5883_v58 = vadd.f32 %v14416_v2, %v5882_v51  ;;  %v9148_v36 = vpop.f32.mrb[213].mxu0  ;;  %10791 = vtanh.f32 %v5302_v16  ;;  %9308 = vmatprep.mubr.msk.f32.mxu0 %vm10890_vm0, %v10891_v33 }
 0x6e5   : > { %v5306_v29 = vpop.f32.mrb[68].mxu1 }
 0x6e6   : > { %6367 = vst.msk [vmem:[%s14108_s5 + $0x140] sm:$0xff] %vm6326_vm1, %v5883_v58  ;;  %v10788_v8 = vpop.eup %10787  ;;  %v5307_v39 = vadd.f32 %v14272_v38, %v5306_v29  ;;  %v8900_v17 = vpop.f32.mrb[69].mxu1 }
 0x6e7   : > { %v5887_v52 = vpop.f32.mrb[214].mxu0  ;;  %9309 = vmatmul.mubr.f32.gmra.mrb[64].mxu0 %v10788_v8 }
 0x6e8   : > { %v5888_v62 = vadd.f32 %v14416_v2, %v5887_v52  ;;  %v9151_v34 = vpop.f32.mrb[215].mxu0  ;;  %10793 = vtanh.f32 %v5307_v39  ;;  %9311 = vmatprep.mubr.msk.f32.mxu0 %vm10890_vm0, %v10891_v33 }
 0x6e9   : > { %v5311_v11 = vpop.f32.mrb[70].mxu1 }
 0x6ea   : > { %6368 = vst.msk [vmem:[%s14108_s5 + $0x148] sm:$0xff] %vm6326_vm1, %v5888_v62  ;;  %v10790_v63 = vpop.eup %10789  ;;  %v5312_v26 = vadd.f32 %v14272_v38, %v5311_v11  ;;  %v8903_v53 = vpop.f32.mrb[71].mxu1 }
 0x6eb   : > { %v5892_v5 = vpop.f32.mrb[216].mxu0  ;;  %9312 = vmatmul.mubr.f32.gmra.mrb[66].mxu0 %v10790_v63 }
 0x6ec   : > { %v5893_v47 = vadd.f32 %v14416_v2, %v5892_v5  ;;  %v9154_v0 = vpop.f32.mrb[217].mxu0  ;;  %10795 = vtanh.f32 %v5312_v26  ;;  %9314 = vmatprep.mubr.msk.f32.mxu0 %vm10890_vm0, %v10891_v33 }
 0x6ed   : > { %v5316_v43 = vpop.f32.mrb[72].mxu1 }
 0x6ee   : > { %6369 = vst.msk [vmem:[%s14108_s5 + $0x150] sm:$0xff] %vm6326_vm1, %v5893_v47  ;;  %v10792_v24 = vpop.eup %10791  ;;  %v5317_v22 = vadd.f32 %v14272_v38, %v5316_v43  ;;  %v8906_v15 = vpop.f32.mrb[73].mxu1 }
 0x6ef   : > { %v5897_v13 = vpop.f32.mrb[218].mxu0  ;;  %9315 = vmatmul.mubr.f32.gmra.mrb[68].mxu0 %v10792_v24 }
 0x6f0   : > { %v5898_v25 = vadd.f32 %v14416_v2, %v5897_v13  ;;  %v9157_v60 = vpop.f32.mrb[219].mxu0  ;;  %10797 = vtanh.f32 %v5317_v22  ;;  %9317 = vmatprep.mubr.msk.f32.mxu0 %vm10890_vm0, %v10891_v33 }
 0x6f1   : > { %v5321_v40 = vpop.f32.mrb[74].mxu1 }
 0x6f2   : > { %6370 = vst.msk [vmem:[%s14108_s5 + $0x158] sm:$0xff] %vm6326_vm1, %v5898_v25  ;;  %v10794_v10 = vpop.eup %10793  ;;  %v5322_v55 = vadd.f32 %v14272_v38, %v5321_v40  ;;  %v8909_v32 = vpop.f32.mrb[75].mxu1 }
 0x6f3   : > { %v5902_v50 = vpop.f32.mrb[220].mxu0  ;;  %9318 = vmatmul.mubr.f32.gmra.mrb[70].mxu0 %v10794_v10 }
 0x6f4   : > { %v5903_v41 = vadd.f32 %v14416_v2, %v5902_v50  ;;  %v9160_v49 = vpop.f32.mrb[221].mxu0  ;;  %10799 = vtanh.f32 %v5322_v55  ;;  %9320 = vmatprep.mubr.msk.f32.mxu0 %vm10890_vm0, %v10891_v33 }
 0x6f5   : > { %v5326_v54 = vpop.f32.mrb[76].mxu1 }
 0x6f6   : > { %6371 = vst.msk [vmem:[%s14108_s5 + $0x160] sm:$0xff] %vm6326_vm1, %v5903_v41  ;;  %v10796_v6 = vpop.eup %10795  ;;  %v5327_v19 = vadd.f32 %v14272_v38, %v5326_v54  ;;  %v8912_v46 = vpop.f32.mrb[77].mxu1 }
 0x6f7   : > { %v5907_v14 = vpop.f32.mrb[222].mxu0  ;;  %9321 = vmatmul.mubr.f32.gmra.mrb[72].mxu0 %v10796_v6 }
 0x6f8   : > { %v5908_v44 = vadd.f32 %v14416_v2, %v5907_v14  ;;  %v9163_v27 = vpop.f32.mrb[223].mxu0  ;;  %10801 = vtanh.f32 %v5327_v19  ;;  %9323 = vmatprep.mubr.msk.f32.mxu0 %vm10890_vm0, %v10891_v33 }
 0x6f9   : > { %v5331_v4 = vpop.f32.mrb[78].mxu1 }
 0x6fa   : > { %6372 = vst.msk [vmem:[%s14108_s5 + $0x168] sm:$0xff] %vm6326_vm1, %v5908_v44  ;;  %v10798_v31 = vpop.eup %10797  ;;  %v5332_v21 = vadd.f32 %v14272_v38, %v5331_v4  ;;  %v8915_v48 = vpop.f32.mrb[79].mxu1 }
 0x6fb   : > { %v5912_v45 = vpop.f32.mrb[224].mxu0  ;;  %9324 = vmatmul.mubr.f32.gmra.mrb[74].mxu0 %v10798_v31 }
 0x6fc   : > { %v5913_v20 = vadd.f32 %v14416_v2, %v5912_v45  ;;  %v9166_v9 = vpop.f32.mrb[225].mxu0  ;;  %10803 = vtanh.f32 %v5332_v21  ;;  %9326 = vmatprep.mubr.msk.f32.mxu0 %vm10890_vm0, %v10891_v33 }
 0x6fd   : > { %v5336_v42 = vpop.f32.mrb[80].mxu1 }
 0x6fe   : > { %6373 = vst.msk [vmem:[%s14108_s5 + $0x170] sm:$0xff] %vm6326_vm1, %v5913_v20  ;;  %v10800_v18 = vpop.eup %10799  ;;  %v5337_v7 = vadd.f32 %v14272_v38, %v5336_v42  ;;  %v8918_v23 = vpop.f32.mrb[81].mxu1 }
 0x6ff   : > { %v5917_v59 = vpop.f32.mrb[226].mxu0  ;;  %9327 = vmatmul.mubr.f32.gmra.mrb[76].mxu0 %v10800_v18 }
 0x700   : > { %v5918_v37 = vadd.f32 %v14416_v2, %v5917_v59  ;;  %v9169_v35 = vpop.f32.mrb[227].mxu0  ;;  %10805 = vtanh.f32 %v5337_v7  ;;  %9329 = vmatprep.mubr.msk.f32.mxu0 %vm10890_vm0, %v10891_v33 }
 0x701   : > { %v5341_v61 = vpop.f32.mrb[82].mxu1 }
 0x702   : > { %6374 = vst.msk [vmem:[%s14108_s5 + $0x178] sm:$0xff] %vm6326_vm1, %v5918_v37  ;;  %v10802_v3 = vpop.eup %10801  ;;  %v5342_v12 = vadd.f32 %v14272_v38, %v5341_v61  ;;  %v8921_v56 = vpop.f32.mrb[83].mxu1 }
 0x703   : > { %v5922_v1 = vpop.f32.mrb[228].mxu0  ;;  %9330 = vmatmul.mubr.f32.gmra.mrb[78].mxu0 %v10802_v3 }
 0x704   : > { %v5923_v28 = vadd.f32 %v14416_v2, %v5922_v1  ;;  %v9172_v30 = vpop.f32.mrb[229].mxu0  ;;  %10807 = vtanh.f32 %v5342_v12  ;;  %9332 = vmatprep.mubr.msk.f32.mxu0 %vm10890_vm0, %v10891_v33 }
 0x705   : > { %v5346_v16 = vpop.f32.mrb[84].mxu1 }
 0x706   : > { %6375 = vst.msk [vmem:[%s14108_s5 + $0x180] sm:$0xff] %vm6326_vm1, %v5923_v28  ;;  %v10804_v57 = vpop.eup %10803  ;;  %v5347_v51 = vadd.f32 %v14272_v38, %v5346_v16  ;;  %v8924_v58 = vpop.f32.mrb[85].mxu1 }
 0x707   : > { %v5927_v36 = vpop.f32.mrb[230].mxu0  ;;  %9333 = vmatmul.mubr.f32.gmra.mrb[80].mxu0 %v10804_v57 }
 0x708   : > { %v5928_v29 = vadd.f32 %v14416_v2, %v5927_v36  ;;  %v9175_v8 = vpop.f32.mrb[231].mxu0  ;;  %10809 = vtanh.f32 %v5347_v51  ;;  %9335 = vmatprep.mubr.msk.f32.mxu0 %vm10890_vm0, %v10891_v33 }
 0x709   : > { %v5351_v39 = vpop.f32.mrb[86].mxu1 }
 0x70a   : > { %6376 = vst.msk [vmem:[%s14108_s5 + $0x188] sm:$0xff] %vm6326_vm1, %v5928_v29  ;;  %v10806_v17 = vpop.eup %10805  ;;  %v5352_v52 = vadd.f32 %v14272_v38, %v5351_v39  ;;  %v8927_v62 = vpop.f32.mrb[87].mxu1 }
 0x70b   : > { %v5932_v34 = vpop.f32.mrb[232].mxu0  ;;  %9336 = vmatmul.mubr.f32.gmra.mrb[82].mxu0 %v10806_v17 }
 0x70c   : > { %v5933_v11 = vadd.f32 %v14416_v2, %v5932_v34  ;;  %v9178_v63 = vpop.f32.mrb[233].mxu0  ;;  %10811 = vtanh.f32 %v5352_v52  ;;  %9338 = vmatprep.mubr.msk.f32.mxu0 %vm10890_vm0, %v10891_v33 }
 0x70d   : > { %v5356_v26 = vpop.f32.mrb[88].mxu1 }
 0x70e   : > { %6377 = vst.msk [vmem:[%s14108_s5 + $0x190] sm:$0xff] %vm6326_vm1, %v5933_v11  ;;  %v10808_v53 = vpop.eup %10807  ;;  %v5357_v5 = vadd.f32 %v14272_v38, %v5356_v26  ;;  %v8930_v47 = vpop.f32.mrb[89].mxu1 }
 0x70f   : > { %v5937_v0 = vpop.f32.mrb[234].mxu0  ;;  %9339 = vmatmul.mubr.f32.gmra.mrb[84].mxu0 %v10808_v53 }
 0x710   : > { %v5938_v43 = vadd.f32 %v14416_v2, %v5937_v0  ;;  %v9181_v24 = vpop.f32.mrb[235].mxu0  ;;  %10813 = vtanh.f32 %v5357_v5  ;;  %9341 = vmatprep.mubr.msk.f32.mxu0 %vm10890_vm0, %v10891_v33 }
 0x711   : > { %v5361_v22 = vpop.f32.mrb[90].mxu1 }
 0x712   : > { %6378 = vst.msk [vmem:[%s14108_s5 + $0x198] sm:$0xff] %vm6326_vm1, %v5938_v43  ;;  %v10810_v15 = vpop.eup %10809  ;;  %v5362_v13 = vadd.f32 %v14272_v38, %v5361_v22  ;;  %v8933_v25 = vpop.f32.mrb[91].mxu1 }
 0x713   : > { %v5942_v60 = vpop.f32.mrb[236].mxu0  ;;  %9342 = vmatmul.mubr.f32.gmra.mrb[86].mxu0 %v10810_v15 }
 0x714   : > { %v5943_v40 = vadd.f32 %v14416_v2, %v5942_v60  ;;  %v9184_v10 = vpop.f32.mrb[237].mxu0  ;;  %10815 = vtanh.f32 %v5362_v13  ;;  %9344 = vmatprep.mubr.msk.f32.mxu0 %vm10890_vm0, %v10891_v33 }
 0x715   : > { %v5366_v55 = vpop.f32.mrb[92].mxu1 }
 0x716   : > { %6379 = vst.msk [vmem:[%s14108_s5 + $0x1a0] sm:$0xff] %vm6326_vm1, %v5943_v40  ;;  %v10812_v32 = vpop.eup %10811  ;;  %v5367_v50 = vadd.f32 %v14272_v38, %v5366_v55  ;;  %v8936_v41 = vpop.f32.mrb[93].mxu1 }
 0x717   : > { %v5947_v49 = vpop.f32.mrb[238].mxu0  ;;  %9345 = vmatmul.mubr.f32.gmra.mrb[88].mxu0 %v10812_v32 }
 0x718   : > { %v5948_v54 = vadd.f32 %v14416_v2, %v5947_v49  ;;  %v9187_v6 = vpop.f32.mrb[239].mxu0  ;;  %10817 = vtanh.f32 %v5367_v50  ;;  %9347 = vmatprep.mubr.msk.f32.mxu0 %vm10890_vm0, %v10891_v33  ;;  %v14564_v49 = vld [vmem:[%s14815_s3 + $0x4] ss:$0 sm:$0xff] }
 0x719   : > { %v5371_v19 = vpop.f32.mrb[94].mxu1 }
 0x71a   : > { %6380 = vst.msk [vmem:[%s14108_s5 + $0x1a8] sm:$0xff] %vm6326_vm1, %v5948_v54  ;;  %v10814_v46 = vpop.eup %10813  ;;  %v5372_v14 = vadd.f32 %v14272_v38, %v5371_v19  ;;  %v8939_v44 = vpop.f32.mrb[95].mxu1 }
 0x71b   : > { %v5952_v27 = vpop.f32.mrb[240].mxu0  ;;  %9348 = vmatmul.mubr.f32.gmra.mrb[90].mxu0 %v10814_v46 }
 0x71c   : > { %v5953_v4 = vadd.f32 %v14416_v2, %v5952_v27  ;;  %v9190_v31 = vpop.f32.mrb[241].mxu0  ;;  %10819 = vtanh.f32 %v5372_v14  ;;  %9350 = vmatprep.mubr.msk.f32.mxu0 %vm10890_vm0, %v10891_v33 }
 0x71d   : > { %v5376_v21 = vpop.f32.mrb[96].mxu1 }
 0x71e   : > { %6381 = vst.msk [vmem:[%s14108_s5 + $0x1b0] sm:$0xff] %vm6326_vm1, %v5953_v4  ;;  %v10816_v48 = vpop.eup %10815  ;;  %v5377_v45 = vadd.f32 %v14272_v38, %v5376_v21  ;;  %v8942_v20 = vpop.f32.mrb[97].mxu1 }
 0x71f   : > { %v5957_v9 = vpop.f32.mrb[242].mxu0  ;;  %9351 = vmatmul.mubr.f32.gmra.mrb[92].mxu0 %v10816_v48 }
 0x720   : > { %v5958_v42 = vadd.f32 %v14416_v2, %v5957_v9  ;;  %v9193_v18 = vpop.f32.mrb[243].mxu0  ;;  %10821 = vtanh.f32 %v5377_v45  ;;  %9353 = vmatprep.mubr.msk.f32.mxu0 %vm10890_vm0, %v10891_v33 }
 0x721   : > { %v5381_v7 = vpop.f32.mrb[98].mxu1 }
 0x722   : > { %6382 = vst.msk [vmem:[%s14108_s5 + $0x1b8] sm:$0xff] %vm6326_vm1, %v5958_v42  ;;  %v10818_v23 = vpop.eup %10817  ;;  %v5382_v59 = vadd.f32 %v14272_v38, %v5381_v7  ;;  %v8945_v37 = vpop.f32.mrb[99].mxu1 }
 0x723   : > { %v5962_v35 = vpop.f32.mrb[244].mxu0  ;;  %9354 = vmatmul.mubr.f32.gmra.mrb[94].mxu0 %v10818_v23 }
 0x724   : > { %v5963_v61 = vadd.f32 %v14416_v2, %v5962_v35  ;;  %v9196_v3 = vpop.f32.mrb[245].mxu0  ;;  %10823 = vtanh.f32 %v5382_v59  ;;  %9356 = vmatprep.mubr.msk.f32.mxu0 %vm10890_vm0, %v10891_v33 }
 0x725   : > { %v5386_v12 = vpop.f32.mrb[100].mxu1 }
 0x726   : > { %6383 = vst.msk [vmem:[%s14108_s5 + $0x1c0] sm:$0xff] %vm6326_vm1, %v5963_v61  ;;  %v10820_v56 = vpop.eup %10819  ;;  %v5387_v1 = vadd.f32 %v14272_v38, %v5386_v12  ;;  %v8948_v28 = vpop.f32.mrb[101].mxu1 }
 0x727   : > { %v5967_v30 = vpop.f32.mrb[246].mxu0  ;;  %9357 = vmatmul.mubr.f32.gmra.mrb[96].mxu0 %v10820_v56 }
 0x728   : > { %v5968_v16 = vadd.f32 %v14416_v2, %v5967_v30  ;;  %v9199_v57 = vpop.f32.mrb[247].mxu0  ;;  %10825 = vtanh.f32 %v5387_v1  ;;  %9359 = vmatprep.mubr.msk.f32.mxu0 %vm10890_vm0, %v10891_v33 }
 0x729   : > { %v5391_v51 = vpop.f32.mrb[102].mxu1 }
 0x72a   : > { %6384 = vst.msk [vmem:[%s14108_s5 + $0x1c8] sm:$0xff] %vm6326_vm1, %v5968_v16  ;;  %v10822_v58 = vpop.eup %10821  ;;  %v5392_v36 = vadd.f32 %v14272_v38, %v5391_v51  ;;  %v8951_v29 = vpop.f32.mrb[103].mxu1 }
 0x72b   : > { %v5972_v8 = vpop.f32.mrb[248].mxu0  ;;  %9360 = vmatmul.mubr.f32.gmra.mrb[98].mxu0 %v10822_v58 }
 0x72c   : > { %v5973_v39 = vadd.f32 %v14416_v2, %v5972_v8  ;;  %v9202_v17 = vpop.f32.mrb[249].mxu0  ;;  %10827 = vtanh.f32 %v5392_v36  ;;  %9362 = vmatprep.mubr.msk.f32.mxu0 %vm10890_vm0, %v10891_v33 }
 0x72d   : > { %v5396_v52 = vpop.f32.mrb[104].mxu1 }
 0x72e   : > { %6385 = vst.msk [vmem:[%s14108_s5 + $0x1d0] sm:$0xff] %vm6326_vm1, %v5973_v39  ;;  %v10824_v62 = vpop.eup %10823  ;;  %v5397_v34 = vadd.f32 %v14272_v38, %v5396_v52  ;;  %v8954_v11 = vpop.f32.mrb[105].mxu1 }
 0x72f   : > { %v5977_v63 = vpop.f32.mrb[250].mxu0  ;;  %9363 = vmatmul.mubr.f32.gmra.mrb[100].mxu0 %v10824_v62 }
 0x730   : > { %v5978_v26 = vadd.f32 %v14416_v2, %v5977_v63  ;;  %v9205_v53 = vpop.f32.mrb[251].mxu0  ;;  %10829 = vtanh.f32 %v5397_v34  ;;  %9365 = vmatprep.mubr.msk.f32.mxu0 %vm10890_vm0, %v10891_v33 }
 0x731   : > { %v5401_v5 = vpop.f32.mrb[106].mxu1 }
 0x732   : > { %6386 = vst.msk [vmem:[%s14108_s5 + $0x1d8] sm:$0xff] %vm6326_vm1, %v5978_v26  ;;  %v10826_v47 = vpop.eup %10825  ;;  %v5402_v0 = vadd.f32 %v14272_v38, %v5401_v5  ;;  %v8957_v43 = vpop.f32.mrb[107].mxu1 }
 0x733   : > { %v5982_v24 = vpop.f32.mrb[252].mxu0  ;;  %9366 = vmatmul.mubr.f32.gmra.mrb[102].mxu0 %v10826_v47 }
 0x734   : > { %v5983_v22 = vadd.f32 %v14416_v2, %v5982_v24  ;;  %v9208_v15 = vpop.f32.mrb[253].mxu0  ;;  %10831 = vtanh.f32 %v5402_v0  ;;  %9368 = vmatprep.mubr.msk.f32.mxu0 %vm10890_vm0, %v10891_v33 }
 0x735   : > { %v5406_v13 = vpop.f32.mrb[108].mxu1 }
 0x736   : > { %6387 = vst.msk [vmem:[%s14108_s5 + $0x1e0] sm:$0xff] %vm6326_vm1, %v5983_v22  ;;  %v10828_v25 = vpop.eup %10827  ;;  %v5407_v60 = vadd.f32 %v14272_v38, %v5406_v13  ;;  %v8960_v40 = vpop.f32.mrb[109].mxu1 }
 0x737   : > { %v5987_v10 = vpop.f32.mrb[254].mxu0  ;;  %9369 = vmatmul.mubr.f32.gmra.mrb[104].mxu0 %v10828_v25 }
 0x738   : > { %v5988_v55 = vadd.f32 %v14416_v2, %v5987_v10  ;;  %v9211_v32 = vpop.f32.mrb[255].mxu0  ;;  %10833 = vtanh.f32 %v5407_v60  ;;  %9371 = vmatprep.mubr.msk.f32.mxu0 %vm10890_vm0, %v10891_v33 }
 0x739   : > { %v5411_v50 = vpop.f32.mrb[110].mxu1 }
 0x73a   : > { %6388 = vst.msk [vmem:[%s14108_s5 + $0x1e8] sm:$0xff] %vm6326_vm1, %v5988_v55  ;;  %v10830_v41 = vpop.eup %10829  ;;  %v5412_v38 = vadd.f32 %v14564_v49, %v5411_v50  ;;  %v8963_v54 = vpop.f32.mrb[111].mxu1 }
 0x73b   : > { %v5992_v6 = vpop.f32.mrb[0].mxu0  ;;  %9372 = vmatmul.mubr.f32.gmra.mrb[106].mxu0 %v10830_v41 }
 0x73c   : > { %v5993_v19 = vadd.f32 %v14416_v2, %v5992_v6  ;;  %v9214_v46 = vpop.f32.mrb[1].mxu0  ;;  %10835 = vtanh.f32 %v5412_v38  ;;  %9374 = vmatprep.mubr.msk.f32.mxu0 %vm10890_vm0, %v10891_v33 }
 0x73d   : > { %v5416_v14 = vpop.f32.mrb[112].mxu1 }
 0x73e   : > { %6389 = vst.msk [vmem:[%s14108_s5 + $0x1f0] sm:$0xff] %vm6326_vm1, %v5993_v19  ;;  %v10832_v44 = vpop.eup %10831  ;;  %v5417_v27 = vadd.f32 %v14564_v49, %v5416_v14  ;;  %v8966_v4 = vpop.f32.mrb[113].mxu1 }
 0x73f   : > { %v5997_v31 = vpop.f32.mrb[2].mxu0  ;;  %9375 = vmatmul.mubr.f32.gmra.mrb[108].mxu0 %v10832_v44 }
 0x740   : > { %v5998_v21 = vadd.f32 %v14416_v2, %v5997_v31  ;;  %v9217_v48 = vpop.f32.mrb[3].mxu0  ;;  %10837 = vtanh.f32 %v5417_v27  ;;  %9377 = vmatprep.mubr.msk.f32.mxu0 %vm10890_vm0, %v10891_v33 }
 0x741   : > { %v5421_v45 = vpop.f32.mrb[114].mxu1 }
 0x742   : > { %6390 = vst.msk [vmem:[%s14108_s5 + $0x1f8] sm:$0xff] %vm6326_vm1, %v5998_v21  ;;  %v10834_v20 = vpop.eup %10833  ;;  %v5422_v9 = vadd.f32 %v14564_v49, %v5421_v45  ;;  %v8969_v42 = vpop.f32.mrb[115].mxu1 }
 0x743   : > { %v6002_v18 = vpop.f32.mrb[4].mxu0  ;;  %9378 = vmatmul.mubr.f32.gmra.mrb[110].mxu0 %v10834_v20 }
 0x744   : > { %v6003_v7 = vadd.f32 %v14416_v2, %v6002_v18  ;;  %v9220_v23 = vpop.f32.mrb[5].mxu0  ;;  %10839 = vtanh.f32 %v5422_v9  ;;  %9380 = vmatprep.mubr.msk.f32.mxu0 %vm10890_vm0, %v10891_v33 }
 0x745   : > { %v5426_v59 = vpop.f32.mrb[116].mxu1 }
 0x746   : > { %6391 = vst.msk [vmem:[%s14108_s5 + $0x200] sm:$0xff] %vm6326_vm1, %v6003_v7  ;;  %v10836_v37 = vpop.eup %10835  ;;  %v5427_v35 = vadd.f32 %v14564_v49, %v5426_v59  ;;  %v8972_v61 = vpop.f32.mrb[117].mxu1 }
 0x747   : > { %v6007_v3 = vpop.f32.mrb[6].mxu0  ;;  %9381 = vmatmul.mubr.f32.gmra.mrb[112].mxu0 %v10836_v37 }
 0x748   : > { %v6008_v12 = vadd.f32 %v14416_v2, %v6007_v3  ;;  %v9223_v56 = vpop.f32.mrb[7].mxu0  ;;  %10841 = vtanh.f32 %v5427_v35  ;;  %9383 = vmatprep.mubr.msk.f32.mxu0 %vm10890_vm0, %v10891_v33 }
 0x749   : > { %v5431_v1 = vpop.f32.mrb[118].mxu1 }
 0x74a   : > { %6392 = vst.msk [vmem:[%s14108_s5 + $0x208] sm:$0xff] %vm6326_vm1, %v6008_v12  ;;  %v10838_v28 = vpop.eup %10837  ;;  %v5432_v30 = vadd.f32 %v14564_v49, %v5431_v1  ;;  %v8975_v16 = vpop.f32.mrb[119].mxu1 }
 0x74b   : > { %v6012_v57 = vpop.f32.mrb[8].mxu0  ;;  %9384 = vmatmul.mubr.f32.gmra.mrb[114].mxu0 %v10838_v28 }
 0x74c   : > { %v6013_v51 = vadd.f32 %v14416_v2, %v6012_v57  ;;  %v9226_v58 = vpop.f32.mrb[9].mxu0  ;;  %10843 = vtanh.f32 %v5432_v30  ;;  %9386 = vmatprep.mubr.msk.f32.mxu0 %vm10890_vm0, %v10891_v33 }
 0x74d   : > { %v5436_v36 = vpop.f32.mrb[120].mxu1 }
 0x74e   : > { %6393 = vst.msk [vmem:[%s14108_s5 + $0x210] sm:$0xff] %vm6326_vm1, %v6013_v51  ;;  %v10840_v29 = vpop.eup %10839  ;;  %v5437_v8 = vadd.f32 %v14564_v49, %v5436_v36  ;;  %v8978_v39 = vpop.f32.mrb[121].mxu1 }
 0x74f   : > { %v6017_v17 = vpop.f32.mrb[10].mxu0  ;;  %9387 = vmatmul.mubr.f32.gmra.mrb[116].mxu0 %v10840_v29 }
 0x750   : > { %v6018_v52 = vadd.f32 %v14416_v2, %v6017_v17  ;;  %v9229_v62 = vpop.f32.mrb[11].mxu0  ;;  %10845 = vtanh.f32 %v5437_v8  ;;  %9389 = vmatprep.mubr.msk.f32.mxu0 %vm10890_vm0, %v10891_v33 }
 0x751   : > { %v5441_v34 = vpop.f32.mrb[122].mxu1 }
 0x752   : > { %6394 = vst.msk [vmem:[%s14108_s5 + $0x218] sm:$0xff] %vm6326_vm1, %v6018_v52  ;;  %v10842_v11 = vpop.eup %10841  ;;  %v5442_v63 = vadd.f32 %v14564_v49, %v5441_v34  ;;  %v8981_v26 = vpop.f32.mrb[123].mxu1 }
 0x753   : > { %v6022_v53 = vpop.f32.mrb[12].mxu0  ;;  %9390 = vmatmul.mubr.f32.gmra.mrb[118].mxu0 %v10842_v11 }
 0x754   : > { %v6023_v5 = vadd.f32 %v14416_v2, %v6022_v53  ;;  %v9232_v47 = vpop.f32.mrb[13].mxu0  ;;  %10847 = vtanh.f32 %v5442_v63  ;;  %9392 = vmatprep.mubr.msk.f32.mxu0 %vm10890_vm0, %v10891_v33 }
 0x755   : > { %v5446_v0 = vpop.f32.mrb[124].mxu1 }
 0x756   : > { %6395 = vst.msk [vmem:[%s14108_s5 + $0x220] sm:$0xff] %vm6326_vm1, %v6023_v5  ;;  %v10844_v43 = vpop.eup %10843  ;;  %v5447_v24 = vadd.f32 %v14564_v49, %v5446_v0  ;;  %v8984_v22 = vpop.f32.mrb[125].mxu1 }
 0x757   : > { %v6027_v15 = vpop.f32.mrb[14].mxu0  ;;  %9393 = vmatmul.mubr.f32.gmra.mrb[120].mxu0 %v10844_v43 }
 0x758   : > { %v6028_v13 = vadd.f32 %v14416_v2, %v6027_v15  ;;  %v9235_v25 = vpop.f32.mrb[15].mxu0  ;;  %10849 = vtanh.f32 %v5447_v24  ;;  %9395 = vmatprep.mubr.msk.f32.mxu0 %vm10890_vm0, %v10891_v33 }
 0x759   : > { %v5451_v60 = vpop.f32.mrb[126].mxu1 }
 0x75a   : > { %6396 = vst.msk [vmem:[%s14108_s5 + $0x228] sm:$0xff] %vm6326_vm1, %v6028_v13  ;;  %v10846_v40 = vpop.eup %10845  ;;  %v5452_v10 = vadd.f32 %v14564_v49, %v5451_v60  ;;  %v8987_v55 = vpop.f32.mrb[127].mxu1 }
 0x75b   : > { %v6032_v32 = vpop.f32.mrb[16].mxu0  ;;  %9396 = vmatmul.mubr.f32.gmra.mrb[122].mxu0 %v10846_v40 }
 0x75c   : > { %v6033_v50 = vadd.f32 %v14416_v2, %v6032_v32  ;;  %v9238_v41 = vpop.f32.mrb[17].mxu0  ;;  %10851 = vtanh.f32 %v5452_v10  ;;  %9398 = vmatprep.mubr.msk.f32.mxu0 %vm10890_vm0, %v10891_v33 }
 0x75d   : > { %v5456_v38 = vpop.f32.mrb[128].mxu1 }
 0x75e   : > { %6397 = vst.msk [vmem:[%s14108_s5 + $0x230] sm:$0xff] %vm6326_vm1, %v6033_v50  ;;  %v10848_v54 = vpop.eup %10847  ;;  %v5457_v6 = vadd.f32 %v14564_v49, %v5456_v38  ;;  %v8990_v19 = vpop.f32.mrb[129].mxu1 }
 0x75f   : > { %v6037_v46 = vpop.f32.mrb[18].mxu0  ;;  %9399 = vmatmul.mubr.f32.gmra.mrb[124].mxu0 %v10848_v54 }
 0x760   : > { %v6038_v14 = vadd.f32 %v14416_v2, %v6037_v46  ;;  %v9241_v44 = vpop.f32.mrb[19].mxu0  ;;  %10853 = vtanh.f32 %v5457_v6  ;;  %9401 = vmatprep.mubr.msk.f32.mxu0 %vm10890_vm0, %v10891_v33 }
 0x761   : > { %v5461_v27 = vpop.f32.mrb[130].mxu1 }
 0x762   : > { %6398 = vst.msk [vmem:[%s14108_s5 + $0x238] sm:$0xff] %vm6326_vm1, %v6038_v14  ;;  %v10850_v4 = vpop.eup %10849  ;;  %v5462_v31 = vadd.f32 %v14564_v49, %v5461_v27  ;;  %v8993_v21 = vpop.f32.mrb[131].mxu1 }
 0x763   : > { %v6042_v48 = vpop.f32.mrb[20].mxu0  ;;  %9402 = vmatmul.mubr.f32.gmra.mrb[126].mxu0 %v10850_v4 }
 0x764   : > { %v6043_v45 = vadd.f32 %v14416_v2, %v6042_v48  ;;  %v9244_v20 = vpop.f32.mrb[21].mxu0  ;;  %10855 = vtanh.f32 %v5462_v31  ;;  %9404 = vmatprep.mubr.msk.f32.mxu0 %vm10890_vm0, %v10891_v33 }
 0x766   : > { %6399 = vst.msk [vmem:[%s14108_s5 + $0x240] sm:$0xff] %vm6326_vm1, %v6043_v45  ;;  %v10852_v9 = vpop.eup %10851  ;;  %v6047_v42 = vpop.f32.mrb[22].mxu0 }
 0x767   : > { %v6048_v18 = vadd.f32 %v14416_v2, %v6047_v42  ;;  %v9247_v7 = vpop.f32.mrb[23].mxu0  ;;  %9405 = vmatmul.mubr.f32.gmra.mrb[128].mxu0 %v10852_v9 }
 0x768   : > { %9407 = vmatprep.mubr.msk.f32.mxu0 %vm10890_vm0, %v10891_v33 }
 0x769   : > { %6400 = vst.msk [vmem:[%s14108_s5 + $0x248] sm:$0xff] %vm6326_vm1, %v6048_v18 }
 0x76a   : > { %v10854_v49 = vpop.eup %10853  ;;  %v6052_v23 = vpop.f32.mrb[24].mxu0 }
 0x76b   : > { %v6053_v59 = vadd.f32 %v14416_v2, %v6052_v23  ;;  %v9250_v37 = vpop.f32.mrb[25].mxu0  ;;  %9408 = vmatmul.mubr.f32.gmra.mrb[130].mxu0 %v10854_v49 }
 0x76c   : > { %9410 = vmatprep.mubr.msk.f32.mxu0 %vm10890_vm0, %v10891_v33 }
 0x76d   : > { %6401 = vst.msk [vmem:[%s14108_s5 + $0x250] sm:$0xff] %vm6326_vm1, %v6053_v59 }
 0x76e   : > { %v10856_v35 = vpop.eup %10855  ;;  %v6057_v61 = vpop.f32.mrb[26].mxu0 }
 0x76f   : > { %v6058_v3 = vadd.f32 %v14416_v2, %v6057_v61  ;;  %v9253_v12 = vpop.f32.mrb[27].mxu0  ;;  %9411 = vmatmul.mubr.f32.gmra.mrb[132].mxu0 %v10856_v35 }
 0x771   : > { %6402 = vst.msk [vmem:[%s14108_s5 + $0x258] sm:$0xff] %vm6326_vm1, %v6058_v3 }
 0x772   : > { %v6062_v56 = vpop.f32.mrb[28].mxu0 }
 0x773   : > { %v6063_v1 = vadd.f32 %v14416_v2, %v6062_v56  ;;  %v9256_v28 = vpop.f32.mrb[29].mxu0 }
 0x775   : > { %6403 = vst.msk [vmem:[%s14108_s5 + $0x260] sm:$0xff] %vm6326_vm1, %v6063_v1 }
 0x776   : > { %v6067_v33 = vpop.f32.mrb[30].mxu0 }
 0x777   : > { %v6068_v30 = vadd.f32 %v14416_v2, %v6067_v33  ;;  %v9259_v16 = vpop.f32.mrb[31].mxu0 }
 0x779   : > { %6404 = vst.msk [vmem:[%s14108_s5 + $0x268] sm:$0xff] %vm6326_vm1, %v6068_v30 }
 0x77a   : > { %v6072_v57 = vpop.f32.mrb[32].mxu0 }
 0x77b   : > { %v6073_v51 = vadd.f32 %v14416_v2, %v6072_v57  ;;  %v9262_v58 = vpop.f32.mrb[33].mxu0 }
 0x77d   : > { %6405 = vst.msk [vmem:[%s14108_s5 + $0x270] sm:$0xff] %vm6326_vm1, %v6073_v51 }
 0x77e   : > { %v6077_v36 = vpop.f32.mrb[34].mxu0 }
 0x77f   : > { %v6078_v29 = vadd.f32 %v14416_v2, %v6077_v36  ;;  %v9265_v8 = vpop.f32.mrb[35].mxu0 }
 0x781   : > { %6406 = vst.msk [vmem:[%s14108_s5 + $0x278] sm:$0xff] %vm6326_vm1, %v6078_v29 }
 0x782   : > { %v6082_v39 = vpop.f32.mrb[36].mxu0 }
 0x783   : > { %v6083_v17 = vadd.f32 %v14416_v2, %v6082_v39  ;;  %v9268_v52 = vpop.f32.mrb[37].mxu0 }
 0x785   : > { %6407 = vst.msk [vmem:[%s14108_s5 + $0x280] sm:$0xff] %vm6326_vm1, %v6083_v17 }
 0x786   : > { %v6087_v62 = vpop.f32.mrb[38].mxu0 }
 0x787   : > { %v6088_v34 = vadd.f32 %v14416_v2, %v6087_v62  ;;  %v9271_v11 = vpop.f32.mrb[39].mxu0 }
 0x789   : > { %6408 = vst.msk [vmem:[%s14108_s5 + $0x288] sm:$0xff] %vm6326_vm1, %v6088_v34 }
 0x78a   : > { %v6092_v63 = vpop.f32.mrb[40].mxu0 }
 0x78b   : > { %v6093_v26 = vadd.f32 %v14416_v2, %v6092_v63  ;;  %v9274_v53 = vpop.f32.mrb[41].mxu0 }
 0x78d   : > { %6409 = vst.msk [vmem:[%s14108_s5 + $0x290] sm:$0xff] %vm6326_vm1, %v6093_v26 }
 0x78e   : > { %v6097_v5 = vpop.f32.mrb[42].mxu0 }
 0x78f   : > { %v6098_v47 = vadd.f32 %v14416_v2, %v6097_v5  ;;  %v9277_v0 = vpop.f32.mrb[43].mxu0 }
 0x791   : > { %6410 = vst.msk [vmem:[%s14108_s5 + $0x298] sm:$0xff] %vm6326_vm1, %v6098_v47  ;;  %v14732_v47 = vld [vmem:[%s14815_s3 + $0x5] ss:$0 sm:$0xff] }
 0x792   : > { %v6102_v43 = vpop.f32.mrb[44].mxu0 }
 0x793   : > { %v6103_v24 = vadd.f32 %v14416_v2, %v6102_v43  ;;  %v9280_v22 = vpop.f32.mrb[45].mxu0 }
 0x795   : > { %6411 = vst.msk [vmem:[%s14108_s5 + $0x2a0] sm:$0xff] %vm6326_vm1, %v6103_v24 }
 0x796   : > { %v6107_v15 = vpop.f32.mrb[46].mxu0 }
 0x797   : > { %v6108_v13 = vadd.f32 %v14416_v2, %v6107_v15  ;;  %v9283_v25 = vpop.f32.mrb[47].mxu0 }
 0x799   : > { %6412 = vst.msk [vmem:[%s14108_s5 + $0x2a8] sm:$0xff] %vm6326_vm1, %v6108_v13 }
 0x79a   : > { %v6112_v60 = vpop.f32.mrb[48].mxu0 }
 0x79b   : > { %v6113_v40 = vadd.f32 %v14416_v2, %v6112_v60  ;;  %v9286_v10 = vpop.f32.mrb[49].mxu0 }
 0x79d   : > { %6413 = vst.msk [vmem:[%s14108_s5 + $0x2b0] sm:$0xff] %vm6326_vm1, %v6113_v40 }
 0x79e   : > { %v6117_v55 = vpop.f32.mrb[50].mxu0 }
 0x79f   : > { %v6118_v32 = vadd.f32 %v14416_v2, %v6117_v55  ;;  %v9289_v50 = vpop.f32.mrb[51].mxu0 }
 0x7a1   : > { %6414 = vst.msk [vmem:[%s14108_s5 + $0x2b8] sm:$0xff] %vm6326_vm1, %v6118_v32 }
 0x7a2   : > { %v6122_v41 = vpop.f32.mrb[52].mxu0 }
 0x7a3   : > { %v6123_v38 = vadd.f32 %v14416_v2, %v6122_v41  ;;  %v9292_v54 = vpop.f32.mrb[53].mxu0 }
 0x7a5   : > { %6415 = vst.msk [vmem:[%s14108_s5 + $0x2c0] sm:$0xff] %vm6326_vm1, %v6123_v38 }
 0x7a6   : > { %v6127_v6 = vpop.f32.mrb[54].mxu0 }
 0x7a7   : > { %v6128_v19 = vadd.f32 %v14416_v2, %v6127_v6  ;;  %v9295_v46 = vpop.f32.mrb[55].mxu0 }
 0x7a9   : > { %6416 = vst.msk [vmem:[%s14108_s5 + $0x2c8] sm:$0xff] %vm6326_vm1, %v6128_v19 }
 0x7aa   : > { %v6132_v14 = vpop.f32.mrb[56].mxu0 }
 0x7ab   : > { %v6133_v44 = vadd.f32 %v14416_v2, %v6132_v14  ;;  %v9298_v27 = vpop.f32.mrb[57].mxu0 }
 0x7ad   : > { %6417 = vst.msk [vmem:[%s14108_s5 + $0x2d0] sm:$0xff] %vm6326_vm1, %v6133_v44 }
 0x7ae   : > { %v6137_v4 = vpop.f32.mrb[58].mxu0 }
 0x7af   : > { %v6138_v31 = vadd.f32 %v14416_v2, %v6137_v4  ;;  %v9301_v21 = vpop.f32.mrb[59].mxu0 }
 0x7b1   : > { %6418 = vst.msk [vmem:[%s14108_s5 + $0x2d8] sm:$0xff] %vm6326_vm1, %v6138_v31 }
 0x7b2   : > { %v6142_v48 = vpop.f32.mrb[60].mxu0 }
 0x7b3   : > { %v6143_v45 = vadd.f32 %v14416_v2, %v6142_v48  ;;  %v9304_v20 = vpop.f32.mrb[61].mxu0 }
 0x7b5   : > { %6419 = vst.msk [vmem:[%s14108_s5 + $0x2e0] sm:$0xff] %vm6326_vm1, %v6143_v45 }
 0x7b6   : > { %v6147_v9 = vpop.f32.mrb[62].mxu0 }
 0x7b7   : > { %v6148_v42 = vadd.f32 %v14416_v2, %v6147_v9  ;;  %v9307_v18 = vpop.f32.mrb[63].mxu0 }
 0x7b9   : > { %6420 = vst.msk [vmem:[%s14108_s5 + $0x2e8] sm:$0xff] %vm6326_vm1, %v6148_v42 }
 0x7ba   : > { %v6152_v7 = vpop.f32.mrb[64].mxu0 }
 0x7bb   : > { %v6153_v49 = vadd.f32 %v14416_v2, %v6152_v7  ;;  %v9310_v23 = vpop.f32.mrb[65].mxu0 }
 0x7bd   : > { %6421 = vst.msk [vmem:[%s14108_s5 + $0x2f0] sm:$0xff] %vm6326_vm1, %v6153_v49 }
 0x7be   : > { %v6157_v59 = vpop.f32.mrb[66].mxu0 }
 0x7bf   : > { %v6158_v37 = vadd.f32 %v14416_v2, %v6157_v59  ;;  %v9313_v35 = vpop.f32.mrb[67].mxu0 }
 0x7c1   : > { %6422 = vst.msk [vmem:[%s14108_s5 + $0x2f8] sm:$0xff] %vm6326_vm1, %v6158_v37 }
 0x7c2   : > { %v6162_v61 = vpop.f32.mrb[68].mxu0 }
 0x7c3   : > { %v6163_v3 = vadd.f32 %v14416_v2, %v6162_v61  ;;  %v9316_v12 = vpop.f32.mrb[69].mxu0 }
 0x7c5   : > { %6423 = vst.msk [vmem:[%s14108_s5 + $0x300] sm:$0xff] %vm6326_vm1, %v6163_v3 }
 0x7c6   : > { %v6167_v56 = vpop.f32.mrb[70].mxu0 }
 0x7c7   : > { %v6168_v1 = vadd.f32 %v14416_v2, %v6167_v56  ;;  %v9319_v28 = vpop.f32.mrb[71].mxu0 }
 0x7c9   : > { %6424 = vst.msk [vmem:[%s14108_s5 + $0x308] sm:$0xff] %vm6326_vm1, %v6168_v1 }
 0x7ca   : > { %v6172_v33 = vpop.f32.mrb[72].mxu0 }
 0x7cb   : > { %v6173_v30 = vadd.f32 %v14416_v2, %v6172_v33  ;;  %v9322_v16 = vpop.f32.mrb[73].mxu0 }
 0x7cd   : > { %6425 = vst.msk [vmem:[%s14108_s5 + $0x310] sm:$0xff] %vm6326_vm1, %v6173_v30 }
 0x7ce   : > { %v6177_v57 = vpop.f32.mrb[74].mxu0 }
 0x7cf   : > { %v6178_v51 = vadd.f32 %v14416_v2, %v6177_v57  ;;  %v9325_v58 = vpop.f32.mrb[75].mxu0 }
 0x7d1   : > { %6426 = vst.msk [vmem:[%s14108_s5 + $0x318] sm:$0xff] %vm6326_vm1, %v6178_v51 }
 0x7d2   : > { %v6182_v36 = vpop.f32.mrb[76].mxu0 }
 0x7d3   : > { %v6183_v29 = vadd.f32 %v14416_v2, %v6182_v36  ;;  %v9328_v8 = vpop.f32.mrb[77].mxu0 }
 0x7d5   : > { %6427 = vst.msk [vmem:[%s14108_s5 + $0x320] sm:$0xff] %vm6326_vm1, %v6183_v29 }
 0x7d6   : > { %v6187_v39 = vpop.f32.mrb[78].mxu0 }
 0x7d7   : > { %v6188_v17 = vadd.f32 %v14416_v2, %v6187_v39  ;;  %v9331_v52 = vpop.f32.mrb[79].mxu0 }
 0x7d9   : > { %6428 = vst.msk [vmem:[%s14108_s5 + $0x328] sm:$0xff] %vm6326_vm1, %v6188_v17 }
 0x7da   : > { %v6192_v62 = vpop.f32.mrb[80].mxu0 }
 0x7db   : > { %v6193_v34 = vadd.f32 %v14416_v2, %v6192_v62  ;;  %v9334_v11 = vpop.f32.mrb[81].mxu0 }
 0x7dd   : > { %6429 = vst.msk [vmem:[%s14108_s5 + $0x330] sm:$0xff] %vm6326_vm1, %v6193_v34 }
 0x7de   : > { %v6197_v63 = vpop.f32.mrb[82].mxu0 }
 0x7df   : > { %v6198_v26 = vadd.f32 %v14416_v2, %v6197_v63  ;;  %v9337_v53 = vpop.f32.mrb[83].mxu0 }
 0x7e1   : > { %6430 = vst.msk [vmem:[%s14108_s5 + $0x338] sm:$0xff] %vm6326_vm1, %v6198_v26 }
 0x7e2   : > { %v6202_v5 = vpop.f32.mrb[84].mxu0 }
 0x7e3   : > { %v6203_v0 = vadd.f32 %v14732_v47, %v6202_v5  ;;  %v9340_v43 = vpop.f32.mrb[85].mxu0 }
 0x7e5   : > { %6431 = vst.msk [vmem:[%s14108_s5 + $0x340] sm:$0xff] %vm6326_vm1, %v6203_v0 }
 0x7e6   : > { %v6207_v24 = vpop.f32.mrb[86].mxu0 }
 0x7e7   : > { %v6208_v22 = vadd.f32 %v14732_v47, %v6207_v24  ;;  %v9343_v2 = vpop.f32.mrb[87].mxu0 }
 0x7e9   : > { %6432 = vst.msk [vmem:[%s14108_s5 + $0x348] sm:$0xff] %vm6326_vm1, %v6208_v22 }
 0x7ea   : > { %v6212_v15 = vpop.f32.mrb[88].mxu0 }
 0x7eb   : > { %v6213_v13 = vadd.f32 %v14732_v47, %v6212_v15  ;;  %v9346_v25 = vpop.f32.mrb[89].mxu0 }
 0x7ed   : > { %6433 = vst.msk [vmem:[%s14108_s5 + $0x350] sm:$0xff] %vm6326_vm1, %v6213_v13 }
 0x7ee   : > { %v6217_v60 = vpop.f32.mrb[90].mxu0 }
 0x7ef   : > { %v6218_v40 = vadd.f32 %v14732_v47, %v6217_v60  ;;  %v9349_v10 = vpop.f32.mrb[91].mxu0 }
 0x7f1   : > { %6434 = vst.msk [vmem:[%s14108_s5 + $0x358] sm:$0xff] %vm6326_vm1, %v6218_v40 }
 0x7f2   : > { %v6222_v55 = vpop.f32.mrb[92].mxu0 }
 0x7f3   : > { %v6223_v32 = vadd.f32 %v14732_v47, %v6222_v55  ;;  %v9352_v50 = vpop.f32.mrb[93].mxu0 }
 0x7f5   : > { %6435 = vst.msk [vmem:[%s14108_s5 + $0x360] sm:$0xff] %vm6326_vm1, %v6223_v32 }
 0x7f6   : > { %v6227_v41 = vpop.f32.mrb[94].mxu0 }
 0x7f7   : > { %v6228_v38 = vadd.f32 %v14732_v47, %v6227_v41  ;;  %v9355_v54 = vpop.f32.mrb[95].mxu0 }
 0x7f9   : > { %6436 = vst.msk [vmem:[%s14108_s5 + $0x368] sm:$0xff] %vm6326_vm1, %v6228_v38 }
 0x7fa   : > { %v6232_v6 = vpop.f32.mrb[96].mxu0 }
 0x7fb   : > { %v6233_v19 = vadd.f32 %v14732_v47, %v6232_v6  ;;  %v9358_v46 = vpop.f32.mrb[97].mxu0 }
 0x7fd   : > { %6437 = vst.msk [vmem:[%s14108_s5 + $0x370] sm:$0xff] %vm6326_vm1, %v6233_v19 }
 0x7fe   : > { %v6237_v14 = vpop.f32.mrb[98].mxu0 }
 0x7ff   : > { %v6238_v44 = vadd.f32 %v14732_v47, %v6237_v14  ;;  %v9361_v27 = vpop.f32.mrb[99].mxu0 }
 0x801   : > { %6438 = vst.msk [vmem:[%s14108_s5 + $0x378] sm:$0xff] %vm6326_vm1, %v6238_v44 }
 0x802   : > { %v6242_v4 = vpop.f32.mrb[100].mxu0 }
 0x803   : > { %v6243_v31 = vadd.f32 %v14732_v47, %v6242_v4  ;;  %v9364_v21 = vpop.f32.mrb[101].mxu0 }
 0x805   : > { %6439 = vst.msk [vmem:[%s14108_s5 + $0x380] sm:$0xff] %vm6326_vm1, %v6243_v31 }
 0x806   : > { %v6247_v48 = vpop.f32.mrb[102].mxu0 }
 0x807   : > { %v6248_v45 = vadd.f32 %v14732_v47, %v6247_v48  ;;  %v9367_v20 = vpop.f32.mrb[103].mxu0 }
 0x809   : > { %6440 = vst.msk [vmem:[%s14108_s5 + $0x388] sm:$0xff] %vm6326_vm1, %v6248_v45 }
 0x80a   : > { %v6252_v9 = vpop.f32.mrb[104].mxu0 }
 0x80b   : > { %v6253_v42 = vadd.f32 %v14732_v47, %v6252_v9  ;;  %v9370_v18 = vpop.f32.mrb[105].mxu0 }
 0x80d   : > { %6441 = vst.msk [vmem:[%s14108_s5 + $0x390] sm:$0xff] %vm6326_vm1, %v6253_v42 }
 0x80e   : > { %v6257_v7 = vpop.f32.mrb[106].mxu0 }
 0x80f   : > { %v6258_v49 = vadd.f32 %v14732_v47, %v6257_v7  ;;  %v9373_v23 = vpop.f32.mrb[107].mxu0 }
 0x811   : > { %6442 = vst.msk [vmem:[%s14108_s5 + $0x398] sm:$0xff] %vm6326_vm1, %v6258_v49 }
 0x812   : > { %v6262_v59 = vpop.f32.mrb[108].mxu0 }
 0x813   : > { %v6263_v37 = vadd.f32 %v14732_v47, %v6262_v59  ;;  %v9376_v35 = vpop.f32.mrb[109].mxu0 }
 0x815   : > { %6443 = vst.msk [vmem:[%s14108_s5 + $0x3a0] sm:$0xff] %vm6326_vm1, %v6263_v37 }
 0x816   : > { %v6267_v61 = vpop.f32.mrb[110].mxu0 }
 0x817   : > { %v6268_v3 = vadd.f32 %v14732_v47, %v6267_v61  ;;  %v9379_v12 = vpop.f32.mrb[111].mxu0 }
 0x819   : > { %6444 = vst.msk [vmem:[%s14108_s5 + $0x3a8] sm:$0xff] %vm6326_vm1, %v6268_v3 }
 0x81a   : > { %v6272_v56 = vpop.f32.mrb[112].mxu0 }
 0x81b   : > { %v6273_v1 = vadd.f32 %v14732_v47, %v6272_v56  ;;  %v9382_v28 = vpop.f32.mrb[113].mxu0 }
 0x81d   : > { %6445 = vst.msk [vmem:[%s14108_s5 + $0x3b0] sm:$0xff] %vm6326_vm1, %v6273_v1 }
 0x81e   : > { %v6277_v33 = vpop.f32.mrb[114].mxu0 }
 0x81f   : > { %v6278_v30 = vadd.f32 %v14732_v47, %v6277_v33  ;;  %v9385_v16 = vpop.f32.mrb[115].mxu0 }
 0x821   : > { %6446 = vst.msk [vmem:[%s14108_s5 + $0x3b8] sm:$0xff] %vm6326_vm1, %v6278_v30 }
 0x822   : > { %v6282_v57 = vpop.f32.mrb[116].mxu0 }
 0x823   : > { %v6283_v51 = vadd.f32 %v14732_v47, %v6282_v57  ;;  %v9388_v58 = vpop.f32.mrb[117].mxu0 }
 0x825   : > { %6447 = vst.msk [vmem:[%s14108_s5 + $0x3c0] sm:$0xff] %vm6326_vm1, %v6283_v51 }
 0x826   : > { %v6287_v36 = vpop.f32.mrb[118].mxu0 }
 0x827   : > { %v6288_v29 = vadd.f32 %v14732_v47, %v6287_v36  ;;  %v9391_v8 = vpop.f32.mrb[119].mxu0 }
 0x829   : > { %6448 = vst.msk [vmem:[%s14108_s5 + $0x3c8] sm:$0xff] %vm6326_vm1, %v6288_v29 }
 0x82a   : > { %v6292_v39 = vpop.f32.mrb[120].mxu0 }
 0x82b   : > { %v6293_v17 = vadd.f32 %v14732_v47, %v6292_v39  ;;  %v9394_v52 = vpop.f32.mrb[121].mxu0 }
 0x82d   : > { %6449 = vst.msk [vmem:[%s14108_s5 + $0x3d0] sm:$0xff] %vm6326_vm1, %v6293_v17 }
 0x82e   : > { %v6297_v62 = vpop.f32.mrb[122].mxu0 }
 0x82f   : > { %v6298_v34 = vadd.f32 %v14732_v47, %v6297_v62  ;;  %v9397_v11 = vpop.f32.mrb[123].mxu0 }
 0x831   : > { %6450 = vst.msk [vmem:[%s14108_s5 + $0x3d8] sm:$0xff] %vm6326_vm1, %v6298_v34 }
 0x832   : > { %v6302_v63 = vpop.f32.mrb[124].mxu0 }
 0x833   : > { %v6303_v26 = vadd.f32 %v14732_v47, %v6302_v63  ;;  %v9400_v53 = vpop.f32.mrb[125].mxu0 }
 0x835   : > { %6451 = vst.msk [vmem:[%s14108_s5 + $0x3e0] sm:$0xff] %vm6326_vm1, %v6303_v26 }
 0x836   : > { %v6307_v5 = vpop.f32.mrb[126].mxu0 }
 0x837   : > { %v6308_v0 = vadd.f32 %v14732_v47, %v6307_v5  ;;  %v9403_v43 = vpop.f32.mrb[127].mxu0 }
 0x839   : > { %6452 = vst.msk [vmem:[%s14108_s5 + $0x3e8] sm:$0xff] %vm6326_vm1, %v6308_v0 }
 0x83a   : > { %v6312_v24 = vpop.f32.mrb[128].mxu0 }
 0x83b   : > { %v6313_v22 = vadd.f32 %v14732_v47, %v6312_v24  ;;  %v9406_v2 = vpop.f32.mrb[129].mxu0 }
 0x83d   : > { %6453 = vst.msk [vmem:[%s14108_s5 + $0x3f0] sm:$0xff] %vm6326_vm1, %v6313_v22 }
 0x83e   : > { %v6317_v15 = vpop.f32.mrb[130].mxu0 }
 0x83f   : > { %v6318_v13 = vadd.f32 %v14732_v47, %v6317_v15  ;;  %v9409_v25 = vpop.f32.mrb[131].mxu0 }
 0x841   : > { %6454 = vst.msk [vmem:[%s14108_s5 + $0x3f8] sm:$0xff] %vm6326_vm1, %v6318_v13 }
 0x842   : > { %v6322_v60 = vpop.f32.mrb[132].mxu0 }
 0x843   : > { %v6323_v40 = vadd.f32 %v14732_v47, %v6322_v60  ;;  %v9412_v10 = vpop.f32.mrb[133].mxu0 }
 0x845   : > { %6455 = vst.msk [vmem:[%s14108_s5 + $0x400] sm:$0xff] %vm6326_vm1, %v6323_v40 }
 0x846 PF: > { %s14_s15 = sadd.s32 1, %s10885_s15  }
 0x847   : > { %p11_p4 = scmp.ge.s32.totalorder %s14_s15, 4  }
 0x849   :  { %13 = sbr.rel (!%p11_p4) target bundleno = 1 (0x1), region = 70 }

</bundles_post_ra>
